<compile_context>
chip_gen: v5e
topology: v5e:2x2
jax: 0.10.0
libtpu: 0.0.40
codegen_flags: <defaults>
</compile_context>

<pallas_src>
import functools
import math

import jax
import jax.numpy as jnp
from jax.experimental import pallas as pl
from jax.experimental.pallas import tpu as pltpu

# ----------------------------------------------------------------------------
# Small-model hyperparameters (consistent with DiscreteVAE.__init__ semantics)
# ----------------------------------------------------------------------------
IMAGE_SIZE = 16          # power of 2
NUM_TOKENS = 32
CODEBOOK_DIM = 32
NUM_LAYERS = 2
NUM_RESNET_BLOCKS = 1
HIDDEN_DIM = 16
CHANNELS = 3
TEMPERATURE = 0.9
STRAIGHT_THROUGH = False
KL_DIV_LOSS_WEIGHT = 0.0
NORM_MEANS = (0.5,) * CHANNELS
NORM_STDS = (0.5,) * CHANNELS


def _round_up(x, m):
    return ((x + m - 1) // m) * m


# ----------------------------------------------------------------------------
# Pallas kernel: matmul + bias (+ fused ReLU), single block (M <= 512 here)
# ----------------------------------------------------------------------------
def _mm_bias_kernel(x_ref, w_ref, b_ref, o_ref, *, relu):
    acc = jnp.dot(x_ref[...], w_ref[...], preferred_element_type=jnp.float32)
    acc = acc + b_ref[...]
    if relu:
        acc = jnp.maximum(acc, 0.0)
    o_ref[...] = acc


def matmul_bias(x, w, b, relu=False):
    """(M,K) @ (K,N) + b, optional fused ReLU.  bf16 operands, f32 accumulate."""
    M, K = x.shape
    N = w.shape[1]
    return pl.pallas_call(
        functools.partial(_mm_bias_kernel, relu=relu),
        out_shape=jax.ShapeDtypeStruct((M, N), jnp.float32),
        grid=(1,),
        in_specs=[
            pl.BlockSpec((M, K), lambda i: (0, 0)),
            pl.BlockSpec((K, N), lambda i: (0, 0)),
            pl.BlockSpec((1, N), lambda i: (0, 0)),
        ],
        out_specs=pl.BlockSpec((M, N), lambda i: (0, 0)),
    )(x.astype(jnp.bfloat16), w.astype(jnp.bfloat16),
      b.reshape(1, N).astype(jnp.float32))


# ----------------------------------------------------------------------------
# In-kernel 3x3 "same" conv on flattened rows (no im2col, no HBM intermediates)
# The source ref is row-padded by P zero rows on both sides; the contribution
# of tap (di, dj) is a static shifted slice of it, masked at image borders.
# ----------------------------------------------------------------------------
def _pixel_indices(M, H, W):
    row = jax.lax.broadcasted_iota(jnp.int32, (M, 1), 0)
    w_shift = int(math.log2(W))          # H, W are powers of two in this model
    i_idx = (row >> w_shift) & (H - 1)
    j_idx = row & (W - 1)
    return i_idx, j_idx


def _conv3x3_from_padded(src_ref, w_ref, b_ref, i_idx, j_idx, *,
                         M, H, W, CI, P, relu):
    acc = None
    t = 0
    for di in (-1, 0, 1):
        for dj in (-1, 0, 1):
            off = di * W + dj
            sh = src_ref[pl.ds(P + off, M), :]
            conds = []
            if di < 0:
                conds.append(i_idx >= -di)
            if di > 0:
                conds.append(i_idx < H - di)
            if dj < 0:
                conds.append(j_idx >= -dj)
            if dj > 0:
                conds.append(j_idx < W - dj)
            if conds:
                valid = conds[0]
                for c in conds[1:]:
                    valid = valid & c
                sh = jnp.where(valid, sh, 0.0)
            contrib = jnp.dot(sh, w_ref[pl.ds(t * CI, CI), :],
                              preferred_element_type=jnp.float32)
            acc = contrib if acc is None else acc + contrib
            t += 1
    acc = acc + b_ref[...]
    if relu:
        acc = jnp.maximum(acc, 0.0)
    return acc


def _conv3x3_kernel(xp_ref, w_ref, b_ref, o_ref, *, H, W, CI, P, relu):
    M = o_ref.shape[0]
    i_idx, j_idx = _pixel_indices(M, H, W)
    o_ref[...] = _conv3x3_from_padded(xp_ref, w_ref, b_ref, i_idx, j_idx,
                                      M=M, H=H, W=W, CI=CI, P=P, relu=relu)


def conv3x3_same(x_nhwc, wmat, bias, relu):
    """3x3, stride 1, pad 1 conv on NHWC; weight already as (9*CI, CO)."""
    B, H, W, CI = x_nhwc.shape
    M = B * H * W
    CO = wmat.shape[1]
    P = _round_up(W + 1, 8)
    xp = jnp.pad(x_nhwc.reshape(M, CI).astype(jnp.float32), ((P, P), (0, 0)))
    out = pl.pallas_call(
        functools.partial(_conv3x3_kernel, H=H, W=W, CI=CI, P=P, relu=relu),
        out_shape=jax.ShapeDtypeStruct((M, CO), jnp.float32),
        grid=(1,),
        in_specs=[
            pl.BlockSpec((M + 2 * P, CI), lambda i: (0, 0)),
            pl.BlockSpec((9 * CI, CO), lambda i: (0, 0)),
            pl.BlockSpec((1, CO), lambda i: (0, 0)),
        ],
        out_specs=pl.BlockSpec((M, CO), lambda i: (0, 0)),
    )(xp, wmat.astype(jnp.float32), bias.reshape(1, CO).astype(jnp.float32))
    return out.reshape(B, H, W, CO)


def conv3x3_weight_mat(w_oihw):
    """(CO, CI, 3, 3) -> (9*CI, CO), tap-major / input-channel-minor rows."""
    CO, CI, KH, KW = w_oihw.shape
    return jnp.transpose(w_oihw, (2, 3, 1, 0)).reshape(KH * KW * CI, CO)


# ----------------------------------------------------------------------------
# Fused ResBlock kernel: conv3x3 -> relu -> conv3x3 -> relu -> conv1x1 -> +x
# Intermediates stay in VMEM (scratch holds the row-padded conv1 output).
# ----------------------------------------------------------------------------
def _resblock_kernel(xp_ref, w1_ref, b1_ref, w2_ref, b2_ref, w3_ref, b3_ref,
                     o_ref, pad_ref, *, H, W, C, P):
    M = o_ref.shape[0]
    i_idx, j_idx = _pixel_indices(M, H, W)
    h = _conv3x3_from_padded(xp_ref, w1_ref, b1_ref, i_idx, j_idx,
                             M=M, H=H, W=W, CI=C, P=P, relu=True)
    pad_ref[...] = jnp.zeros_like(pad_ref)
    pad_ref[pl.ds(P, M), :] = h
    h = _conv3x3_from_padded(pad_ref, w2_ref, b2_ref, i_idx, j_idx,
                             M=M, H=H, W=W, CI=C, P=P, relu=True)
    h = jnp.dot(h, w3_ref[...], preferred_element_type=jnp.float32) + b3_ref[...]
    o_ref[...] = h + xp_ref[pl.ds(P, M), :]


def res_block(x_nhwc, p):
    B, H, W, C = x_nhwc.shape
    M = B * H * W
    P = _round_up(W + 1, 8)
    xp = jnp.pad(x_nhwc.reshape(M, C).astype(jnp.float32), ((P, P), (0, 0)))
    w1 = conv3x3_weight_mat(p["w1"])
    w2 = conv3x3_weight_mat(p["w2"])
    w3 = p["w3"].reshape(C, C).T                     # 1x1: (CO,CI,1,1)->(CI,CO)
    out = pl.pallas_call(
        functools.partial(_resblock_kernel, H=H, W=W, C=C, P=P),
        out_shape=jax.ShapeDtypeStruct((M, C), jnp.float32),
        grid=(1,),
        in_specs=[
            pl.BlockSpec((M + 2 * P, C), lambda i: (0, 0)),
            pl.BlockSpec((9 * C, C), lambda i: (0, 0)),
            pl.BlockSpec((1, C), lambda i: (0, 0)),
            pl.BlockSpec((9 * C, C), lambda i: (0, 0)),
            pl.BlockSpec((1, C), lambda i: (0, 0)),
            pl.BlockSpec((C, C), lambda i: (0, 0)),
            pl.BlockSpec((1, C), lambda i: (0, 0)),
        ],
        out_specs=pl.BlockSpec((M, C), lambda i: (0, 0)),
        scratch_shapes=[pltpu.VMEM((M + 2 * P, C), jnp.float32)],
    )(xp, w1, p["b1"].reshape(1, C), w2, p["b2"].reshape(1, C),
      w3, p["b3"].reshape(1, C))
    return out.reshape(B, H, W, C)


# ----------------------------------------------------------------------------
# Fused gumbel-softmax + codebook matmul + KL column-sum kernel
# ----------------------------------------------------------------------------
def _gumbel_code_kl_kernel(logits_ref, g_ref, cb_ref, samp_ref, kl_ref, *,
                           inv_tau, log_u, half_rows, compute_kl):
    x = logits_ref[...]
    # soft gumbel-softmax over the token axis
    # TODO(synk): straight_through=True (hard one-hot + ST estimator) not
    # implemented; the module default straight_through=False is reproduced.
    y = (x + g_ref[...]) * inv_tau
    y = y - jnp.max(y, axis=-1, keepdims=True)
    ey = jnp.exp(y)
    soft = ey / jnp.sum(ey, axis=-1, keepdims=True)
    samp_ref[...] = jnp.dot(soft, cb_ref[...],
                            preferred_element_type=jnp.float32)
    if compute_kl:
        m = jnp.max(x, axis=-1, keepdims=True)
        e = jnp.exp(x - m)
        s = jnp.sum(e, axis=-1, keepdims=True)
        log_q = (x - m) - jnp.log(s)
        q = e / s
        row = jax.lax.broadcasted_iota(jnp.int32, (x.shape[0], 1), 0)
        contrib = jnp.where(row < half_rows, q * (log_q - log_u), 0.0)
        kl_ref[...] = jnp.sum(contrib, axis=0, keepdims=True)
    else:
        kl_ref[...] = jnp.zeros_like(kl_ref)


def gumbel_codebook_kl(logits, gumbels, codebook, tau, half_rows):
    M, N = logits.shape
    D = codebook.shape[1]
    return pl.pallas_call(
        functools.partial(
            _gumbel_code_kl_kernel, inv_tau=1.0 / tau,
            log_u=math.log(1.0 / N), half_rows=half_rows,
            compute_kl=(KL_DIV_LOSS_WEIGHT != 0.0)),
        out_shape=(jax.ShapeDtypeStruct((M, D), jnp.float32),
                   jax.ShapeDtypeStruct((1, N), jnp.float32)),
        grid=(1,),
        in_specs=[
            pl.BlockSpec((M, N), lambda i: (0, 0)),
            pl.BlockSpec((M, N), lambda i: (0, 0)),
            pl.BlockSpec((N, D), lambda i: (0, 0)),
        ],
        out_specs=(pl.BlockSpec((M, D), lambda i: (0, 0)),
                   pl.BlockSpec((1, N), lambda i: (0, 0))),
    )(logits.astype(jnp.float32), gumbels.astype(jnp.float32),
      codebook.astype(jnp.float32))


# ----------------------------------------------------------------------------
# Conv via lean im2col (only the two strided 4x4 encoder convs use it; 1x1
# convs are pure matmuls)
# ----------------------------------------------------------------------------
def conv2d(x_nhwc, w_oihw, b, stride=1, pad=0, relu=False):
    B, H, W, C = x_nhwc.shape
    CO, CI, KH, KW = w_oihw.shape
    assert CI == C
    if KH == 1 and KW == 1 and stride == 1 and pad == 0:
        out = matmul_bias(x_nhwc.reshape(-1, C), w_oihw.reshape(CO, CI).T, b,
                          relu=relu)
        return out.reshape(B, H, W, CO)
    xp = jnp.pad(x_nhwc, ((0, 0), (pad, pad), (pad, pad), (0, 0)))
    Hp, Wp = H + 2 * pad, W + 2 * pad
    OH = (Hp - KH) // stride + 1
    OW = (Wp - KW) // stride + 1
    cols = [xp[:, i:i + OH * stride:stride, j:j + OW * stride:stride, :]
            for i in range(KH) for j in range(KW)]
    patches = jnp.concatenate(cols, axis=-1).reshape(B * OH * OW, KH * KW * C)
    wmat = jnp.transpose(w_oihw, (2, 3, 1, 0)).reshape(KH * KW * CI, CO)
    out = matmul_bias(patches, wmat, b, relu=relu)
    return out.reshape(B, OH, OW, CO)


# ----------------------------------------------------------------------------
# ConvTranspose2d(k=4, s=2, p=1) as sub-pixel 3x3 conv + pixel shuffle
# y[2m+r, 2n+s] only uses kernel taps A(r,di), A(s,dj) with
# A = {(0,-1):3, (0,0):1, (1,0):2, (1,1):0}; the rest are structural zeros.
# ----------------------------------------------------------------------------
_SUBPIX_TAP = {(0, -1): 3, (0, 0): 1, (1, 0): 2, (1, 1): 0}


def conv_transpose2d(x_nhwc, w_iohw, b, relu=False):
    B, H, W, CI = x_nhwc.shape
    CI_w, CO, KH, KW = w_iohw.shape
    assert CI_w == CI and KH == 4 and KW == 4
    wmat = jnp.zeros((9 * CI, 4 * CO), w_iohw.dtype)
    for r in (0, 1):
        for s in (0, 1):
            for di in (-1, 0, 1):
                a = _SUBPIX_TAP.get((r, di))
                if a is None:
                    continue
                for dj in (-1, 0, 1):
                    bb = _SUBPIX_TAP.get((s, dj))
                    if bb is None:
                        continue
                    t = (di + 1) * 3 + (dj + 1)
                    c0 = (r * 2 + s) * CO
                    wmat = wmat.at[t * CI:(t + 1) * CI, c0:c0 + CO].set(
                        w_iohw[:, :, a, bb])
    bias4 = jnp.tile(b, 4)
    y = conv3x3_same(x_nhwc, wmat, bias4, relu=relu)       # (B, H, W, 4*CO)
    y = y.reshape(B, H, W, 2, 2, CO)
    y = jnp.transpose(y, (0, 1, 3, 2, 4, 5)).reshape(B, 2 * H, 2 * W, CO)
    return y


# ----------------------------------------------------------------------------
# Model: encoder / decoder / forward
# ----------------------------------------------------------------------------
def encoder(x_nhwc, P, e1_w, e1_b):
    h = conv2d(x_nhwc, e1_w, e1_b, stride=2, pad=1, relu=True)       # 16 -> 8
    h = conv2d(h, P["e2_w"], P["e2_b"], stride=2, pad=1, relu=True)  # 8 -> 4
    h = res_block(h, P["enc_res"])
    return conv2d(h, P["eo_w"], P["eo_b"], stride=1, pad=0, relu=False)


def decoder(z_nhwc, P):
    h = conv2d(z_nhwc, P["din_w"], P["din_b"], stride=1, pad=0, relu=False)
    h = res_block(h, P["dec_res"])
    h = conv_transpose2d(h, P["d1_w"], P["d1_b"], relu=True)   # 4 -> 8
    h = conv_transpose2d(h, P["d2_w"], P["d2_b"], relu=True)   # 8 -> 16
    return conv2d(h, P["dout_w"], P["dout_b"], stride=1, pad=0, relu=False)


def discrete_vae_forward(params, img, img2, key):
    """img, img2: NCHW float32.  Returns (loss, recon) like the PyTorch module."""
    B, C, H, W = img.shape
    assert H == IMAGE_SIZE and W == IMAGE_SIZE

    # Both images go through the encoder as one batch of 2B.
    x = jnp.concatenate([img, img2], axis=0)
    x = jnp.transpose(x, (0, 2, 3, 1)).astype(jnp.float32)   # NCHW -> NHWC

    # Fold (x - mean) / std into the first conv: w' = w/std, b' = b - sum(w*mean/std)
    inv_std = (1.0 / params["norm_stds"]).astype(jnp.float32)
    e1_w = params["e1_w"] * inv_std[None, :, None, None]
    e1_b = params["e1_b"] - jnp.sum(
        params["e1_w"] * (params["norm_means"] * inv_std)[None, :, None, None],
        axis=(1, 2, 3))

    logits = encoder(x, params, e1_w, e1_b)          # (2B, h, w, num_tokens)
    bh, bw = logits.shape[1], logits.shape[2]
    l = logits.reshape(2 * B * bh * bw, NUM_TOKENS)

    g = jax.random.gumbel(key, l.shape, dtype=jnp.float32)
    sampled, kl_col = gumbel_codebook_kl(l, g, params["codebook"], TEMPERATURE,
                                         half_rows=B * bh * bw)
    s = sampled.reshape(2 * B, bh, bw, CODEBOOK_DIM)
    z = 0.5 * (s[:B] + s[B:])                        # (sampled + sampled2) / 2

    out_nhwc = decoder(z, params)
    out = jnp.transpose(out_nhwc, (0, 3, 1, 2))      # back to NCHW

    # F.kl_div(log_uniform, log_softmax(logits1), reduction='mean', log_target=True)
    kl = jnp.sum(kl_col) / (B * bh * bw * NUM_TOKENS)
    loss = kl * KL_DIV_LOSS_WEIGHT
    return loss, out


# ----------------------------------------------------------------------------
# Deterministic parameter init (PyTorch-like uniform fan-in bounds)
# ----------------------------------------------------------------------------
def init_params(key):
    keys = iter(jax.random.split(key, 64))

    def conv_init(cout, cin, kh, kw):
        bound = 1.0 / math.sqrt(cin * kh * kw)
        w = jax.random.uniform(next(keys), (cout, cin, kh, kw), jnp.float32,
                               -bound, bound)
        b = jax.random.uniform(next(keys), (cout,), jnp.float32, -bound, bound)
        return w, b

    def convT_init(cin, cout, kh, kw):
        bound = 1.0 / math.sqrt(cin * kh * kw)
        w = jax.random.uniform(next(keys), (cin, cout, kh, kw), jnp.float32,
                               -bound, bound)
        b = jax.random.uniform(next(keys), (cout,), jnp.float32, -bound, bound)
        return w, b

    def resblock_init(chan):
        w1, b1 = conv_init(chan, chan, 3, 3)
        w2, b2 = conv_init(chan, chan, 3, 3)
        w3, b3 = conv_init(chan, chan, 1, 1)
        return {"w1": w1, "b1": b1, "w2": w2, "b2": b2, "w3": w3, "b3": b3}

    P = {}
    # encoder
    P["e1_w"], P["e1_b"] = conv_init(HIDDEN_DIM, CHANNELS, 4, 4)
    P["e2_w"], P["e2_b"] = conv_init(HIDDEN_DIM, HIDDEN_DIM, 4, 4)
    P["enc_res"] = resblock_init(HIDDEN_DIM)
    P["eo_w"], P["eo_b"] = conv_init(NUM_TOKENS, HIDDEN_DIM, 1, 1)
    # codebook (nn.Embedding default ~ N(0, 1))
    P["codebook"] = jax.random.normal(next(keys), (NUM_TOKENS, CODEBOOK_DIM),
                                      jnp.float32)
    # decoder
    P["din_w"], P["din_b"] = conv_init(HIDDEN_DIM, CODEBOOK_DIM, 1, 1)
    P["dec_res"] = resblock_init(HIDDEN_DIM)
    P["d1_w"], P["d1_b"] = convT_init(HIDDEN_DIM, HIDDEN_DIM, 4, 4)
    P["d2_w"], P["d2_b"] = convT_init(HIDDEN_DIM, HIDDEN_DIM, 4, 4)
    P["dout_w"], P["dout_b"] = conv_init(CHANNELS, HIDDEN_DIM, 1, 1)
    # normalization constants
    P["norm_means"] = jnp.array(NORM_MEANS, jnp.float32)
    P["norm_stds"] = jnp.array(NORM_STDS, jnp.float32)
    return P


if __name__ == "__main__":
    root = jax.random.PRNGKey(0)
    k_params, k_img1, k_img2, k_gumbel = jax.random.split(root, 4)

    params = init_params(k_params)
    img = jax.random.uniform(k_img1, (2, CHANNELS, IMAGE_SIZE, IMAGE_SIZE),
                             jnp.float32)
    img2 = jax.random.uniform(k_img2, (2, CHANNELS, IMAGE_SIZE, IMAGE_SIZE),
                              jnp.float32)

    fwd = jax.jit(discrete_vae_forward)
    loss, recon = fwd(params, img, img2, k_gumbel)
    jax.block_until_ready((loss, recon))

    assert recon.shape == (2, CHANNELS, IMAGE_SIZE, IMAGE_SIZE)
    assert loss.shape == ()
    print("KERNEL_OK")
</pallas_src>

<mosaic_0001>
module attributes {stable_mosaic.version = 11 : i64} {
  func.func @_mm_bias_kernel(%arg0: i32, %arg1: memref<256x48xbf16, #tpu.memory_space<vmem>>, %arg2: memref<48x16xbf16, #tpu.memory_space<vmem>>, %arg3: memref<1x16xf32, #tpu.memory_space<vmem>>, %arg4: memref<256x16xf32, #tpu.memory_space<vmem>>) attributes {dimension_semantics = [#tpu.dimension_semantics<arbitrary>], iteration_bounds = array<i64: 1>, scalar_prefetch = 0 : i64, scratch_operands = 0 : i64, tpu.core_type = #tpu.core_type<tc>, window_params = [{pipeline_mode = #tpu.pipeline_mode<synchronous>, transform_indices = @transform_0, window_bounds = array<i64: 256, 48>}, {pipeline_mode = #tpu.pipeline_mode<synchronous>, transform_indices = @transform_1, window_bounds = array<i64: 48, 16>}, {pipeline_mode = #tpu.pipeline_mode<synchronous>, transform_indices = @transform_2, window_bounds = array<i64: 1, 16>}, {pipeline_mode = #tpu.pipeline_mode<synchronous>, transform_indices = @transform_3, window_bounds = array<i64: 256, 16>}]} {
    %c0 = arith.constant 0 : index
    %c0_0 = arith.constant 0 : index
    %0 = vector.load %arg1[%c0, %c0_0] : memref<256x48xbf16, #tpu.memory_space<vmem>>, vector<256x48xbf16>
    %c0_1 = arith.constant 0 : index
    %c0_2 = arith.constant 0 : index
    %1 = vector.load %arg2[%c0_1, %c0_2] : memref<48x16xbf16, #tpu.memory_space<vmem>>, vector<48x16xbf16>
    %cst = arith.constant dense<0.000000e+00> : vector<256x16xf32>
    %2 = tpu.matmul %0, %1, %cst {dimension_numbers = #tpu.dot_dimension_numbers<[1], [0], [0], [1], [0, 0, 1, 1], [], []>} : vector<256x48xbf16>, vector<48x16xbf16>, vector<256x16xf32> -> vector<256x16xf32>
    %c0_3 = arith.constant 0 : index
    %c0_4 = arith.constant 0 : index
    %3 = vector.load %arg3[%c0_3, %c0_4] : memref<1x16xf32, #tpu.memory_space<vmem>>, vector<1x16xf32>
    %4 = vector.broadcast %3 : vector<1x16xf32> to vector<256x16xf32>
    %5 = arith.addf %2, %4 : vector<256x16xf32>
    %cst_5 = arith.constant 0.000000e+00 : f32
    %6 = vector.broadcast %cst_5 : f32 to vector<256x16xf32>
    %7 = arith.maximumf %5, %6 : vector<256x16xf32>
    %c0_6 = arith.constant 0 : index
    %c0_7 = arith.constant 0 : index
    %8 = vector.load %arg4[%c0_6, %c0_7] : memref<256x16xf32, #tpu.memory_space<vmem>>, vector<256x16xf32>
    tpu.vector_store %arg4[%c0_6, %c0_7], %7 {strides = array<i32>} : memref<256x16xf32, #tpu.memory_space<vmem>>, vector<256x16xf32>,
    return
  }
  func.func @transform_0(%arg0: i32) -> (i32, i32) {
    %c0_i32 = arith.constant 0 : i32
    %c0_i32_0 = arith.constant 0 : i32
    %c0_i32_1 = arith.constant 0 : i32
    return %c0_i32, %c0_i32_0 : i32, i32
  }
  func.func @transform_1(%arg0: i32) -> (i32, i32) {
    %c0_i32 = arith.constant 0 : i32
    %c0_i32_0 = arith.constant 0 : i32
    %c0_i32_1 = arith.constant 0 : i32
    return %c0_i32, %c0_i32_0 : i32, i32
  }
  func.func @transform_2(%arg0: i32) -> (i32, i32) {
    %c0_i32 = arith.constant 0 : i32
    %c0_i32_0 = arith.constant 0 : i32
    %c0_i32_1 = arith.constant 0 : i32
    return %c0_i32, %c0_i32_0 : i32, i32
  }
  func.func @transform_3(%arg0: i32) -> (i32, i32) {
    %c0_i32 = arith.constant 0 : i32
    %c0_i32_0 = arith.constant 0 : i32
    %c0_i32_1 = arith.constant 0 : i32
    return %c0_i32, %c0_i32_0 : i32, i32
  }
}

module attributes {stable_mosaic.version = 11 : i64} {
  func.func @_mm_bias_kernel(%arg0: i32, %arg1: memref<64x256xbf16, #tpu.memory_space<vmem>>, %arg2: memref<256x16xbf16, #tpu.memory_space<vmem>>, %arg3: memref<1x16xf32, #tpu.memory_space<vmem>>, %arg4: memref<64x16xf32, #tpu.memory_space<vmem>>) attributes {dimension_semantics = [#tpu.dimension_semantics<arbitrary>], iteration_bounds = array<i64: 1>, scalar_prefetch = 0 : i64, scratch_operands = 0 : i64, tpu.core_type = #tpu.core_type<tc>, window_params = [{pipeline_mode = #tpu.pipeline_mode<synchronous>, transform_indices = @transform_0, window_bounds = array<i64: 64, 256>}, {pipeline_mode = #tpu.pipeline_mode<synchronous>, transform_indices = @transform_1, window_bounds = array<i64: 256, 16>}, {pipeline_mode = #tpu.pipeline_mode<synchronous>, transform_indices = @transform_2, window_bounds = array<i64: 1, 16>}, {pipeline_mode = #tpu.pipeline_mode<synchronous>, transform_indices = @transform_3, window_bounds = array<i64: 64, 16>}]} {
    %c0 = arith.constant 0 : index
    %c0_0 = arith.constant 0 : index
    %0 = vector.load %arg1[%c0, %c0_0] : memref<64x256xbf16, #tpu.memory_space<vmem>>, vector<64x256xbf16>
    %c0_1 = arith.constant 0 : index
    %c0_2 = arith.constant 0 : index
    %1 = vector.load %arg2[%c0_1, %c0_2] : memref<256x16xbf16, #tpu.memory_space<vmem>>, vector<256x16xbf16>
    %cst = arith.constant dense<0.000000e+00> : vector<64x16xf32>
    %2 = tpu.matmul %0, %1, %cst {dimension_numbers = #tpu.dot_dimension_numbers<[1], [0], [0], [1], [0, 0, 1, 1], [], []>} : vector<64x256xbf16>, vector<256x16xbf16>, vector<64x16xf32> -> vector<64x16xf32>
    %c0_3 = arith.constant 0 : index
    %c0_4 = arith.constant 0 : index
    %3 = vector.load %arg3[%c0_3, %c0_4] : memref<1x16xf32, #tpu.memory_space<vmem>>, vector<1x16xf32>
    %4 = vector.broadcast %3 : vector<1x16xf32> to vector<64x16xf32>
    %5 = arith.addf %2, %4 : vector<64x16xf32>
    %cst_5 = arith.constant 0.000000e+00 : f32
    %6 = vector.broadcast %cst_5 : f32 to vector<64x16xf32>
    %7 = arith.maximumf %5, %6 : vector<64x16xf32>
    %c0_6 = arith.constant 0 : index
    %c0_7 = arith.constant 0 : index
    %8 = vector.load %arg4[%c0_6, %c0_7] : memref<64x16xf32, #tpu.memory_space<vmem>>, vector<64x16xf32>
    tpu.vector_store %arg4[%c0_6, %c0_7], %7 {strides = array<i32>} : memref<64x16xf32, #tpu.memory_space<vmem>>, vector<64x16xf32>,
    return
  }
  func.func @transform_0(%arg0: i32) -> (i32, i32) {
    %c0_i32 = arith.constant 0 : i32
    %c0_i32_0 = arith.constant 0 : i32
    %c0_i32_1 = arith.constant 0 : i32
    return %c0_i32, %c0_i32_0 : i32, i32
  }
  func.func @transform_1(%arg0: i32) -> (i32, i32) {
    %c0_i32 = arith.constant 0 : i32
    %c0_i32_0 = arith.constant 0 : i32
    %c0_i32_1 = arith.constant 0 : i32
    return %c0_i32, %c0_i32_0 : i32, i32
  }
  func.func @transform_2(%arg0: i32) -> (i32, i32) {
    %c0_i32 = arith.constant 0 : i32
    %c0_i32_0 = arith.constant 0 : i32
    %c0_i32_1 = arith.constant 0 : i32
    return %c0_i32, %c0_i32_0 : i32, i32
  }
  func.func @transform_3(%arg0: i32) -> (i32, i32) {
    %c0_i32 = arith.constant 0 : i32
    %c0_i32_0 = arith.constant 0 : i32
    %c0_i32_1 = arith.constant 0 : i32
    return %c0_i32, %c0_i32_0 : i32, i32
  }
}

module attributes {stable_mosaic.version = 11 : i64} {
  func.func @_resblock_kernel(%arg0: i32, %arg1: memref<80x16xf32, #tpu.memory_space<vmem>>, %arg2: memref<144x16xf32, #tpu.memory_space<vmem>>, %arg3: memref<1x16xf32, #tpu.memory_space<vmem>>, %arg4: memref<144x16xf32, #tpu.memory_space<vmem>>, %arg5: memref<1x16xf32, #tpu.memory_space<vmem>>, %arg6: memref<16x16xf32, #tpu.memory_space<vmem>>, %arg7: memref<1x16xf32, #tpu.memory_space<vmem>>, %arg8: memref<64x16xf32, #tpu.memory_space<vmem>>, %arg9: memref<80x16xf32, #tpu.memory_space<vmem>>) attributes {dimension_semantics = [#tpu.dimension_semantics<arbitrary>], iteration_bounds = array<i64: 1>, scalar_prefetch = 0 : i64, scratch_operands = 1 : i64, tpu.core_type = #tpu.core_type<tc>, window_params = [{pipeline_mode = #tpu.pipeline_mode<synchronous>, transform_indices = @transform_0, window_bounds = array<i64: 80, 16>}, {pipeline_mode = #tpu.pipeline_mode<synchronous>, transform_indices = @transform_1, window_bounds = array<i64: 144, 16>}, {pipeline_mode = #tpu.pipeline_mode<synchronous>, transform_indices = @transform_2, window_bounds = array<i64: 1, 16>}, {pipeline_mode = #tpu.pipeline_mode<synchronous>, transform_indices = @transform_3, window_bounds = array<i64: 144, 16>}, {pipeline_mode = #tpu.pipeline_mode<synchronous>, transform_indices = @transform_4, window_bounds = array<i64: 1, 16>}, {pipeline_mode = #tpu.pipeline_mode<synchronous>, transform_indices = @transform_5, window_bounds = array<i64: 16, 16>}, {pipeline_mode = #tpu.pipeline_mode<synchronous>, transform_indices = @transform_6, window_bounds = array<i64: 1, 16>}, {pipeline_mode = #tpu.pipeline_mode<synchronous>, transform_indices = @transform_7, window_bounds = array<i64: 64, 16>}]} {
    %0 = tpu.iota {dimensions = array<i32: 0>} : vector<64x1xi32>
    %c2_i32 = arith.constant 2 : i32
    %1 = vector.broadcast %c2_i32 : i32 to vector<64x1xi32>
    %2 = arith.shrsi %0, %1 : vector<64x1xi32>
    %c3_i32 = arith.constant 3 : i32
    %3 = vector.broadcast %c3_i32 : i32 to vector<64x1xi32>
    %4 = arith.andi %2, %3 : vector<64x1xi32>
    %c3_i32_0 = arith.constant 3 : i32
    %5 = vector.broadcast %c3_i32_0 : i32 to vector<64x1xi32>
    %6 = arith.andi %0, %5 : vector<64x1xi32>
    %c3 = arith.constant 3 : index
    %c0 = arith.constant 0 : index
    %7 = vector.load %arg1[%c3, %c0] : memref<80x16xf32, #tpu.memory_space<vmem>>, vector<64x16xf32>
    %c1_i32 = arith.constant 1 : i32
    %8 = vector.broadcast %c1_i32 : i32 to vector<64x1xi32>
    %9 = arith.cmpi sge, %4, %8 : vector<64x1xi32>
    %c1_i32_1 = arith.constant 1 : i32
    %10 = vector.broadcast %c1_i32_1 : i32 to vector<64x1xi32>
    %11 = arith.cmpi sge, %6, %10 : vector<64x1xi32>
    %12 = arith.andi %9, %11 : vector<64x1xi1>
    %cst = arith.constant 0.000000e+00 : f32
    %13 = vector.shape_cast %12 : vector<64x1xi1> to vector<64x1xi1>
    %14 = vector.broadcast %13 : vector<64x1xi1> to vector<64x16xi1>
    %15 = vector.broadcast %cst : f32 to vector<64x16xf32>
    %16 = arith.select %14, %7, %15 : vector<64x16xi1>, vector<64x16xf32>
    %c0_2 = arith.constant 0 : index
    %c0_3 = arith.constant 0 : index
    %17 = vector.load %arg2[%c0_2, %c0_3] : memref<144x16xf32, #tpu.memory_space<vmem>>, vector<16x16xf32>
    %cst_4 = arith.constant dense<0.000000e+00> : vector<64x16xf32>
    %18 = tpu.matmul %16, %17, %cst_4 {dimension_numbers = #tpu.dot_dimension_numbers<[1], [0], [0], [1], [0, 0, 1, 1], [], []>} : vector<64x16xf32>, vector<16x16xf32>, vector<64x16xf32> -> vector<64x16xf32>
    %c4 = arith.constant 4 : index
    %c0_5 = arith.constant 0 : index
    %19 = vector.load %arg1[%c4, %c0_5] : memref<80x16xf32, #tpu.memory_space<vmem>>, vector<64x16xf32>
    %c1_i32_6 = arith.constant 1 : i32
    %20 = vector.broadcast %c1_i32_6 : i32 to vector<64x1xi32>
    %21 = arith.cmpi sge, %4, %20 : vector<64x1xi32>
    %cst_7 = arith.constant 0.000000e+00 : f32
    %22 = vector.shape_cast %21 : vector<64x1xi1> to vector<64x1xi1>
    %23 = vector.broadcast %22 : vector<64x1xi1> to vector<64x16xi1>
    %24 = vector.broadcast %cst_7 : f32 to vector<64x16xf32>
    %25 = arith.select %23, %19, %24 : vector<64x16xi1>, vector<64x16xf32>
    %c16 = arith.constant 16 : index
    %c0_8 = arith.constant 0 : index
    %26 = vector.load %arg2[%c16, %c0_8] : memref<144x16xf32, #tpu.memory_space<vmem>>, vector<16x16xf32>
    %cst_9 = arith.constant dense<0.000000e+00> : vector<64x16xf32>
    %27 = tpu.matmul %25, %26, %cst_9 {dimension_numbers = #tpu.dot_dimension_numbers<[1], [0], [0], [1], [0, 0, 1, 1], [], []>} : vector<64x16xf32>, vector<16x16xf32>, vector<64x16xf32> -> vector<64x16xf32>
    %28 = arith.addf %18, %27 : vector<64x16xf32>
    %c5 = arith.constant 5 : index
    %c0_10 = arith.constant 0 : index
    %29 = vector.load %arg1[%c5, %c0_10] : memref<80x16xf32, #tpu.memory_space<vmem>>, vector<64x16xf32>
    %c1_i32_11 = arith.constant 1 : i32
    %30 = vector.broadcast %c1_i32_11 : i32 to vector<64x1xi32>
    %31 = arith.cmpi sge, %4, %30 : vector<64x1xi32>
    %c3_i32_12 = arith.constant 3 : i32
    %32 = vector.broadcast %c3_i32_12 : i32 to vector<64x1xi32>
    %33 = arith.cmpi slt, %6, %32 : vector<64x1xi32>
    %34 = arith.andi %31, %33 : vector<64x1xi1>
    %cst_13 = arith.constant 0.000000e+00 : f32
    %35 = vector.shape_cast %34 : vector<64x1xi1> to vector<64x1xi1>
    %36 = vector.broadcast %35 : vector<64x1xi1> to vector<64x16xi1>
    %37 = vector.broadcast %cst_13 : f32 to vector<64x16xf32>
    %38 = arith.select %36, %29, %37 : vector<64x16xi1>, vector<64x16xf32>
    %c32 = arith.constant 32 : index
    %c0_14 = arith.constant 0 : index
    %39 = vector.load %arg2[%c32, %c0_14] : memref<144x16xf32, #tpu.memory_space<vmem>>, vector<16x16xf32>
    %cst_15 = arith.constant dense<0.000000e+00> : vector<64x16xf32>
    %40 = tpu.matmul %38, %39, %cst_15 {dimension_numbers = #tpu.dot_dimension_numbers<[1], [0], [0], [1], [0, 0, 1, 1], [], []>} : vector<64x16xf32>, vector<16x16xf32>, vector<64x16xf32> -> vector<64x16xf32>
    %41 = arith.addf %28, %40 : vector<64x16xf32>
    %c7 = arith.constant 7 : index
    %c0_16 = arith.constant 0 : index
    %42 = vector.load %arg1[%c7, %c0_16] : memref<80x16xf32, #tpu.memory_space<vmem>>, vector<64x16xf32>
    %c1_i32_17 = arith.constant 1 : i32
    %43 = vector.broadcast %c1_i32_17 : i32 to vector<64x1xi32>
    %44 = arith.cmpi sge, %6, %43 : vector<64x1xi32>
    %cst_18 = arith.constant 0.000000e+00 : f32
    %45 = vector.shape_cast %44 : vector<64x1xi1> to vector<64x1xi1>
    %46 = vector.broadcast %45 : vector<64x1xi1> to vector<64x16xi1>
    %47 = vector.broadcast %cst_18 : f32 to vector<64x16xf32>
    %48 = arith.select %46, %42, %47 : vector<64x16xi1>, vector<64x16xf32>
    %c48 = arith.constant 48 : index
    %c0_19 = arith.constant 0 : index
    %49 = vector.load %arg2[%c48, %c0_19] : memref<144x16xf32, #tpu.memory_space<vmem>>, vector<16x16xf32>
    %cst_20 = arith.constant dense<0.000000e+00> : vector<64x16xf32>
    %50 = tpu.matmul %48, %49, %cst_20 {dimension_numbers = #tpu.dot_dimension_numbers<[1], [0], [0], [1], [0, 0, 1, 1], [], []>} : vector<64x16xf32>, vector<16x16xf32>, vector<64x16xf32> -> vector<64x16xf32>
    %51 = arith.addf %41, %50 : vector<64x16xf32>
    %c8 = arith.constant 8 : index
    %c0_21 = arith.constant 0 : index
    %52 = vector.load %arg1[%c8, %c0_21] : memref<80x16xf32, #tpu.memory_space<vmem>>, vector<64x16xf32>
    %c64 = arith.constant 64 : index
    %c0_22 = arith.constant 0 : index
    %53 = vector.load %arg2[%c64, %c0_22] : memref<144x16xf32, #tpu.memory_space<vmem>>, vector<16x16xf32>
    %cst_23 = arith.constant dense<0.000000e+00> : vector<64x16xf32>
    %54 = tpu.matmul %52, %53, %cst_23 {dimension_numbers = #tpu.dot_dimension_numbers<[1], [0], [0], [1], [0, 0, 1, 1], [], []>} : vector<64x16xf32>, vector<16x16xf32>, vector<64x16xf32> -> vector<64x16xf32>
    %55 = arith.addf %51, %54 : vector<64x16xf32>
    %c9 = arith.constant 9 : index
    %c0_24 = arith.constant 0 : index
    %56 = vector.load %arg1[%c9, %c0_24] : memref<80x16xf32, #tpu.memory_space<vmem>>, vector<64x16xf32>
    %c3_i32_25 = arith.constant 3 : i32
    %57 = vector.broadcast %c3_i32_25 : i32 to vector<64x1xi32>
    %58 = arith.cmpi slt, %6, %57 : vector<64x1xi32>
    %cst_26 = arith.constant 0.000000e+00 : f32
    %59 = vector.shape_cast %58 : vector<64x1xi1> to vector<64x1xi1>
    %60 = vector.broadcast %59 : vector<64x1xi1> to vector<64x16xi1>
    %61 = vector.broadcast %cst_26 : f32 to vector<64x16xf32>
    %62 = arith.select %60, %56, %61 : vector<64x16xi1>, vector<64x16xf32>
    %c80 = arith.constant 80 : index
    %c0_27 = arith.constant 0 : index
    %63 = vector.load %arg2[%c80, %c0_27] : memref<144x16xf32, #tpu.memory_space<vmem>>, vector<16x16xf32>
    %cst_28 = arith.constant dense<0.000000e+00> : vector<64x16xf32>
    %64 = tpu.matmul %62, %63, %cst_28 {dimension_numbers = #tpu.dot_dimension_numbers<[1], [0], [0], [1], [0, 0, 1, 1], [], []>} : vector<64x16xf32>, vector<16x16xf32>, vector<64x16xf32> -> vector<64x16xf32>
    %65 = arith.addf %55, %64 : vector<64x16xf32>
    %c11 = arith.constant 11 : index
    %c0_29 = arith.constant 0 : index
    %66 = vector.load %arg1[%c11, %c0_29] : memref<80x16xf32, #tpu.memory_space<vmem>>, vector<64x16xf32>
    %c3_i32_30 = arith.constant 3 : i32
    %67 = vector.broadcast %c3_i32_30 : i32 to vector<64x1xi32>
    %68 = arith.cmpi slt, %4, %67 : vector<64x1xi32>
    %c1_i32_31 = arith.constant 1 : i32
    %69 = vector.broadcast %c1_i32_31 : i32 to vector<64x1xi32>
    %70 = arith.cmpi sge, %6, %69 : vector<64x1xi32>
    %71 = arith.andi %68, %70 : vector<64x1xi1>
    %cst_32 = arith.constant 0.000000e+00 : f32
    %72 = vector.shape_cast %71 : vector<64x1xi1> to vector<64x1xi1>
    %73 = vector.broadcast %72 : vector<64x1xi1> to vector<64x16xi1>
    %74 = vector.broadcast %cst_32 : f32 to vector<64x16xf32>
    %75 = arith.select %73, %66, %74 : vector<64x16xi1>, vector<64x16xf32>
    %c96 = arith.constant 96 : index
    %c0_33 = arith.constant 0 : index
    %76 = vector.load %arg2[%c96, %c0_33] : memref<144x16xf32, #tpu.memory_space<vmem>>, vector<16x16xf32>
    %cst_34 = arith.constant dense<0.000000e+00> : vector<64x16xf32>
    %77 = tpu.matmul %75, %76, %cst_34 {dimension_numbers = #tpu.dot_dimension_numbers<[1], [0], [0], [1], [0, 0, 1, 1], [], []>} : vector<64x16xf32>, vector<16x16xf32>, vector<64x16xf32> -> vector<64x16xf32>
    %78 = arith.addf %65, %77 : vector<64x16xf32>
    %c12 = arith.constant 12 : index
    %c0_35 = arith.constant 0 : index
    %79 = vector.load %arg1[%c12, %c0_35] : memref<80x16xf32, #tpu.memory_space<vmem>>, vector<64x16xf32>
    %c3_i32_36 = arith.constant 3 : i32
    %80 = vector.broadcast %c3_i32_36 : i32 to vector<64x1xi32>
    %81 = arith.cmpi slt, %4, %80 : vector<64x1xi32>
    %cst_37 = arith.constant 0.000000e+00 : f32
    %82 = vector.shape_cast %81 : vector<64x1xi1> to vector<64x1xi1>
    %83 = vector.broadcast %82 : vector<64x1xi1> to vector<64x16xi1>
    %84 = vector.broadcast %cst_37 : f32 to vector<64x16xf32>
    %85 = arith.select %83, %79, %84 : vector<64x16xi1>, vector<64x16xf32>
    %c112 = arith.constant 112 : index
    %c0_38 = arith.constant 0 : index
    %86 = vector.load %arg2[%c112, %c0_38] : memref<144x16xf32, #tpu.memory_space<vmem>>, vector<16x16xf32>
    %cst_39 = arith.constant dense<0.000000e+00> : vector<64x16xf32>
    %87 = tpu.matmul %85, %86, %cst_39 {dimension_numbers = #tpu.dot_dimension_numbers<[1], [0], [0], [1], [0, 0, 1, 1], [], []>} : vector<64x16xf32>, vector<16x16xf32>, vector<64x16xf32> -> vector<64x16xf32>
    %88 = arith.addf %78, %87 : vector<64x16xf32>
    %c13 = arith.constant 13 : index
    %c0_40 = arith.constant 0 : index
    %89 = vector.load %arg1[%c13, %c0_40] : memref<80x16xf32, #tpu.memory_space<vmem>>, vector<64x16xf32>
    %c3_i32_41 = arith.constant 3 : i32
    %90 = vector.broadcast %c3_i32_41 : i32 to vector<64x1xi32>
    %91 = arith.cmpi slt, %4, %90 : vector<64x1xi32>
    %c3_i32_42 = arith.constant 3 : i32
    %92 = vector.broadcast %c3_i32_42 : i32 to vector<64x1xi32>
    %93 = arith.cmpi slt, %6, %92 : vector<64x1xi32>
    %94 = arith.andi %91, %93 : vector<64x1xi1>
    %cst_43 = arith.constant 0.000000e+00 : f32
    %95 = vector.shape_cast %94 : vector<64x1xi1> to vector<64x1xi1>
    %96 = vector.broadcast %95 : vector<64x1xi1> to vector<64x16xi1>
    %97 = vector.broadcast %cst_43 : f32 to vector<64x16xf32>
    %98 = arith.select %96, %89, %97 : vector<64x16xi1>, vector<64x16xf32>
    %c128 = arith.constant 128 : index
    %c0_44 = arith.constant 0 : index
    %99 = vector.load %arg2[%c128, %c0_44] : memref<144x16xf32, #tpu.memory_space<vmem>>, vector<16x16xf32>
    %cst_45 = arith.constant dense<0.000000e+00> : vector<64x16xf32>
    %100 = tpu.matmul %98, %99, %cst_45 {dimension_numbers = #tpu.dot_dimension_numbers<[1], [0], [0], [1], [0, 0, 1, 1], [], []>} : vector<64x16xf32>, vector<16x16xf32>, vector<64x16xf32> -> vector<64x16xf32>
    %101 = arith.addf %88, %100 : vector<64x16xf32>
    %c0_46 = arith.constant 0 : index
    %c0_47 = arith.constant 0 : index
    %102 = vector.load %arg3[%c0_46, %c0_47] : memref<1x16xf32, #tpu.memory_space<vmem>>, vector<1x16xf32>
    %103 = vector.broadcast %102 : vector<1x16xf32> to vector<64x16xf32>
    %104 = arith.addf %101, %103 : vector<64x16xf32>
    %cst_48 = arith.constant 0.000000e+00 : f32
    %105 = vector.broadcast %cst_48 : f32 to vector<64x16xf32>
    %106 = arith.maximumf %104, %105 : vector<64x16xf32>
    %cst_49 = arith.constant 0.000000e+00 : f32
    %107 = vector.broadcast %cst_49 : f32 to vector<80x16xf32>
    %c0_50 = arith.constant 0 : index
    %c0_51 = arith.constant 0 : index
    %108 = vector.load %arg9[%c0_50, %c0_51] : memref<80x16xf32, #tpu.memory_space<vmem>>, vector<80x16xf32>
    tpu.vector_store %arg9[%c0_50, %c0_51], %107 {strides = array<i32>} : memref<80x16xf32, #tpu.memory_space<vmem>>, vector<80x16xf32>,
    %c8_52 = arith.constant 8 : index
    %c0_53 = arith.constant 0 : index
    %109 = vector.load %arg9[%c8_52, %c0_53] : memref<80x16xf32, #tpu.memory_space<vmem>>, vector<64x16xf32>
    tpu.vector_store %arg9[%c8_52, %c0_53], %106 {strides = array<i32>} : memref<80x16xf32, #tpu.memory_space<vmem>>, vector<64x16xf32>,
    %c3_54 = arith.constant 3 : index
    %c0_55 = arith.constant 0 : index
    %110 = vector.load %arg9[%c3_54, %c0_55] : memref<80x16xf32, #tpu.memory_space<vmem>>, vector<64x16xf32>
    %c1_i32_56 = arith.constant 1 : i32
    %111 = vector.broadcast %c1_i32_56 : i32 to vector<64x1xi32>
    %112 = arith.cmpi sge, %4, %111 : vector<64x1xi32>
    %c1_i32_57 = arith.constant 1 : i32
    %113 = vector.broadcast %c1_i32_57 : i32 to vector<64x1xi32>
    %114 = arith.cmpi sge, %6, %113 : vector<64x1xi32>
    %115 = arith.andi %112, %114 : vector<64x1xi1>
    %cst_58 = arith.constant 0.000000e+00 : f32
    %116 = vector.shape_cast %115 : vector<64x1xi1> to vector<64x1xi1>
    %117 = vector.broadcast %116 : vector<64x1xi1> to vector<64x16xi1>
    %118 = vector.broadcast %cst_58 : f32 to vector<64x16xf32>
    %119 = arith.select %117, %110, %118 : vector<64x16xi1>, vector<64x16xf32>
    %c0_59 = arith.constant 0 : index
    %c0_60 = arith.constant 0 : index
    %120 = vector.load %arg4[%c0_59, %c0_60] : memref<144x16xf32, #tpu.memory_space<vmem>>, vector<16x16xf32>
    %cst_61 = arith.constant dense<0.000000e+00> : vector<64x16xf32>
    %121 = tpu.matmul %119, %120, %cst_61 {dimension_numbers = #tpu.dot_dimension_numbers<[1], [0], [0], [1], [0, 0, 1, 1], [], []>} : vector<64x16xf32>, vector<16x16xf32>, vector<64x16xf32> -> vector<64x16xf32>
    %c4_62 = arith.constant 4 : index
    %c0_63 = arith.constant 0 : index
    %122 = vector.load %arg9[%c4_62, %c0_63] : memref<80x16xf32, #tpu.memory_space<vmem>>, vector<64x16xf32>
    %c1_i32_64 = arith.constant 1 : i32
    %123 = vector.broadcast %c1_i32_64 : i32 to vector<64x1xi32>
    %124 = arith.cmpi sge, %4, %123 : vector<64x1xi32>
    %cst_65 = arith.constant 0.000000e+00 : f32
    %125 = vector.shape_cast %124 : vector<64x1xi1> to vector<64x1xi1>
    %126 = vector.broadcast %125 : vector<64x1xi1> to vector<64x16xi1>
    %127 = vector.broadcast %cst_65 : f32 to vector<64x16xf32>
    %128 = arith.select %126, %122, %127 : vector<64x16xi1>, vector<64x16xf32>
    %c16_66 = arith.constant 16 : index
    %c0_67 = arith.constant 0 : index
    %129 = vector.load %arg4[%c16_66, %c0_67] : memref<144x16xf32, #tpu.memory_space<vmem>>, vector<16x16xf32>
    %cst_68 = arith.constant dense<0.000000e+00> : vector<64x16xf32>
    %130 = tpu.matmul %128, %129, %cst_68 {dimension_numbers = #tpu.dot_dimension_numbers<[1], [0], [0], [1], [0, 0, 1, 1], [], []>} : vector<64x16xf32>, vector<16x16xf32>, vector<64x16xf32> -> vector<64x16xf32>
    %131 = arith.addf %121, %130 : vector<64x16xf32>
    %c5_69 = arith.constant 5 : index
    %c0_70 = arith.constant 0 : index
    %132 = vector.load %arg9[%c5_69, %c0_70] : memref<80x16xf32, #tpu.memory_space<vmem>>, vector<64x16xf32>
    %c1_i32_71 = arith.constant 1 : i32
    %133 = vector.broadcast %c1_i32_71 : i32 to vector<64x1xi32>
    %134 = arith.cmpi sge, %4, %133 : vector<64x1xi32>
    %c3_i32_72 = arith.constant 3 : i32
    %135 = vector.broadcast %c3_i32_72 : i32 to vector<64x1xi32>
    %136 = arith.cmpi slt, %6, %135 : vector<64x1xi32>
    %137 = arith.andi %134, %136 : vector<64x1xi1>
    %cst_73 = arith.constant 0.000000e+00 : f32
    %138 = vector.shape_cast %137 : vector<64x1xi1> to vector<64x1xi1>
    %139 = vector.broadcast %138 : vector<64x1xi1> to vector<64x16xi1>
    %140 = vector.broadcast %cst_73 : f32 to vector<64x16xf32>
    %141 = arith.select %139, %132, %140 : vector<64x16xi1>, vector<64x16xf32>
    %c32_74 = arith.constant 32 : index
    %c0_75 = arith.constant 0 : index
    %142 = vector.load %arg4[%c32_74, %c0_75] : memref<144x16xf32, #tpu.memory_space<vmem>>, vector<16x16xf32>
    %cst_76 = arith.constant dense<0.000000e+00> : vector<64x16xf32>
    %143 = tpu.matmul %141, %142, %cst_76 {dimension_numbers = #tpu.dot_dimension_numbers<[1], [0], [0], [1], [0, 0, 1, 1], [], []>} : vector<64x16xf32>, vector<16x16xf32>, vector<64x16xf32> -> vector<64x16xf32>
    %144 = arith.addf %131, %143 : vector<64x16xf32>
    %c7_77 = arith.constant 7 : index
    %c0_78 = arith.constant 0 : index
    %145 = vector.load %arg9[%c7_77, %c0_78] : memref<80x16xf32, #tpu.memory_space<vmem>>, vector<64x16xf32>
    %c1_i32_79 = arith.constant 1 : i32
    %146 = vector.broadcast %c1_i32_79 : i32 to vector<64x1xi32>
    %147 = arith.cmpi sge, %6, %146 : vector<64x1xi32>
    %cst_80 = arith.constant 0.000000e+00 : f32
    %148 = vector.shape_cast %147 : vector<64x1xi1> to vector<64x1xi1>
    %149 = vector.broadcast %148 : vector<64x1xi1> to vector<64x16xi1>
    %150 = vector.broadcast %cst_80 : f32 to vector<64x16xf32>
    %151 = arith.select %149, %145, %150 : vector<64x16xi1>, vector<64x16xf32>
    %c48_81 = arith.constant 48 : index
    %c0_82 = arith.constant 0 : index
    %152 = vector.load %arg4[%c48_81, %c0_82] : memref<144x16xf32, #tpu.memory_space<vmem>>, vector<16x16xf32>
    %cst_83 = arith.constant dense<0.000000e+00> : vector<64x16xf32>
    %153 = tpu.matmul %151, %152, %cst_83 {dimension_numbers = #tpu.dot_dimension_numbers<[1], [0], [0], [1], [0, 0, 1, 1], [], []>} : vector<64x16xf32>, vector<16x16xf32>, vector<64x16xf32> -> vector<64x16xf32>
    %154 = arith.addf %144, %153 : vector<64x16xf32>
    %c8_84 = arith.constant 8 : index
    %c0_85 = arith.constant 0 : index
    %155 = vector.load %arg9[%c8_84, %c0_85] : memref<80x16xf32, #tpu.memory_space<vmem>>, vector<64x16xf32>
    %c64_86 = arith.constant 64 : index
    %c0_87 = arith.constant 0 : index
    %156 = vector.load %arg4[%c64_86, %c0_87] : memref<144x16xf32, #tpu.memory_space<vmem>>, vector<16x16xf32>
    %cst_88 = arith.constant dense<0.000000e+00> : vector<64x16xf32>
    %157 = tpu.matmul %155, %156, %cst_88 {dimension_numbers = #tpu.dot_dimension_numbers<[1], [0], [0], [1], [0, 0, 1, 1], [], []>} : vector<64x16xf32>, vector<16x16xf32>, vector<64x16xf32> -> vector<64x16xf32>
    %158 = arith.addf %154, %157 : vector<64x16xf32>
    %c9_89 = arith.constant 9 : index
    %c0_90 = arith.constant 0 : index
    %159 = vector.load %arg9[%c9_89, %c0_90] : memref<80x16xf32, #tpu.memory_space<vmem>>, vector<64x16xf32>
    %c3_i32_91 = arith.constant 3 : i32
    %160 = vector.broadcast %c3_i32_91 : i32 to vector<64x1xi32>
    %161 = arith.cmpi slt, %6, %160 : vector<64x1xi32>
    %cst_92 = arith.constant 0.000000e+00 : f32
    %162 = vector.shape_cast %161 : vector<64x1xi1> to vector<64x1xi1>
    %163 = vector.broadcast %162 : vector<64x1xi1> to vector<64x16xi1>
    %164 = vector.broadcast %cst_92 : f32 to vector<64x16xf32>
    %165 = arith.select %163, %159, %164 : vector<64x16xi1>, vector<64x16xf32>
    %c80_93 = arith.constant 80 : index
    %c0_94 = arith.constant 0 : index
    %166 = vector.load %arg4[%c80_93, %c0_94] : memref<144x16xf32, #tpu.memory_space<vmem>>, vector<16x16xf32>
    %cst_95 = arith.constant dense<0.000000e+00> : vector<64x16xf32>
    %167 = tpu.matmul %165, %166, %cst_95 {dimension_numbers = #tpu.dot_dimension_numbers<[1], [0], [0], [1], [0, 0, 1, 1], [], []>} : vector<64x16xf32>, vector<16x16xf32>, vector<64x16xf32> -> vector<64x16xf32>
    %168 = arith.addf %158, %167 : vector<64x16xf32>
    %c11_96 = arith.constant 11 : index
    %c0_97 = arith.constant 0 : index
    %169 = vector.load %arg9[%c11_96, %c0_97] : memref<80x16xf32, #tpu.memory_space<vmem>>, vector<64x16xf32>
    %c3_i32_98 = arith.constant 3 : i32
    %170 = vector.broadcast %c3_i32_98 : i32 to vector<64x1xi32>
    %171 = arith.cmpi slt, %4, %170 : vector<64x1xi32>
    %c1_i32_99 = arith.constant 1 : i32
    %172 = vector.broadcast %c1_i32_99 : i32 to vector<64x1xi32>
    %173 = arith.cmpi sge, %6, %172 : vector<64x1xi32>
    %174 = arith.andi %171, %173 : vector<64x1xi1>
    %cst_100 = arith.constant 0.000000e+00 : f32
    %175 = vector.shape_cast %174 : vector<64x1xi1> to vector<64x1xi1>
    %176 = vector.broadcast %175 : vector<64x1xi1> to vector<64x16xi1>
    %177 = vector.broadcast %cst_100 : f32 to vector<64x16xf32>
    %178 = arith.select %176, %169, %177 : vector<64x16xi1>, vector<64x16xf32>
    %c96_101 = arith.constant 96 : index
    %c0_102 = arith.constant 0 : index
    %179 = vector.load %arg4[%c96_101, %c0_102] : memref<144x16xf32, #tpu.memory_space<vmem>>, vector<16x16xf32>
    %cst_103 = arith.constant dense<0.000000e+00> : vector<64x16xf32>
    %180 = tpu.matmul %178, %179, %cst_103 {dimension_numbers = #tpu.dot_dimension_numbers<[1], [0], [0], [1], [0, 0, 1, 1], [], []>} : vector<64x16xf32>, vector<16x16xf32>, vector<64x16xf32> -> vector<64x16xf32>
    %181 = arith.addf %168, %180 : vector<64x16xf32>
    %c12_104 = arith.constant 12 : index
    %c0_105 = arith.constant 0 : index
    %182 = vector.load %arg9[%c12_104, %c0_105] : memref<80x16xf32, #tpu.memory_space<vmem>>, vector<64x16xf32>
    %c3_i32_106 = arith.constant 3 : i32
    %183 = vector.broadcast %c3_i32_106 : i32 to vector<64x1xi32>
    %184 = arith.cmpi slt, %4, %183 : vector<64x1xi32>
    %cst_107 = arith.constant 0.000000e+00 : f32
    %185 = vector.shape_cast %184 : vector<64x1xi1> to vector<64x1xi1>
    %186 = vector.broadcast %185 : vector<64x1xi1> to vector<64x16xi1>
    %187 = vector.broadcast %cst_107 : f32 to vector<64x16xf32>
    %188 = arith.select %186, %182, %187 : vector<64x16xi1>, vector<64x16xf32>
    %c112_108 = arith.constant 112 : index
    %c0_109 = arith.constant 0 : index
    %189 = vector.load %arg4[%c112_108, %c0_109] : memref<144x16xf32, #tpu.memory_space<vmem>>, vector<16x16xf32>
    %cst_110 = arith.constant dense<0.000000e+00> : vector<64x16xf32>
    %190 = tpu.matmul %188, %189, %cst_110 {dimension_numbers = #tpu.dot_dimension_numbers<[1], [0], [0], [1], [0, 0, 1, 1], [], []>} : vector<64x16xf32>, vector<16x16xf32>, vector<64x16xf32> -> vector<64x16xf32>
    %191 = arith.addf %181, %190 : vector<64x16xf32>
    %c13_111 = arith.constant 13 : index
    %c0_112 = arith.constant 0 : index
    %192 = vector.load %arg9[%c13_111, %c0_112] : memref<80x16xf32, #tpu.memory_space<vmem>>, vector<64x16xf32>
    %c3_i32_113 = arith.constant 3 : i32
    %193 = vector.broadcast %c3_i32_113 : i32 to vector<64x1xi32>
    %194 = arith.cmpi slt, %4, %193 : vector<64x1xi32>
    %c3_i32_114 = arith.constant 3 : i32
    %195 = vector.broadcast %c3_i32_114 : i32 to vector<64x1xi32>
    %196 = arith.cmpi slt, %6, %195 : vector<64x1xi32>
    %197 = arith.andi %194, %196 : vector<64x1xi1>
    %cst_115 = arith.constant 0.000000e+00 : f32
    %198 = vector.shape_cast %197 : vector<64x1xi1> to vector<64x1xi1>
    %199 = vector.broadcast %198 : vector<64x1xi1> to vector<64x16xi1>
    %200 = vector.broadcast %cst_115 : f32 to vector<64x16xf32>
    %201 = arith.select %199, %192, %200 : vector<64x16xi1>, vector<64x16xf32>
    %c128_116 = arith.constant 128 : index
    %c0_117 = arith.constant 0 : index
    %202 = vector.load %arg4[%c128_116, %c0_117] : memref<144x16xf32, #tpu.memory_space<vmem>>, vector<16x16xf32>
    %cst_118 = arith.constant dense<0.000000e+00> : vector<64x16xf32>
    %203 = tpu.matmul %201, %202, %cst_118 {dimension_numbers = #tpu.dot_dimension_numbers<[1], [0], [0], [1], [0, 0, 1, 1], [], []>} : vector<64x16xf32>, vector<16x16xf32>, vector<64x16xf32> -> vector<64x16xf32>
    %204 = arith.addf %191, %203 : vector<64x16xf32>
    %c0_119 = arith.constant 0 : index
    %c0_120 = arith.constant 0 : index
    %205 = vector.load %arg5[%c0_119, %c0_120] : memref<1x16xf32, #tpu.memory_space<vmem>>, vector<1x16xf32>
    %206 = vector.broadcast %205 : vector<1x16xf32> to vector<64x16xf32>
    %207 = arith.addf %204, %206 : vector<64x16xf32>
    %cst_121 = arith.constant 0.000000e+00 : f32
    %208 = vector.broadcast %cst_121 : f32 to vector<64x16xf32>
    %209 = arith.maximumf %207, %208 : vector<64x16xf32>
    %c0_122 = arith.constant 0 : index
    %c0_123 = arith.constant 0 : index
    %210 = vector.load %arg6[%c0_122, %c0_123] : memref<16x16xf32, #tpu.memory_space<vmem>>, vector<16x16xf32>
    %cst_124 = arith.constant dense<0.000000e+00> : vector<64x16xf32>
    %211 = tpu.matmul %209, %210, %cst_124 {dimension_numbers = #tpu.dot_dimension_numbers<[1], [0], [0], [1], [0, 0, 1, 1], [], []>} : vector<64x16xf32>, vector<16x16xf32>, vector<64x16xf32> -> vector<64x16xf32>
    %c0_125 = arith.constant 0 : index
    %c0_126 = arith.constant 0 : index
    %212 = vector.load %arg7[%c0_125, %c0_126] : memref<1x16xf32, #tpu.memory_space<vmem>>, vector<1x16xf32>
    %213 = vector.broadcast %212 : vector<1x16xf32> to vector<64x16xf32>
    %214 = arith.addf %211, %213 : vector<64x16xf32>
    %c8_127 = arith.constant 8 : index
    %c0_128 = arith.constant 0 : index
    %215 = vector.load %arg1[%c8_127, %c0_128] : memref<80x16xf32, #tpu.memory_space<vmem>>, vector<64x16xf32>
    %216 = arith.addf %214, %215 : vector<64x16xf32>
    %c0_129 = arith.constant 0 : index
    %c0_130 = arith.constant 0 : index
    %217 = vector.load %arg8[%c0_129, %c0_130] : memref<64x16xf32, #tpu.memory_space<vmem>>, vector<64x16xf32>
    tpu.vector_store %arg8[%c0_129, %c0_130], %216 {strides = array<i32>} : memref<64x16xf32, #tpu.memory_space<vmem>>, vector<64x16xf32>,
    return
  }
  func.func @transform_0(%arg0: i32) -> (i32, i32) {
    %c0_i32 = arith.constant 0 : i32
    %c0_i32_0 = arith.constant 0 : i32
    %c0_i32_1 = arith.constant 0 : i32
    return %c0_i32, %c0_i32_0 : i32, i32
  }
  func.func @transform_1(%arg0: i32) -> (i32, i32) {
    %c0_i32 = arith.constant 0 : i32
    %c0_i32_0 = arith.constant 0 : i32
    %c0_i32_1 = arith.constant 0 : i32
    return %c0_i32, %c0_i32_0 : i32, i32
  }
  func.func @transform_2(%arg0: i32) -> (i32, i32) {
    %c0_i32 = arith.constant 0 : i32
    %c0_i32_0 = arith.constant 0 : i32
    %c0_i32_1 = arith.constant 0 : i32
    return %c0_i32, %c0_i32_0 : i32, i32
  }
  func.func @transform_3(%arg0: i32) -> (i32, i32) {
    %c0_i32 = arith.constant 0 : i32
    %c0_i32_0 = arith.constant 0 : i32
    %c0_i32_1 = arith.constant 0 : i32
    return %c0_i32, %c0_i32_0 : i32, i32
  }
  func.func @transform_4(%arg0: i32) -> (i32, i32) {
    %c0_i32 = arith.constant 0 : i32
    %c0_i32_0 = arith.constant 0 : i32
    %c0_i32_1 = arith.constant 0 : i32
    return %c0_i32, %c0_i32_0 : i32, i32
  }
  func.func @transform_5(%arg0: i32) -> (i32, i32) {
    %c0_i32 = arith.constant 0 : i32
    %c0_i32_0 = arith.constant 0 : i32
    %c0_i32_1 = arith.constant 0 : i32
    return %c0_i32, %c0_i32_0 : i32, i32
  }
  func.func @transform_6(%arg0: i32) -> (i32, i32) {
    %c0_i32 = arith.constant 0 : i32
    %c0_i32_0 = arith.constant 0 : i32
    %c0_i32_1 = arith.constant 0 : i32
    return %c0_i32, %c0_i32_0 : i32, i32
  }
  func.func @transform_7(%arg0: i32) -> (i32, i32) {
    %c0_i32 = arith.constant 0 : i32
    %c0_i32_0 = arith.constant 0 : i32
    %c0_i32_1 = arith.constant 0 : i32
    return %c0_i32, %c0_i32_0 : i32, i32
  }
}

module attributes {stable_mosaic.version = 11 : i64} {
  func.func @_mm_bias_kernel(%arg0: i32, %arg1: memref<64x16xbf16, #tpu.memory_space<vmem>>, %arg2: memref<16x32xbf16, #tpu.memory_space<vmem>>, %arg3: memref<1x32xf32, #tpu.memory_space<vmem>>, %arg4: memref<64x32xf32, #tpu.memory_space<vmem>>) attributes {dimension_semantics = [#tpu.dimension_semantics<arbitrary>], iteration_bounds = array<i64: 1>, scalar_prefetch = 0 : i64, scratch_operands = 0 : i64, tpu.core_type = #tpu.core_type<tc>, window_params = [{pipeline_mode = #tpu.pipeline_mode<synchronous>, transform_indices = @transform_0, window_bounds = array<i64: 64, 16>}, {pipeline_mode = #tpu.pipeline_mode<synchronous>, transform_indices = @transform_1, window_bounds = array<i64: 16, 32>}, {pipeline_mode = #tpu.pipeline_mode<synchronous>, transform_indices = @transform_2, window_bounds = array<i64: 1, 32>}, {pipeline_mode = #tpu.pipeline_mode<synchronous>, transform_indices = @transform_3, window_bounds = array<i64: 64, 32>}]} {
    %c0 = arith.constant 0 : index
    %c0_0 = arith.constant 0 : index
    %0 = vector.load %arg1[%c0, %c0_0] : memref<64x16xbf16, #tpu.memory_space<vmem>>, vector<64x16xbf16>
    %c0_1 = arith.constant 0 : index
    %c0_2 = arith.constant 0 : index
    %1 = vector.load %arg2[%c0_1, %c0_2] : memref<16x32xbf16, #tpu.memory_space<vmem>>, vector<16x32xbf16>
    %cst = arith.constant dense<0.000000e+00> : vector<64x32xf32>
    %2 = tpu.matmul %0, %1, %cst {dimension_numbers = #tpu.dot_dimension_numbers<[1], [0], [0], [1], [0, 0, 1, 1], [], []>} : vector<64x16xbf16>, vector<16x32xbf16>, vector<64x32xf32> -> vector<64x32xf32>
    %c0_3 = arith.constant 0 : index
    %c0_4 = arith.constant 0 : index
    %3 = vector.load %arg3[%c0_3, %c0_4] : memref<1x32xf32, #tpu.memory_space<vmem>>, vector<1x32xf32>
    %4 = vector.broadcast %3 : vector<1x32xf32> to vector<64x32xf32>
    %5 = arith.addf %2, %4 : vector<64x32xf32>
    %c0_5 = arith.constant 0 : index
    %c0_6 = arith.constant 0 : index
    %6 = vector.load %arg4[%c0_5, %c0_6] : memref<64x32xf32, #tpu.memory_space<vmem>>, vector<64x32xf32>
    tpu.vector_store %arg4[%c0_5, %c0_6], %5 {strides = array<i32>} : memref<64x32xf32, #tpu.memory_space<vmem>>, vector<64x32xf32>,
    return
  }
  func.func @transform_0(%arg0: i32) -> (i32, i32) {
    %c0_i32 = arith.constant 0 : i32
    %c0_i32_0 = arith.constant 0 : i32
    %c0_i32_1 = arith.constant 0 : i32
    return %c0_i32, %c0_i32_0 : i32, i32
  }
  func.func @transform_1(%arg0: i32) -> (i32, i32) {
    %c0_i32 = arith.constant 0 : i32
    %c0_i32_0 = arith.constant 0 : i32
    %c0_i32_1 = arith.constant 0 : i32
    return %c0_i32, %c0_i32_0 : i32, i32
  }
  func.func @transform_2(%arg0: i32) -> (i32, i32) {
    %c0_i32 = arith.constant 0 : i32
    %c0_i32_0 = arith.constant 0 : i32
    %c0_i32_1 = arith.constant 0 : i32
    return %c0_i32, %c0_i32_0 : i32, i32
  }
  func.func @transform_3(%arg0: i32) -> (i32, i32) {
    %c0_i32 = arith.constant 0 : i32
    %c0_i32_0 = arith.constant 0 : i32
    %c0_i32_1 = arith.constant 0 : i32
    return %c0_i32, %c0_i32_0 : i32, i32
  }
}

module attributes {stable_mosaic.version = 11 : i64} {
  func.func @_gumbel_code_kl_kernel(%arg0: i32, %arg1: memref<64x32xf32, #tpu.memory_space<vmem>>, %arg2: memref<64x32xf32, #tpu.memory_space<vmem>>, %arg3: memref<32x32xf32, #tpu.memory_space<vmem>>, %arg4: memref<64x32xf32, #tpu.memory_space<vmem>>, %arg5: memref<1x32xf32, #tpu.memory_space<vmem>>) attributes {dimension_semantics = [#tpu.dimension_semantics<arbitrary>], iteration_bounds = array<i64: 1>, scalar_prefetch = 0 : i64, scratch_operands = 0 : i64, tpu.core_type = #tpu.core_type<tc>, window_params = [{pipeline_mode = #tpu.pipeline_mode<synchronous>, transform_indices = @transform_0, window_bounds = array<i64: 64, 32>}, {pipeline_mode = #tpu.pipeline_mode<synchronous>, transform_indices = @transform_1, window_bounds = array<i64: 64, 32>}, {pipeline_mode = #tpu.pipeline_mode<synchronous>, transform_indices = @transform_2, window_bounds = array<i64: 32, 32>}, {pipeline_mode = #tpu.pipeline_mode<synchronous>, transform_indices = @transform_3, window_bounds = array<i64: 64, 32>}, {pipeline_mode = #tpu.pipeline_mode<synchronous>, transform_indices = @transform_4, window_bounds = array<i64: 1, 32>}]} {
    %c0 = arith.constant 0 : index
    %c0_0 = arith.constant 0 : index
    %0 = vector.load %arg1[%c0, %c0_0] : memref<64x32xf32, #tpu.memory_space<vmem>>, vector<64x32xf32>
    %c0_1 = arith.constant 0 : index
    %c0_2 = arith.constant 0 : index
    %1 = vector.load %arg2[%c0_1, %c0_2] : memref<64x32xf32, #tpu.memory_space<vmem>>, vector<64x32xf32>
    %2 = arith.addf %0, %1 : vector<64x32xf32>
    %cst = arith.constant 1.11111116 : f32
    %3 = vector.broadcast %cst : f32 to vector<64x32xf32>
    %4 = arith.mulf %2, %3 : vector<64x32xf32>
    %cst_3 = arith.constant dense<0xFF800000> : vector<64xf32>
    %5 = vector.multi_reduction <maximumf>, %4, %cst_3 [1] : vector<64x32xf32> to vector<64xf32>
    %6 = vector.shape_cast %5 : vector<64xf32> to vector<64x1xf32>
    %7 = vector.broadcast %6 : vector<64x1xf32> to vector<64x32xf32>
    %8 = arith.subf %4, %7 : vector<64x32xf32>
    %9 = math.exp %8 : vector<64x32xf32>
    %cst_4 = arith.constant dense<0.000000e+00> : vector<64xf32>
    %10 = vector.multi_reduction <add>, %9, %cst_4 [1] : vector<64x32xf32> to vector<64xf32>
    %11 = vector.shape_cast %10 : vector<64xf32> to vector<64x1xf32>
    %12 = vector.broadcast %11 : vector<64x1xf32> to vector<64x32xf32>
    %13 = arith.divf %9, %12 : vector<64x32xf32>
    %c0_5 = arith.constant 0 : index
    %c0_6 = arith.constant 0 : index
    %14 = vector.load %arg3[%c0_5, %c0_6] : memref<32x32xf32, #tpu.memory_space<vmem>>, vector<32x32xf32>
    %cst_7 = arith.constant dense<0.000000e+00> : vector<64x32xf32>
    %15 = tpu.matmul %13, %14, %cst_7 {dimension_numbers = #tpu.dot_dimension_numbers<[1], [0], [0], [1], [0, 0, 1, 1], [], []>} : vector<64x32xf32>, vector<32x32xf32>, vector<64x32xf32> -> vector<64x32xf32>
    %c0_8 = arith.constant 0 : index
    %c0_9 = arith.constant 0 : index
    %16 = vector.load %arg4[%c0_8, %c0_9] : memref<64x32xf32, #tpu.memory_space<vmem>>, vector<64x32xf32>
    tpu.vector_store %arg4[%c0_8, %c0_9], %15 {strides = array<i32>} : memref<64x32xf32, #tpu.memory_space<vmem>>, vector<64x32xf32>,
    %cst_10 = arith.constant 0.000000e+00 : f32
    %17 = vector.broadcast %cst_10 : f32 to vector<1x32xf32>
    %c0_11 = arith.constant 0 : index
    %c0_12 = arith.constant 0 : index
    %18 = vector.load %arg5[%c0_11, %c0_12] : memref<1x32xf32, #tpu.memory_space<vmem>>, vector<1x32xf32>
    tpu.vector_store %arg5[%c0_11, %c0_12], %17 {strides = array<i32>} : memref<1x32xf32, #tpu.memory_space<vmem>>, vector<1x32xf32>,
    return
  }
  func.func @transform_0(%arg0: i32) -> (i32, i32) {
    %c0_i32 = arith.constant 0 : i32
    %c0_i32_0 = arith.constant 0 : i32
    %c0_i32_1 = arith.constant 0 : i32
    return %c0_i32, %c0_i32_0 : i32, i32
  }
  func.func @transform_1(%arg0: i32) -> (i32, i32) {
    %c0_i32 = arith.constant 0 : i32
    %c0_i32_0 = arith.constant 0 : i32
    %c0_i32_1 = arith.constant 0 : i32
    return %c0_i32, %c0_i32_0 : i32, i32
  }
  func.func @transform_2(%arg0: i32) -> (i32, i32) {
    %c0_i32 = arith.constant 0 : i32
    %c0_i32_0 = arith.constant 0 : i32
    %c0_i32_1 = arith.constant 0 : i32
    return %c0_i32, %c0_i32_0 : i32, i32
  }
  func.func @transform_3(%arg0: i32) -> (i32, i32) {
    %c0_i32 = arith.constant 0 : i32
    %c0_i32_0 = arith.constant 0 : i32
    %c0_i32_1 = arith.constant 0 : i32
    return %c0_i32, %c0_i32_0 : i32, i32
  }
  func.func @transform_4(%arg0: i32) -> (i32, i32) {
    %c0_i32 = arith.constant 0 : i32
    %c0_i32_0 = arith.constant 0 : i32
    %c0_i32_1 = arith.constant 0 : i32
    return %c0_i32, %c0_i32_0 : i32, i32
  }
}

module attributes {stable_mosaic.version = 11 : i64} {
  func.func @_mm_bias_kernel(%arg0: i32, %arg1: memref<32x32xbf16, #tpu.memory_space<vmem>>, %arg2: memref<32x16xbf16, #tpu.memory_space<vmem>>, %arg3: memref<1x16xf32, #tpu.memory_space<vmem>>, %arg4: memref<32x16xf32, #tpu.memory_space<vmem>>) attributes {dimension_semantics = [#tpu.dimension_semantics<arbitrary>], iteration_bounds = array<i64: 1>, scalar_prefetch = 0 : i64, scratch_operands = 0 : i64, tpu.core_type = #tpu.core_type<tc>, window_params = [{pipeline_mode = #tpu.pipeline_mode<synchronous>, transform_indices = @transform_0, window_bounds = array<i64: 32, 32>}, {pipeline_mode = #tpu.pipeline_mode<synchronous>, transform_indices = @transform_1, window_bounds = array<i64: 32, 16>}, {pipeline_mode = #tpu.pipeline_mode<synchronous>, transform_indices = @transform_2, window_bounds = array<i64: 1, 16>}, {pipeline_mode = #tpu.pipeline_mode<synchronous>, transform_indices = @transform_3, window_bounds = array<i64: 32, 16>}]} {
    %c0 = arith.constant 0 : index
    %c0_0 = arith.constant 0 : index
    %0 = vector.load %arg1[%c0, %c0_0] : memref<32x32xbf16, #tpu.memory_space<vmem>>, vector<32x32xbf16>
    %c0_1 = arith.constant 0 : index
    %c0_2 = arith.constant 0 : index
    %1 = vector.load %arg2[%c0_1, %c0_2] : memref<32x16xbf16, #tpu.memory_space<vmem>>, vector<32x16xbf16>
    %cst = arith.constant dense<0.000000e+00> : vector<32x16xf32>
    %2 = tpu.matmul %0, %1, %cst {dimension_numbers = #tpu.dot_dimension_numbers<[1], [0], [0], [1], [0, 0, 1, 1], [], []>} : vector<32x32xbf16>, vector<32x16xbf16>, vector<32x16xf32> -> vector<32x16xf32>
    %c0_3 = arith.constant 0 : index
    %c0_4 = arith.constant 0 : index
    %3 = vector.load %arg3[%c0_3, %c0_4] : memref<1x16xf32, #tpu.memory_space<vmem>>, vector<1x16xf32>
    %4 = vector.broadcast %3 : vector<1x16xf32> to vector<32x16xf32>
    %5 = arith.addf %2, %4 : vector<32x16xf32>
    %c0_5 = arith.constant 0 : index
    %c0_6 = arith.constant 0 : index
    %6 = vector.load %arg4[%c0_5, %c0_6] : memref<32x16xf32, #tpu.memory_space<vmem>>, vector<32x16xf32>
    tpu.vector_store %arg4[%c0_5, %c0_6], %5 {strides = array<i32>} : memref<32x16xf32, #tpu.memory_space<vmem>>, vector<32x16xf32>,
    return
  }
  func.func @transform_0(%arg0: i32) -> (i32, i32) {
    %c0_i32 = arith.constant 0 : i32
    %c0_i32_0 = arith.constant 0 : i32
    %c0_i32_1 = arith.constant 0 : i32
    return %c0_i32, %c0_i32_0 : i32, i32
  }
  func.func @transform_1(%arg0: i32) -> (i32, i32) {
    %c0_i32 = arith.constant 0 : i32
    %c0_i32_0 = arith.constant 0 : i32
    %c0_i32_1 = arith.constant 0 : i32
    return %c0_i32, %c0_i32_0 : i32, i32
  }
  func.func @transform_2(%arg0: i32) -> (i32, i32) {
    %c0_i32 = arith.constant 0 : i32
    %c0_i32_0 = arith.constant 0 : i32
    %c0_i32_1 = arith.constant 0 : i32
    return %c0_i32, %c0_i32_0 : i32, i32
  }
  func.func @transform_3(%arg0: i32) -> (i32, i32) {
    %c0_i32 = arith.constant 0 : i32
    %c0_i32_0 = arith.constant 0 : i32
    %c0_i32_1 = arith.constant 0 : i32
    return %c0_i32, %c0_i32_0 : i32, i32
  }
}

module attributes {stable_mosaic.version = 11 : i64} {
  func.func @_resblock_kernel(%arg0: i32, %arg1: memref<48x16xf32, #tpu.memory_space<vmem>>, %arg2: memref<144x16xf32, #tpu.memory_space<vmem>>, %arg3: memref<1x16xf32, #tpu.memory_space<vmem>>, %arg4: memref<144x16xf32, #tpu.memory_space<vmem>>, %arg5: memref<1x16xf32, #tpu.memory_space<vmem>>, %arg6: memref<16x16xf32, #tpu.memory_space<vmem>>, %arg7: memref<1x16xf32, #tpu.memory_space<vmem>>, %arg8: memref<32x16xf32, #tpu.memory_space<vmem>>, %arg9: memref<48x16xf32, #tpu.memory_space<vmem>>) attributes {dimension_semantics = [#tpu.dimension_semantics<arbitrary>], iteration_bounds = array<i64: 1>, scalar_prefetch = 0 : i64, scratch_operands = 1 : i64, tpu.core_type = #tpu.core_type<tc>, window_params = [{pipeline_mode = #tpu.pipeline_mode<synchronous>, transform_indices = @transform_0, window_bounds = array<i64: 48, 16>}, {pipeline_mode = #tpu.pipeline_mode<synchronous>, transform_indices = @transform_1, window_bounds = array<i64: 144, 16>}, {pipeline_mode = #tpu.pipeline_mode<synchronous>, transform_indices = @transform_2, window_bounds = array<i64: 1, 16>}, {pipeline_mode = #tpu.pipeline_mode<synchronous>, transform_indices = @transform_3, window_bounds = array<i64: 144, 16>}, {pipeline_mode = #tpu.pipeline_mode<synchronous>, transform_indices = @transform_4, window_bounds = array<i64: 1, 16>}, {pipeline_mode = #tpu.pipeline_mode<synchronous>, transform_indices = @transform_5, window_bounds = array<i64: 16, 16>}, {pipeline_mode = #tpu.pipeline_mode<synchronous>, transform_indices = @transform_6, window_bounds = array<i64: 1, 16>}, {pipeline_mode = #tpu.pipeline_mode<synchronous>, transform_indices = @transform_7, window_bounds = array<i64: 32, 16>}]} {
    %0 = tpu.iota {dimensions = array<i32: 0>} : vector<32x1xi32>
    %c2_i32 = arith.constant 2 : i32
    %1 = vector.broadcast %c2_i32 : i32 to vector<32x1xi32>
    %2 = arith.shrsi %0, %1 : vector<32x1xi32>
    %c3_i32 = arith.constant 3 : i32
    %3 = vector.broadcast %c3_i32 : i32 to vector<32x1xi32>
    %4 = arith.andi %2, %3 : vector<32x1xi32>
    %c3_i32_0 = arith.constant 3 : i32
    %5 = vector.broadcast %c3_i32_0 : i32 to vector<32x1xi32>
    %6 = arith.andi %0, %5 : vector<32x1xi32>
    %c3 = arith.constant 3 : index
    %c0 = arith.constant 0 : index
    %7 = vector.load %arg1[%c3, %c0] : memref<48x16xf32, #tpu.memory_space<vmem>>, vector<32x16xf32>
    %c1_i32 = arith.constant 1 : i32
    %8 = vector.broadcast %c1_i32 : i32 to vector<32x1xi32>
    %9 = arith.cmpi sge, %4, %8 : vector<32x1xi32>
    %c1_i32_1 = arith.constant 1 : i32
    %10 = vector.broadcast %c1_i32_1 : i32 to vector<32x1xi32>
    %11 = arith.cmpi sge, %6, %10 : vector<32x1xi32>
    %12 = arith.andi %9, %11 : vector<32x1xi1>
    %cst = arith.constant 0.000000e+00 : f32
    %13 = vector.shape_cast %12 : vector<32x1xi1> to vector<32x1xi1>
    %14 = vector.broadcast %13 : vector<32x1xi1> to vector<32x16xi1>
    %15 = vector.broadcast %cst : f32 to vector<32x16xf32>
    %16 = arith.select %14, %7, %15 : vector<32x16xi1>, vector<32x16xf32>
    %c0_2 = arith.constant 0 : index
    %c0_3 = arith.constant 0 : index
    %17 = vector.load %arg2[%c0_2, %c0_3] : memref<144x16xf32, #tpu.memory_space<vmem>>, vector<16x16xf32>
    %cst_4 = arith.constant dense<0.000000e+00> : vector<32x16xf32>
    %18 = tpu.matmul %16, %17, %cst_4 {dimension_numbers = #tpu.dot_dimension_numbers<[1], [0], [0], [1], [0, 0, 1, 1], [], []>} : vector<32x16xf32>, vector<16x16xf32>, vector<32x16xf32> -> vector<32x16xf32>
    %c4 = arith.constant 4 : index
    %c0_5 = arith.constant 0 : index
    %19 = vector.load %arg1[%c4, %c0_5] : memref<48x16xf32, #tpu.memory_space<vmem>>, vector<32x16xf32>
    %c1_i32_6 = arith.constant 1 : i32
    %20 = vector.broadcast %c1_i32_6 : i32 to vector<32x1xi32>
    %21 = arith.cmpi sge, %4, %20 : vector<32x1xi32>
    %cst_7 = arith.constant 0.000000e+00 : f32
    %22 = vector.shape_cast %21 : vector<32x1xi1> to vector<32x1xi1>
    %23 = vector.broadcast %22 : vector<32x1xi1> to vector<32x16xi1>
    %24 = vector.broadcast %cst_7 : f32 to vector<32x16xf32>
    %25 = arith.select %23, %19, %24 : vector<32x16xi1>, vector<32x16xf32>
    %c16 = arith.constant 16 : index
    %c0_8 = arith.constant 0 : index
    %26 = vector.load %arg2[%c16, %c0_8] : memref<144x16xf32, #tpu.memory_space<vmem>>, vector<16x16xf32>
    %cst_9 = arith.constant dense<0.000000e+00> : vector<32x16xf32>
    %27 = tpu.matmul %25, %26, %cst_9 {dimension_numbers = #tpu.dot_dimension_numbers<[1], [0], [0], [1], [0, 0, 1, 1], [], []>} : vector<32x16xf32>, vector<16x16xf32>, vector<32x16xf32> -> vector<32x16xf32>
    %28 = arith.addf %18, %27 : vector<32x16xf32>
    %c5 = arith.constant 5 : index
    %c0_10 = arith.constant 0 : index
    %29 = vector.load %arg1[%c5, %c0_10] : memref<48x16xf32, #tpu.memory_space<vmem>>, vector<32x16xf32>
    %c1_i32_11 = arith.constant 1 : i32
    %30 = vector.broadcast %c1_i32_11 : i32 to vector<32x1xi32>
    %31 = arith.cmpi sge, %4, %30 : vector<32x1xi32>
    %c3_i32_12 = arith.constant 3 : i32
    %32 = vector.broadcast %c3_i32_12 : i32 to vector<32x1xi32>
    %33 = arith.cmpi slt, %6, %32 : vector<32x1xi32>
    %34 = arith.andi %31, %33 : vector<32x1xi1>
    %cst_13 = arith.constant 0.000000e+00 : f32
    %35 = vector.shape_cast %34 : vector<32x1xi1> to vector<32x1xi1>
    %36 = vector.broadcast %35 : vector<32x1xi1> to vector<32x16xi1>
    %37 = vector.broadcast %cst_13 : f32 to vector<32x16xf32>
    %38 = arith.select %36, %29, %37 : vector<32x16xi1>, vector<32x16xf32>
    %c32 = arith.constant 32 : index
    %c0_14 = arith.constant 0 : index
    %39 = vector.load %arg2[%c32, %c0_14] : memref<144x16xf32, #tpu.memory_space<vmem>>, vector<16x16xf32>
    %cst_15 = arith.constant dense<0.000000e+00> : vector<32x16xf32>
    %40 = tpu.matmul %38, %39, %cst_15 {dimension_numbers = #tpu.dot_dimension_numbers<[1], [0], [0], [1], [0, 0, 1, 1], [], []>} : vector<32x16xf32>, vector<16x16xf32>, vector<32x16xf32> -> vector<32x16xf32>
    %41 = arith.addf %28, %40 : vector<32x16xf32>
    %c7 = arith.constant 7 : index
    %c0_16 = arith.constant 0 : index
    %42 = vector.load %arg1[%c7, %c0_16] : memref<48x16xf32, #tpu.memory_space<vmem>>, vector<32x16xf32>
    %c1_i32_17 = arith.constant 1 : i32
    %43 = vector.broadcast %c1_i32_17 : i32 to vector<32x1xi32>
    %44 = arith.cmpi sge, %6, %43 : vector<32x1xi32>
    %cst_18 = arith.constant 0.000000e+00 : f32
    %45 = vector.shape_cast %44 : vector<32x1xi1> to vector<32x1xi1>
    %46 = vector.broadcast %45 : vector<32x1xi1> to vector<32x16xi1>
    %47 = vector.broadcast %cst_18 : f32 to vector<32x16xf32>
    %48 = arith.select %46, %42, %47 : vector<32x16xi1>, vector<32x16xf32>
    %c48 = arith.constant 48 : index
    %c0_19 = arith.constant 0 : index
    %49 = vector.load %arg2[%c48, %c0_19] : memref<144x16xf32, #tpu.memory_space<vmem>>, vector<16x16xf32>
    %cst_20 = arith.constant dense<0.000000e+00> : vector<32x16xf32>
    %50 = tpu.matmul %48, %49, %cst_20 {dimension_numbers = #tpu.dot_dimension_numbers<[1], [0], [0], [1], [0, 0, 1, 1], [], []>} : vector<32x16xf32>, vector<16x16xf32>, vector<32x16xf32> -> vector<32x16xf32>
    %51 = arith.addf %41, %50 : vector<32x16xf32>
    %c8 = arith.constant 8 : index
    %c0_21 = arith.constant 0 : index
    %52 = vector.load %arg1[%c8, %c0_21] : memref<48x16xf32, #tpu.memory_space<vmem>>, vector<32x16xf32>
    %c64 = arith.constant 64 : index
    %c0_22 = arith.constant 0 : index
    %53 = vector.load %arg2[%c64, %c0_22] : memref<144x16xf32, #tpu.memory_space<vmem>>, vector<16x16xf32>
    %cst_23 = arith.constant dense<0.000000e+00> : vector<32x16xf32>
    %54 = tpu.matmul %52, %53, %cst_23 {dimension_numbers = #tpu.dot_dimension_numbers<[1], [0], [0], [1], [0, 0, 1, 1], [], []>} : vector<32x16xf32>, vector<16x16xf32>, vector<32x16xf32> -> vector<32x16xf32>
    %55 = arith.addf %51, %54 : vector<32x16xf32>
    %c9 = arith.constant 9 : index
    %c0_24 = arith.constant 0 : index
    %56 = vector.load %arg1[%c9, %c0_24] : memref<48x16xf32, #tpu.memory_space<vmem>>, vector<32x16xf32>
    %c3_i32_25 = arith.constant 3 : i32
    %57 = vector.broadcast %c3_i32_25 : i32 to vector<32x1xi32>
    %58 = arith.cmpi slt, %6, %57 : vector<32x1xi32>
    %cst_26 = arith.constant 0.000000e+00 : f32
    %59 = vector.shape_cast %58 : vector<32x1xi1> to vector<32x1xi1>
    %60 = vector.broadcast %59 : vector<32x1xi1> to vector<32x16xi1>
    %61 = vector.broadcast %cst_26 : f32 to vector<32x16xf32>
    %62 = arith.select %60, %56, %61 : vector<32x16xi1>, vector<32x16xf32>
    %c80 = arith.constant 80 : index
    %c0_27 = arith.constant 0 : index
    %63 = vector.load %arg2[%c80, %c0_27] : memref<144x16xf32, #tpu.memory_space<vmem>>, vector<16x16xf32>
    %cst_28 = arith.constant dense<0.000000e+00> : vector<32x16xf32>
    %64 = tpu.matmul %62, %63, %cst_28 {dimension_numbers = #tpu.dot_dimension_numbers<[1], [0], [0], [1], [0, 0, 1, 1], [], []>} : vector<32x16xf32>, vector<16x16xf32>, vector<32x16xf32> -> vector<32x16xf32>
    %65 = arith.addf %55, %64 : vector<32x16xf32>
    %c11 = arith.constant 11 : index
    %c0_29 = arith.constant 0 : index
    %66 = vector.load %arg1[%c11, %c0_29] : memref<48x16xf32, #tpu.memory_space<vmem>>, vector<32x16xf32>
    %c3_i32_30 = arith.constant 3 : i32
    %67 = vector.broadcast %c3_i32_30 : i32 to vector<32x1xi32>
    %68 = arith.cmpi slt, %4, %67 : vector<32x1xi32>
    %c1_i32_31 = arith.constant 1 : i32
    %69 = vector.broadcast %c1_i32_31 : i32 to vector<32x1xi32>
    %70 = arith.cmpi sge, %6, %69 : vector<32x1xi32>
    %71 = arith.andi %68, %70 : vector<32x1xi1>
    %cst_32 = arith.constant 0.000000e+00 : f32
    %72 = vector.shape_cast %71 : vector<32x1xi1> to vector<32x1xi1>
    %73 = vector.broadcast %72 : vector<32x1xi1> to vector<32x16xi1>
    %74 = vector.broadcast %cst_32 : f32 to vector<32x16xf32>
    %75 = arith.select %73, %66, %74 : vector<32x16xi1>, vector<32x16xf32>
    %c96 = arith.constant 96 : index
    %c0_33 = arith.constant 0 : index
    %76 = vector.load %arg2[%c96, %c0_33] : memref<144x16xf32, #tpu.memory_space<vmem>>, vector<16x16xf32>
    %cst_34 = arith.constant dense<0.000000e+00> : vector<32x16xf32>
    %77 = tpu.matmul %75, %76, %cst_34 {dimension_numbers = #tpu.dot_dimension_numbers<[1], [0], [0], [1], [0, 0, 1, 1], [], []>} : vector<32x16xf32>, vector<16x16xf32>, vector<32x16xf32> -> vector<32x16xf32>
    %78 = arith.addf %65, %77 : vector<32x16xf32>
    %c12 = arith.constant 12 : index
    %c0_35 = arith.constant 0 : index
    %79 = vector.load %arg1[%c12, %c0_35] : memref<48x16xf32, #tpu.memory_space<vmem>>, vector<32x16xf32>
    %c3_i32_36 = arith.constant 3 : i32
    %80 = vector.broadcast %c3_i32_36 : i32 to vector<32x1xi32>
    %81 = arith.cmpi slt, %4, %80 : vector<32x1xi32>
    %cst_37 = arith.constant 0.000000e+00 : f32
    %82 = vector.shape_cast %81 : vector<32x1xi1> to vector<32x1xi1>
    %83 = vector.broadcast %82 : vector<32x1xi1> to vector<32x16xi1>
    %84 = vector.broadcast %cst_37 : f32 to vector<32x16xf32>
    %85 = arith.select %83, %79, %84 : vector<32x16xi1>, vector<32x16xf32>
    %c112 = arith.constant 112 : index
    %c0_38 = arith.constant 0 : index
    %86 = vector.load %arg2[%c112, %c0_38] : memref<144x16xf32, #tpu.memory_space<vmem>>, vector<16x16xf32>
    %cst_39 = arith.constant dense<0.000000e+00> : vector<32x16xf32>
    %87 = tpu.matmul %85, %86, %cst_39 {dimension_numbers = #tpu.dot_dimension_numbers<[1], [0], [0], [1], [0, 0, 1, 1], [], []>} : vector<32x16xf32>, vector<16x16xf32>, vector<32x16xf32> -> vector<32x16xf32>
    %88 = arith.addf %78, %87 : vector<32x16xf32>
    %c13 = arith.constant 13 : index
    %c0_40 = arith.constant 0 : index
    %89 = vector.load %arg1[%c13, %c0_40] : memref<48x16xf32, #tpu.memory_space<vmem>>, vector<32x16xf32>
    %c3_i32_41 = arith.constant 3 : i32
    %90 = vector.broadcast %c3_i32_41 : i32 to vector<32x1xi32>
    %91 = arith.cmpi slt, %4, %90 : vector<32x1xi32>
    %c3_i32_42 = arith.constant 3 : i32
    %92 = vector.broadcast %c3_i32_42 : i32 to vector<32x1xi32>
    %93 = arith.cmpi slt, %6, %92 : vector<32x1xi32>
    %94 = arith.andi %91, %93 : vector<32x1xi1>
    %cst_43 = arith.constant 0.000000e+00 : f32
    %95 = vector.shape_cast %94 : vector<32x1xi1> to vector<32x1xi1>
    %96 = vector.broadcast %95 : vector<32x1xi1> to vector<32x16xi1>
    %97 = vector.broadcast %cst_43 : f32 to vector<32x16xf32>
    %98 = arith.select %96, %89, %97 : vector<32x16xi1>, vector<32x16xf32>
    %c128 = arith.constant 128 : index
    %c0_44 = arith.constant 0 : index
    %99 = vector.load %arg2[%c128, %c0_44] : memref<144x16xf32, #tpu.memory_space<vmem>>, vector<16x16xf32>
    %cst_45 = arith.constant dense<0.000000e+00> : vector<32x16xf32>
    %100 = tpu.matmul %98, %99, %cst_45 {dimension_numbers = #tpu.dot_dimension_numbers<[1], [0], [0], [1], [0, 0, 1, 1], [], []>} : vector<32x16xf32>, vector<16x16xf32>, vector<32x16xf32> -> vector<32x16xf32>
    %101 = arith.addf %88, %100 : vector<32x16xf32>
    %c0_46 = arith.constant 0 : index
    %c0_47 = arith.constant 0 : index
    %102 = vector.load %arg3[%c0_46, %c0_47] : memref<1x16xf32, #tpu.memory_space<vmem>>, vector<1x16xf32>
    %103 = vector.broadcast %102 : vector<1x16xf32> to vector<32x16xf32>
    %104 = arith.addf %101, %103 : vector<32x16xf32>
    %cst_48 = arith.constant 0.000000e+00 : f32
    %105 = vector.broadcast %cst_48 : f32 to vector<32x16xf32>
    %106 = arith.maximumf %104, %105 : vector<32x16xf32>
    %cst_49 = arith.constant 0.000000e+00 : f32
    %107 = vector.broadcast %cst_49 : f32 to vector<48x16xf32>
    %c0_50 = arith.constant 0 : index
    %c0_51 = arith.constant 0 : index
    %108 = vector.load %arg9[%c0_50, %c0_51] : memref<48x16xf32, #tpu.memory_space<vmem>>, vector<48x16xf32>
    tpu.vector_store %arg9[%c0_50, %c0_51], %107 {strides = array<i32>} : memref<48x16xf32, #tpu.memory_space<vmem>>, vector<48x16xf32>,
    %c8_52 = arith.constant 8 : index
    %c0_53 = arith.constant 0 : index
    %109 = vector.load %arg9[%c8_52, %c0_53] : memref<48x16xf32, #tpu.memory_space<vmem>>, vector<32x16xf32>
    tpu.vector_store %arg9[%c8_52, %c0_53], %106 {strides = array<i32>} : memref<48x16xf32, #tpu.memory_space<vmem>>, vector<32x16xf32>,
    %c3_54 = arith.constant 3 : index
    %c0_55 = arith.constant 0 : index
    %110 = vector.load %arg9[%c3_54, %c0_55] : memref<48x16xf32, #tpu.memory_space<vmem>>, vector<32x16xf32>
    %c1_i32_56 = arith.constant 1 : i32
    %111 = vector.broadcast %c1_i32_56 : i32 to vector<32x1xi32>
    %112 = arith.cmpi sge, %4, %111 : vector<32x1xi32>
    %c1_i32_57 = arith.constant 1 : i32
    %113 = vector.broadcast %c1_i32_57 : i32 to vector<32x1xi32>
    %114 = arith.cmpi sge, %6, %113 : vector<32x1xi32>
    %115 = arith.andi %112, %114 : vector<32x1xi1>
    %cst_58 = arith.constant 0.000000e+00 : f32
    %116 = vector.shape_cast %115 : vector<32x1xi1> to vector<32x1xi1>
    %117 = vector.broadcast %116 : vector<32x1xi1> to vector<32x16xi1>
    %118 = vector.broadcast %cst_58 : f32 to vector<32x16xf32>
    %119 = arith.select %117, %110, %118 : vector<32x16xi1>, vector<32x16xf32>
    %c0_59 = arith.constant 0 : index
    %c0_60 = arith.constant 0 : index
    %120 = vector.load %arg4[%c0_59, %c0_60] : memref<144x16xf32, #tpu.memory_space<vmem>>, vector<16x16xf32>
    %cst_61 = arith.constant dense<0.000000e+00> : vector<32x16xf32>
    %121 = tpu.matmul %119, %120, %cst_61 {dimension_numbers = #tpu.dot_dimension_numbers<[1], [0], [0], [1], [0, 0, 1, 1], [], []>} : vector<32x16xf32>, vector<16x16xf32>, vector<32x16xf32> -> vector<32x16xf32>
    %c4_62 = arith.constant 4 : index
    %c0_63 = arith.constant 0 : index
    %122 = vector.load %arg9[%c4_62, %c0_63] : memref<48x16xf32, #tpu.memory_space<vmem>>, vector<32x16xf32>
    %c1_i32_64 = arith.constant 1 : i32
    %123 = vector.broadcast %c1_i32_64 : i32 to vector<32x1xi32>
    %124 = arith.cmpi sge, %4, %123 : vector<32x1xi32>
    %cst_65 = arith.constant 0.000000e+00 : f32
    %125 = vector.shape_cast %124 : vector<32x1xi1> to vector<32x1xi1>
    %126 = vector.broadcast %125 : vector<32x1xi1> to vector<32x16xi1>
    %127 = vector.broadcast %cst_65 : f32 to vector<32x16xf32>
    %128 = arith.select %126, %122, %127 : vector<32x16xi1>, vector<32x16xf32>
    %c16_66 = arith.constant 16 : index
    %c0_67 = arith.constant 0 : index
    %129 = vector.load %arg4[%c16_66, %c0_67] : memref<144x16xf32, #tpu.memory_space<vmem>>, vector<16x16xf32>
    %cst_68 = arith.constant dense<0.000000e+00> : vector<32x16xf32>
    %130 = tpu.matmul %128, %129, %cst_68 {dimension_numbers = #tpu.dot_dimension_numbers<[1], [0], [0], [1], [0, 0, 1, 1], [], []>} : vector<32x16xf32>, vector<16x16xf32>, vector<32x16xf32> -> vector<32x16xf32>
    %131 = arith.addf %121, %130 : vector<32x16xf32>
    %c5_69 = arith.constant 5 : index
    %c0_70 = arith.constant 0 : index
    %132 = vector.load %arg9[%c5_69, %c0_70] : memref<48x16xf32, #tpu.memory_space<vmem>>, vector<32x16xf32>
    %c1_i32_71 = arith.constant 1 : i32
    %133 = vector.broadcast %c1_i32_71 : i32 to vector<32x1xi32>
    %134 = arith.cmpi sge, %4, %133 : vector<32x1xi32>
    %c3_i32_72 = arith.constant 3 : i32
    %135 = vector.broadcast %c3_i32_72 : i32 to vector<32x1xi32>
    %136 = arith.cmpi slt, %6, %135 : vector<32x1xi32>
    %137 = arith.andi %134, %136 : vector<32x1xi1>
    %cst_73 = arith.constant 0.000000e+00 : f32
    %138 = vector.shape_cast %137 : vector<32x1xi1> to vector<32x1xi1>
    %139 = vector.broadcast %138 : vector<32x1xi1> to vector<32x16xi1>
    %140 = vector.broadcast %cst_73 : f32 to vector<32x16xf32>
    %141 = arith.select %139, %132, %140 : vector<32x16xi1>, vector<32x16xf32>
    %c32_74 = arith.constant 32 : index
    %c0_75 = arith.constant 0 : index
    %142 = vector.load %arg4[%c32_74, %c0_75] : memref<144x16xf32, #tpu.memory_space<vmem>>, vector<16x16xf32>
    %cst_76 = arith.constant dense<0.000000e+00> : vector<32x16xf32>
    %143 = tpu.matmul %141, %142, %cst_76 {dimension_numbers = #tpu.dot_dimension_numbers<[1], [0], [0], [1], [0, 0, 1, 1], [], []>} : vector<32x16xf32>, vector<16x16xf32>, vector<32x16xf32> -> vector<32x16xf32>
    %144 = arith.addf %131, %143 : vector<32x16xf32>
    %c7_77 = arith.constant 7 : index
    %c0_78 = arith.constant 0 : index
    %145 = vector.load %arg9[%c7_77, %c0_78] : memref<48x16xf32, #tpu.memory_space<vmem>>, vector<32x16xf32>
    %c1_i32_79 = arith.constant 1 : i32
    %146 = vector.broadcast %c1_i32_79 : i32 to vector<32x1xi32>
    %147 = arith.cmpi sge, %6, %146 : vector<32x1xi32>
    %cst_80 = arith.constant 0.000000e+00 : f32
    %148 = vector.shape_cast %147 : vector<32x1xi1> to vector<32x1xi1>
    %149 = vector.broadcast %148 : vector<32x1xi1> to vector<32x16xi1>
    %150 = vector.broadcast %cst_80 : f32 to vector<32x16xf32>
    %151 = arith.select %149, %145, %150 : vector<32x16xi1>, vector<32x16xf32>
    %c48_81 = arith.constant 48 : index
    %c0_82 = arith.constant 0 : index
    %152 = vector.load %arg4[%c48_81, %c0_82] : memref<144x16xf32, #tpu.memory_space<vmem>>, vector<16x16xf32>
    %cst_83 = arith.constant dense<0.000000e+00> : vector<32x16xf32>
    %153 = tpu.matmul %151, %152, %cst_83 {dimension_numbers = #tpu.dot_dimension_numbers<[1], [0], [0], [1], [0, 0, 1, 1], [], []>} : vector<32x16xf32>, vector<16x16xf32>, vector<32x16xf32> -> vector<32x16xf32>
    %154 = arith.addf %144, %153 : vector<32x16xf32>
    %c8_84 = arith.constant 8 : index
    %c0_85 = arith.constant 0 : index
    %155 = vector.load %arg9[%c8_84, %c0_85] : memref<48x16xf32, #tpu.memory_space<vmem>>, vector<32x16xf32>
    %c64_86 = arith.constant 64 : index
    %c0_87 = arith.constant 0 : index
    %156 = vector.load %arg4[%c64_86, %c0_87] : memref<144x16xf32, #tpu.memory_space<vmem>>, vector<16x16xf32>
    %cst_88 = arith.constant dense<0.000000e+00> : vector<32x16xf32>
    %157 = tpu.matmul %155, %156, %cst_88 {dimension_numbers = #tpu.dot_dimension_numbers<[1], [0], [0], [1], [0, 0, 1, 1], [], []>} : vector<32x16xf32>, vector<16x16xf32>, vector<32x16xf32> -> vector<32x16xf32>
    %158 = arith.addf %154, %157 : vector<32x16xf32>
    %c9_89 = arith.constant 9 : index
    %c0_90 = arith.constant 0 : index
    %159 = vector.load %arg9[%c9_89, %c0_90] : memref<48x16xf32, #tpu.memory_space<vmem>>, vector<32x16xf32>
    %c3_i32_91 = arith.constant 3 : i32
    %160 = vector.broadcast %c3_i32_91 : i32 to vector<32x1xi32>
    %161 = arith.cmpi slt, %6, %160 : vector<32x1xi32>
    %cst_92 = arith.constant 0.000000e+00 : f32
    %162 = vector.shape_cast %161 : vector<32x1xi1> to vector<32x1xi1>
    %163 = vector.broadcast %162 : vector<32x1xi1> to vector<32x16xi1>
    %164 = vector.broadcast %cst_92 : f32 to vector<32x16xf32>
    %165 = arith.select %163, %159, %164 : vector<32x16xi1>, vector<32x16xf32>
    %c80_93 = arith.constant 80 : index
    %c0_94 = arith.constant 0 : index
    %166 = vector.load %arg4[%c80_93, %c0_94] : memref<144x16xf32, #tpu.memory_space<vmem>>, vector<16x16xf32>
    %cst_95 = arith.constant dense<0.000000e+00> : vector<32x16xf32>
    %167 = tpu.matmul %165, %166, %cst_95 {dimension_numbers = #tpu.dot_dimension_numbers<[1], [0], [0], [1], [0, 0, 1, 1], [], []>} : vector<32x16xf32>, vector<16x16xf32>, vector<32x16xf32> -> vector<32x16xf32>
    %168 = arith.addf %158, %167 : vector<32x16xf32>
    %c11_96 = arith.constant 11 : index
    %c0_97 = arith.constant 0 : index
    %169 = vector.load %arg9[%c11_96, %c0_97] : memref<48x16xf32, #tpu.memory_space<vmem>>, vector<32x16xf32>
    %c3_i32_98 = arith.constant 3 : i32
    %170 = vector.broadcast %c3_i32_98 : i32 to vector<32x1xi32>
    %171 = arith.cmpi slt, %4, %170 : vector<32x1xi32>
    %c1_i32_99 = arith.constant 1 : i32
    %172 = vector.broadcast %c1_i32_99 : i32 to vector<32x1xi32>
    %173 = arith.cmpi sge, %6, %172 : vector<32x1xi32>
    %174 = arith.andi %171, %173 : vector<32x1xi1>
    %cst_100 = arith.constant 0.000000e+00 : f32
    %175 = vector.shape_cast %174 : vector<32x1xi1> to vector<32x1xi1>
    %176 = vector.broadcast %175 : vector<32x1xi1> to vector<32x16xi1>
    %177 = vector.broadcast %cst_100 : f32 to vector<32x16xf32>
    %178 = arith.select %176, %169, %177 : vector<32x16xi1>, vector<32x16xf32>
    %c96_101 = arith.constant 96 : index
    %c0_102 = arith.constant 0 : index
    %179 = vector.load %arg4[%c96_101, %c0_102] : memref<144x16xf32, #tpu.memory_space<vmem>>, vector<16x16xf32>
    %cst_103 = arith.constant dense<0.000000e+00> : vector<32x16xf32>
    %180 = tpu.matmul %178, %179, %cst_103 {dimension_numbers = #tpu.dot_dimension_numbers<[1], [0], [0], [1], [0, 0, 1, 1], [], []>} : vector<32x16xf32>, vector<16x16xf32>, vector<32x16xf32> -> vector<32x16xf32>
    %181 = arith.addf %168, %180 : vector<32x16xf32>
    %c12_104 = arith.constant 12 : index
    %c0_105 = arith.constant 0 : index
    %182 = vector.load %arg9[%c12_104, %c0_105] : memref<48x16xf32, #tpu.memory_space<vmem>>, vector<32x16xf32>
    %c3_i32_106 = arith.constant 3 : i32
    %183 = vector.broadcast %c3_i32_106 : i32 to vector<32x1xi32>
    %184 = arith.cmpi slt, %4, %183 : vector<32x1xi32>
    %cst_107 = arith.constant 0.000000e+00 : f32
    %185 = vector.shape_cast %184 : vector<32x1xi1> to vector<32x1xi1>
    %186 = vector.broadcast %185 : vector<32x1xi1> to vector<32x16xi1>
    %187 = vector.broadcast %cst_107 : f32 to vector<32x16xf32>
    %188 = arith.select %186, %182, %187 : vector<32x16xi1>, vector<32x16xf32>
    %c112_108 = arith.constant 112 : index
    %c0_109 = arith.constant 0 : index
    %189 = vector.load %arg4[%c112_108, %c0_109] : memref<144x16xf32, #tpu.memory_space<vmem>>, vector<16x16xf32>
    %cst_110 = arith.constant dense<0.000000e+00> : vector<32x16xf32>
    %190 = tpu.matmul %188, %189, %cst_110 {dimension_numbers = #tpu.dot_dimension_numbers<[1], [0], [0], [1], [0, 0, 1, 1], [], []>} : vector<32x16xf32>, vector<16x16xf32>, vector<32x16xf32> -> vector<32x16xf32>
    %191 = arith.addf %181, %190 : vector<32x16xf32>
    %c13_111 = arith.constant 13 : index
    %c0_112 = arith.constant 0 : index
    %192 = vector.load %arg9[%c13_111, %c0_112] : memref<48x16xf32, #tpu.memory_space<vmem>>, vector<32x16xf32>
    %c3_i32_113 = arith.constant 3 : i32
    %193 = vector.broadcast %c3_i32_113 : i32 to vector<32x1xi32>
    %194 = arith.cmpi slt, %4, %193 : vector<32x1xi32>
    %c3_i32_114 = arith.constant 3 : i32
    %195 = vector.broadcast %c3_i32_114 : i32 to vector<32x1xi32>
    %196 = arith.cmpi slt, %6, %195 : vector<32x1xi32>
    %197 = arith.andi %194, %196 : vector<32x1xi1>
    %cst_115 = arith.constant 0.000000e+00 : f32
    %198 = vector.shape_cast %197 : vector<32x1xi1> to vector<32x1xi1>
    %199 = vector.broadcast %198 : vector<32x1xi1> to vector<32x16xi1>
    %200 = vector.broadcast %cst_115 : f32 to vector<32x16xf32>
    %201 = arith.select %199, %192, %200 : vector<32x16xi1>, vector<32x16xf32>
    %c128_116 = arith.constant 128 : index
    %c0_117 = arith.constant 0 : index
    %202 = vector.load %arg4[%c128_116, %c0_117] : memref<144x16xf32, #tpu.memory_space<vmem>>, vector<16x16xf32>
    %cst_118 = arith.constant dense<0.000000e+00> : vector<32x16xf32>
    %203 = tpu.matmul %201, %202, %cst_118 {dimension_numbers = #tpu.dot_dimension_numbers<[1], [0], [0], [1], [0, 0, 1, 1], [], []>} : vector<32x16xf32>, vector<16x16xf32>, vector<32x16xf32> -> vector<32x16xf32>
    %204 = arith.addf %191, %203 : vector<32x16xf32>
    %c0_119 = arith.constant 0 : index
    %c0_120 = arith.constant 0 : index
    %205 = vector.load %arg5[%c0_119, %c0_120] : memref<1x16xf32, #tpu.memory_space<vmem>>, vector<1x16xf32>
    %206 = vector.broadcast %205 : vector<1x16xf32> to vector<32x16xf32>
    %207 = arith.addf %204, %206 : vector<32x16xf32>
    %cst_121 = arith.constant 0.000000e+00 : f32
    %208 = vector.broadcast %cst_121 : f32 to vector<32x16xf32>
    %209 = arith.maximumf %207, %208 : vector<32x16xf32>
    %c0_122 = arith.constant 0 : index
    %c0_123 = arith.constant 0 : index
    %210 = vector.load %arg6[%c0_122, %c0_123] : memref<16x16xf32, #tpu.memory_space<vmem>>, vector<16x16xf32>
    %cst_124 = arith.constant dense<0.000000e+00> : vector<32x16xf32>
    %211 = tpu.matmul %209, %210, %cst_124 {dimension_numbers = #tpu.dot_dimension_numbers<[1], [0], [0], [1], [0, 0, 1, 1], [], []>} : vector<32x16xf32>, vector<16x16xf32>, vector<32x16xf32> -> vector<32x16xf32>
    %c0_125 = arith.constant 0 : index
    %c0_126 = arith.constant 0 : index
    %212 = vector.load %arg7[%c0_125, %c0_126] : memref<1x16xf32, #tpu.memory_space<vmem>>, vector<1x16xf32>
    %213 = vector.broadcast %212 : vector<1x16xf32> to vector<32x16xf32>
    %214 = arith.addf %211, %213 : vector<32x16xf32>
    %c8_127 = arith.constant 8 : index
    %c0_128 = arith.constant 0 : index
    %215 = vector.load %arg1[%c8_127, %c0_128] : memref<48x16xf32, #tpu.memory_space<vmem>>, vector<32x16xf32>
    %216 = arith.addf %214, %215 : vector<32x16xf32>
    %c0_129 = arith.constant 0 : index
    %c0_130 = arith.constant 0 : index
    %217 = vector.load %arg8[%c0_129, %c0_130] : memref<32x16xf32, #tpu.memory_space<vmem>>, vector<32x16xf32>
    tpu.vector_store %arg8[%c0_129, %c0_130], %216 {strides = array<i32>} : memref<32x16xf32, #tpu.memory_space<vmem>>, vector<32x16xf32>,
    return
  }
  func.func @transform_0(%arg0: i32) -> (i32, i32) {
    %c0_i32 = arith.constant 0 : i32
    %c0_i32_0 = arith.constant 0 : i32
    %c0_i32_1 = arith.constant 0 : i32
    return %c0_i32, %c0_i32_0 : i32, i32
  }
  func.func @transform_1(%arg0: i32) -> (i32, i32) {
    %c0_i32 = arith.constant 0 : i32
    %c0_i32_0 = arith.constant 0 : i32
    %c0_i32_1 = arith.constant 0 : i32
    return %c0_i32, %c0_i32_0 : i32, i32
  }
  func.func @transform_2(%arg0: i32) -> (i32, i32) {
    %c0_i32 = arith.constant 0 : i32
    %c0_i32_0 = arith.constant 0 : i32
    %c0_i32_1 = arith.constant 0 : i32
    return %c0_i32, %c0_i32_0 : i32, i32
  }
  func.func @transform_3(%arg0: i32) -> (i32, i32) {
    %c0_i32 = arith.constant 0 : i32
    %c0_i32_0 = arith.constant 0 : i32
    %c0_i32_1 = arith.constant 0 : i32
    return %c0_i32, %c0_i32_0 : i32, i32
  }
  func.func @transform_4(%arg0: i32) -> (i32, i32) {
    %c0_i32 = arith.constant 0 : i32
    %c0_i32_0 = arith.constant 0 : i32
    %c0_i32_1 = arith.constant 0 : i32
    return %c0_i32, %c0_i32_0 : i32, i32
  }
  func.func @transform_5(%arg0: i32) -> (i32, i32) {
    %c0_i32 = arith.constant 0 : i32
    %c0_i32_0 = arith.constant 0 : i32
    %c0_i32_1 = arith.constant 0 : i32
    return %c0_i32, %c0_i32_0 : i32, i32
  }
  func.func @transform_6(%arg0: i32) -> (i32, i32) {
    %c0_i32 = arith.constant 0 : i32
    %c0_i32_0 = arith.constant 0 : i32
    %c0_i32_1 = arith.constant 0 : i32
    return %c0_i32, %c0_i32_0 : i32, i32
  }
  func.func @transform_7(%arg0: i32) -> (i32, i32) {
    %c0_i32 = arith.constant 0 : i32
    %c0_i32_0 = arith.constant 0 : i32
    %c0_i32_1 = arith.constant 0 : i32
    return %c0_i32, %c0_i32_0 : i32, i32
  }
}

module attributes {stable_mosaic.version = 11 : i64} {
  func.func @_conv3x3_kernel(%arg0: i32, %arg1: memref<48x16xf32, #tpu.memory_space<vmem>>, %arg2: memref<144x64xf32, #tpu.memory_space<vmem>>, %arg3: memref<1x64xf32, #tpu.memory_space<vmem>>, %arg4: memref<32x64xf32, #tpu.memory_space<vmem>>) attributes {dimension_semantics = [#tpu.dimension_semantics<arbitrary>], iteration_bounds = array<i64: 1>, scalar_prefetch = 0 : i64, scratch_operands = 0 : i64, tpu.core_type = #tpu.core_type<tc>, window_params = [{pipeline_mode = #tpu.pipeline_mode<synchronous>, transform_indices = @transform_0, window_bounds = array<i64: 48, 16>}, {pipeline_mode = #tpu.pipeline_mode<synchronous>, transform_indices = @transform_1, window_bounds = array<i64: 144, 64>}, {pipeline_mode = #tpu.pipeline_mode<synchronous>, transform_indices = @transform_2, window_bounds = array<i64: 1, 64>}, {pipeline_mode = #tpu.pipeline_mode<synchronous>, transform_indices = @transform_3, window_bounds = array<i64: 32, 64>}]} {
    %0 = tpu.iota {dimensions = array<i32: 0>} : vector<32x1xi32>
    %c2_i32 = arith.constant 2 : i32
    %1 = vector.broadcast %c2_i32 : i32 to vector<32x1xi32>
    %2 = arith.shrsi %0, %1 : vector<32x1xi32>
    %c3_i32 = arith.constant 3 : i32
    %3 = vector.broadcast %c3_i32 : i32 to vector<32x1xi32>
    %4 = arith.andi %2, %3 : vector<32x1xi32>
    %c3_i32_0 = arith.constant 3 : i32
    %5 = vector.broadcast %c3_i32_0 : i32 to vector<32x1xi32>
    %6 = arith.andi %0, %5 : vector<32x1xi32>
    %c3 = arith.constant 3 : index
    %c0 = arith.constant 0 : index
    %7 = vector.load %arg1[%c3, %c0] : memref<48x16xf32, #tpu.memory_space<vmem>>, vector<32x16xf32>
    %c1_i32 = arith.constant 1 : i32
    %8 = vector.broadcast %c1_i32 : i32 to vector<32x1xi32>
    %9 = arith.cmpi sge, %4, %8 : vector<32x1xi32>
    %c1_i32_1 = arith.constant 1 : i32
    %10 = vector.broadcast %c1_i32_1 : i32 to vector<32x1xi32>
    %11 = arith.cmpi sge, %6, %10 : vector<32x1xi32>
    %12 = arith.andi %9, %11 : vector<32x1xi1>
    %cst = arith.constant 0.000000e+00 : f32
    %13 = vector.shape_cast %12 : vector<32x1xi1> to vector<32x1xi1>
    %14 = vector.broadcast %13 : vector<32x1xi1> to vector<32x16xi1>
    %15 = vector.broadcast %cst : f32 to vector<32x16xf32>
    %16 = arith.select %14, %7, %15 : vector<32x16xi1>, vector<32x16xf32>
    %c0_2 = arith.constant 0 : index
    %c0_3 = arith.constant 0 : index
    %17 = vector.load %arg2[%c0_2, %c0_3] : memref<144x64xf32, #tpu.memory_space<vmem>>, vector<16x64xf32>
    %cst_4 = arith.constant dense<0.000000e+00> : vector<32x64xf32>
    %18 = tpu.matmul %16, %17, %cst_4 {dimension_numbers = #tpu.dot_dimension_numbers<[1], [0], [0], [1], [0, 0, 1, 1], [], []>} : vector<32x16xf32>, vector<16x64xf32>, vector<32x64xf32> -> vector<32x64xf32>
    %c4 = arith.constant 4 : index
    %c0_5 = arith.constant 0 : index
    %19 = vector.load %arg1[%c4, %c0_5] : memref<48x16xf32, #tpu.memory_space<vmem>>, vector<32x16xf32>
    %c1_i32_6 = arith.constant 1 : i32
    %20 = vector.broadcast %c1_i32_6 : i32 to vector<32x1xi32>
    %21 = arith.cmpi sge, %4, %20 : vector<32x1xi32>
    %cst_7 = arith.constant 0.000000e+00 : f32
    %22 = vector.shape_cast %21 : vector<32x1xi1> to vector<32x1xi1>
    %23 = vector.broadcast %22 : vector<32x1xi1> to vector<32x16xi1>
    %24 = vector.broadcast %cst_7 : f32 to vector<32x16xf32>
    %25 = arith.select %23, %19, %24 : vector<32x16xi1>, vector<32x16xf32>
    %c16 = arith.constant 16 : index
    %c0_8 = arith.constant 0 : index
    %26 = vector.load %arg2[%c16, %c0_8] : memref<144x64xf32, #tpu.memory_space<vmem>>, vector<16x64xf32>
    %cst_9 = arith.constant dense<0.000000e+00> : vector<32x64xf32>
    %27 = tpu.matmul %25, %26, %cst_9 {dimension_numbers = #tpu.dot_dimension_numbers<[1], [0], [0], [1], [0, 0, 1, 1], [], []>} : vector<32x16xf32>, vector<16x64xf32>, vector<32x64xf32> -> vector<32x64xf32>
    %28 = arith.addf %18, %27 : vector<32x64xf32>
    %c5 = arith.constant 5 : index
    %c0_10 = arith.constant 0 : index
    %29 = vector.load %arg1[%c5, %c0_10] : memref<48x16xf32, #tpu.memory_space<vmem>>, vector<32x16xf32>
    %c1_i32_11 = arith.constant 1 : i32
    %30 = vector.broadcast %c1_i32_11 : i32 to vector<32x1xi32>
    %31 = arith.cmpi sge, %4, %30 : vector<32x1xi32>
    %c3_i32_12 = arith.constant 3 : i32
    %32 = vector.broadcast %c3_i32_12 : i32 to vector<32x1xi32>
    %33 = arith.cmpi slt, %6, %32 : vector<32x1xi32>
    %34 = arith.andi %31, %33 : vector<32x1xi1>
    %cst_13 = arith.constant 0.000000e+00 : f32
    %35 = vector.shape_cast %34 : vector<32x1xi1> to vector<32x1xi1>
    %36 = vector.broadcast %35 : vector<32x1xi1> to vector<32x16xi1>
    %37 = vector.broadcast %cst_13 : f32 to vector<32x16xf32>
    %38 = arith.select %36, %29, %37 : vector<32x16xi1>, vector<32x16xf32>
    %c32 = arith.constant 32 : index
    %c0_14 = arith.constant 0 : index
    %39 = vector.load %arg2[%c32, %c0_14] : memref<144x64xf32, #tpu.memory_space<vmem>>, vector<16x64xf32>
    %cst_15 = arith.constant dense<0.000000e+00> : vector<32x64xf32>
    %40 = tpu.matmul %38, %39, %cst_15 {dimension_numbers = #tpu.dot_dimension_numbers<[1], [0], [0], [1], [0, 0, 1, 1], [], []>} : vector<32x16xf32>, vector<16x64xf32>, vector<32x64xf32> -> vector<32x64xf32>
    %41 = arith.addf %28, %40 : vector<32x64xf32>
    %c7 = arith.constant 7 : index
    %c0_16 = arith.constant 0 : index
    %42 = vector.load %arg1[%c7, %c0_16] : memref<48x16xf32, #tpu.memory_space<vmem>>, vector<32x16xf32>
    %c1_i32_17 = arith.constant 1 : i32
    %43 = vector.broadcast %c1_i32_17 : i32 to vector<32x1xi32>
    %44 = arith.cmpi sge, %6, %43 : vector<32x1xi32>
    %cst_18 = arith.constant 0.000000e+00 : f32
    %45 = vector.shape_cast %44 : vector<32x1xi1> to vector<32x1xi1>
    %46 = vector.broadcast %45 : vector<32x1xi1> to vector<32x16xi1>
    %47 = vector.broadcast %cst_18 : f32 to vector<32x16xf32>
    %48 = arith.select %46, %42, %47 : vector<32x16xi1>, vector<32x16xf32>
    %c48 = arith.constant 48 : index
    %c0_19 = arith.constant 0 : index
    %49 = vector.load %arg2[%c48, %c0_19] : memref<144x64xf32, #tpu.memory_space<vmem>>, vector<16x64xf32>
    %cst_20 = arith.constant dense<0.000000e+00> : vector<32x64xf32>
    %50 = tpu.matmul %48, %49, %cst_20 {dimension_numbers = #tpu.dot_dimension_numbers<[1], [0], [0], [1], [0, 0, 1, 1], [], []>} : vector<32x16xf32>, vector<16x64xf32>, vector<32x64xf32> -> vector<32x64xf32>
    %51 = arith.addf %41, %50 : vector<32x64xf32>
    %c8 = arith.constant 8 : index
    %c0_21 = arith.constant 0 : index
    %52 = vector.load %arg1[%c8, %c0_21] : memref<48x16xf32, #tpu.memory_space<vmem>>, vector<32x16xf32>
    %c64 = arith.constant 64 : index
    %c0_22 = arith.constant 0 : index
    %53 = vector.load %arg2[%c64, %c0_22] : memref<144x64xf32, #tpu.memory_space<vmem>>, vector<16x64xf32>
    %cst_23 = arith.constant dense<0.000000e+00> : vector<32x64xf32>
    %54 = tpu.matmul %52, %53, %cst_23 {dimension_numbers = #tpu.dot_dimension_numbers<[1], [0], [0], [1], [0, 0, 1, 1], [], []>} : vector<32x16xf32>, vector<16x64xf32>, vector<32x64xf32> -> vector<32x64xf32>
    %55 = arith.addf %51, %54 : vector<32x64xf32>
    %c9 = arith.constant 9 : index
    %c0_24 = arith.constant 0 : index
    %56 = vector.load %arg1[%c9, %c0_24] : memref<48x16xf32, #tpu.memory_space<vmem>>, vector<32x16xf32>
    %c3_i32_25 = arith.constant 3 : i32
    %57 = vector.broadcast %c3_i32_25 : i32 to vector<32x1xi32>
    %58 = arith.cmpi slt, %6, %57 : vector<32x1xi32>
    %cst_26 = arith.constant 0.000000e+00 : f32
    %59 = vector.shape_cast %58 : vector<32x1xi1> to vector<32x1xi1>
    %60 = vector.broadcast %59 : vector<32x1xi1> to vector<32x16xi1>
    %61 = vector.broadcast %cst_26 : f32 to vector<32x16xf32>
    %62 = arith.select %60, %56, %61 : vector<32x16xi1>, vector<32x16xf32>
    %c80 = arith.constant 80 : index
    %c0_27 = arith.constant 0 : index
    %63 = vector.load %arg2[%c80, %c0_27] : memref<144x64xf32, #tpu.memory_space<vmem>>, vector<16x64xf32>
    %cst_28 = arith.constant dense<0.000000e+00> : vector<32x64xf32>
    %64 = tpu.matmul %62, %63, %cst_28 {dimension_numbers = #tpu.dot_dimension_numbers<[1], [0], [0], [1], [0, 0, 1, 1], [], []>} : vector<32x16xf32>, vector<16x64xf32>, vector<32x64xf32> -> vector<32x64xf32>
    %65 = arith.addf %55, %64 : vector<32x64xf32>
    %c11 = arith.constant 11 : index
    %c0_29 = arith.constant 0 : index
    %66 = vector.load %arg1[%c11, %c0_29] : memref<48x16xf32, #tpu.memory_space<vmem>>, vector<32x16xf32>
    %c3_i32_30 = arith.constant 3 : i32
    %67 = vector.broadcast %c3_i32_30 : i32 to vector<32x1xi32>
    %68 = arith.cmpi slt, %4, %67 : vector<32x1xi32>
    %c1_i32_31 = arith.constant 1 : i32
    %69 = vector.broadcast %c1_i32_31 : i32 to vector<32x1xi32>
    %70 = arith.cmpi sge, %6, %69 : vector<32x1xi32>
    %71 = arith.andi %68, %70 : vector<32x1xi1>
    %cst_32 = arith.constant 0.000000e+00 : f32
    %72 = vector.shape_cast %71 : vector<32x1xi1> to vector<32x1xi1>
    %73 = vector.broadcast %72 : vector<32x1xi1> to vector<32x16xi1>
    %74 = vector.broadcast %cst_32 : f32 to vector<32x16xf32>
    %75 = arith.select %73, %66, %74 : vector<32x16xi1>, vector<32x16xf32>
    %c96 = arith.constant 96 : index
    %c0_33 = arith.constant 0 : index
    %76 = vector.load %arg2[%c96, %c0_33] : memref<144x64xf32, #tpu.memory_space<vmem>>, vector<16x64xf32>
    %cst_34 = arith.constant dense<0.000000e+00> : vector<32x64xf32>
    %77 = tpu.matmul %75, %76, %cst_34 {dimension_numbers = #tpu.dot_dimension_numbers<[1], [0], [0], [1], [0, 0, 1, 1], [], []>} : vector<32x16xf32>, vector<16x64xf32>, vector<32x64xf32> -> vector<32x64xf32>
    %78 = arith.addf %65, %77 : vector<32x64xf32>
    %c12 = arith.constant 12 : index
    %c0_35 = arith.constant 0 : index
    %79 = vector.load %arg1[%c12, %c0_35] : memref<48x16xf32, #tpu.memory_space<vmem>>, vector<32x16xf32>
    %c3_i32_36 = arith.constant 3 : i32
    %80 = vector.broadcast %c3_i32_36 : i32 to vector<32x1xi32>
    %81 = arith.cmpi slt, %4, %80 : vector<32x1xi32>
    %cst_37 = arith.constant 0.000000e+00 : f32
    %82 = vector.shape_cast %81 : vector<32x1xi1> to vector<32x1xi1>
    %83 = vector.broadcast %82 : vector<32x1xi1> to vector<32x16xi1>
    %84 = vector.broadcast %cst_37 : f32 to vector<32x16xf32>
    %85 = arith.select %83, %79, %84 : vector<32x16xi1>, vector<32x16xf32>
    %c112 = arith.constant 112 : index
    %c0_38 = arith.constant 0 : index
    %86 = vector.load %arg2[%c112, %c0_38] : memref<144x64xf32, #tpu.memory_space<vmem>>, vector<16x64xf32>
    %cst_39 = arith.constant dense<0.000000e+00> : vector<32x64xf32>
    %87 = tpu.matmul %85, %86, %cst_39 {dimension_numbers = #tpu.dot_dimension_numbers<[1], [0], [0], [1], [0, 0, 1, 1], [], []>} : vector<32x16xf32>, vector<16x64xf32>, vector<32x64xf32> -> vector<32x64xf32>
    %88 = arith.addf %78, %87 : vector<32x64xf32>
    %c13 = arith.constant 13 : index
    %c0_40 = arith.constant 0 : index
    %89 = vector.load %arg1[%c13, %c0_40] : memref<48x16xf32, #tpu.memory_space<vmem>>, vector<32x16xf32>
    %c3_i32_41 = arith.constant 3 : i32
    %90 = vector.broadcast %c3_i32_41 : i32 to vector<32x1xi32>
    %91 = arith.cmpi slt, %4, %90 : vector<32x1xi32>
    %c3_i32_42 = arith.constant 3 : i32
    %92 = vector.broadcast %c3_i32_42 : i32 to vector<32x1xi32>
    %93 = arith.cmpi slt, %6, %92 : vector<32x1xi32>
    %94 = arith.andi %91, %93 : vector<32x1xi1>
    %cst_43 = arith.constant 0.000000e+00 : f32
    %95 = vector.shape_cast %94 : vector<32x1xi1> to vector<32x1xi1>
    %96 = vector.broadcast %95 : vector<32x1xi1> to vector<32x16xi1>
    %97 = vector.broadcast %cst_43 : f32 to vector<32x16xf32>
    %98 = arith.select %96, %89, %97 : vector<32x16xi1>, vector<32x16xf32>
    %c128 = arith.constant 128 : index
    %c0_44 = arith.constant 0 : index
    %99 = vector.load %arg2[%c128, %c0_44] : memref<144x64xf32, #tpu.memory_space<vmem>>, vector<16x64xf32>
    %cst_45 = arith.constant dense<0.000000e+00> : vector<32x64xf32>
    %100 = tpu.matmul %98, %99, %cst_45 {dimension_numbers = #tpu.dot_dimension_numbers<[1], [0], [0], [1], [0, 0, 1, 1], [], []>} : vector<32x16xf32>, vector<16x64xf32>, vector<32x64xf32> -> vector<32x64xf32>
    %101 = arith.addf %88, %100 : vector<32x64xf32>
    %c0_46 = arith.constant 0 : index
    %c0_47 = arith.constant 0 : index
    %102 = vector.load %arg3[%c0_46, %c0_47] : memref<1x64xf32, #tpu.memory_space<vmem>>, vector<1x64xf32>
    %103 = vector.broadcast %102 : vector<1x64xf32> to vector<32x64xf32>
    %104 = arith.addf %101, %103 : vector<32x64xf32>
    %cst_48 = arith.constant 0.000000e+00 : f32
    %105 = vector.broadcast %cst_48 : f32 to vector<32x64xf32>
    %106 = arith.maximumf %104, %105 : vector<32x64xf32>
    %c0_49 = arith.constant 0 : index
    %c0_50 = arith.constant 0 : index
    %107 = vector.load %arg4[%c0_49, %c0_50] : memref<32x64xf32, #tpu.memory_space<vmem>>, vector<32x64xf32>
    tpu.vector_store %arg4[%c0_49, %c0_50], %106 {strides = array<i32>} : memref<32x64xf32, #tpu.memory_space<vmem>>, vector<32x64xf32>,
    return
  }
  func.func @transform_0(%arg0: i32) -> (i32, i32) {
    %c0_i32 = arith.constant 0 : i32
    %c0_i32_0 = arith.constant 0 : i32
    %c0_i32_1 = arith.constant 0 : i32
    return %c0_i32, %c0_i32_0 : i32, i32
  }
  func.func @transform_1(%arg0: i32) -> (i32, i32) {
    %c0_i32 = arith.constant 0 : i32
    %c0_i32_0 = arith.constant 0 : i32
    %c0_i32_1 = arith.constant 0 : i32
    return %c0_i32, %c0_i32_0 : i32, i32
  }
  func.func @transform_2(%arg0: i32) -> (i32, i32) {
    %c0_i32 = arith.constant 0 : i32
    %c0_i32_0 = arith.constant 0 : i32
    %c0_i32_1 = arith.constant 0 : i32
    return %c0_i32, %c0_i32_0 : i32, i32
  }
  func.func @transform_3(%arg0: i32) -> (i32, i32) {
    %c0_i32 = arith.constant 0 : i32
    %c0_i32_0 = arith.constant 0 : i32
    %c0_i32_1 = arith.constant 0 : i32
    return %c0_i32, %c0_i32_0 : i32, i32
  }
}

module attributes {stable_mosaic.version = 11 : i64} {
  func.func @_conv3x3_kernel(%arg0: i32, %arg1: memref<160x16xf32, #tpu.memory_space<vmem>>, %arg2: memref<144x64xf32, #tpu.memory_space<vmem>>, %arg3: memref<1x64xf32, #tpu.memory_space<vmem>>, %arg4: memref<128x64xf32, #tpu.memory_space<vmem>>) attributes {dimension_semantics = [#tpu.dimension_semantics<arbitrary>], iteration_bounds = array<i64: 1>, scalar_prefetch = 0 : i64, scratch_operands = 0 : i64, tpu.core_type = #tpu.core_type<tc>, window_params = [{pipeline_mode = #tpu.pipeline_mode<synchronous>, transform_indices = @transform_0, window_bounds = array<i64: 160, 16>}, {pipeline_mode = #tpu.pipeline_mode<synchronous>, transform_indices = @transform_1, window_bounds = array<i64: 144, 64>}, {pipeline_mode = #tpu.pipeline_mode<synchronous>, transform_indices = @transform_2, window_bounds = array<i64: 1, 64>}, {pipeline_mode = #tpu.pipeline_mode<synchronous>, transform_indices = @transform_3, window_bounds = array<i64: 128, 64>}]} {
    %0 = tpu.iota {dimensions = array<i32: 0>} : vector<128x1xi32>
    %c3_i32 = arith.constant 3 : i32
    %1 = vector.broadcast %c3_i32 : i32 to vector<128x1xi32>
    %2 = arith.shrsi %0, %1 : vector<128x1xi32>
    %c7_i32 = arith.constant 7 : i32
    %3 = vector.broadcast %c7_i32 : i32 to vector<128x1xi32>
    %4 = arith.andi %2, %3 : vector<128x1xi32>
    %c7_i32_0 = arith.constant 7 : i32
    %5 = vector.broadcast %c7_i32_0 : i32 to vector<128x1xi32>
    %6 = arith.andi %0, %5 : vector<128x1xi32>
    %c7 = arith.constant 7 : index
    %c0 = arith.constant 0 : index
    %7 = vector.load %arg1[%c7, %c0] : memref<160x16xf32, #tpu.memory_space<vmem>>, vector<128x16xf32>
    %c1_i32 = arith.constant 1 : i32
    %8 = vector.broadcast %c1_i32 : i32 to vector<128x1xi32>
    %9 = arith.cmpi sge, %4, %8 : vector<128x1xi32>
    %c1_i32_1 = arith.constant 1 : i32
    %10 = vector.broadcast %c1_i32_1 : i32 to vector<128x1xi32>
    %11 = arith.cmpi sge, %6, %10 : vector<128x1xi32>
    %12 = arith.andi %9, %11 : vector<128x1xi1>
    %cst = arith.constant 0.000000e+00 : f32
    %13 = vector.shape_cast %12 : vector<128x1xi1> to vector<128x1xi1>
    %14 = vector.broadcast %13 : vector<128x1xi1> to vector<128x16xi1>
    %15 = vector.broadcast %cst : f32 to vector<128x16xf32>
    %16 = arith.select %14, %7, %15 : vector<128x16xi1>, vector<128x16xf32>
    %c0_2 = arith.constant 0 : index
    %c0_3 = arith.constant 0 : index
    %17 = vector.load %arg2[%c0_2, %c0_3] : memref<144x64xf32, #tpu.memory_space<vmem>>, vector<16x64xf32>
    %cst_4 = arith.constant dense<0.000000e+00> : vector<128x64xf32>
    %18 = tpu.matmul %16, %17, %cst_4 {dimension_numbers = #tpu.dot_dimension_numbers<[1], [0], [0], [1], [0, 0, 1, 1], [], []>} : vector<128x16xf32>, vector<16x64xf32>, vector<128x64xf32> -> vector<128x64xf32>
    %c8 = arith.constant 8 : index
    %c0_5 = arith.constant 0 : index
    %19 = vector.load %arg1[%c8, %c0_5] : memref<160x16xf32, #tpu.memory_space<vmem>>, vector<128x16xf32>
    %c1_i32_6 = arith.constant 1 : i32
    %20 = vector.broadcast %c1_i32_6 : i32 to vector<128x1xi32>
    %21 = arith.cmpi sge, %4, %20 : vector<128x1xi32>
    %cst_7 = arith.constant 0.000000e+00 : f32
    %22 = vector.shape_cast %21 : vector<128x1xi1> to vector<128x1xi1>
    %23 = vector.broadcast %22 : vector<128x1xi1> to vector<128x16xi1>
    %24 = vector.broadcast %cst_7 : f32 to vector<128x16xf32>
    %25 = arith.select %23, %19, %24 : vector<128x16xi1>, vector<128x16xf32>
    %c16 = arith.constant 16 : index
    %c0_8 = arith.constant 0 : index
    %26 = vector.load %arg2[%c16, %c0_8] : memref<144x64xf32, #tpu.memory_space<vmem>>, vector<16x64xf32>
    %cst_9 = arith.constant dense<0.000000e+00> : vector<128x64xf32>
    %27 = tpu.matmul %25, %26, %cst_9 {dimension_numbers = #tpu.dot_dimension_numbers<[1], [0], [0], [1], [0, 0, 1, 1], [], []>} : vector<128x16xf32>, vector<16x64xf32>, vector<128x64xf32> -> vector<128x64xf32>
    %28 = arith.addf %18, %27 : vector<128x64xf32>
    %c9 = arith.constant 9 : index
    %c0_10 = arith.constant 0 : index
    %29 = vector.load %arg1[%c9, %c0_10] : memref<160x16xf32, #tpu.memory_space<vmem>>, vector<128x16xf32>
    %c1_i32_11 = arith.constant 1 : i32
    %30 = vector.broadcast %c1_i32_11 : i32 to vector<128x1xi32>
    %31 = arith.cmpi sge, %4, %30 : vector<128x1xi32>
    %c7_i32_12 = arith.constant 7 : i32
    %32 = vector.broadcast %c7_i32_12 : i32 to vector<128x1xi32>
    %33 = arith.cmpi slt, %6, %32 : vector<128x1xi32>
    %34 = arith.andi %31, %33 : vector<128x1xi1>
    %cst_13 = arith.constant 0.000000e+00 : f32
    %35 = vector.shape_cast %34 : vector<128x1xi1> to vector<128x1xi1>
    %36 = vector.broadcast %35 : vector<128x1xi1> to vector<128x16xi1>
    %37 = vector.broadcast %cst_13 : f32 to vector<128x16xf32>
    %38 = arith.select %36, %29, %37 : vector<128x16xi1>, vector<128x16xf32>
    %c32 = arith.constant 32 : index
    %c0_14 = arith.constant 0 : index
    %39 = vector.load %arg2[%c32, %c0_14] : memref<144x64xf32, #tpu.memory_space<vmem>>, vector<16x64xf32>
    %cst_15 = arith.constant dense<0.000000e+00> : vector<128x64xf32>
    %40 = tpu.matmul %38, %39, %cst_15 {dimension_numbers = #tpu.dot_dimension_numbers<[1], [0], [0], [1], [0, 0, 1, 1], [], []>} : vector<128x16xf32>, vector<16x64xf32>, vector<128x64xf32> -> vector<128x64xf32>
    %41 = arith.addf %28, %40 : vector<128x64xf32>
    %c15 = arith.constant 15 : index
    %c0_16 = arith.constant 0 : index
    %42 = vector.load %arg1[%c15, %c0_16] : memref<160x16xf32, #tpu.memory_space<vmem>>, vector<128x16xf32>
    %c1_i32_17 = arith.constant 1 : i32
    %43 = vector.broadcast %c1_i32_17 : i32 to vector<128x1xi32>
    %44 = arith.cmpi sge, %6, %43 : vector<128x1xi32>
    %cst_18 = arith.constant 0.000000e+00 : f32
    %45 = vector.shape_cast %44 : vector<128x1xi1> to vector<128x1xi1>
    %46 = vector.broadcast %45 : vector<128x1xi1> to vector<128x16xi1>
    %47 = vector.broadcast %cst_18 : f32 to vector<128x16xf32>
    %48 = arith.select %46, %42, %47 : vector<128x16xi1>, vector<128x16xf32>
    %c48 = arith.constant 48 : index
    %c0_19 = arith.constant 0 : index
    %49 = vector.load %arg2[%c48, %c0_19] : memref<144x64xf32, #tpu.memory_space<vmem>>, vector<16x64xf32>
    %cst_20 = arith.constant dense<0.000000e+00> : vector<128x64xf32>
    %50 = tpu.matmul %48, %49, %cst_20 {dimension_numbers = #tpu.dot_dimension_numbers<[1], [0], [0], [1], [0, 0, 1, 1], [], []>} : vector<128x16xf32>, vector<16x64xf32>, vector<128x64xf32> -> vector<128x64xf32>
    %51 = arith.addf %41, %50 : vector<128x64xf32>
    %c16_21 = arith.constant 16 : index
    %c0_22 = arith.constant 0 : index
    %52 = vector.load %arg1[%c16_21, %c0_22] : memref<160x16xf32, #tpu.memory_space<vmem>>, vector<128x16xf32>
    %c64 = arith.constant 64 : index
    %c0_23 = arith.constant 0 : index
    %53 = vector.load %arg2[%c64, %c0_23] : memref<144x64xf32, #tpu.memory_space<vmem>>, vector<16x64xf32>
    %cst_24 = arith.constant dense<0.000000e+00> : vector<128x64xf32>
    %54 = tpu.matmul %52, %53, %cst_24 {dimension_numbers = #tpu.dot_dimension_numbers<[1], [0], [0], [1], [0, 0, 1, 1], [], []>} : vector<128x16xf32>, vector<16x64xf32>, vector<128x64xf32> -> vector<128x64xf32>
    %55 = arith.addf %51, %54 : vector<128x64xf32>
    %c17 = arith.constant 17 : index
    %c0_25 = arith.constant 0 : index
    %56 = vector.load %arg1[%c17, %c0_25] : memref<160x16xf32, #tpu.memory_space<vmem>>, vector<128x16xf32>
    %c7_i32_26 = arith.constant 7 : i32
    %57 = vector.broadcast %c7_i32_26 : i32 to vector<128x1xi32>
    %58 = arith.cmpi slt, %6, %57 : vector<128x1xi32>
    %cst_27 = arith.constant 0.000000e+00 : f32
    %59 = vector.shape_cast %58 : vector<128x1xi1> to vector<128x1xi1>
    %60 = vector.broadcast %59 : vector<128x1xi1> to vector<128x16xi1>
    %61 = vector.broadcast %cst_27 : f32 to vector<128x16xf32>
    %62 = arith.select %60, %56, %61 : vector<128x16xi1>, vector<128x16xf32>
    %c80 = arith.constant 80 : index
    %c0_28 = arith.constant 0 : index
    %63 = vector.load %arg2[%c80, %c0_28] : memref<144x64xf32, #tpu.memory_space<vmem>>, vector<16x64xf32>
    %cst_29 = arith.constant dense<0.000000e+00> : vector<128x64xf32>
    %64 = tpu.matmul %62, %63, %cst_29 {dimension_numbers = #tpu.dot_dimension_numbers<[1], [0], [0], [1], [0, 0, 1, 1], [], []>} : vector<128x16xf32>, vector<16x64xf32>, vector<128x64xf32> -> vector<128x64xf32>
    %65 = arith.addf %55, %64 : vector<128x64xf32>
    %c23 = arith.constant 23 : index
    %c0_30 = arith.constant 0 : index
    %66 = vector.load %arg1[%c23, %c0_30] : memref<160x16xf32, #tpu.memory_space<vmem>>, vector<128x16xf32>
    %c7_i32_31 = arith.constant 7 : i32
    %67 = vector.broadcast %c7_i32_31 : i32 to vector<128x1xi32>
    %68 = arith.cmpi slt, %4, %67 : vector<128x1xi32>
    %c1_i32_32 = arith.constant 1 : i32
    %69 = vector.broadcast %c1_i32_32 : i32 to vector<128x1xi32>
    %70 = arith.cmpi sge, %6, %69 : vector<128x1xi32>
    %71 = arith.andi %68, %70 : vector<128x1xi1>
    %cst_33 = arith.constant 0.000000e+00 : f32
    %72 = vector.shape_cast %71 : vector<128x1xi1> to vector<128x1xi1>
    %73 = vector.broadcast %72 : vector<128x1xi1> to vector<128x16xi1>
    %74 = vector.broadcast %cst_33 : f32 to vector<128x16xf32>
    %75 = arith.select %73, %66, %74 : vector<128x16xi1>, vector<128x16xf32>
    %c96 = arith.constant 96 : index
    %c0_34 = arith.constant 0 : index
    %76 = vector.load %arg2[%c96, %c0_34] : memref<144x64xf32, #tpu.memory_space<vmem>>, vector<16x64xf32>
    %cst_35 = arith.constant dense<0.000000e+00> : vector<128x64xf32>
    %77 = tpu.matmul %75, %76, %cst_35 {dimension_numbers = #tpu.dot_dimension_numbers<[1], [0], [0], [1], [0, 0, 1, 1], [], []>} : vector<128x16xf32>, vector<16x64xf32>, vector<128x64xf32> -> vector<128x64xf32>
    %78 = arith.addf %65, %77 : vector<128x64xf32>
    %c24 = arith.constant 24 : index
    %c0_36 = arith.constant 0 : index
    %79 = vector.load %arg1[%c24, %c0_36] : memref<160x16xf32, #tpu.memory_space<vmem>>, vector<128x16xf32>
    %c7_i32_37 = arith.constant 7 : i32
    %80 = vector.broadcast %c7_i32_37 : i32 to vector<128x1xi32>
    %81 = arith.cmpi slt, %4, %80 : vector<128x1xi32>
    %cst_38 = arith.constant 0.000000e+00 : f32
    %82 = vector.shape_cast %81 : vector<128x1xi1> to vector<128x1xi1>
    %83 = vector.broadcast %82 : vector<128x1xi1> to vector<128x16xi1>
    %84 = vector.broadcast %cst_38 : f32 to vector<128x16xf32>
    %85 = arith.select %83, %79, %84 : vector<128x16xi1>, vector<128x16xf32>
    %c112 = arith.constant 112 : index
    %c0_39 = arith.constant 0 : index
    %86 = vector.load %arg2[%c112, %c0_39] : memref<144x64xf32, #tpu.memory_space<vmem>>, vector<16x64xf32>
    %cst_40 = arith.constant dense<0.000000e+00> : vector<128x64xf32>
    %87 = tpu.matmul %85, %86, %cst_40 {dimension_numbers = #tpu.dot_dimension_numbers<[1], [0], [0], [1], [0, 0, 1, 1], [], []>} : vector<128x16xf32>, vector<16x64xf32>, vector<128x64xf32> -> vector<128x64xf32>
    %88 = arith.addf %78, %87 : vector<128x64xf32>
    %c25 = arith.constant 25 : index
    %c0_41 = arith.constant 0 : index
    %89 = vector.load %arg1[%c25, %c0_41] : memref<160x16xf32, #tpu.memory_space<vmem>>, vector<128x16xf32>
    %c7_i32_42 = arith.constant 7 : i32
    %90 = vector.broadcast %c7_i32_42 : i32 to vector<128x1xi32>
    %91 = arith.cmpi slt, %4, %90 : vector<128x1xi32>
    %c7_i32_43 = arith.constant 7 : i32
    %92 = vector.broadcast %c7_i32_43 : i32 to vector<128x1xi32>
    %93 = arith.cmpi slt, %6, %92 : vector<128x1xi32>
    %94 = arith.andi %91, %93 : vector<128x1xi1>
    %cst_44 = arith.constant 0.000000e+00 : f32
    %95 = vector.shape_cast %94 : vector<128x1xi1> to vector<128x1xi1>
    %96 = vector.broadcast %95 : vector<128x1xi1> to vector<128x16xi1>
    %97 = vector.broadcast %cst_44 : f32 to vector<128x16xf32>
    %98 = arith.select %96, %89, %97 : vector<128x16xi1>, vector<128x16xf32>
    %c128 = arith.constant 128 : index
    %c0_45 = arith.constant 0 : index
    %99 = vector.load %arg2[%c128, %c0_45] : memref<144x64xf32, #tpu.memory_space<vmem>>, vector<16x64xf32>
    %cst_46 = arith.constant dense<0.000000e+00> : vector<128x64xf32>
    %100 = tpu.matmul %98, %99, %cst_46 {dimension_numbers = #tpu.dot_dimension_numbers<[1], [0], [0], [1], [0, 0, 1, 1], [], []>} : vector<128x16xf32>, vector<16x64xf32>, vector<128x64xf32> -> vector<128x64xf32>
    %101 = arith.addf %88, %100 : vector<128x64xf32>
    %c0_47 = arith.constant 0 : index
    %c0_48 = arith.constant 0 : index
    %102 = vector.load %arg3[%c0_47, %c0_48] : memref<1x64xf32, #tpu.memory_space<vmem>>, vector<1x64xf32>
    %103 = vector.broadcast %102 : vector<1x64xf32> to vector<128x64xf32>
    %104 = arith.addf %101, %103 : vector<128x64xf32>
    %cst_49 = arith.constant 0.000000e+00 : f32
    %105 = vector.broadcast %cst_49 : f32 to vector<128x64xf32>
    %106 = arith.maximumf %104, %105 : vector<128x64xf32>
    %c0_50 = arith.constant 0 : index
    %c0_51 = arith.constant 0 : index
    %107 = vector.load %arg4[%c0_50, %c0_51] : memref<128x64xf32, #tpu.memory_space<vmem>>, vector<128x64xf32>
    tpu.vector_store %arg4[%c0_50, %c0_51], %106 {strides = array<i32>} : memref<128x64xf32, #tpu.memory_space<vmem>>, vector<128x64xf32>,
    return
  }
  func.func @transform_0(%arg0: i32) -> (i32, i32) {
    %c0_i32 = arith.constant 0 : i32
    %c0_i32_0 = arith.constant 0 : i32
    %c0_i32_1 = arith.constant 0 : i32
    return %c0_i32, %c0_i32_0 : i32, i32
  }
  func.func @transform_1(%arg0: i32) -> (i32, i32) {
    %c0_i32 = arith.constant 0 : i32
    %c0_i32_0 = arith.constant 0 : i32
    %c0_i32_1 = arith.constant 0 : i32
    return %c0_i32, %c0_i32_0 : i32, i32
  }
  func.func @transform_2(%arg0: i32) -> (i32, i32) {
    %c0_i32 = arith.constant 0 : i32
    %c0_i32_0 = arith.constant 0 : i32
    %c0_i32_1 = arith.constant 0 : i32
    return %c0_i32, %c0_i32_0 : i32, i32
  }
  func.func @transform_3(%arg0: i32) -> (i32, i32) {
    %c0_i32 = arith.constant 0 : i32
    %c0_i32_0 = arith.constant 0 : i32
    %c0_i32_1 = arith.constant 0 : i32
    return %c0_i32, %c0_i32_0 : i32, i32
  }
}

module attributes {stable_mosaic.version = 11 : i64} {
  func.func @_mm_bias_kernel(%arg0: i32, %arg1: memref<512x16xbf16, #tpu.memory_space<vmem>>, %arg2: memref<16x3xbf16, #tpu.memory_space<vmem>>, %arg3: memref<1x3xf32, #tpu.memory_space<vmem>>, %arg4: memref<512x3xf32, #tpu.memory_space<vmem>>) attributes {dimension_semantics = [#tpu.dimension_semantics<arbitrary>], iteration_bounds = array<i64: 1>, scalar_prefetch = 0 : i64, scratch_operands = 0 : i64, tpu.core_type = #tpu.core_type<tc>, window_params = [{pipeline_mode = #tpu.pipeline_mode<synchronous>, transform_indices = @transform_0, window_bounds = array<i64: 512, 16>}, {pipeline_mode = #tpu.pipeline_mode<synchronous>, transform_indices = @transform_1, window_bounds = array<i64: 16, 3>}, {pipeline_mode = #tpu.pipeline_mode<synchronous>, transform_indices = @transform_2, window_bounds = array<i64: 1, 3>}, {pipeline_mode = #tpu.pipeline_mode<synchronous>, transform_indices = @transform_3, window_bounds = array<i64: 512, 3>}]} {
    %c0 = arith.constant 0 : index
    %c0_0 = arith.constant 0 : index
    %0 = vector.load %arg1[%c0, %c0_0] : memref<512x16xbf16, #tpu.memory_space<vmem>>, vector<512x16xbf16>
    %c0_1 = arith.constant 0 : index
    %c0_2 = arith.constant 0 : index
    %1 = vector.load %arg2[%c0_1, %c0_2] : memref<16x3xbf16, #tpu.memory_space<vmem>>, vector<16x3xbf16>
    %cst = arith.constant dense<0.000000e+00> : vector<512x3xf32>
    %2 = tpu.matmul %0, %1, %cst {dimension_numbers = #tpu.dot_dimension_numbers<[1], [0], [0], [1], [0, 0, 1, 1], [], []>} : vector<512x16xbf16>, vector<16x3xbf16>, vector<512x3xf32> -> vector<512x3xf32>
    %c0_3 = arith.constant 0 : index
    %c0_4 = arith.constant 0 : index
    %3 = vector.load %arg3[%c0_3, %c0_4] : memref<1x3xf32, #tpu.memory_space<vmem>>, vector<1x3xf32>
    %4 = vector.broadcast %3 : vector<1x3xf32> to vector<512x3xf32>
    %5 = arith.addf %2, %4 : vector<512x3xf32>
    %c0_5 = arith.constant 0 : index
    %c0_6 = arith.constant 0 : index
    %6 = vector.load %arg4[%c0_5, %c0_6] : memref<512x3xf32, #tpu.memory_space<vmem>>, vector<512x3xf32>
    tpu.vector_store %arg4[%c0_5, %c0_6], %5 {strides = array<i32>} : memref<512x3xf32, #tpu.memory_space<vmem>>, vector<512x3xf32>,
    return
  }
  func.func @transform_0(%arg0: i32) -> (i32, i32) {
    %c0_i32 = arith.constant 0 : i32
    %c0_i32_0 = arith.constant 0 : i32
    %c0_i32_1 = arith.constant 0 : i32
    return %c0_i32, %c0_i32_0 : i32, i32
  }
  func.func @transform_1(%arg0: i32) -> (i32, i32) {
    %c0_i32 = arith.constant 0 : i32
    %c0_i32_0 = arith.constant 0 : i32
    %c0_i32_1 = arith.constant 0 : i32
    return %c0_i32, %c0_i32_0 : i32, i32
  }
  func.func @transform_2(%arg0: i32) -> (i32, i32) {
    %c0_i32 = arith.constant 0 : i32
    %c0_i32_0 = arith.constant 0 : i32
    %c0_i32_1 = arith.constant 0 : i32
    return %c0_i32, %c0_i32_0 : i32, i32
  }
  func.func @transform_3(%arg0: i32) -> (i32, i32) {
    %c0_i32 = arith.constant 0 : i32
    %c0_i32_0 = arith.constant 0 : i32
    %c0_i32_1 = arith.constant 0 : i32
    return %c0_i32, %c0_i32_0 : i32, i32
  }
}

</mosaic_0001>

<bundles_post_ra>
// kernel: discrete_vae_forward.10
= control target key start
LH: loop header
LB: loop body
LE: loop exit
PB: predicated region body
PF: predicated region fallthrough
CT: control target
= control target key end

     0   :  { %vm155_vm0 = vcmask 392192   ;;  %vm325_vm1 = vcmask 130048   ;;  %s741_s1 = inlined_call_operand.vmem [shape: bf16[48,16], index: 1, kind: input, shape index: {}]   ;;  %s742_s2 = inlined_call_operand.vmem [shape: f32[1,16], index: 2, kind: input, shape index: {}]   ;;  %s743_s0 = inlined_call_operand.vmem [shape: bf16[256,48], index: 0, kind: input, shape index: {}]   ;;  %s744_s3 = inlined_call_operand.vmem [shape: f32[256,16], index: 3, kind: output, shape index: {}]  }
   0x1   :  { %v472_v0 = vld [vmem:[%s741_s1 + $0x10] sm:$0xff]  ;;  %v471_v1 = vld [vmem:[%s741_s1 + $0x8] sm:$0xff]  ;;  %v470_v2 = vld [vmem:[%s741_s1] sm:$0xff] }
   0x2   :  { %209 = vmatpush.bf16.msra.mxu0 %v472_v0  ;;  %473 = vmatpush.bf16.msra.mxu1 %v472_v0  ;;  %v454_v3 = vld [vmem:[%s743_s0] sm:$0xff]  ;;  %v455_v7 = vld [vmem:[%s743_s0 + $0x8] sm:$0xff]  ;;  %v456_v11 = vld [vmem:[%s743_s0 + $0x10] sm:$0xff] }
   0x3   :  { %474 = vmatpush.bf16.msra.mxu2 %v472_v0  ;;  %475 = vmatpush.bf16.msra.mxu3 %v472_v0  ;;  %v458_v4 = vld [vmem:[%s743_s0 + $0x20] sm:$0xff]  ;;  %v459_v8 = vld [vmem:[%s743_s0 + $0x28] sm:$0xff]  ;;  %v460_v12 = vld [vmem:[%s743_s0 + $0x30] sm:$0xff] }
   0x4   :  { %v462_v5 = vld [vmem:[%s743_s0 + $0x40] sm:$0xff]  ;;  %v463_v9 = vld [vmem:[%s743_s0 + $0x48] sm:$0xff]  ;;  %v464_v13 = vld [vmem:[%s743_s0 + $0x50] sm:$0xff] }
   0x5   :  { %v466_v6 = vld [vmem:[%s743_s0 + $0x60] sm:$0xff]  ;;  %v467_v10 = vld [vmem:[%s743_s0 + $0x68] sm:$0xff]  ;;  %v468_v14 = vld [vmem:[%s743_s0 + $0x70] sm:$0xff] }
   0x6   :  { %210 = vmatpush.bf16.msra.mxu0 %v471_v1  ;;  %476 = vmatpush.bf16.msra.mxu1 %v471_v1  ;;  %v457_v15 = vld [vmem:[%s743_s0 + $0x18] sm:$0xff]  ;;  %v579_v19 = vld [vmem:[%s742_s2] ss:$0 sm:$0xff] }
   0x7   :  { %477 = vmatpush.bf16.msra.mxu2 %v471_v1  ;;  %478 = vmatpush.bf16.msra.mxu3 %v471_v1  ;;  %v461_v16 = vld [vmem:[%s743_s0 + $0x38] sm:$0xff] }
   0x8   :  { %v465_v17 = vld [vmem:[%s743_s0 + $0x58] sm:$0xff] }
   0x9   :  { %v469_v18 = vld [vmem:[%s743_s0 + $0x78] sm:$0xff] }
   0xa   :  { %211 = vmatpush.bf16.msra.mxu0 %v470_v2  ;;  %479 = vmatpush.bf16.msra.mxu1 %v470_v2 }
   0xb   :  { %480 = vmatpush.bf16.msra.mxu2 %v470_v2  ;;  %481 = vmatpush.bf16.msra.mxu3 %v470_v2 }
   0xd   :  { %438 = vmatmul.msk.bf16.vlgmr.msra.gmra.mxu0 %vm155_vm0, %v454_v3  ;;  %442 = vmatmul.msk.bf16.vlgmr.msra.gmra.mxu1 %vm155_vm0, %v458_v4 }
   0xe   :  { %446 = vmatmul.msk.bf16.vlgmr.msra.gmra.mxu2 %vm155_vm0, %v462_v5  ;;  %450 = vmatmul.msk.bf16.vlgmr.msra.gmra.mxu3 %vm155_vm0, %v466_v6 }
  0x1d   :  { %439 = vmatmul.msk.bf16.gmra.mxu0 %vm155_vm0, %v455_v7  ;;  %443 = vmatmul.msk.bf16.gmra.mxu1 %vm155_vm0, %v459_v8 }
  0x1e   :  { %447 = vmatmul.msk.bf16.gmra.mxu2 %vm155_vm0, %v463_v9  ;;  %451 = vmatmul.msk.bf16.gmra.mxu3 %vm155_vm0, %v467_v10 }
  0x2d   :  { %440 = vmatmul.msk.bf16.gmra.mxu0 %vm155_vm0, %v456_v11  ;;  %444 = vmatmul.msk.bf16.gmra.mxu1 %vm155_vm0, %v460_v12 }
  0x2e   :  { %448 = vmatmul.msk.bf16.gmra.mxu2 %vm155_vm0, %v464_v13  ;;  %452 = vmatmul.msk.bf16.gmra.mxu3 %vm155_vm0, %v468_v14 }
  0x3d   :  { %441 = vmatmul.msk.bf16.gmra.mxu0 %vm155_vm0, %v457_v15  ;;  %445 = vmatmul.msk.bf16.gmra.mxu1 %vm155_vm0, %v461_v16 }
  0x3e   :  { %449 = vmatmul.msk.bf16.gmra.mxu2 %vm155_vm0, %v465_v17  ;;  %453 = vmatmul.msk.bf16.gmra.mxu3 %vm155_vm0, %v469_v18 }
  0x8a   :  { %v213_v20 = vpop.f32.mrf.mxu0  ;;  %v233_v21 = vpop.f32.mrf.mxu1 }
  0x8b   :  { %v214_v22 = vadd.f32 %v579_v19, %v213_v20  ;;  %v234_v23 = vadd.f32 %v579_v19, %v233_v21 }
  0x8d   :  { %v293_v24 = vmax.f32 %v214_v22, 0.0  ;;  %v301_v25 = vmax.f32 %v234_v23, 0.0 }
  0x8f   :  { %326 = vst.msk [vmem:[%s744_s3] sm:$0xff] %vm325_vm1, %v293_v24 }
  0x90   :  { %334 = vst.msk [vmem:[%s744_s3 + $0x40] sm:$0xff] %vm325_vm1, %v301_v25 }
  0x91   :  { %v253_v26 = vpop.f32.mrf.mxu2  ;;  %v273_v27 = vpop.f32.mrf.mxu3 }
  0x92   :  { %v254_v28 = vadd.f32 %v579_v19, %v253_v26  ;;  %v274_v29 = vadd.f32 %v579_v19, %v273_v27  ;;  %v215_v30 = vpop.f32.mrf.mxu0  ;;  %v235_v31 = vpop.f32.mrf.mxu1 }
  0x93   :  { %v216_v32 = vadd.f32 %v579_v19, %v215_v30  ;;  %v236_v33 = vadd.f32 %v579_v19, %v235_v31 }
  0x94   :  { %v309_v34 = vmax.f32 %v254_v28, 0.0  ;;  %v317_v35 = vmax.f32 %v274_v29, 0.0 }
  0x95   :  { %v294_v36 = vmax.f32 %v216_v32, 0.0  ;;  %v302_v37 = vmax.f32 %v236_v33, 0.0 }
  0x96   :  { %342 = vst.msk [vmem:[%s744_s3 + $0x80] sm:$0xff] %vm325_vm1, %v309_v34 }
  0x97   :  { %350 = vst.msk [vmem:[%s744_s3 + $0xc0] sm:$0xff] %vm325_vm1, %v317_v35 }
  0x98   :  { %327 = vst.msk [vmem:[%s744_s3 + $0x8] sm:$0xff] %vm325_vm1, %v294_v36 }
  0x99   :  { %335 = vst.msk [vmem:[%s744_s3 + $0x48] sm:$0xff] %vm325_vm1, %v302_v37  ;;  %v255_v38 = vpop.f32.mrf.mxu2  ;;  %v275_v39 = vpop.f32.mrf.mxu3 }
  0x9a   :  { %v256_v40 = vadd.f32 %v579_v19, %v255_v38  ;;  %v276_v41 = vadd.f32 %v579_v19, %v275_v39  ;;  %v218_v42 = vpop.f32.mrf.mxu0  ;;  %v238_v43 = vpop.f32.mrf.mxu1 }
  0x9b   :  { %v219_v44 = vadd.f32 %v579_v19, %v218_v42  ;;  %v239_v45 = vadd.f32 %v579_v19, %v238_v43 }
  0x9c   :  { %v310_v46 = vmax.f32 %v256_v40, 0.0  ;;  %v318_v47 = vmax.f32 %v276_v41, 0.0 }
  0x9d   :  { %v295_v48 = vmax.f32 %v219_v44, 0.0  ;;  %v303_v49 = vmax.f32 %v239_v45, 0.0 }
  0x9e   :  { %343 = vst.msk [vmem:[%s744_s3 + $0x88] sm:$0xff] %vm325_vm1, %v310_v46 }
  0x9f   :  { %351 = vst.msk [vmem:[%s744_s3 + $0xc8] sm:$0xff] %vm325_vm1, %v318_v47 }
  0xa0   :  { %328 = vst.msk [vmem:[%s744_s3 + $0x10] sm:$0xff] %vm325_vm1, %v295_v48 }
  0xa1   :  { %336 = vst.msk [vmem:[%s744_s3 + $0x50] sm:$0xff] %vm325_vm1, %v303_v49  ;;  %v258_v50 = vpop.f32.mrf.mxu2  ;;  %v278_v51 = vpop.f32.mrf.mxu3 }
  0xa2   :  { %v259_v52 = vadd.f32 %v579_v19, %v258_v50  ;;  %v279_v53 = vadd.f32 %v579_v19, %v278_v51  ;;  %v220_v54 = vpop.f32.mrf.mxu0  ;;  %v240_v55 = vpop.f32.mrf.mxu1 }
  0xa3   :  { %v221_v56 = vadd.f32 %v579_v19, %v220_v54  ;;  %v241_v57 = vadd.f32 %v579_v19, %v240_v55 }
  0xa4   :  { %v311_v58 = vmax.f32 %v259_v52, 0.0  ;;  %v319_v59 = vmax.f32 %v279_v53, 0.0 }
  0xa5   :  { %v296_v60 = vmax.f32 %v221_v56, 0.0  ;;  %v304_v61 = vmax.f32 %v241_v57, 0.0 }
  0xa6   :  { %344 = vst.msk [vmem:[%s744_s3 + $0x90] sm:$0xff] %vm325_vm1, %v311_v58 }
  0xa7   :  { %352 = vst.msk [vmem:[%s744_s3 + $0xd0] sm:$0xff] %vm325_vm1, %v319_v59 }
  0xa8   :  { %329 = vst.msk [vmem:[%s744_s3 + $0x18] sm:$0xff] %vm325_vm1, %v296_v60 }
  0xa9   :  { %337 = vst.msk [vmem:[%s744_s3 + $0x58] sm:$0xff] %vm325_vm1, %v304_v61  ;;  %v260_v62 = vpop.f32.mrf.mxu2  ;;  %v280_v63 = vpop.f32.mrf.mxu3 }
  0xaa   :  { %v261_v0 = vadd.f32 %v579_v19, %v260_v62  ;;  %v281_v1 = vadd.f32 %v579_v19, %v280_v63  ;;  %v223_v2 = vpop.f32.mrf.mxu0  ;;  %v243_v3 = vpop.f32.mrf.mxu1 }
  0xab   :  { %v224_v4 = vadd.f32 %v579_v19, %v223_v2  ;;  %v244_v5 = vadd.f32 %v579_v19, %v243_v3 }
  0xac   :  { %v312_v6 = vmax.f32 %v261_v0, 0.0  ;;  %v320_v7 = vmax.f32 %v281_v1, 0.0 }
  0xad   :  { %v297_v8 = vmax.f32 %v224_v4, 0.0  ;;  %v305_v9 = vmax.f32 %v244_v5, 0.0 }
  0xae   :  { %345 = vst.msk [vmem:[%s744_s3 + $0x98] sm:$0xff] %vm325_vm1, %v312_v6 }
  0xaf   :  { %353 = vst.msk [vmem:[%s744_s3 + $0xd8] sm:$0xff] %vm325_vm1, %v320_v7 }
  0xb0   :  { %330 = vst.msk [vmem:[%s744_s3 + $0x20] sm:$0xff] %vm325_vm1, %v297_v8 }
  0xb1   :  { %338 = vst.msk [vmem:[%s744_s3 + $0x60] sm:$0xff] %vm325_vm1, %v305_v9  ;;  %v263_v10 = vpop.f32.mrf.mxu2  ;;  %v283_v11 = vpop.f32.mrf.mxu3 }
  0xb2   :  { %v264_v12 = vadd.f32 %v579_v19, %v263_v10  ;;  %v284_v13 = vadd.f32 %v579_v19, %v283_v11  ;;  %v225_v14 = vpop.f32.mrf.mxu0  ;;  %v245_v15 = vpop.f32.mrf.mxu1 }
  0xb3   :  { %v226_v16 = vadd.f32 %v579_v19, %v225_v14  ;;  %v246_v17 = vadd.f32 %v579_v19, %v245_v15 }
  0xb4   :  { %v313_v18 = vmax.f32 %v264_v12, 0.0  ;;  %v321_v20 = vmax.f32 %v284_v13, 0.0 }
  0xb5   :  { %v298_v21 = vmax.f32 %v226_v16, 0.0  ;;  %v306_v22 = vmax.f32 %v246_v17, 0.0 }
  0xb6   :  { %346 = vst.msk [vmem:[%s744_s3 + $0xa0] sm:$0xff] %vm325_vm1, %v313_v18 }
  0xb7   :  { %354 = vst.msk [vmem:[%s744_s3 + $0xe0] sm:$0xff] %vm325_vm1, %v321_v20 }
  0xb8   :  { %331 = vst.msk [vmem:[%s744_s3 + $0x28] sm:$0xff] %vm325_vm1, %v298_v21 }
  0xb9   :  { %339 = vst.msk [vmem:[%s744_s3 + $0x68] sm:$0xff] %vm325_vm1, %v306_v22  ;;  %v265_v23 = vpop.f32.mrf.mxu2  ;;  %v285_v24 = vpop.f32.mrf.mxu3 }
  0xba   :  { %v266_v25 = vadd.f32 %v579_v19, %v265_v23  ;;  %v286_v26 = vadd.f32 %v579_v19, %v285_v24  ;;  %v228_v27 = vpop.f32.mrf.mxu0  ;;  %v248_v28 = vpop.f32.mrf.mxu1 }
  0xbb   :  { %v229_v29 = vadd.f32 %v579_v19, %v228_v27  ;;  %v249_v30 = vadd.f32 %v579_v19, %v248_v28 }
  0xbc   :  { %v314_v31 = vmax.f32 %v266_v25, 0.0  ;;  %v322_v32 = vmax.f32 %v286_v26, 0.0 }
  0xbd   :  { %v299_v33 = vmax.f32 %v229_v29, 0.0  ;;  %v307_v34 = vmax.f32 %v249_v30, 0.0 }
  0xbe   :  { %347 = vst.msk [vmem:[%s744_s3 + $0xa8] sm:$0xff] %vm325_vm1, %v314_v31 }
  0xbf   :  { %355 = vst.msk [vmem:[%s744_s3 + $0xe8] sm:$0xff] %vm325_vm1, %v322_v32 }
  0xc0   :  { %332 = vst.msk [vmem:[%s744_s3 + $0x30] sm:$0xff] %vm325_vm1, %v299_v33 }
  0xc1   :  { %340 = vst.msk [vmem:[%s744_s3 + $0x70] sm:$0xff] %vm325_vm1, %v307_v34  ;;  %v268_v35 = vpop.f32.mrf.mxu2  ;;  %v288_v36 = vpop.f32.mrf.mxu3 }
  0xc2   :  { %v269_v37 = vadd.f32 %v579_v19, %v268_v35  ;;  %v289_v38 = vadd.f32 %v579_v19, %v288_v36  ;;  %v230_v39 = vpop.f32.mrf.mxu0  ;;  %v250_v40 = vpop.f32.mrf.mxu1 }
  0xc3   :  { %v231_v41 = vadd.f32 %v579_v19, %v230_v39  ;;  %v251_v42 = vadd.f32 %v579_v19, %v250_v40 }
  0xc4   :  { %v315_v43 = vmax.f32 %v269_v37, 0.0  ;;  %v323_v44 = vmax.f32 %v289_v38, 0.0 }
  0xc5   :  { %v300_v45 = vmax.f32 %v231_v41, 0.0  ;;  %v308_v46 = vmax.f32 %v251_v42, 0.0 }
  0xc6   :  { %348 = vst.msk [vmem:[%s744_s3 + $0xb0] sm:$0xff] %vm325_vm1, %v315_v43 }
  0xc7   :  { %356 = vst.msk [vmem:[%s744_s3 + $0xf0] sm:$0xff] %vm325_vm1, %v323_v44 }
  0xc8   :  { %333 = vst.msk [vmem:[%s744_s3 + $0x38] sm:$0xff] %vm325_vm1, %v300_v45 }
  0xc9   :  { %341 = vst.msk [vmem:[%s744_s3 + $0x78] sm:$0xff] %vm325_vm1, %v308_v46  ;;  %v270_v47 = vpop.f32.mrf.mxu2  ;;  %v290_v48 = vpop.f32.mrf.mxu3 }
  0xca   :  { %v271_v49 = vadd.f32 %v579_v19, %v270_v47  ;;  %v291_v50 = vadd.f32 %v579_v19, %v290_v48 }
  0xcc   :  { %v316_v51 = vmax.f32 %v271_v49, 0.0  ;;  %v324_v52 = vmax.f32 %v291_v50, 0.0 }
  0xce   :  { %349 = vst.msk [vmem:[%s744_s3 + $0xb8] sm:$0xff] %vm325_vm1, %v316_v51 }
  0xcf   :  { %357 = vst.msk [vmem:[%s744_s3 + $0xf8] sm:$0xff] %vm325_vm1, %v324_v52 }

// kernel: discrete_vae_forward.11
= control target key start
LH: loop header
LB: loop body
LE: loop exit
PB: predicated region body
PF: predicated region fallthrough
CT: control target
= control target key end

     0   :  { %vm260_vm0 = vcmask 130048   ;;  %s561_s1 = inlined_call_operand.vmem [shape: bf16[256,16], index: 1, kind: input, shape index: {}]   ;;  %s562_s2 = inlined_call_operand.vmem [shape: f32[1,16], index: 2, kind: input, shape index: {}]   ;;  %s563_s0 = inlined_call_operand.vmem [shape: bf16[64,256], index: 0, kind: input, shape index: {}]   ;;  %s564_s3 = inlined_call_operand.vmem [shape: f32[64,16], index: 3, kind: output, shape index: {}]  }
   0x1   :  { %v384_v0 = vld [vmem:[%s561_s1 + $0x38] sm:$0xff]  ;;  %v383_v2 = vld [vmem:[%s561_s1 + $0x30] sm:$0xff]  ;;  %v382_v4 = vld [vmem:[%s561_s1 + $0x28] sm:$0xff] }
   0x2   :  { %v392_v1 = vld [vmem:[%s561_s1 + $0x78] sm:$0xff]  ;;  %194 = vmatpush.bf16.msra.mxu0 %v384_v0  ;;  %393 = vmatpush.bf16.msra.mxu2 %v384_v0  ;;  %v391_v3 = vld [vmem:[%s561_s1 + $0x70] sm:$0xff]  ;;  %v390_v5 = vld [vmem:[%s561_s1 + $0x68] sm:$0xff] }
   0x3   :  { %223 = vmatpush.bf16.msra.mxu1 %v392_v1  ;;  %401 = vmatpush.bf16.msra.mxu3 %v392_v1  ;;  %v381_v6 = vld [vmem:[%s561_s1 + $0x20] sm:$0xff]  ;;  %v380_v8 = vld [vmem:[%s561_s1 + $0x18] sm:$0xff]  ;;  %v379_v10 = vld [vmem:[%s561_s1 + $0x10] sm:$0xff] }
   0x4   :  { %v389_v7 = vld [vmem:[%s561_s1 + $0x60] sm:$0xff]  ;;  %v388_v9 = vld [vmem:[%s561_s1 + $0x58] sm:$0xff]  ;;  %v387_v11 = vld [vmem:[%s561_s1 + $0x50] sm:$0xff] }
   0x5   :  { %v378_v12 = vld [vmem:[%s561_s1 + $0x8] sm:$0xff]  ;;  %v377_v14 = vld [vmem:[%s561_s1] sm:$0xff]  ;;  %v283_v28 = vld [vmem:[%s563_s0 + $0x10] sm:$0xf] }
   0x6   :  { %195 = vmatpush.bf16.msra.mxu0 %v383_v2  ;;  %394 = vmatpush.bf16.msra.mxu2 %v383_v2  ;;  %v386_v13 = vld [vmem:[%s561_s1 + $0x48] sm:$0xff]  ;;  %v385_v15 = vld [vmem:[%s561_s1 + $0x40] sm:$0xff]  ;;  %v372_v29 = vld [vmem:[%s563_s0 + $0x14] sm:$0xf0] }
   0x7   :  { %224 = vmatpush.bf16.msra.mxu1 %v391_v3  ;;  %402 = vmatpush.bf16.msra.mxu3 %v391_v3  ;;  %v275_v16 = vld [vmem:[%s563_s0] sm:$0xf]  ;;  %v370_v17 = vld [vmem:[%s563_s0 + $0x4] sm:$0xf0]  ;;  %v369_v20 = vld [vmem:[%s563_s0 + $0x4] sm:$0xf]  ;;  %v284_v36 = vor.u32 %v372_v29, %v283_v28 }
   0x8   :  { %v291_v18 = vld [vmem:[%s563_s0 + $0x20] sm:$0xf]  ;;  %v374_v19 = vld [vmem:[%s563_s0 + $0x24] sm:$0xf0]  ;;  %v277_v21 = vld [vmem:[%s563_s0 + $0x8] sm:$0xf0]  ;;  %v276_v24 = vor.u32 %v370_v17, %v275_v16 }
   0x9   :  { %v373_v22 = vld [vmem:[%s563_s0 + $0x24] sm:$0xf]  ;;  %v293_v23 = vld [vmem:[%s563_s0 + $0x28] sm:$0xf0]  ;;  %v292_v25 = vor.u32 %v374_v19, %v291_v18  ;;  %v280_v26 = vor.u32 %v369_v20, %v277_v21  ;;  %v299_v30 = vld [vmem:[%s563_s0 + $0x30] sm:$0xf] }
   0xa   :  { %196 = vmatpush.bf16.msra.mxu0 %v382_v4  ;;  %395 = vmatpush.bf16.msra.mxu2 %v382_v4  ;;  %v296_v27 = vor.u32 %v373_v22, %v293_v23  ;;  %v376_v31 = vld [vmem:[%s563_s0 + $0x34] sm:$0xf0]  ;;  %v371_v32 = vld [vmem:[%s563_s0 + $0x14] sm:$0xf]  ;;  %v285_v33 = vld [vmem:[%s563_s0 + $0x18] sm:$0xf0] }
   0xb   :  { %225 = vmatpush.bf16.msra.mxu1 %v390_v5  ;;  %403 = vmatpush.bf16.msra.mxu3 %v390_v5  ;;  %v375_v34 = vld [vmem:[%s563_s0 + $0x34] sm:$0xf]  ;;  %v301_v35 = vld [vmem:[%s563_s0 + $0x38] sm:$0xf0]  ;;  %v300_v37 = vor.u32 %v376_v31, %v299_v30  ;;  %v288_v38 = vor.u32 %v371_v32, %v285_v33  ;;  %v409_v40 = vld [vmem:[%s562_s2] ss:$0 sm:$0xff] }
   0xc   :  { %v304_v39 = vor.u32 %v375_v34, %v301_v35 }
   0xe   :  { %197 = vmatpush.bf16.msra.mxu0 %v381_v6  ;;  %396 = vmatpush.bf16.msra.mxu2 %v381_v6 }
   0xf   :  { %226 = vmatpush.bf16.msra.mxu1 %v389_v7  ;;  %404 = vmatpush.bf16.msra.mxu3 %v389_v7 }
  0x12   :  { %198 = vmatpush.bf16.msra.mxu0 %v380_v8  ;;  %397 = vmatpush.bf16.msra.mxu2 %v380_v8 }
  0x13   :  { %227 = vmatpush.bf16.msra.mxu1 %v388_v9  ;;  %405 = vmatpush.bf16.msra.mxu3 %v388_v9 }
  0x16   :  { %199 = vmatpush.bf16.msra.mxu0 %v379_v10  ;;  %398 = vmatpush.bf16.msra.mxu2 %v379_v10 }
  0x17   :  { %228 = vmatpush.bf16.msra.mxu1 %v387_v11  ;;  %406 = vmatpush.bf16.msra.mxu3 %v387_v11 }
  0x1a   :  { %200 = vmatpush.bf16.msra.mxu0 %v378_v12  ;;  %399 = vmatpush.bf16.msra.mxu2 %v378_v12 }
  0x1b   :  { %229 = vmatpush.bf16.msra.mxu1 %v386_v13  ;;  %407 = vmatpush.bf16.msra.mxu3 %v386_v13 }
  0x1e   :  { %201 = vmatpush.bf16.msra.mxu0 %v377_v14  ;;  %400 = vmatpush.bf16.msra.mxu2 %v377_v14 }
  0x1f   :  { %230 = vmatpush.bf16.msra.mxu1 %v385_v15  ;;  %408 = vmatpush.bf16.msra.mxu3 %v385_v15 }
  0x21   :  { %202 = vmatmul.bf16.vlgmr.msra.gmra.mxu0 %v276_v24  ;;  %212 = vmatmul.bf16.vlgmr.msra.gmra.mxu2 %v292_v25 }
  0x22   :  { %231 = vmatmul.bf16.vlgmr.msra.gmra.mxu1 %v280_v26  ;;  %241 = vmatmul.bf16.vlgmr.msra.gmra.mxu3 %v296_v27 }
  0x31   :  { %207 = vmatmul.bf16.gmra.mxu0 %v284_v36  ;;  %217 = vmatmul.bf16.gmra.mxu2 %v300_v37 }
  0x32   :  { %236 = vmatmul.bf16.gmra.mxu1 %v288_v38  ;;  %246 = vmatmul.bf16.gmra.mxu3 %v304_v39 }
  0x9e   :  { %v203_v41 = vpop.f32.mrf.mxu0 }
  0x9f   :  { %v204_v42 = vadd.f32 %v409_v40, %v203_v41  ;;  %v232_v43 = vpop.f32.mrf.mxu1 }
  0xa1   :  { %v233_v44 = vadd.f32 %v232_v43, %v204_v42 }
  0xa3   :  { %v252_v45 = vmax.f32 %v233_v44, 0.0 }
  0xa4   :  { %v213_v46 = vpop.f32.mrf.mxu2 }
  0xa5   :  { %261 = vst.msk [vmem:[%s564_s3] sm:$0xff] %vm260_vm0, %v252_v45  ;;  %v214_v47 = vadd.f32 %v409_v40, %v213_v46  ;;  %v242_v48 = vpop.f32.mrf.mxu3 }
  0xa6   :  { %v205_v49 = vpop.f32.mrf.mxu0 }
  0xa7   :  { %v243_v50 = vadd.f32 %v242_v48, %v214_v47  ;;  %v206_v51 = vadd.f32 %v409_v40, %v205_v49  ;;  %v234_v52 = vpop.f32.mrf.mxu1 }
  0xa9   :  { %v256_v53 = vmax.f32 %v243_v50, 0.0  ;;  %v235_v54 = vadd.f32 %v234_v52, %v206_v51 }
  0xab   :  { %265 = vst.msk [vmem:[%s564_s3 + $0x20] sm:$0xff] %vm260_vm0, %v256_v53  ;;  %v253_v55 = vmax.f32 %v235_v54, 0.0 }
  0xac   :  { %v215_v56 = vpop.f32.mrf.mxu2 }
  0xad   :  { %262 = vst.msk [vmem:[%s564_s3 + $0x8] sm:$0xff] %vm260_vm0, %v253_v55  ;;  %v216_v57 = vadd.f32 %v409_v40, %v215_v56  ;;  %v244_v58 = vpop.f32.mrf.mxu3 }
  0xae   :  { %v208_v59 = vpop.f32.mrf.mxu0 }
  0xaf   :  { %v245_v60 = vadd.f32 %v244_v58, %v216_v57  ;;  %v209_v61 = vadd.f32 %v409_v40, %v208_v59  ;;  %v237_v62 = vpop.f32.mrf.mxu1 }
  0xb1   :  { %v257_v63 = vmax.f32 %v245_v60, 0.0  ;;  %v238_v0 = vadd.f32 %v237_v62, %v209_v61 }
  0xb3   :  { %266 = vst.msk [vmem:[%s564_s3 + $0x28] sm:$0xff] %vm260_vm0, %v257_v63  ;;  %v254_v1 = vmax.f32 %v238_v0, 0.0 }
  0xb4   :  { %v218_v2 = vpop.f32.mrf.mxu2 }
  0xb5   :  { %263 = vst.msk [vmem:[%s564_s3 + $0x10] sm:$0xff] %vm260_vm0, %v254_v1  ;;  %v219_v3 = vadd.f32 %v409_v40, %v218_v2  ;;  %v247_v4 = vpop.f32.mrf.mxu3 }
  0xb6   :  { %v210_v5 = vpop.f32.mrf.mxu0 }
  0xb7   :  { %v248_v6 = vadd.f32 %v247_v4, %v219_v3  ;;  %v211_v7 = vadd.f32 %v409_v40, %v210_v5  ;;  %v239_v8 = vpop.f32.mrf.mxu1 }
  0xb9   :  { %v258_v9 = vmax.f32 %v248_v6, 0.0  ;;  %v240_v10 = vadd.f32 %v239_v8, %v211_v7 }
  0xbb   :  { %267 = vst.msk [vmem:[%s564_s3 + $0x30] sm:$0xff] %vm260_vm0, %v258_v9  ;;  %v255_v11 = vmax.f32 %v240_v10, 0.0 }
  0xbc   :  { %v220_v12 = vpop.f32.mrf.mxu2 }
  0xbd   :  { %264 = vst.msk [vmem:[%s564_s3 + $0x18] sm:$0xff] %vm260_vm0, %v255_v11  ;;  %v221_v13 = vadd.f32 %v409_v40, %v220_v12  ;;  %v249_v14 = vpop.f32.mrf.mxu3 }
  0xbf   :  { %v250_v15 = vadd.f32 %v249_v14, %v221_v13 }
  0xc1   :  { %v259_v16 = vmax.f32 %v250_v15, 0.0 }
  0xc3   :  { %268 = vst.msk [vmem:[%s564_s3 + $0x38] sm:$0xff] %vm260_vm0, %v259_v16 }

// kernel: discrete_vae_forward.13
= control target key start
LH: loop header
LB: loop body
LE: loop exit
PB: predicated region body
PF: predicated region fallthrough
CT: control target
= control target key end

     0   :  { %vm55_vm0 = vcmask 130048   ;;  %vm97_vm1 = vcmask 261120   ;;  %s213_s1 = inlined_call_operand.vmem [shape: bf16[16,32], index: 1, kind: input, shape index: {}]   ;;  %s214_s0 = inlined_call_operand.vmem [shape: bf16[64,16], index: 0, kind: input, shape index: {}]   ;;  %s215_s2 = inlined_call_operand.vmem [shape: f32[1,32], index: 2, kind: input, shape index: {}]   ;;  %s216_s3 = inlined_call_operand.vmem [shape: f32[64,32], index: 3, kind: output, shape index: {}]  }
   0x1   :  { %v138_v0 = vld [vmem:[%s213_s1] sm:$0xff]  ;;  %v135_v2 = vld [vmem:[%s214_s0 + $0x8] sm:$0xff]  ;;  %v136_v3 = vld [vmem:[%s214_s0 + $0x10] sm:$0xff] }
   0x2   :  { %v134_v1 = vld [vmem:[%s214_s0] sm:$0xff]  ;;  %75 = vmatpush.bf16.msra.mxu0 %v138_v0  ;;  %139 = vmatpush.bf16.msra.mxu1 %v138_v0  ;;  %v137_v4 = vld [vmem:[%s214_s0 + $0x18] sm:$0xff] }
   0x3   :  { %140 = vmatpush.bf16.msra.mxu2 %v138_v0  ;;  %141 = vmatpush.bf16.msra.mxu3 %v138_v0  ;;  %v142_v5 = vld [vmem:[%s215_s2] ss:$0 sm:$0xff] }
   0x5   :  { %130 = vmatmul.msk.bf16.vlgmr.msra.gmra.mxu0 %vm55_vm0, %v134_v1  ;;  %131 = vmatmul.msk.bf16.vlgmr.msra.gmra.mxu1 %vm55_vm0, %v135_v2 }
   0x6   :  { %132 = vmatmul.msk.bf16.vlgmr.msra.gmra.mxu2 %vm55_vm0, %v136_v3  ;;  %133 = vmatmul.msk.bf16.vlgmr.msra.gmra.mxu3 %vm55_vm0, %v137_v4 }
  0x82   :  { %v77_v6 = vpop.f32.mrf.mxu0  ;;  %v82_v7 = vpop.f32.mrf.mxu1 }
  0x83   :  { %v78_v8 = vadd.f32 %v142_v5, %v77_v6  ;;  %v83_v9 = vadd.f32 %v142_v5, %v82_v7 }
  0x85   :  { %98 = vst.msk [vmem:[%s216_s3] sm:$0xff] %vm97_vm1, %v78_v8 }
  0x86   :  { %100 = vst.msk [vmem:[%s216_s3 + $0x10] sm:$0xff] %vm97_vm1, %v83_v9 }
  0x89   :  { %v87_v10 = vpop.f32.mrf.mxu2  ;;  %v92_v11 = vpop.f32.mrf.mxu3 }
  0x8a   :  { %v88_v12 = vadd.f32 %v142_v5, %v87_v10  ;;  %v93_v13 = vadd.f32 %v142_v5, %v92_v11  ;;  %v79_v14 = vpop.f32.mrf.mxu0  ;;  %v84_v15 = vpop.f32.mrf.mxu1 }
  0x8b   :  { %v80_v16 = vadd.f32 %v142_v5, %v79_v14  ;;  %v85_v17 = vadd.f32 %v142_v5, %v84_v15 }
  0x8c   :  { %102 = vst.msk [vmem:[%s216_s3 + $0x20] sm:$0xff] %vm97_vm1, %v88_v12 }
  0x8d   :  { %104 = vst.msk [vmem:[%s216_s3 + $0x30] sm:$0xff] %vm97_vm1, %v93_v13 }
  0x8e   :  { %99 = vst.msk [vmem:[%s216_s3 + $0x8] sm:$0xff] %vm97_vm1, %v80_v16 }
  0x8f   :  { %101 = vst.msk [vmem:[%s216_s3 + $0x18] sm:$0xff] %vm97_vm1, %v85_v17 }
  0x91   :  { %v89_v18 = vpop.f32.mrf.mxu2  ;;  %v94_v19 = vpop.f32.mrf.mxu3 }
  0x92   :  { %v90_v20 = vadd.f32 %v142_v5, %v89_v18  ;;  %v95_v21 = vadd.f32 %v142_v5, %v94_v19 }
  0x94   :  { %103 = vst.msk [vmem:[%s216_s3 + $0x28] sm:$0xff] %vm97_vm1, %v90_v20 }
  0x95   :  { %105 = vst.msk [vmem:[%s216_s3 + $0x38] sm:$0xff] %vm97_vm1, %v95_v21 }

// kernel: discrete_vae_forward.14
= control target key start
LH: loop header
LB: loop body
LE: loop exit
PB: predicated region body
PF: predicated region fallthrough
CT: control target
= control target key end

     0   :  { %vm48_vm0 = vcmask 261120   ;;  %s666_s0 = inlined_call_operand.vmem [shape: f32[64,32], index: 0, kind: input, shape index: {}]   ;;  %s667_s1 = inlined_call_operand.vmem [shape: f32[64,32], index: 1, kind: input, shape index: {}]   ;;  %s668_s2 = inlined_call_operand.vmem [shape: f32[32,32], index: 2, kind: input, shape index: {}]   ;;  %s669_s4 = inlined_call_operand.vmem [shape: f32[1,32], index: 4, kind: output, shape index: {1}]   ;;  %s670_s3 = inlined_call_operand.vmem [shape: f32[64,32], index: 3, kind: output, shape index: {0}]  }
   0x1   :  { %v21_v0 = vld [vmem:[%s666_s0 + $0x28] sm:$0xff]  ;;  %v20_v2 = vld [vmem:[%s666_s0 + $0x20] sm:$0xff]  ;;  %v23_v9 = vld [vmem:[%s666_s0 + $0x38] sm:$0xff] }
   0x2   :  { %v29_v1 = vld [vmem:[%s667_s1 + $0x28] sm:$0xff]  ;;  %v28_v4 = vld [vmem:[%s667_s1 + $0x20] sm:$0xff]  ;;  %v31_v10 = vld [vmem:[%s667_s1 + $0x38] sm:$0xff] }
   0x3   :  { %v37_v3 = vadd.f32 %v29_v1, %v21_v0  ;;  %v16_v5 = vld [vmem:[%s666_s0] sm:$0xff]  ;;  %v36_v7 = vadd.f32 %v28_v4, %v20_v2  ;;  %v22_v11 = vld [vmem:[%s666_s0 + $0x30] sm:$0xff]  ;;  %v39_v13 = vadd.f32 %v31_v10, %v23_v9  ;;  %v17_v27 = vld [vmem:[%s666_s0 + $0x8] sm:$0xff] }
   0x4   :  { %v24_v6 = vld [vmem:[%s667_s1] sm:$0xff]  ;;  %v30_v14 = vld [vmem:[%s667_s1 + $0x30] sm:$0xff]  ;;  %v25_v28 = vld [vmem:[%s667_s1 + $0x8] sm:$0xff] }
   0x5   :  { %v32_v8 = vadd.f32 %v24_v6, %v16_v5  ;;  %v434_v12 = vmul.f32 1.1111112, %v37_v3  ;;  %v18_v15 = vld [vmem:[%s666_s0 + $0x10] sm:$0xff]  ;;  %v44_v17 = vmul.f32 1.1111112, %v36_v7  ;;  %v38_v19 = vadd.f32 %v30_v14, %v22_v11  ;;  %v19_v29 = vld [vmem:[%s666_s0 + $0x18] sm:$0xff] }
   0x6   :  { %v26_v16 = vld [vmem:[%s667_s1 + $0x10] sm:$0xff]  ;;  %v47_v24 = vmul.f32 1.1111112, %v39_v13  ;;  %v27_v30 = vld [vmem:[%s667_s1 + $0x18] sm:$0xff]  ;;  %v33_v34 = vadd.f32 %v25_v28, %v17_v27 }
   0x7   :  { %v40_v18 = vmul.f32 1.1111112, %v32_v8  ;;  %v34_v20 = vadd.f32 %v26_v16, %v18_v15  ;;  %v64_v21 = vsel %vm48_vm0, %v434_v12, -inf  ;;  %v61_v22 = vsel %vm48_vm0, %v44_v17, -inf  ;;  %v244_v16 = vld [vmem:[%s668_s2 + $0x18] sm:$0xff] }
   0x8   :  { %65 = vmax.xlane.f32.xlu2 %v64_v21  ;;  %62 = vmax.xlane.f32.xlu0 %v61_v22  ;;  %v46_v25 = vmul.f32 1.1111112, %v38_v19  ;;  %v70_v31 = vsel %vm48_vm0, %v47_v24, -inf  ;;  %v35_v35 = vadd.f32 %v27_v30, %v19_v29  ;;  %v41_v36 = vmul.f32 1.1111112, %v33_v34  ;;  %v241_v19 = vld [vmem:[%s668_s2] sm:$0xff] }
   0x9   :  { %v49_v23 = vsel %vm48_vm0, %v40_v18, -inf  ;;  %v42_v26 = vmul.f32 1.1111112, %v34_v20  ;;  %281 = vmatpush.msra.mxu0 %v244_v16  ;;  %337 = vmatpush.msra.mxu2 %v244_v16 }
   0xa   :  { %50 = vmax.xlane.f32.xlu1 %v49_v23  ;;  %v67_v32 = vsel %vm48_vm0, %v46_v25, -inf  ;;  %v43_v37 = vmul.f32 1.1111112, %v35_v35  ;;  %v52_v38 = vsel %vm48_vm0, %v41_v36, -inf  ;;  %336 = vmatpush.msra.mxu1 %v244_v16 }
   0xb   :  { %v55_v33 = vsel %vm48_vm0, %v42_v26, -inf  ;;  %338 = vmatpush.msra.mxu3 %v244_v16 }
   0xc   :  { %v58_v39 = vsel %vm48_vm0, %v43_v37, -inf }
  0x10   :  { %71 = vmax.xlane.f32.xlu2 %v70_v31  ;;  %68 = vmax.xlane.f32.xlu0 %v67_v32 }
  0x12   :  { %56 = vmax.xlane.f32.xlu1 %v55_v33 }
  0x18   :  { %53 = vmax.xlane.f32.xlu0 %v52_v38 }
  0x1a   :  { %59 = vmax.xlane.f32.xlu1 %v58_v39 }
  0x7b   :  { %v66_v40 = vpop.xlane.xlu2 %65  ;;  %v63_v41 = vpop.xlane.xlu0 %62 }
  0x7c   :  { %v77_v43 = vsub.f32 %v44_v17, %v63_v41  ;;  %v78_v55 = vsub.f32 %v434_v12, %v66_v40  ;;  %v243_v17 = vld [vmem:[%s668_s2 + $0x10] sm:$0xff] }
  0x7d   :  { %v51_v42 = vpop.xlane.xlu1 %50  ;;  %282 = vmatpush.msra.mxu0 %v243_v17  ;;  %340 = vmatpush.msra.mxu2 %v243_v17 }
  0x7e   :  { %v73_v44 = vsub.f32 %v40_v18, %v51_v42  ;;  %v89_v45 = vmul.f32 1.442695, %v77_v43  ;;  %v91_v61 = vmul.f32 1.442695, %v78_v55  ;;  %v242_v18 = vld [vmem:[%s668_s2 + $0x8] sm:$0xff]  ;;  %339 = vmatpush.msra.mxu1 %v243_v17  ;;  %341 = vmatpush.msra.mxu3 %v243_v17 }
  0x7f   :  { %283 = vmatpush.msra.mxu0 %v242_v18  ;;  %343 = vmatpush.msra.mxu2 %v242_v18 }
  0x80   :  { %v81_v46 = vmul.f32 1.442695, %v73_v44  ;;  %349 = vpow2.f32 %v89_v45  ;;  %342 = vmatpush.msra.mxu1 %v242_v18  ;;  %344 = vmatpush.msra.mxu3 %v242_v18 }
  0x81   :  { %284 = vmatpush.msra.mxu0 %v241_v19  ;;  %346 = vmatpush.msra.mxu2 %v241_v19 }
  0x82   :  { %351 = vpow2.f32 %v81_v46  ;;  %345 = vmatpush.msra.mxu1 %v241_v19  ;;  %347 = vmatpush.msra.mxu3 %v241_v19 }
  0x83   :  { %v72_v47 = vpop.xlane.xlu2 %71  ;;  %v69_v49 = vpop.xlane.xlu0 %68 }
  0x84   :  { %v80_v48 = vsub.f32 %v47_v24, %v72_v47  ;;  %v79_v51 = vsub.f32 %v46_v25, %v69_v49 }
  0x85   :  { %v57_v50 = vpop.xlane.xlu1 %56 }
  0x86   :  { %v75_v52 = vsub.f32 %v42_v26, %v57_v50  ;;  %v95_v53 = vmul.f32 1.442695, %v80_v48  ;;  %v466_v54 = vpop.eup %349  ;;  %v93_v56 = vmul.f32 1.442695, %v79_v51 }
  0x87   :  { %v109_v59 = vsel %vm48_vm0, %v466_v54, 0.0 }
  0x88   :  { %v85_v57 = vmul.f32 1.442695, %v75_v52  ;;  %v469_v58 = vpop.eup %351  ;;  %353 = vpow2.f32 %v95_v53  ;;  %110 = vadd.xlane.f32.xlu2 %v109_v59 }
  0x89   :  { %355 = vpow2.f32 %v93_v56  ;;  %v97_v60 = vsel %vm48_vm0, %v469_v58, 0.0 }
  0x8a   :  { %357 = vpow2.f32 %v85_v57  ;;  %98 = vadd.xlane.f32.xlu1 %v97_v60 }
  0x8b   :  { %v54_v62 = vpop.xlane.xlu0 %53  ;;  %359 = vpow2.f32 %v91_v61 }
  0x8c   :  { %v74_v0 = vsub.f32 %v41_v36, %v54_v62 }
  0x8d   :  { %v60_v63 = vpop.xlane.xlu1 %59 }
  0x8e   :  { %v76_v1 = vsub.f32 %v43_v37, %v60_v63  ;;  %v475_v2 = vpop.eup %353  ;;  %v83_v4 = vmul.f32 1.442695, %v74_v0 }
  0x8f   :  { %v477_v3 = vpop.eup %355  ;;  %v118_v5 = vsel %vm48_vm0, %v475_v2, 0.0 }
  0x90   :  { %v481_v6 = vpop.eup %357  ;;  %v115_v7 = vsel %vm48_vm0, %v477_v3, 0.0  ;;  %361 = vpow2.f32 %v83_v4  ;;  %v87_v9 = vmul.f32 1.442695, %v76_v1 }
  0x91   :  { %116 = vadd.xlane.f32.xlu0 %v115_v7  ;;  %v103_v8 = vsel %vm48_vm0, %v481_v6, 0.0  ;;  %v487_v10 = vpop.eup %359 }
  0x92   :  { %119 = vadd.xlane.f32.xlu1 %v118_v5  ;;  %104 = vadd.xlane.f32.xlu2 %v103_v8  ;;  %363 = vpow2.f32 %v87_v9  ;;  %v112_v12 = vsel %vm48_vm0, %v487_v10, 0.0 }
  0x96   :  { %v489_v11 = vpop.eup %361 }
  0x97   :  { %v100_v13 = vsel %vm48_vm0, %v489_v11, 0.0 }
  0x98   :  { %v495_v14 = vpop.eup %363 }
  0x99   :  { %113 = vadd.xlane.f32.xlu0 %v112_v12  ;;  %v106_v15 = vsel %vm48_vm0, %v495_v14, 0.0 }
  0x9a   :  { %101 = vadd.xlane.f32.xlu2 %v100_v13 }
  0xa1   :  { %107 = vadd.xlane.f32.xlu0 %v106_v15 }
  0xfb   :  { %v111_v20 = vpop.xlane.xlu2 %110 }
  0xfc   :  { %365 = vrcp.f32 %v111_v20  ;;  %v192_v30 = vand.u32 2147483648, %v111_v20  ;;  %v190_v33 = vand.u32 2147483647, %v111_v20  ;;  %vm186_vm1 = vweird.f32 %v111_v20 }
  0xfd   :  { %v99_v21 = vpop.xlane.xlu1 %98 }
  0xfe   :  { %367 = vrcp.f32 %v99_v21  ;;  %v132_v32 = vand.u32 2147483648, %v99_v21  ;;  %v130_v35 = vand.u32 2147483647, %v99_v21  ;;  %vm126_vm2 = vweird.f32 %v99_v21 }
  0xff   :  { %v193_v39 = vor.u32 1.1754944e-38, %v192_v30  ;;  %vm523_vm4 = vcmp.eq.f32.partialorder %v190_v33, 8.507059e+37 }
 0x100   :  { %v133_v40 = vor.u32 1.1754944e-38, %v132_v32  ;;  %vm531_vm6 = vcmp.eq.f32.partialorder %v130_v35, 8.507059e+37 }
 0x102   :  { %v366_v22 = vpop.eup %365 }
 0x103   :  { %v182_v24 = vmul.f32 %v366_v22, %v111_v20  ;;  %vm187_vm3 = vweird.f32 %v366_v22 }
 0x104   :  { %v368_v23 = vpop.eup %367  ;;  %v511_v25 = vpop.xlane.xlu0 %116  ;;  %vm545_vm8 = vmor %vm186_vm1, %vm187_vm3 }
 0x105   :  { %v122_v26 = vmul.f32 %v368_v23, %v99_v21  ;;  %369 = vrcp.f32 %v511_v25  ;;  %v514_v27 = vpop.xlane.xlu2 %104  ;;  %v516_v28 = vpop.xlane.xlu1 %119  ;;  %v183_v29 = vsub.f32 1.0, %v182_v24  ;;  %v222_v41 = vand.u32 2147483648, %v511_v25 }
 0x106   :  { %371 = vrcp.f32 %v514_v27  ;;  %vm127_vm5 = vweird.f32 %v368_v23  ;;  %vm216_vm7 = vweird.f32 %v511_v25  ;;  %v162_v50 = vand.u32 2147483648, %v514_v27 }
 0x107   :  { %v123_v31 = vsub.f32 1.0, %v122_v26  ;;  %373 = vrcp.f32 %v516_v28  ;;  %v184_v34 = vmul.f32 %v366_v22, %v183_v29  ;;  %v223_v57 = vor.u32 1.1754944e-38, %v222_v41  ;;  %vm128_vm10 = vmor %vm126_vm2, %vm127_vm5 }
 0x108   :  { %vm156_vm9 = vweird.f32 %v514_v27  ;;  %v160_v60 = vand.u32 2147483647, %v514_v27  ;;  %v220_v0 = vand.u32 2147483647, %v511_v25  ;;  %vm231_vm11 = vweird.f32 %v516_v28 }
 0x109   :  { %v124_v36 = vmul.f32 %v368_v23, %v123_v31  ;;  %v185_v37 = vadd.f32 %v366_v22, %v184_v34  ;;  %v163_v7 = vor.u32 1.1754944e-38, %v162_v50  ;;  %v237_v8 = vand.u32 2147483648, %v516_v28 }
 0x10a   :  { %vm161_vm14 = vcmp.eq.f32.partialorder %v160_v60, 8.507059e+37  ;;  %vm576_vm15 = vcmp.eq.f32.partialorder %v220_v0, 8.507059e+37 }
 0x10b   :  { %v520_v38 = vpop.eup %369  ;;  %v125_v46 = vadd.f32 %v368_v23, %v124_v36  ;;  %v189_v56 = vsel %vm545_vm8, %v366_v22, %v185_v37  ;;  %v235_v37 = vand.u32 2147483647, %v516_v28 }
 0x10c   :  { %v372_v43 = vpop.eup %371  ;;  %v212_v44 = vmul.f32 %v520_v38, %v511_v25  ;;  %v529_v45 = vpop.xlane.xlu0 %113  ;;  %v194_v5 = vsel %vm523_vm4, %v193_v39, %v189_v56  ;;  %vm217_vm13 = vweird.f32 %v520_v38 }
 0x10d   :  { %v535_v48 = vpop.eup %373  ;;  %v152_v49 = vmul.f32 %v372_v43, %v514_v27  ;;  %375 = vrcp.f32 %v529_v45  ;;  %v541_v51 = vpop.xlane.xlu2 %101  ;;  %v129_v63 = vsel %vm128_vm10, %v368_v23, %v125_v46  ;;  %v195_v12 = vmul.f32 %v466_v54, %v194_v5  ;;  %vm218_vm4 = vmor %vm216_vm7, %vm217_vm13 }
 0x10e   :  { %v213_v53 = vsub.f32 1.0, %v212_v44  ;;  %v227_v55 = vmul.f32 %v535_v48, %v516_v28  ;;  %377 = vrcp.f32 %v541_v51  ;;  %v134_v4 = vsel %vm531_vm6, %v133_v40, %v129_v63 }
 0x10f   :  { %v153_v59 = vsub.f32 1.0, %v152_v49  ;;  %v135_v9 = vmul.f32 %v469_v58, %v134_v4  ;;  %vm157_vm12 = vweird.f32 %v372_v43  ;;  %332 = vmatmul.msk.f32.vlgmr.msra.gmra.mxu2 %vm48_vm0, %v195_v12  ;;  %vm232_vm1 = vweird.f32 %v535_v48 }
 0x110   :  { %v214_v61 = vmul.f32 %v520_v38, %v213_v53  ;;  %v228_v62 = vsub.f32 1.0, %v227_v55  ;;  %v207_v58 = vand.u32 2147483648, %v529_v45  ;;  %vm158_vm2 = vmor %vm156_vm9, %vm157_vm12  ;;  %vm141_vm3 = vweird.f32 %v541_v51 }
 0x111   :  { %v154_v1 = vmul.f32 %v372_v43, %v153_v59  ;;  %328 = vmatmul.msk.f32.vlgmr.msra.gmra.mxu0 %vm48_vm0, %v135_v9  ;;  %v147_v23 = vand.u32 2147483648, %v541_v51  ;;  %v205_v31 = vand.u32 2147483647, %v529_v45  ;;  %v145_v35 = vand.u32 2147483647, %v541_v51  ;;  %vm604_vm7 = vmor %vm231_vm11, %vm232_vm1 }
 0x112   :  { %v215_v16 = vadd.f32 %v520_v38, %v214_v61  ;;  %v229_v18 = vmul.f32 %v535_v48, %v228_v62  ;;  %vm201_vm8 = vweird.f32 %v529_v45  ;;  %v208_v40 = vor.u32 1.1754944e-38, %v207_v58 }
 0x113   :  { %v376_v13 = vpop.eup %375  ;;  %v155_v15 = vadd.f32 %v372_v43, %v154_v1  ;;  %v148_v42 = vor.u32 1.1754944e-38, %v147_v23  ;;  %vm206_vm11 = vcmp.eq.f32.partialorder %v205_v31, 8.507059e+37  ;;  %v238_v44 = vor.u32 1.1754944e-38, %v237_v8 }
 0x114   :  { %v378_v17 = vpop.eup %377  ;;  %v197_v19 = vmul.f32 %v376_v13, %v529_v45  ;;  %v574_v20 = vpop.xlane.xlu0 %107  ;;  %v219_v30 = vsel %vm218_vm4, %v520_v38, %v215_v16  ;;  %v230_v27 = vadd.f32 %v535_v48, %v229_v18  ;;  %vm202_vm5 = vweird.f32 %v376_v13 }
 0x115   :  { %v137_v21 = vmul.f32 %v378_v17, %v541_v51  ;;  %379 = vrcp.f32 %v574_v20  ;;  %v159_v24 = vsel %vm158_vm2, %v372_v43, %v155_v15  ;;  %vm142_vm6 = vweird.f32 %v378_v17  ;;  %vm203_vm9 = vmor %vm201_vm8, %vm202_vm5 }
 0x116   :  { %v198_v22 = vsub.f32 1.0, %v197_v19  ;;  %v164_v29 = vsel %vm161_vm14, %v163_v7, %v159_v24  ;;  %v224_v25 = vsel %vm576_vm15, %v223_v57, %v219_v30  ;;  %vm143_vm10 = vmor %vm141_vm3, %vm142_vm6  ;;  %vm146_vm12 = vcmp.eq.f32.partialorder %v145_v35, 8.507059e+37 }
 0x117   :  { %v138_v26 = vsub.f32 1.0, %v137_v21  ;;  %v165_v33 = vmul.f32 %v481_v6, %v164_v29  ;;  %v225_v6 = vmul.f32 %v477_v3, %v224_v25  ;;  %v234_v3 = vsel %vm604_vm7, %v535_v48, %v230_v27 }
 0x118   :  { %v199_v32 = vmul.f32 %v376_v13, %v198_v22  ;;  %vm236_vm13 = vcmp.eq.f32.partialorder %v235_v37, 8.507059e+37  ;;  %v177_v51 = vand.u32 2147483648, %v574_v20  ;;  %v175_v56 = vand.u32 2147483647, %v574_v20 }
 0x119   :  { %v139_v34 = vmul.f32 %v378_v17, %v138_v26  ;;  %330 = vmatmul.msk.f32.vlgmr.msra.gmra.mxu1 %vm48_vm0, %v165_v33  ;;  %334 = vmatmul.msk.f32.vlgmr.msra.gmra.mxu3 %vm48_vm0, %v225_v6  ;;  %v239_v53 = vsel %vm236_vm13, %v238_v44, %v234_v3  ;;  %vm171_vm15 = vweird.f32 %v574_v20  ;;  %vm318_vm3 = vcmask 253952  }
 0x11a   :  { %v200_v38 = vadd.f32 %v376_v13, %v199_v32  ;;  %v240_v57 = vmul.f32 %v475_v2, %v239_v53  ;;  %vm176_vm2 = vcmp.eq.f32.partialorder %v175_v56, 8.507059e+37  ;;  %v381_v61 = vmov 0.0  }
 0x11b   :  { %v380_v39 = vpop.eup %379  ;;  %v140_v41 = vadd.f32 %v378_v17, %v139_v34  ;;  %319 = vst.msk [vmem:[%s669_s4] sm:$0x1] %vm318_vm3, %v381_v61 }
 0x11c   :  { %v167_v43 = vmul.f32 %v380_v39, %v574_v20  ;;  %v204_v28 = vsel %vm203_vm9, %v376_v13, %v200_v38  ;;  %vm172_vm14 = vweird.f32 %v380_v39 }
 0x11d   :  { %v144_v45 = vsel %vm143_vm10, %v378_v17, %v140_v41  ;;  %v209_v46 = vsel %vm206_vm11, %v208_v40, %v204_v28  ;;  %vm173_vm1 = vmor %vm171_vm15, %vm172_vm14 }
 0x11e   :  { %v168_v47 = vsub.f32 1.0, %v167_v43  ;;  %v149_v49 = vsel %vm146_vm12, %v148_v42, %v144_v45  ;;  %v210_v50 = vmul.f32 %v487_v10, %v209_v46  ;;  %v178_v10 = vor.u32 1.1754944e-38, %v177_v51 }
 0x11f   :  { %v150_v52 = vmul.f32 %v489_v11, %v149_v49 }
 0x120   :  { %v169_v55 = vmul.f32 %v380_v39, %v168_v47  ;;  %333 = vmatmul.msk.f32.gmra.mxu2 %vm48_vm0, %v210_v50 }
 0x121   :  { %329 = vmatmul.msk.f32.gmra.mxu0 %vm48_vm0, %v150_v52  ;;  %335 = vmatmul.msk.f32.gmra.mxu3 %vm48_vm0, %v240_v57 }
 0x122   :  { %v170_v48 = vadd.f32 %v380_v39, %v169_v55 }
 0x124   :  { %v174_v11 = vsel %vm173_vm1, %v380_v39, %v170_v48 }
 0x125   :  { %v179_v59 = vsel %vm176_vm2, %v178_v10, %v174_v11 }
 0x126   :  { %v180_v60 = vmul.f32 %v495_v14, %v179_v59 }
 0x128   :  { %331 = vmatmul.msk.f32.gmra.mxu1 %vm48_vm0, %v180_v60 }
 0x18e   :  { %v286_v62 = vpop.f32.mrf.mxu0 }
 0x18f   :  { %310 = vst.msk [vmem:[%s670_s3] sm:$0xff] %vm48_vm0, %v286_v62 }
 0x192   :  { %v298_v2 = vpop.f32.mrf.mxu2 }
 0x193   :  { %314 = vst.msk [vmem:[%s670_s3 + $0x20] sm:$0xff] %vm48_vm0, %v298_v2 }
 0x196   :  { %v292_v63 = vpop.f32.mrf.mxu1 }
 0x197   :  { %312 = vst.msk [vmem:[%s670_s3 + $0x10] sm:$0xff] %vm48_vm0, %v292_v63 }
 0x19c   :  { %v304_v0 = vpop.f32.mrf.mxu3 }
 0x19d   :  { %316 = vst.msk [vmem:[%s670_s3 + $0x30] sm:$0xff] %vm48_vm0, %v304_v0 }
 0x19e   :  { %v289_v14 = vpop.f32.mrf.mxu0 }
 0x19f   :  { %311 = vst.msk [vmem:[%s670_s3 + $0x8] sm:$0xff] %vm48_vm0, %v289_v14 }
 0x1a3   :  { %v301_v1 = vpop.f32.mrf.mxu2 }
 0x1a4   :  { %315 = vst.msk [vmem:[%s670_s3 + $0x28] sm:$0xff] %vm48_vm0, %v301_v1  ;;  %v307_v5 = vpop.f32.mrf.mxu3 }
 0x1a5   :  { %v295_v4 = vpop.f32.mrf.mxu1  ;;  %317 = vst.msk [vmem:[%s670_s3 + $0x38] sm:$0xff] %vm48_vm0, %v307_v5 }
 0x1a6   :  { %313 = vst.msk [vmem:[%s670_s3 + $0x18] sm:$0xff] %vm48_vm0, %v295_v4 }

// kernel: discrete_vae_forward.12
= control target key start
LH: loop header
LB: loop body
LE: loop exit
PB: predicated region body
PF: predicated region fallthrough
CT: control target
= control target key end

     0   :  { %v26_v0 = vlaneseq  ;;  %v3829_v17 = vmov 0  ;;  %v3832_v21 = vmov 0  ;;  %vm3714_vm3 = vcmask 130048   ;;  %s3702_s1 = inlined_call_operand.vmem [shape: f32[144,16], index: 1, kind: input, shape index: {}]   ;;  %s3703_s0 = inlined_call_operand.vmem [shape: f32[80,16], index: 0, kind: input, shape index: {}]   ;;  %s3704_s2 = inlined_call_operand.vmem [shape: f32[1,16], index: 2, kind: input, shape index: {}]   ;;  %s3705_s3 = inlined_call_operand.vmem [shape: f32[144,16], index: 3, kind: input, shape index: {}]   ;;  %s3706_s4 = inlined_call_operand.vmem [shape: f32[1,16], index: 4, kind: input, shape index: {}]   ;;  %s3707_s5 = inlined_call_operand.vmem [shape: f32[16,16], index: 5, kind: input, shape index: {}]   ;;  %s3708_s6 = inlined_call_operand.vmem [shape: f32[1,16], index: 6, kind: input, shape index: {}]   ;;  %s3709_s7 = inlined_call_operand.vmem [shape: f32[64,16], index: 7, kind: output, shape index: {}]  }
   0x1   :  { %v150_v1 = vld [vmem:[%s3702_s1 + $0x18] sm:$0xff]  ;;  %v149_v2 = vld [vmem:[%s3702_s1 + $0x10] sm:$0xff]  ;;  %v116_v4 = vld [vmem:[%s3702_s1 + $0x8] sm:$0xff]  ;;  %v3835_v27 = vmov 0  ;;  %v3838_v32 = vmov 0  ;;  %v3840_v33 = vmov 0 }
   0x2   :  { %2151 = vmatpush.msra.mxu3 %v150_v1  ;;  %v2208_v3 = vshrl.u32 %v26_v0, 7  ;;  %v331_v5 = vld [vmem:[%s3702_s1 + $0x28] sm:$0xff]  ;;  %v2219_v6 = vld [vmem:[%s3702_s1 + $0x20] sm:$0xff]  ;;  %190 = vmatpush.msra.mxu0 %v150_v1  ;;  %v2261_v25 = vld [vmem:[%s3703_s0 + $0x34] sm:$0xff]  ;;  %v3843_v37 = vmov 0  ;;  %v3845_v41 = vmov 0 }
   0x3   :  { %370 = vmatpush.msra.mxu2 %v331_v5  ;;  %255 = vmatpush.msra.mxu1 %v116_v4  ;;  %v115_v7 = vld [vmem:[%s3702_s1] sm:$0xff]  ;;  %v521_v12 = vld [vmem:[%s3702_s1 + $0x48] sm:$0xff]  ;;  %v3847_v45 = vmov 0  ;;  %v3849_v53 = vmov 0  ;;  %v3852_v54 = vmov 0  ;;  %v3855_v56 = vmov 0 }
   0x4   :  { %2152 = vmatpush.msra.mxu3 %v149_v2  ;;  %v2225_v8 = vadd.s32 48, %v2208_v3  ;;  %v35_v9 = vshra.s32 %v2208_v3, 2  ;;  %v51_v10 = vand.u32 3, %v2208_v3  ;;  %191 = vmatpush.msra.mxu0 %v149_v2  ;;  %v2230_v11 = vadd.s32 56, %v2208_v3  ;;  %v117_v18 = vld [vmem:[%s3703_s0 + $0x4] sm:$0xff]  ;;  %v2313_v38 = vld [vmem:[%s3703_s0 + $0xc] sm:$0xff] }
   0x5   :  { %371 = vmatpush.msra.mxu2 %v2219_v6  ;;  %v28_v13 = vadd.s32 8, %v2208_v3  ;;  %v29_v14 = vadd.s32 16, %v2208_v3  ;;  %256 = vmatpush.msra.mxu1 %v115_v7  ;;  %v282_v20 = vld [vmem:[%s3703_s0 + $0x5] sm:$0xff]  ;;  %v2321_v40 = vld [vmem:[%s3703_s0 + $0xd] sm:$0xff]  ;;  %v2336_v43 = vld [vmem:[%s3703_s0 + $0x3c] sm:$0xff]  ;;  %v30_v48 = vadd.s32 24, %v2208_v3 }
   0x6   :  { %2153 = vmatpush.msrb.mxu3 %v116_v4  ;;  %v41_v15 = vshra.s32 %v2225_v8, 2  ;;  %v2239_v16 = vand.u32 3, %v35_v9  ;;  %vm2241_vm0 = vcmp.lt.s32.totalorder %v51_v10, 3  ;;  %v42_v19 = vshra.s32 %v2230_v11, 2  ;;  %560 = vmatpush.msrb.mxu0 %v521_v12  ;;  %v59_v26 = vld [vmem:[%s3703_s0 + $0x3] sm:$0xff]  ;;  %v2341_v44 = vld [vmem:[%s3703_s0 + $0xb] sm:$0xff] }
   0x7   :  { %v3830_v17 = vsel %vm2241_vm0, 4294967295, %v3829_v17  ;;  %vm2252_vm1 = vcmp.ge.s32.totalorder %v51_v10, 1  ;;  %v36_v22 = vshra.s32 %v28_v13, 2  ;;  %v52_v23 = vand.u32 3, %v28_v13  ;;  %v520_v39 = vld [vmem:[%s3702_s1 + $0x40] sm:$0xff]  ;;  %v2397_v58 = vld [vmem:[%s3703_s0 + $0x14] sm:$0xff] }
   0x8   :  { %3831 = vst [vmem:[#allocation3_spill] sm:$0xff] %v3830_v17  ;;  %2154 = vmatpush.msrb.mxu3 %v115_v7  ;;  %v3833_v21 = vsel %vm2252_vm1, 4294967295, %v3832_v21  ;;  %v2256_v24 = vand.u32 3, %v41_v15  ;;  %vm3711_vm2 = vcmp.ge.s32.totalorder %v2239_v16, 1  ;;  %v2277_v29 = vand.u32 3, %v42_v19  ;;  %561 = vmatpush.msrb.mxu0 %v520_v39  ;;  %v2403_v60 = vld [vmem:[%s3703_s0 + $0x15] sm:$0xff] }
   0x9   :  { %vm2271_vm4 = vmand %vm3711_vm2, %vm2241_vm0  ;;  %v141_v28 = vsel %vm3711_vm2, %v117_v18, 0.0  ;;  %v2279_v30 = vand.u32 3, %v36_v22  ;;  %vm2293_vm7 = vcmp.lt.s32.totalorder %v52_v23, 3  ;;  %v37_v34 = vshra.s32 %v29_v14, 2  ;;  %v2416_v62 = vld [vmem:[%s3703_s0 + $0x33] sm:$0xff]  ;;  %v2473_v18 = vld [vmem:[%s3703_s0 + $0x1c] sm:$0xff] }
   0xa   :  { %3834 = vst [vmem:[#allocation4_spill] sm:$0xff] %v2256_v24  ;;  %v3836_v27 = vsel %vm2271_vm4, 4294967295, %v3835_v27  ;;  %vm3712_vm5 = vcmp.ge.s32.totalorder %v2256_v24, 1  ;;  %v322_v31 = vsel %vm2271_vm4, %v282_v20, 0.0  ;;  %1999 = vmatmul.msk.f32.vlgmr.msra.gmra.mxu0 %vm3714_vm3, %v141_v28  ;;  %vm2289_vm6 = vmand %vm3711_vm2, %vm2252_vm1  ;;  %v3841_v33 = vsel %vm2293_vm7, 4294967295, %v3840_v33  ;;  %v2421_v63 = vld [vmem:[%s3703_s0 + $0x13] sm:$0xff] }
   0xb   :  { %3837 = vst [vmem:[#allocation5_spill] sm:$0xff] %v2277_v29  ;;  %v3839_v32 = vsel %vm2289_vm6, 4294967295, %v3838_v32  ;;  %v147_v35 = vsel %vm3712_vm5, %v2261_v25, 0.0  ;;  %2015 = vmatmul.msk.f32.vlgmr.msra.gmra.mxu2 %vm3714_vm3, %v322_v31  ;;  %v107_v36 = vsel %vm2289_vm6, %v59_v26, 0.0  ;;  %vm3710_vm8 = vcmp.ge.s32.totalorder %v2279_v30, 1  ;;  %v438_v13 = vld [vmem:[%s3702_s1 + $0x38] sm:$0xff] }
   0xc   :  { %3842 = vst [vmem:[#allocation6_spill] sm:$0xff] %v3841_v33  ;;  %vm2304_vm9 = vcmp.ge.s32.totalorder %v52_v23, 1  ;;  %2005 = vmatmul.msk.f32.vlgmr.msra.gmra.mxu3 %vm3714_vm3, %v147_v35  ;;  %2007 = vmatmul.msk.f32.vlgmr.msra.gmra.mxu1 %vm3714_vm3, %v107_v36  ;;  %vm2327_vm10 = vmand %vm3710_vm8, %vm2293_vm7  ;;  %v57_v42 = vand.u32 3, %v2225_v8  ;;  %vm3713_vm11 = vcmp.ge.s32.totalorder %v2277_v29, 1  ;;  %v2351_v46 = vand.u32 3, %v37_v34  ;;  %v437_v20 = vld [vmem:[%s3702_s1 + $0x30] sm:$0xff] }
   0xd   :  { %v3844_v37 = vsel %vm2304_vm9, 4294967295, %v3843_v37  ;;  %v3846_v41 = vsel %vm2327_vm10, 4294967295, %v3845_v41  ;;  %2155 = vmatpush.msra.mxu3 %v331_v5  ;;  %vm2347_vm12 = vmand %vm3710_vm8, %vm2304_vm9  ;;  %v53_v47 = vand.u32 3, %v29_v14  ;;  %v142_v49 = vsel %vm3710_vm8, %v2313_v38, 0.0  ;;  %v751_v22 = vld [vmem:[%s3702_s1 + $0x68] sm:$0xff]  ;;  %v750_v23 = vld [vmem:[%s3702_s1 + $0x60] sm:$0xff] }
   0xe   :  { %v3848_v45 = vsel %vm2347_vm12, 4294967295, %v3847_v45  ;;  %v323_v50 = vsel %vm2327_vm10, %v2321_v40, 0.0  ;;  %v148_v51 = vsel %vm3713_vm11, %v2336_v43, 0.0  ;;  %v108_v52 = vsel %vm2347_vm12, %v2341_v44, 0.0  ;;  %v2493_v26 = vld [vmem:[%s3703_s0 + $0x1d] sm:$0xff]  ;;  %790 = vmatpush.msrb.mxu2 %v751_v22 }
   0xf   :  { %2156 = vmatpush.msra.mxu3 %v2219_v6  ;;  %vm2369_vm13 = vcmp.ge.s32.totalorder %v57_v42, 1  ;;  %vm3716_vm14 = vcmp.ge.s32.totalorder %v2351_v46, 1  ;;  %vm2375_vm15 = vcmp.lt.s32.totalorder %v53_v47, 3  ;;  %v38_v55 = vshra.s32 %v30_v48, 2  ;;  %v628_v31 = vld [vmem:[%s3702_s1 + $0x58] sm:$0xff] }
  0x10   :  { %v3850_v53 = vsel %vm2369_vm13, 4294967295, %v3849_v53  ;;  %v3853_v54 = vsel %vm2375_vm15, 4294967295, %v3852_v54  ;;  %vm2380_vm8 = vcmp.ge.s32.totalorder %v53_v47, 1  ;;  %vm2390_vm2 = vmand %vm3712_vm5, %vm2369_vm13  ;;  %v3857_v57 = vmov 0  ;;  %v2509_v34 = vld [vmem:[%s3703_s0 + $0x3b] sm:$0xff]  ;;  %667 = vmatpush.msrb.mxu1 %v628_v31  ;;  %791 = vmatpush.msrb.mxu2 %v750_v23 }
  0x11   :  { %3851 = vst [vmem:[#allocation7_spill] sm:$0xff] %v3850_v53  ;;  %v3856_v56 = vsel %vm2380_vm8, 4294967295, %v3855_v56  ;;  %v3858_v57 = vsel %vm2390_vm2, 4294967295, %v3857_v57  ;;  %v58_v59 = vand.u32 3, %v2230_v11  ;;  %vm2409_vm5 = vmand %vm3716_vm14, %vm2375_vm15  ;;  %v3860_v61 = vmov 0  ;;  %v2514_v35 = vld [vmem:[%s3703_s0 + $0x1b] sm:$0xff] }
  0x12   :  { %2000 = vmatmul.msk.f32.gmra.mxu0 %vm3714_vm3, %v142_v49  ;;  %3854 = vst [vmem:[#allocation8_spill] sm:$0xff] %v3853_v54  ;;  %v3861_v61 = vsel %vm2409_vm5, 4294967295, %v3860_v61  ;;  %vm2427_vm11 = vmand %vm3716_vm14, %vm2380_vm8  ;;  %v3862_v0 = vmov 0  ;;  %v2431_v1 = vand.u32 3, %v38_v55  ;;  %v54_v2 = vand.u32 3, %v30_v48 }
  0x13   :  { %2016 = vmatmul.msk.f32.gmra.mxu2 %vm3714_vm3, %v323_v50  ;;  %3859 = vst [vmem:[#allocation9_spill] sm:$0xff] %v3858_v57  ;;  %v3863_v0 = vsel %vm2427_vm11, 4294967295, %v3862_v0  ;;  %v31_v4 = vadd.s32 32, %v2208_v3  ;;  %v143_v5 = vsel %vm3716_vm14, %v2397_v58, 0.0  ;;  %v324_v6 = vsel %vm2409_vm5, %v2403_v60, 0.0 }
  0x14   :  { %2006 = vmatmul.msk.f32.gmra.mxu3 %vm3714_vm3, %v148_v51  ;;  %2008 = vmatmul.msk.f32.gmra.mxu1 %vm3714_vm3, %v108_v52  ;;  %3864 = vst [vmem:[#allocation10_spill] sm:$0xff] %v2431_v1  ;;  %vm2442_vm3 = vcmp.ge.s32.totalorder %v58_v59, 1  ;;  %v3865_v7 = vmov 0  ;;  %v113_v9 = vsel %vm2390_vm2, %v2416_v62, 0.0  ;;  %v109_v10 = vsel %vm2427_vm11, %v2421_v63, 0.0 }
  0x15   :  { %v3866_v7 = vsel %vm2442_vm3, 4294967295, %v3865_v7  ;;  %vm3868_vm10 = vcmask 130048   ;;  %vm2454_vm12 = vcmp.lt.s32.totalorder %v54_v2, 3  ;;  %v3869_v12 = vmov 0 }
  0x16   :  { %3867 = vst [vmem:[#allocation11_spill] sm:$0xff] %v3866_v7  ;;  %v3870_v12 = vsel %vm2454_vm12, 4294967295, %v3869_v12  ;;  %v39_v14 = vshra.s32 %v31_v4, 2  ;;  %vm3872_vm5 = vmmov %vm3868_vm10  ;;  %vm3873_vm2 = vcmp.ge.s32.totalorder %v2277_v29, 1  ;;  %v3874_v15 = vmov 0 }
  0x17   :  { %3871 = vst [vmem:[#allocation12_spill] sm:$0xff] %v3870_v12  ;;  %vm2466_vm11 = vmand %vm3873_vm2, %vm2442_vm3  ;;  %v3877_v19 = vmov 0  ;;  %vm3881_vm2 = vcmp.ge.s32.totalorder %v2431_v1, 1  ;;  %v3882_v28 = vmov 0  ;;  %v3886_v36 = vmov 0 }
  0x18   :  { %v3875_v15 = vsel %vm2466_vm11, 4294967295, %v3874_v15  ;;  %vm3880_vm14 = vmmov %vm3872_vm5  ;;  %v2524_v39 = vand.u32 3, %v39_v14  ;;  %v55_v47 = vand.u32 3, %v31_v4  ;;  %v32_v48 = vadd.s32 40, %v2208_v3  ;;  %v2555_v4 = vld [vmem:[%s3703_s0 + $0x24] sm:$0xff] }
  0x19   :  { %3876 = vst [vmem:[#allocation13_spill] sm:$0xff] %v3875_v15  ;;  %v114_v51 = vsel %vm2466_vm11, %v2509_v34, 0.0  ;;  %v3891_v3 = vmov 0  ;;  %v3895_v55 = vmov 0  ;;  %v3899_v8 = vmov 0  ;;  %v2598_v14 = vld [vmem:[%s3703_s0 + $0x23] sm:$0xff] }
  0x1a   :  { %2001 = vmatmul.msk.f32.gmra.mxu0 %vm3868_vm10, %v143_v5  ;;  %vm2475_vm10 = vcmp.ge.s32.totalorder %v54_v2, 1  ;;  %3889 = vst [vmem:[#allocation17_spill] sm:$0xff] %v2524_v39  ;;  %vm2547_vm3 = vcmp.lt.s32.totalorder %v55_v47, 3  ;;  %v40_v2 = vshra.s32 %v32_v48, 2  ;;  %vm3904_vm6 = vcmp.ge.s32.totalorder %v2256_v24, 1  ;;  %v973_v5 = vld [vmem:[%s3702_s1 + $0x88] sm:$0xff] }
  0x1b   :  { %2017 = vmatmul.msk.f32.gmra.mxu2 %vm3872_vm5, %v324_v6  ;;  %v3878_v19 = vsel %vm2475_vm10, 4294967295, %v3877_v19  ;;  %v3896_v55 = vsel %vm2547_vm3, 4294967295, %v3895_v55  ;;  %v627_v6 = vld [vmem:[%s3702_s1 + $0x50] sm:$0xff]  ;;  %1012 = vmatpush.msra.mxu0 %v973_v5  ;;  %v56_v23 = vand.u32 3, %v32_v48  ;;  %v3918_v48 = vmov 0 }
  0x1c   :  { %3879 = vst [vmem:[#allocation14_spill] sm:$0xff] %v3878_v19  ;;  %2013 = vmatmul.msk.f32.vlgmr.msrb.gmra.mxu3 %vm3880_vm14, %v113_v9  ;;  %2009 = vmatmul.msk.f32.gmra.mxu1 %vm3872_vm5, %v109_v10  ;;  %vm2499_vm14 = vmand %vm3881_vm2, %vm2454_vm12  ;;  %v2580_v9 = vld [vmem:[%s3703_s0 + $0x25] sm:$0xff]  ;;  %v3909_v10 = vmov 0  ;;  %v2608_v22 = vand.u32 3, %v40_v2  ;;  %v3926_v11 = vmov 0  ;;  %v2660_v5 = vld [vmem:[%s3703_s0 + $0x2d] sm:$0xff] }
  0x1d   :  { %v3883_v28 = vsel %vm2499_vm14, 4294967295, %v3882_v28  ;;  %477 = vmatpush.msrb.mxu3 %v438_v13  ;;  %vm3885_vm5 = vmmov %vm3881_vm2  ;;  %v325_v50 = vsel %vm2499_vm14, %v2493_v26, 0.0  ;;  %3897 = vst [vmem:[#allocation19_spill] sm:$0xff] %v3896_v55  ;;  %vm2557_vm14 = vcmp.ge.s32.totalorder %v55_v47, 1  ;;  %668 = vmatpush.msrb.mxu1 %v627_v6  ;;  %v2593_v13 = vld [vmem:[%s3703_s0 + $0x35] sm:$0xff]  ;;  %v2655_v2 = vld [vmem:[%s3703_s0 + $0x2c] sm:$0xff] }
  0x1e   :  { %3884 = vst [vmem:[#allocation15_spill] sm:$0xff] %v3883_v28  ;;  %vm2520_vm2 = vmand %vm3885_vm5, %vm2475_vm10  ;;  %v3900_v8 = vsel %vm2557_vm14, 4294967295, %v3899_v8  ;;  %v3936_v6 = vmov 0 }
  0x1f   :  { %v3887_v36 = vsel %vm2520_vm2, 4294967295, %v3886_v36  ;;  %vm3890_vm4 = vmmov %vm3885_vm5  ;;  %478 = vmatpush.msrb.mxu3 %v437_v20  ;;  %v110_v52 = vsel %vm2520_vm2, %v2514_v35, 0.0  ;;  %vm2541_vm5 = vcmp.lt.s32.totalorder %v57_v42, 3  ;;  %3901 = vst [vmem:[#allocation20_spill] sm:$0xff] %v3900_v8  ;;  %v3905_v42 = vmov 0 }
  0x20   :  { %3888 = vst [vmem:[#allocation16_spill] sm:$0xff] %v3887_v36  ;;  %v144_v49 = vsel %vm3890_vm4, %v2473_v18, 0.0  ;;  %v3892_v3 = vsel %vm2541_vm5, 4294967295, %v3891_v3  ;;  %vm3894_vm4 = vcmask 130048   ;;  %vm2567_vm13 = vmand %vm3904_vm6, %vm2541_vm5  ;;  %vm3908_vm6 = vcmp.ge.s32.totalorder %v2524_v39, 1 }
  0x21   :  { %3893 = vst [vmem:[#allocation18_spill] sm:$0xff] %v3892_v3  ;;  %vm3898_vm11 = vmmov %vm3894_vm4  ;;  %v3906_v42 = vsel %vm2567_vm13, 4294967295, %v3905_v42  ;;  %v3913_v20 = vmov 0  ;;  %vm3921_vm5 = vcmask 130048  }
  0x22   :  { %2002 = vmatmul.msk.f32.gmra.mxu0 %vm3894_vm4, %v144_v49  ;;  %vm3902_vm2 = vmmov %vm3894_vm4  ;;  %3907 = vst [vmem:[#allocation21_spill] sm:$0xff] %v3906_v42  ;;  %v328_v49 = vsel %vm2567_vm13, %v2593_v13, 0.0 }
  0x23   :  { %2018 = vmatmul.msk.f32.gmra.mxu2 %vm3898_vm11, %v325_v50  ;;  %vm3903_vm4 = vmmov %vm3902_vm2  ;;  %3916 = vst [vmem:[#allocation24_spill] sm:$0xff] %v2608_v22 }
  0x24   :  { %2014 = vmatmul.msk.f32.gmra.mxu3 %vm3902_vm2, %v114_v51  ;;  %2010 = vmatmul.msk.f32.gmra.mxu1 %vm3903_vm4, %v110_v52  ;;  %vm2586_vm11 = vmand %vm3908_vm6, %vm2547_vm3  ;;  %vm2630_vm3 = vcmp.lt.s32.totalorder %v56_v23, 3  ;;  %v3922_v51 = vmov 0  ;;  %v858_v52 = vld [vmem:[%s3702_s1 + $0x78] sm:$0xff] }
  0x25   :  { %v3910_v10 = vsel %vm2586_vm11, 4294967295, %v3909_v10  ;;  %vm3912_vm2 = vmmov %vm3908_vm6  ;;  %v326_v47 = vsel %vm2586_vm11, %v2580_v9, 0.0  ;;  %v3923_v51 = vsel %vm2630_vm3, 4294967295, %v3922_v51  ;;  %vm2638_vm11 = vcmp.ge.s32.totalorder %v56_v23, 1  ;;  %v2673_v23 = vld [vmem:[%s3703_s0 + $0x3d] sm:$0xff] }
  0x26   :  { %3911 = vst [vmem:[#allocation22_spill] sm:$0xff] %v3910_v10  ;;  %vm2604_vm4 = vmand %vm3912_vm2, %vm2557_vm14  ;;  %v3927_v11 = vsel %vm2638_vm11, 4294967295, %v3926_v11 }
  0x27   :  { %v3914_v20 = vsel %vm2604_vm4, 4294967295, %v3913_v20  ;;  %vm3917_vm6 = vmmov %vm3912_vm2  ;;  %v111_v50 = vsel %vm2604_vm4, %v2598_v14, 0.0  ;;  %vm2624_vm2 = vcmp.lt.s32.totalorder %v58_v59, 3  ;;  %3924 = vst [vmem:[#allocation26_spill] sm:$0xff] %v3923_v51  ;;  %v3932_v59 = vmov 0 }
  0x28   :  { %3915 = vst [vmem:[#allocation23_spill] sm:$0xff] %v3914_v20  ;;  %v145_v31 = vsel %vm3917_vm6, %v2555_v4, 0.0  ;;  %v3919_v48 = vsel %vm2624_vm2, 4294967295, %v3918_v48  ;;  %vm3925_vm13 = vmmov %vm3921_vm5 }
  0x29   :  { %3920 = vst [vmem:[#allocation25_spill] sm:$0xff] %v3919_v48  ;;  %vm3929_vm4 = vmmov %vm3921_vm5 }
  0x2a   :  { %2003 = vmatmul.msk.f32.gmra.mxu0 %vm3921_vm5, %v145_v31  ;;  %3928 = vst [vmem:[#allocation27_spill] sm:$0xff] %v3927_v11  ;;  %vm3930_vm14 = vmmov %vm3929_vm4  ;;  %vm3931_vm5 = vcmp.ge.s32.totalorder %v2277_v29, 1  ;;  %v2678_v31 = vld [vmem:[%s3703_s0 + $0x2b] sm:$0xff] }
  0x2b   :  { %2019 = vmatmul.msk.f32.gmra.mxu2 %vm3925_vm13, %v326_v47  ;;  %vm2648_vm6 = vmand %vm3931_vm5, %vm2624_vm2  ;;  %vm3935_vm13 = vcmp.ge.s32.totalorder %v2608_v22, 1  ;;  %v3940_v47 = vmov 0  ;;  %vm3750_vm2 = vcmp.lt.s32.totalorder %v2239_v16, 3 }
  0x2c   :  { %2021 = vmatmul.msk.f32.vlgmr.msra.gmra.mxu3 %vm3929_vm4, %v328_v49  ;;  %2011 = vmatmul.msk.f32.gmra.mxu1 %vm3930_vm14, %v111_v50  ;;  %v3933_v59 = vsel %vm2648_vm6, 4294967295, %v3932_v59  ;;  %vm2666_vm14 = vmand %vm3935_vm13, %vm2630_vm3 }
  0x2d   :  { %3934 = vst [vmem:[#allocation28_spill] sm:$0xff] %v3933_v59  ;;  %v3937_v6 = vsel %vm2666_vm14, 4294967295, %v3936_v6  ;;  %897 = vmatpush.msra.mxu3 %v858_v52  ;;  %vm3939_vm4 = vmmov %vm3935_vm13  ;;  %v327_v50 = vsel %vm2666_vm14, %v2660_v5, 0.0  ;;  %v329_v52 = vsel %vm2648_vm6, %v2673_v23, 0.0  ;;  %v3948_v59 = vmov 0 }
  0x2e   :  { %3938 = vst [vmem:[#allocation29_spill] sm:$0xff] %v3937_v6  ;;  %vm2684_vm5 = vmand %vm3939_vm4, %vm2638_vm11  ;;  %vm3972_vm6 = vnez %v3900_v8  ;;  %v1358_v8 = vld [vmem:[%s3705_s3 + $0x30] sm:$0xff] }
  0x2f   :  { %v3941_v47 = vsel %vm2684_vm5, 4294967295, %v3940_v47  ;;  %vm3943_vm13 = vmmov %vm3939_vm4  ;;  %v112_v15 = vsel %vm2684_vm5, %v2678_v31, 0.0  ;;  %vm3944_vm4 = vcmask 130048  }
  0x30   :  { %3942 = vst [vmem:[#allocation30_spill] sm:$0xff] %v3941_v47  ;;  %v146_v49 = vsel %vm3943_vm13, %v2655_v2, 0.0  ;;  %vm3945_vm3 = vmmov %vm3944_vm4 }
  0x31   :  { %vm3946_vm11 = vmmov %vm3945_vm3 }
  0x32   :  { %2004 = vmatmul.msk.f32.gmra.mxu0 %vm3944_vm4, %v146_v49  ;;  %vm3947_vm13 = vmmov %vm3945_vm3  ;;  %v405_v49 = vld [vmem:[%s3703_s0 + $0x7] sm:$0xff] }
  0x33   :  { %2020 = vmatmul.msk.f32.gmra.mxu2 %vm3945_vm3, %v327_v50  ;;  %vm2709_vm14 = vmand %vm3750_vm2, %vm2252_vm1  ;;  %v595_v50 = vld [vmem:[%s3703_s0 + $0x9] sm:$0xff]  ;;  %v429_v42 = vsel %vm2252_vm1, %v405_v49, 0.0  ;;  %v3954_v49 = vmov 0 }
  0x34   :  { %2022 = vmatmul.msk.f32.gmra.mxu3 %vm3946_vm11, %v329_v52  ;;  %2012 = vmatmul.msk.f32.gmra.mxu1 %vm3947_vm13, %v112_v15  ;;  %v3949_v59 = vsel %vm2709_vm14, 4294967295, %v3948_v59  ;;  %v512_v15 = vld [vmem:[%s3703_s0 + $0x8] sm:$0xff]  ;;  %v742_v52 = vsel %vm2709_vm14, %v2341_v44, 0.0  ;;  %v619_v57 = vsel %vm2241_vm0, %v595_v50, 0.0  ;;  %vm3752_vm11 = vcmp.lt.s32.totalorder %v2279_v30, 3  ;;  %vm3951_vm4 = vmmov %vm3945_vm3  ;;  %v857_v44 = vld [vmem:[%s3702_s1 + $0x70] sm:$0xff] }
  0x35   :  { %3950 = vst [vmem:[#allocation31_spill] sm:$0xff] %v3949_v59  ;;  %vm3952_vm13 = vmmov %vm3945_vm3  ;;  %898 = vmatpush.msra.mxu3 %v857_v44  ;;  %v406_v50 = vld [vmem:[%s3703_s0 + $0xf] sm:$0xff] }
  0x36   :  { %vm3953_vm2 = vmmov %vm3945_vm3 }
  0x37   :  { %vm2741_vm14 = vmand %vm3752_vm11, %vm2304_vm9 }
  0x38   :  { %v3955_v49 = vsel %vm2741_vm14, 4294967295, %v3954_v49  ;;  %vm3959_vm11 = vmmov %vm3953_vm2 }
  0x39   :  { %3956 = vst [vmem:[#allocation32_spill] sm:$0xff] %v3955_v49 }
  0x3a   :  { %2031 = vmatmul.msk.f32.vlgmr.msrb.gmra.mxu0 %vm3945_vm3, %v512_v15  ;;  %v743_v15 = vsel %vm2741_vm14, %v2421_v63, 0.0  ;;  %vm3754_vm3 = vcmp.lt.s32.totalorder %v2351_v46, 3  ;;  %v972_v63 = vld [vmem:[%s3702_s1 + $0x80] sm:$0xff] }
  0x3b   :  { %2047 = vmatmul.msk.f32.vlgmr.msrb.gmra.mxu2 %vm3951_vm4, %v742_v52  ;;  %v430_v52 = vsel %vm2304_vm9, %v406_v50, 0.0  ;;  %vm3957_vm4 = vmmov %vm3953_vm2  ;;  %v3960_v50 = vmov 0  ;;  %1013 = vmatpush.msra.mxu0 %v972_v63  ;;  %vm4005_vm9 = vcmp.lt.s32.totalorder %v2239_v16, 3 }
  0x3c   :  { %2023 = vmatmul.msk.f32.vlgmr.msrb.gmra.mxu3 %vm3952_vm13, %v429_v42  ;;  %2039 = vmatmul.msk.f32.vlgmr.msrb.gmra.mxu1 %vm3953_vm2, %v619_v57  ;;  %v596_v57 = vld [vmem:[%s3703_s0 + $0x11] sm:$0xff]  ;;  %vm3958_vm13 = vmmov %vm3953_vm2 }
  0x3d   :  { %v513_v42 = vld [vmem:[%s3703_s0 + $0x10] sm:$0xff]  ;;  %v620_v44 = vsel %vm2293_vm7, %v596_v57, 0.0  ;;  %vm2773_vm14 = vmand %vm3754_vm3, %vm2380_vm8 }
  0x3e   :  { %v3961_v50 = vsel %vm2773_vm14, 4294967295, %v3960_v50  ;;  %v407_v57 = vld [vmem:[%s3703_s0 + $0x17] sm:$0xff]  ;;  %vm3965_vm3 = vmmov %vm3957_vm4 }
  0x3f   :  { %3962 = vst [vmem:[#allocation33_spill] sm:$0xff] %v3961_v50  ;;  %vm3979_vm5 = vmmov %vm3965_vm3 }
  0x40   :  { %vm2948_vm1 = vmand %vm4005_vm9, %vm2241_vm0 }
  0x42   :  { %2032 = vmatmul.msk.f32.gmra.mxu0 %vm3953_vm2, %v513_v42  ;;  %v597_v42 = vld [vmem:[%s3703_s0 + $0x19] sm:$0xff] }
  0x43   :  { %2048 = vmatmul.msk.f32.gmra.mxu2 %vm3957_vm4, %v743_v15  ;;  %v514_v15 = vld [vmem:[%s3703_s0 + $0x18] sm:$0xff]  ;;  %v621_v63 = vsel %vm2375_vm15, %v597_v42, 0.0  ;;  %v598_v42 = vld [vmem:[%s3703_s0 + $0x21] sm:$0xff] }
  0x44   :  { %2024 = vmatmul.msk.f32.gmra.mxu3 %vm3958_vm13, %v430_v52  ;;  %2040 = vmatmul.msk.f32.gmra.mxu1 %vm3959_vm11, %v620_v44  ;;  %v744_v52 = vsel %vm2773_vm14, %v2514_v35, 0.0  ;;  %v431_v44 = vsel %vm2380_vm8, %v407_v57, 0.0  ;;  %vm3963_vm11 = vmmov %vm3953_vm2  ;;  %vm3756_vm2 = vcmp.lt.s32.totalorder %v2431_v1, 3  ;;  %v3966_v35 = vmov 0  ;;  %v408_v57 = vld [vmem:[%s3703_s0 + $0x1f] sm:$0xff] }
  0x45   :  { %vm3964_vm13 = vmmov %vm3957_vm4  ;;  %vm3989_vm8 = vnez %v3850_v53 }
  0x46   :  { %vm2802_vm14 = vmand %vm3756_vm2, %vm2475_vm10 }
  0x47   :  { %v3967_v35 = vsel %vm2802_vm14, 4294967295, %v3966_v35  ;;  %vm3971_vm2 = vmmov %vm3965_vm3 }
  0x48   :  { %3968 = vst [vmem:[#allocation34_spill] sm:$0xff] %v3967_v35 }
  0x4a   :  { %2033 = vmatmul.msk.f32.gmra.mxu0 %vm3963_vm11, %v514_v15  ;;  %v515_v15 = vld [vmem:[%s3703_s0 + $0x20] sm:$0xff]  ;;  %vm3759_vm11 = vcmp.lt.s32.totalorder %v2524_v39, 3 }
  0x4b   :  { %2049 = vmatmul.msk.f32.gmra.mxu2 %vm3957_vm4, %v744_v52  ;;  %v745_v52 = vsel %vm2802_vm14, %v2598_v14, 0.0  ;;  %vm3969_vm4 = vmmov %vm3965_vm3  ;;  %v3973_v14 = vmov 0 }
  0x4c   :  { %2025 = vmatmul.msk.f32.gmra.mxu3 %vm3964_vm13, %v431_v44  ;;  %2041 = vmatmul.msk.f32.gmra.mxu1 %vm3965_vm3, %v621_v63  ;;  %v432_v44 = vsel %vm2475_vm10, %v408_v57, 0.0  ;;  %v622_v63 = vsel %vm2454_vm12, %v598_v42, 0.0  ;;  %vm3970_vm13 = vmmov %vm3965_vm3  ;;  %v409_v57 = vld [vmem:[%s3703_s0 + $0x27] sm:$0xff]  ;;  %vm3980_vm10 = vnez %v3927_v11 }
  0x4d   :  { %vm2831_vm14 = vmand %vm3759_vm11, %vm3972_vm6  ;;  %v599_v42 = vld [vmem:[%s3703_s0 + $0x29] sm:$0xff] }
  0x4e   :  { %v3974_v14 = vsel %vm2831_vm14, 4294967295, %v3973_v14  ;;  %vm3978_vm11 = vmmov %vm3965_vm3  ;;  %v1268_v11 = vld [vmem:[%s3705_s3 + $0x28] sm:$0xff] }
  0x4f   :  { %3975 = vst [vmem:[#allocation35_spill] sm:$0xff] %v3974_v14  ;;  %1307 = vmatpush.msrb.mxu3 %v1268_v11 }
  0x52   :  { %2034 = vmatmul.msk.f32.gmra.mxu0 %vm3965_vm3, %v515_v15  ;;  %v516_v15 = vld [vmem:[%s3703_s0 + $0x28] sm:$0xff] }
  0x53   :  { %2050 = vmatmul.msk.f32.gmra.mxu2 %vm3969_vm4, %v745_v52  ;;  %v746_v52 = vsel %vm2831_vm14, %v2678_v31, 0.0  ;;  %vm3763_vm4 = vcmp.lt.s32.totalorder %v2608_v22, 3  ;;  %v3981_v31 = vmov 0 }
  0x54   :  { %2026 = vmatmul.msk.f32.gmra.mxu3 %vm3970_vm13, %v432_v44  ;;  %2042 = vmatmul.msk.f32.gmra.mxu1 %vm3971_vm2, %v622_v63  ;;  %v433_v44 = vsel %vm3972_vm6, %v409_v57, 0.0  ;;  %vm3976_vm2 = vnez %v3896_v55  ;;  %vm3977_vm13 = vmmov %vm3965_vm3  ;;  %v410_v57 = vld [vmem:[%s3703_s0 + $0x2f] sm:$0xff] }
  0x55   :  { %v623_v63 = vsel %vm3976_vm2, %v599_v42, 0.0  ;;  %vm2860_vm14 = vmand %vm3763_vm4, %vm3980_vm10  ;;  %v600_v42 = vld [vmem:[%s3703_s0 + $0x31] sm:$0xff] }
  0x56   :  { %v3982_v31 = vsel %vm2860_vm14, 4294967295, %v3981_v31  ;;  %v1119_v55 = vld [vmem:[%s3705_s3 + $0x10] sm:$0xff] }
  0x57   :  { %3983 = vst [vmem:[#allocation36_spill] sm:$0xff] %v3982_v31 }
  0x5a   :  { %2035 = vmatmul.msk.f32.gmra.mxu0 %vm3965_vm3, %v516_v15  ;;  %v517_v15 = vld [vmem:[%s3703_s0 + $0x30] sm:$0xff] }
  0x5b   :  { %2051 = vmatmul.msk.f32.gmra.mxu2 %vm3977_vm13, %v746_v52  ;;  %v747_v52 = vsel %vm2860_vm14, %v2416_v62, 0.0  ;;  %v3990_v62 = vmov 0 }
  0x5c   :  { %2027 = vmatmul.msk.f32.gmra.mxu3 %vm3978_vm11, %v433_v44  ;;  %2043 = vmatmul.msk.f32.gmra.mxu1 %vm3979_vm5, %v623_v63  ;;  %v434_v44 = vsel %vm3980_vm10, %v410_v57, 0.0  ;;  %vm3984_vm5 = vnez %v3923_v51  ;;  %vm3985_vm11 = vmmov %vm3965_vm3  ;;  %vm3767_vm3 = vcmp.lt.s32.totalorder %v2256_v24, 3  ;;  %v411_v57 = vld [vmem:[%s3703_s0 + $0x37] sm:$0xff] }
  0x5d   :  { %v624_v63 = vsel %vm3984_vm5, %v600_v42, 0.0  ;;  %vm3986_vm13 = vmmov %vm3985_vm11  ;;  %v601_v42 = vld [vmem:[%s3703_s0 + $0x39] sm:$0xff] }
  0x5e   :  { %vm3987_vm4 = vmmov %vm3985_vm11 }
  0x5f   :  { %vm3988_vm6 = vmmov %vm3987_vm4 }
  0x60   :  { %vm2889_vm14 = vmand %vm3767_vm3, %vm3989_vm8 }
  0x61   :  { %v3991_v62 = vsel %vm2889_vm14, 4294967295, %v3990_v62  ;;  %vm3995_vm3 = vmmov %vm3987_vm4 }
  0x62   :  { %2036 = vmatmul.msk.f32.gmra.mxu0 %vm3985_vm11, %v517_v15  ;;  %3992 = vst [vmem:[#allocation37_spill] sm:$0xff] %v3991_v62  ;;  %v518_v15 = vld [vmem:[%s3703_s0 + $0x38] sm:$0xff]  ;;  %vm3772_vm11 = vcmp.lt.s32.totalorder %v2277_v29, 3  ;;  %vm3996_vm10 = vmmov %vm3995_vm3 }
  0x63   :  { %2052 = vmatmul.msk.f32.gmra.mxu2 %vm3986_vm13, %v747_v52  ;;  %v748_v52 = vsel %vm2889_vm14, %v2509_v34, 0.0  ;;  %vm3994_vm13 = vmmov %vm3987_vm4  ;;  %v709_v34 = vld [vmem:[%s3703_s0 + $0x43] sm:$0xff]  ;;  %vm3997_vm14 = vnez %v3866_v7 }
  0x64   :  { %2028 = vmatmul.msk.f32.gmra.mxu3 %vm3987_vm4, %v434_v44  ;;  %2044 = vmatmul.msk.f32.gmra.mxu1 %vm3988_vm6, %v624_v63  ;;  %v435_v44 = vsel %vm3989_vm8, %v411_v57, 0.0  ;;  %vm3993_vm6 = vnez %v3892_v3  ;;  %vm2921_vm8 = vmand %vm3772_vm11, %vm3997_vm14  ;;  %v3998_v57 = vmov 0 }
  0x65   :  { %v625_v63 = vsel %vm3993_vm6, %v601_v42, 0.0  ;;  %v3999_v57 = vsel %vm2921_vm8, 4294967295, %v3998_v57  ;;  %v412_v42 = vld [vmem:[%s3703_s0 + $0x3f] sm:$0xff]  ;;  %vm4004_vm11 = vmmov %vm3995_vm3 }
  0x66   :  { %4000 = vst [vmem:[#allocation38_spill] sm:$0xff] %v3999_v57 }
  0x6a   :  { %2037 = vmatmul.msk.f32.gmra.mxu0 %vm3987_vm4, %v518_v15  ;;  %v602_v15 = vld [vmem:[%s3703_s0 + $0x41] sm:$0xff]  ;;  %vm4002_vm4 = vmmov %vm3995_vm3 }
  0x6b   :  { %2053 = vmatmul.msk.f32.gmra.mxu2 %vm3994_vm13, %v748_v52  ;;  %v519_v52 = vld [vmem:[%s3703_s0 + $0x40] sm:$0xff]  ;;  %vm4003_vm13 = vmmov %vm3995_vm3 }
  0x6c   :  { %2029 = vmatmul.msk.f32.gmra.mxu3 %vm3995_vm3, %v435_v44  ;;  %2045 = vmatmul.msk.f32.gmra.mxu1 %vm3996_vm10, %v625_v63  ;;  %v749_v44 = vsel %vm2921_vm8, %v709_v34, 0.0  ;;  %v436_v63 = vsel %vm3997_vm14, %v412_v42, 0.0  ;;  %vm4001_vm10 = vnez %v3919_v48  ;;  %v4006_v34 = vmov 0 }
  0x6d   :  { %v626_v62 = vsel %vm4001_vm10, %v602_v15, 0.0  ;;  %v4007_v34 = vsel %vm2948_vm1, 4294967295, %v4006_v34  ;;  %v964_v42 = vsel %vm2948_vm1, %v2321_v40, 0.0  ;;  %vm4072_vm8 = vnez %v3833_v21 }
  0x6e   :  { %4008 = vst [vmem:[#allocation39_spill] sm:$0xff] %v4007_v34 }
  0x72   :  { %2038 = vmatmul.msk.f32.gmra.mxu0 %vm3995_vm3, %v519_v52  ;;  %vm4009_vm3 = vmmov %vm4005_vm9  ;;  %v4019_v52 = vmov 0 }
  0x73   :  { %2054 = vmatmul.msk.f32.gmra.mxu2 %vm4002_vm4, %v749_v44  ;;  %v849_v15 = vsel %vm4009_vm3, %v2313_v38, 0.0  ;;  %vm4016_vm3 = vmmov %vm4002_vm4 }
  0x74   :  { %2030 = vmatmul.msk.f32.gmra.mxu3 %vm4003_vm13, %v436_v63  ;;  %2046 = vmatmul.msk.f32.gmra.mxu1 %vm4004_vm11, %v626_v62  ;;  %vm4010_vm13 = vmmov %vm4002_vm4  ;;  %vm4011_vm11 = vcmp.lt.s32.totalorder %v2279_v30, 3  ;;  %v4012_v62 = vmov 0  ;;  %v4025_v63 = vmov 0 }
  0x75   :  { %vm2964_vm9 = vmand %vm4011_vm11, %vm2293_vm7 }
  0x76   :  { %v4013_v62 = vsel %vm2964_vm9, 4294967295, %v4012_v62  ;;  %v965_v40 = vsel %vm2964_vm9, %v2403_v60, 0.0  ;;  %vm4015_vm1 = vmmov %vm4011_vm11 }
  0x77   :  { %4014 = vst [vmem:[#allocation40_spill] sm:$0xff] %v4013_v62  ;;  %v850_v38 = vsel %vm4015_vm1, %v2397_v58, 0.0 }
  0x7a   :  { %2063 = vmatmul.msk.f32.vlgmr.msra.gmra.mxu0 %vm4002_vm4, %v964_v42  ;;  %vm4017_vm4 = vmmov %vm4016_vm3 }
  0x7c   :  { %2055 = vmatmul.msk.f32.vlgmr.msra.gmra.mxu3 %vm4010_vm13, %v849_v15  ;;  %vm4018_vm13 = vcmp.lt.s32.totalorder %v2351_v46, 3 }
  0x7d   :  { %vm2980_vm11 = vmand %vm4018_vm13, %vm2375_vm15 }
  0x7e   :  { %v4020_v52 = vsel %vm2980_vm11, 4294967295, %v4019_v52  ;;  %v966_v60 = vsel %vm2980_vm11, %v2493_v26, 0.0  ;;  %vm4022_vm1 = vmmov %vm4018_vm13  ;;  %vm4024_vm13 = vcmp.lt.s32.totalorder %v2431_v1, 3 }
  0x7f   :  { %4021 = vst [vmem:[#allocation41_spill] sm:$0xff] %v4020_v52  ;;  %v851_v58 = vsel %vm4022_vm1, %v2473_v18, 0.0  ;;  %vm2998_vm9 = vmand %vm4024_vm13, %vm2454_vm12  ;;  %v1120_v52 = vld [vmem:[%s3705_s3 + $0x18] sm:$0xff] }
  0x80   :  { %v4026_v63 = vsel %vm2998_vm9, 4294967295, %v4025_v63  ;;  %v967_v18 = vsel %vm2998_vm9, %v2580_v9, 0.0  ;;  %vm4028_vm1 = vmmov %vm4024_vm13  ;;  %vm4030_vm13 = vcmp.lt.s32.totalorder %v2524_v39, 3  ;;  %1159 = vmatpush.msra.mxu1 %v1120_v52 }
  0x81   :  { %4027 = vst [vmem:[#allocation42_spill] sm:$0xff] %v4026_v63  ;;  %v852_v26 = vsel %vm4028_vm1, %v2555_v4, 0.0  ;;  %vm3018_vm11 = vmand %vm4030_vm13, %vm3976_vm2 }
  0x82   :  { %2064 = vmatmul.msk.f32.gmra.mxu0 %vm4016_vm3, %v965_v40  ;;  %v4031_v40 = vmov 0  ;;  %v968_v4 = vsel %vm3018_vm11, %v2660_v5, 0.0  ;;  %vm4034_vm1 = vmmov %vm4030_vm13  ;;  %vm4036_vm13 = vcmp.lt.s32.totalorder %v2608_v22, 3  ;;  %1160 = vmatpush.msra.mxu1 %v1119_v55  ;;  %v2161_v55 = vmov 0.0   ;;  %v1359_v22 = vld [vmem:[%s3705_s3 + $0x38] sm:$0xff] }
  0x83   :  { %v4032_v40 = vsel %vm3018_vm11, 4294967295, %v4031_v40  ;;  %v853_v9 = vsel %vm4034_vm1, %v2655_v2, 0.0  ;;  %vm3038_vm9 = vmand %vm4036_vm13, %vm3984_vm5  ;;  %1398 = vmatpush.msrb.mxu0 %v1359_v22 }
  0x84   :  { %2056 = vmatmul.msk.f32.gmra.mxu3 %vm4017_vm4, %v850_v38  ;;  %vm4023_vm4 = vmmov %vm4016_vm3  ;;  %4033 = vst [vmem:[#allocation43_spill] sm:$0xff] %v4032_v40  ;;  %v969_v2 = vsel %vm3038_vm9, %v2593_v13, 0.0 }
  0x85   :  { %vm4040_vm1 = vmmov %vm4036_vm13  ;;  %vm4042_vm13 = vcmp.lt.s32.totalorder %v2256_v24, 3  ;;  %v1102_v24 = vld [vmem:[%s3705_s3 + $0x8] sm:$0xff]  ;;  %1399 = vmatpush.msrb.mxu0 %v1358_v8 }
  0x86   :  { %v854_v5 = vsel %vm4040_vm1, %v2261_v25, 0.0  ;;  %vm3058_vm11 = vmand %vm4042_vm13, %vm3993_vm6  ;;  %1224 = vmatpush.msra.mxu2 %v1102_v24 }
  0x87   :  { %v2984_v44 = vpop.f32.mrf.mxu0  ;;  %v970_v25 = vsel %vm3058_vm11, %v2673_v23, 0.0  ;;  %vm4046_vm1 = vmmov %vm4042_vm13  ;;  %vm4048_vm13 = vcmp.lt.s32.totalorder %v2277_v29, 3 }
  0x88   :  { %v855_v13 = vsel %vm4046_vm1, %v2336_v43, 0.0  ;;  %v832_v43 = vld [vmem:[%s3703_s0 + $0x44] sm:$0xff]  ;;  %vm4052_vm1 = vmmov %vm4048_vm13 }
  0x89   :  { %v258_v23 = vpop.f32.mrf.mxu1  ;;  %v856_v40 = vsel %vm4052_vm1, %v832_v43, 0.0  ;;  %vm4056_vm1 = vmmov %vm4016_vm3 }
  0x8a   :  { %2065 = vmatmul.msk.f32.gmra.mxu0 %vm4016_vm3, %v966_v60  ;;  %1067 = vst.msk [vmem:[#allocation2] sm:$0xff] %vm4056_vm1, %v2161_v55  ;;  %v259_v6 = vadd.f32 %v258_v23, %v2984_v44  ;;  %v1101_v44 = vld [vmem:[%s3705_s3] sm:$0xff] }
  0x8b   :  { %1073 = vst.msk [vmem:[#allocation2 + $0x30] sm:$0xff] %vm4056_vm1, %v2161_v55  ;;  %v1267_v23 = vld [vmem:[%s3705_s3 + $0x20] sm:$0xff]  ;;  %1225 = vmatpush.msra.mxu2 %v1101_v44 }
  0x8c   :  { %2057 = vmatmul.msk.f32.gmra.mxu3 %vm4023_vm4, %v851_v58  ;;  %vm4029_vm4 = vmmov %vm4016_vm3  ;;  %v4037_v58 = vmov 0 }
  0x8d   :  { %v4038_v58 = vsel %vm3038_vm9, 4294967295, %v4037_v58  ;;  %vm3081_vm9 = vmand %vm4048_vm13, %vm4001_vm10  ;;  %1308 = vmatpush.msrb.mxu3 %v1267_v23 }
  0x8e   :  { %4039 = vst [vmem:[#allocation44_spill] sm:$0xff] %v4038_v58  ;;  %v373_v63 = vpop.f32.mrf.mxu2  ;;  %vm4055_vm13 = vmmov %vm4016_vm3 }
  0x8f   :  { %v3002_v42 = vpop.f32.mrf.mxu3  ;;  %v3004_v15 = vpop.f32.mrf.mxu0  ;;  %1068 = vst.msk [vmem:[#allocation2 + $0x8] sm:$0xff] %vm4055_vm13, %v2161_v55  ;;  %vm4060_vm13 = vmmov %vm4056_vm1  ;;  %v397_v10 = vadd.f32 %v373_v63, %v259_v6 }
  0x90   :  { %1072 = vst.msk [vmem:[#allocation2 + $0x28] sm:$0xff] %vm4060_vm13, %v2161_v55  ;;  %vm4067_vm13 = vcmp.ge.s32.totalorder %v2239_v16, 1 }
  0x91   :  { %v261_v57 = vpop.f32.mrf.mxu1 }
  0x92   :  { %2066 = vmatmul.msk.f32.gmra.mxu0 %vm4016_vm3, %v967_v18  ;;  %v262_v39 = vadd.f32 %v261_v57, %v3004_v15 }
  0x94   :  { %2058 = vmatmul.msk.f32.gmra.mxu3 %vm4029_vm4, %v852_v26  ;;  %vm4035_vm4 = vmmov %vm4016_vm3 }
  0x96   :  { %v376_v48 = vpop.f32.mrf.mxu2 }
  0x97   :  { %v3022_v38 = vpop.f32.mrf.mxu3  ;;  %v3024_v60 = vpop.f32.mrf.mxu0  ;;  %v398_v1 = vadd.f32 %v376_v48, %v262_v39  ;;  %v3185_v39 = vld [vmem:[%s3704_s2] ss:$0 sm:$0xff] }
  0x99   :  { %v264_v3 = vpop.f32.mrf.mxu1 }
  0x9a   :  { %2067 = vmatmul.msk.f32.gmra.mxu0 %vm4016_vm3, %v968_v4  ;;  %v4043_v4 = vmov 0 }
  0x9b   :  { %v4044_v4 = vsel %vm3058_vm11, 4294967295, %v4043_v4  ;;  %vm4061_vm11 = vmmov %vm4056_vm1 }
  0x9c   :  { %2059 = vmatmul.msk.f32.gmra.mxu3 %vm4035_vm4, %v853_v9  ;;  %vm4041_vm4 = vmmov %vm4016_vm3  ;;  %4045 = vst [vmem:[#allocation45_spill] sm:$0xff] %v4044_v4 }
  0x9d   :  { %1074 = vst.msk [vmem:[#allocation2 + $0x38] sm:$0xff] %vm4061_vm11, %v2161_v55  ;;  %vm4065_vm11 = vmmov %vm4056_vm1 }
  0x9e   :  { %v3105_v43 = vpop.f32.mrf.mxu2 }
  0x9f   :  { %v3042_v18 = vpop.f32.mrf.mxu3  ;;  %v3044_v26 = vpop.f32.mrf.mxu0 }
  0xa1   :  { %v3109_v51 = vpop.f32.mrf.mxu1 }
  0xa2   :  { %2068 = vmatmul.msk.f32.gmra.mxu0 %vm4016_vm3, %v969_v2  ;;  %v939_v2 = vld [vmem:[%s3703_s0 + $0x45] sm:$0xff] }
  0xa3   :  { %v971_v4 = vsel %vm3081_vm9, %v939_v2, 0.0 }
  0xa4   :  { %2060 = vmatmul.msk.f32.gmra.mxu3 %vm4041_vm4, %v854_v5  ;;  %vm4047_vm4 = vmmov %vm4016_vm3  ;;  %v4049_v5 = vmov 0 }
  0xa5   :  { %v4050_v5 = vsel %vm3081_vm9, 4294967295, %v4049_v5  ;;  %vm4059_vm9 = vmmov %vm4056_vm1 }
  0xa6   :  { %4051 = vst [vmem:[#allocation46_spill] sm:$0xff] %v4050_v5 }
  0xa7   :  { %v3062_v9 = vpop.f32.mrf.mxu3  ;;  %v3064_v58 = vpop.f32.mrf.mxu0  ;;  %1071 = vst.msk [vmem:[#allocation2 + $0x20] sm:$0xff] %vm4059_vm9, %v2161_v55  ;;  %vm4064_vm9 = vmmov %vm4056_vm1 }
  0xa8   :  { %1076 = vst.msk [vmem:[#allocation2 + $0x48] sm:$0xff] %vm4064_vm9, %v2161_v55 }
  0xa9   :  { %v3120_v35 = vpop.f32.mrf.mxu1 }
  0xaa   :  { %2069 = vmatmul.msk.f32.gmra.mxu0 %vm4016_vm3, %v970_v25 }
  0xac   :  { %2061 = vmatmul.msk.f32.gmra.mxu3 %vm4047_vm4, %v855_v13  ;;  %vm4053_vm4 = vmmov %vm4016_vm3 }
  0xaf   :  { %v3088_v25 = vpop.f32.mrf.mxu3  ;;  %v3090_v13 = vpop.f32.mrf.mxu0 }
  0xb1   :  { %v3132_v59 = vpop.f32.mrf.mxu1 }
  0xb2   :  { %2070 = vmatmul.msk.f32.gmra.mxu0 %vm4016_vm3, %v971_v4  ;;  %vm4057_vm3 = vmmov %vm4056_vm1 }
  0xb3   :  { %1069 = vst.msk [vmem:[#allocation2 + $0x10] sm:$0xff] %vm4057_vm3, %v2161_v55  ;;  %vm4063_vm3 = vmmov %vm4056_vm1 }
  0xb4   :  { %2062 = vmatmul.msk.f32.gmra.mxu3 %vm4053_vm4, %v856_v40  ;;  %v3115_v40 = vpop.f32.mrf.mxu2  ;;  %vm4058_vm4 = vmmov %vm4056_vm1  ;;  %1075 = vst.msk [vmem:[#allocation2 + $0x40] sm:$0xff] %vm4063_vm3, %v2161_v55  ;;  %vm4069_vm3 = vnez %v3836_v27  ;;  %v274_v27 = vadd.f32 %v3132_v59, %v3090_v13 }
  0xb5   :  { %1070 = vst.msk [vmem:[#allocation2 + $0x18] sm:$0xff] %vm4058_vm4, %v2161_v55  ;;  %v265_v55 = vadd.f32 %v264_v3, %v3024_v60  ;;  %v268_v3 = vadd.f32 %v3109_v51, %v3044_v26  ;;  %v271_v51 = vadd.f32 %v3120_v35, %v3064_v58  ;;  %vm4066_vm4 = vmmov %vm4056_vm1  ;;  %vm4068_vm1 = vnez %v3839_v32 }
  0xb6   :  { %vm4070_vm9 = vmmov %vm4066_vm4 }
  0xb7   :  { %v3101_v62 = vpop.f32.mrf.mxu3  ;;  %v563_v34 = vpop.f32.mrf.mxu0  ;;  %v399_v15 = vadd.f32 %v3105_v43, %v265_v55 }
  0xb8   :  { %4054 = vst [vmem:[#allocation47_spill] sm:$0xff] %v3101_v62  ;;  %v1442_v62 = vld [vmem:[%s3705_s3 + $0x48] sm:$0xff] }
  0xb9   :  { %v670_v53 = vpop.f32.mrf.mxu1  ;;  %1481 = vmatpush.msrb.mxu1 %v1442_v62 }
  0xbc   :  { %v3126_v54 = vpop.f32.mrf.mxu2 }
  0xbf   :  { %v480_v5 = vpop.f32.mrf.mxu3  ;;  %v3103_v2 = vpop.f32.mrf.mxu0 }
  0xc0   :  { %v504_v22 = vadd.f32 %v480_v5, %v397_v10 }
  0xc1   :  { %v673_v20 = vpop.f32.mrf.mxu1 }
  0xc4   :  { %v3134_v17 = vpop.f32.mrf.mxu2 }
  0xc5   :  { %v402_v21 = vadd.f32 %v3134_v17, %v274_v27 }
  0xc7   :  { %v483_v31 = vpop.f32.mrf.mxu3  ;;  %v3107_v4 = vpop.f32.mrf.mxu0 }
  0xc8   :  { %v505_v63 = vadd.f32 %v483_v31, %v398_v1 }
  0xc9   :  { %v676_v8 = vpop.f32.mrf.mxu1 }
  0xca   :  { %v588_v5 = vadd.f32 %v3103_v2, %v505_v63 }
  0xcc   :  { %v793_v47 = vpop.f32.mrf.mxu2  ;;  %v695_v62 = vadd.f32 %v673_v20, %v588_v5 }
  0xcf   :  { %v3111_v14 = vpop.f32.mrf.mxu3  ;;  %v3113_v52 = vpop.f32.mrf.mxu0 }
  0xd1   :  { %v679_v2 = vpop.f32.mrf.mxu1 }
  0xd4   :  { %v796_v19 = vpop.f32.mrf.mxu2 }
  0xd5   :  { %v818_v31 = vadd.f32 %v796_v19, %v695_v62 }
  0xd7   :  { %v3122_v12 = vpop.f32.mrf.mxu3  ;;  %v3124_v50 = vpop.f32.mrf.mxu0 }
  0xdc   :  { %v799_v48 = vpop.f32.mrf.mxu2 }
  0xdf   :  { %v3128_v49 = vpop.f32.mrf.mxu3  ;;  %v3130_v33 = vpop.f32.mrf.mxu0 }
  0xe4   :  { %v802_v26 = vpop.f32.mrf.mxu2 }
  0xe7   :  { %v3136_v7 = vpop.f32.mrf.mxu3  ;;  %v3138_v29 = vpop.f32.mrf.mxu0 }
  0xef   :  { %v3158_v24 = vpop.f32.mrf.mxu3  ;;  %v3160_v11 = vpop.f32.mrf.mxu0 }
  0xf0   :  { %4062 = vst [vmem:[#allocation48_spill] sm:$0xff] %v3160_v11  ;;  %v587_v11 = vadd.f32 %v563_v34, %v504_v22  ;;  %v400_v22 = vadd.f32 %v3115_v40, %v268_v3 }
  0xf2   :  { %v694_v6 = vadd.f32 %v670_v53, %v587_v11  ;;  %v506_v53 = vadd.f32 %v3111_v14, %v399_v15 }
  0xf4   :  { %v817_v10 = vadd.f32 %v793_v47, %v694_v6  ;;  %v589_v60 = vadd.f32 %v3107_v4, %v506_v53 }
  0xf6   :  { %v696_v6 = vadd.f32 %v676_v8, %v589_v60 }
  0xf7   :  { %v3174_v28 = vpop.f32.mrf.mxu3  ;;  %v1015_v36 = vpop.f32.mrf.mxu0 }
  0xf8   :  { %v819_v4 = vadd.f32 %v799_v48, %v696_v6 }
  0xff   :  { %v900_v57 = vpop.f32.mrf.mxu3  ;;  %v1018_v34 = vpop.f32.mrf.mxu0 }
 0x100   :  { %v924_v44 = vadd.f32 %v900_v57, %v817_v10  ;;  %v401_v10 = vadd.f32 %v3126_v54, %v271_v51  ;;  %v277_v51 = vadd.f32 %v3042_v18, %v3002_v42 }
 0x102   :  { %v1039_v1 = vadd.f32 %v1015_v36, %v924_v44  ;;  %v507_v36 = vadd.f32 %v3122_v12, %v400_v22  ;;  %v682_v44 = vpop.f32.mrf.mxu1  ;;  %v508_v62 = vadd.f32 %v3128_v49, %v401_v10 }
 0x104   :  { %v1051_v47 = vadd.f32 %v3185_v39, %v1039_v1  ;;  %v590_v63 = vadd.f32 %v3113_v52, %v507_v36  ;;  %v805_v1 = vpop.f32.mrf.mxu2 }
 0x106   :  { %v1059_v43 = vmax.f32 %v1051_v47, 0.0  ;;  %v697_v48 = vadd.f32 %v679_v2, %v590_v63  ;;  %v591_v47 = vadd.f32 %v3124_v50, %v508_v62 }
 0x107   :  { %v903_v11 = vpop.f32.mrf.mxu3  ;;  %v1021_v23 = vpop.f32.mrf.mxu0 }
 0x108   :  { %1077 = vst.msk [vmem:[#allocation2 + $0x8] sm:$0xff] %vm4065_vm11, %v1059_v43  ;;  %v925_v20 = vadd.f32 %v903_v11, %v818_v31  ;;  %vm4071_vm11 = vmmov %vm4066_vm4  ;;  %v820_v3 = vadd.f32 %v802_v26, %v697_v48  ;;  %v698_v6 = vadd.f32 %v682_v44, %v591_v47  ;;  %v4096_v47 = vld [vmem:[#allocation15_spill] sm:$0xff] }
 0x10a   :  { %v1040_v14 = vadd.f32 %v1018_v34, %v925_v20  ;;  %v821_v26 = vadd.f32 %v805_v1, %v698_v6 }
 0x10c   :  { %v1052_v19 = vadd.f32 %v3185_v39, %v1040_v14  ;;  %v808_v63 = vpop.f32.mrf.mxu2 }
 0x10e   :  { %v1060_v55 = vmax.f32 %v1052_v19, 0.0 }
 0x10f   :  { %v906_v40 = vpop.f32.mrf.mxu3  ;;  %v1103_v5 = vld [vmem:[#allocation2 + $0x4] sm:$0xff]  ;;  %v1024_v8 = vpop.f32.mrf.mxu0 }
 0x110   :  { %v1085_v57 = vld [vmem:[#allocation2 + $0x3] sm:$0xff]  ;;  %1078 = vst.msk [vmem:[#allocation2 + $0x10] sm:$0xff] %vm4066_vm4, %v1060_v55  ;;  %v926_v12 = vadd.f32 %v906_v40, %v819_v4  ;;  %v1111_v35 = vsel %vm4067_vm13, %v1103_v5, 0.0  ;;  %vm4073_vm13 = vmmov %vm4066_vm4  ;;  %v403_v4 = vadd.f32 %v3088_v25, %v277_v51 }
 0x111   :  { %v1251_v15 = vld [vmem:[#allocation2 + $0x5] sm:$0xff]  ;;  %v1093_v58 = vsel %vm4068_vm1, %v1085_v57, 0.0  ;;  %2071 = vmatmul.msk.f32.vlgmr.msra.gmra.mxu1 %vm4070_vm9, %v1111_v35  ;;  %vm4075_vm1 = vcmp.ge.s32.totalorder %v2279_v30, 1  ;;  %vm4077_vm9 = vnez %v3846_v41  ;;  %v685_v41 = vpop.f32.mrf.mxu1 }
 0x112   :  { %v1259_v52 = vsel %vm4069_vm3, %v1251_v15, 0.0  ;;  %v1342_v34 = vld [vmem:[#allocation2 + $0x7] sm:$0xff]  ;;  %2079 = vmatmul.msk.f32.vlgmr.msra.gmra.mxu2 %vm4071_vm11, %v1093_v58  ;;  %v1041_v53 = vadd.f32 %v1021_v23, %v926_v12  ;;  %vm4076_vm3 = vnez %v3848_v45  ;;  %vm4078_vm11 = vmmov %vm4066_vm4  ;;  %v509_v45 = vadd.f32 %v3136_v7, %v402_v21 }
 0x113   :  { %v1350_v54 = vsel %vm4072_vm8, %v1342_v34, 0.0  ;;  %2087 = vmatmul.msk.f32.vlgmr.msrb.gmra.mxu3 %vm4066_vm4, %v1259_v52  ;;  %vm4074_vm8 = vmmov %vm4066_vm4  ;;  %v1441_v23 = vld [vmem:[%s3705_s3 + $0x40] sm:$0xff] }
 0x114   :  { %2095 = vmatmul.msk.f32.vlgmr.msrb.gmra.mxu0 %vm4073_vm13, %v1350_v54  ;;  %v1053_v32 = vadd.f32 %v3185_v39, %v1041_v53  ;;  %vm4079_vm13 = vnez %v3844_v37  ;;  %1482 = vmatpush.msrb.mxu1 %v1441_v23  ;;  %v592_v37 = vadd.f32 %v3130_v33, %v509_v45  ;;  %v4090_v54 = vld [vmem:[#allocation47_spill] sm:$0xff]  ;;  %v1715_v23 = vld [vmem:[%s3705_s3 + $0x78] sm:$0xff] }
 0x115   :  { %1754 = vmatpush.msra.mxu0 %v1715_v23 }
 0x116   :  { %v1061_v31 = vmax.f32 %v1053_v32, 0.0  ;;  %v699_v15 = vadd.f32 %v685_v41, %v592_v37  ;;  %v4104_v41 = vld [vmem:[#allocation48_spill] sm:$0xff] }
 0x117   :  { %v909_v60 = vpop.f32.mrf.mxu3  ;;  %v3219_v2 = vld [vmem:[#allocation2 + $0xc] sm:$0xff]  ;;  %v1027_v20 = vpop.f32.mrf.mxu0 }
 0x118   :  { %v3221_v49 = vld [vmem:[#allocation2 + $0xb] sm:$0xff]  ;;  %1079 = vst.msk [vmem:[#allocation2 + $0x18] sm:$0xff] %vm4074_vm8, %v1061_v31  ;;  %v927_v11 = vadd.f32 %v909_v60, %v820_v3  ;;  %v1112_v59 = vsel %vm4075_vm1, %v3219_v2, 0.0  ;;  %vm4080_vm8 = vmmov %vm4066_vm4  ;;  %v822_v52 = vadd.f32 %v808_v63, %v699_v15  ;;  %v811_v60 = vpop.f32.mrf.mxu2 }
 0x119   :  { %v3223_v43 = vld [vmem:[#allocation2 + $0xd] sm:$0xff]  ;;  %v1094_v50 = vsel %vm4076_vm3, %v3221_v49, 0.0  ;;  %2072 = vmatmul.msk.f32.gmra.mxu1 %vm4078_vm11, %v1112_v59  ;;  %vm4081_vm1 = vmmov %vm4066_vm4  ;;  %vm4084_vm11 = vnez %v3863_v0  ;;  %v688_v58 = vpop.f32.mrf.mxu1 }
 0x11a   :  { %v1260_v17 = vsel %vm4077_vm9, %v3223_v43, 0.0  ;;  %v1343_v13 = vld [vmem:[#allocation2 + $0xf] sm:$0xff]  ;;  %2080 = vmatmul.msk.f32.gmra.mxu2 %vm4066_vm4, %v1094_v50  ;;  %v1042_v36 = vadd.f32 %v1024_v8, %v927_v11  ;;  %vm4082_vm3 = vmmov %vm4081_vm1  ;;  %vm4083_vm9 = vcmp.ge.s32.totalorder %v2351_v46, 1  ;;  %vm4085_vm4 = vnez %v3861_v61  ;;  %v1533_v61 = vld [vmem:[%s3705_s3 + $0x58] sm:$0xff] }
 0x11b   :  { %v1351_v22 = vsel %vm4079_vm13, %v1343_v13, 0.0  ;;  %2088 = vmatmul.msk.f32.gmra.mxu3 %vm4080_vm8, %v1260_v17  ;;  %vm4086_vm13 = vmmov %vm4081_vm1  ;;  %v510_v8 = vadd.f32 %v3158_v24, %v403_v4  ;;  %v1624_v0 = vld [vmem:[%s3705_s3 + $0x68] sm:$0xff]  ;;  %1572 = vmatpush.msrb.mxu2 %v1533_v61  ;;  %v280_v24 = vadd.f32 %v3062_v9, %v3022_v38  ;;  %v4094_v9 = vld [vmem:[#allocation16_spill] sm:$0xff] }
 0x11c   :  { %2096 = vmatmul.msk.f32.gmra.mxu0 %vm4081_vm1, %v1351_v22  ;;  %v1054_v14 = vadd.f32 %v3185_v39, %v1042_v36  ;;  %vm4087_vm8 = vmmov %vm4081_vm1  ;;  %vm4088_vm1 = vnez %v3856_v56  ;;  %1663 = vmatpush.msra.mxu3 %v1624_v0  ;;  %v4092_v3 = vld [vmem:[#allocation10_spill] sm:$0xff]  ;;  %v1532_v22 = vld [vmem:[%s3705_s3 + $0x50] sm:$0xff] }
 0x11d   :  { %v593_v34 = vadd.f32 %v3138_v29, %v510_v8  ;;  %v404_v48 = vadd.f32 %v4090_v54, %v280_v24  ;;  %v4100_v11 = vld [vmem:[#allocation14_spill] sm:$0xff]  ;;  %1573 = vmatpush.msrb.mxu2 %v1532_v22  ;;  %v4114_v8 = vld [vmem:[#allocation20_spill] sm:$0xff] }
 0x11e   :  { %v1062_v19 = vmax.f32 %v1054_v14, 0.0 }
 0x11f   :  { %v912_v7 = vpop.f32.mrf.mxu3  ;;  %v3250_v55 = vld [vmem:[#allocation2 + $0x14] sm:$0xff]  ;;  %v1030_v35 = vpop.f32.mrf.mxu0  ;;  %v700_v50 = vadd.f32 %v688_v58, %v593_v34  ;;  %v511_v17 = vadd.f32 %v3174_v28, %v404_v48 }
 0x120   :  { %v3252_v10 = vld [vmem:[#allocation2 + $0x13] sm:$0xff]  ;;  %1080 = vst.msk [vmem:[#allocation2 + $0x20] sm:$0xff] %vm4082_vm3, %v1062_v19  ;;  %v928_v5 = vadd.f32 %v912_v7, %v821_v26  ;;  %v1113_v42 = vsel %vm4083_vm9, %v3250_v55, 0.0  ;;  %vm4089_vm9 = vmmov %vm4082_vm3 }
 0x121   :  { %v3254_v40 = vld [vmem:[#allocation2 + $0x15] sm:$0xff]  ;;  %v1095_v33 = vsel %vm4084_vm11, %v3252_v10, 0.0  ;;  %2073 = vmatmul.msk.f32.gmra.mxu1 %vm4086_vm13, %v1113_v42  ;;  %vm4091_vm11 = vmmov %vm4082_vm3  ;;  %vm4095_vm13 = vnez %v4094_v9  ;;  %v823_v36 = vadd.f32 %v811_v60, %v700_v50  ;;  %v594_v14 = vadd.f32 %v4104_v41, %v511_v17  ;;  %v691_v26 = vpop.f32.mrf.mxu1  ;;  %v4135_v41 = vld [vmem:[#allocation21_spill] sm:$0xff] }
 0x122   :  { %v1261_v18 = vsel %vm4085_vm4, %v3254_v40, 0.0  ;;  %v1344_v25 = vld [vmem:[#allocation2 + $0x17] sm:$0xff]  ;;  %2081 = vmatmul.msk.f32.gmra.mxu2 %vm4087_vm8, %v1095_v33  ;;  %v1043_v12 = vadd.f32 %v1027_v20, %v928_v5  ;;  %vm4093_vm4 = vcmp.ge.s32.totalorder %v4092_v3, 1  ;;  %vm4097_vm8 = vnez %v4096_v47  ;;  %v1623_v20 = vld [vmem:[%s3705_s3 + $0x60] sm:$0xff] }
 0x123   :  { %v1352_v57 = vsel %vm4088_vm1, %v1344_v25, 0.0  ;;  %2089 = vmatmul.msk.f32.gmra.mxu3 %vm4082_vm3, %v1261_v18  ;;  %vm4098_vm1 = vmmov %vm4082_vm3  ;;  %v1714_v28 = vld [vmem:[%s3705_s3 + $0x70] sm:$0xff]  ;;  %v4106_v5 = vld [vmem:[#allocation17_spill] sm:$0xff]  ;;  %v701_v61 = vadd.f32 %v691_v26, %v594_v14 }
 0x124   :  { %2097 = vmatmul.msk.f32.gmra.mxu0 %vm4089_vm9, %v1352_v57  ;;  %v1055_v56 = vadd.f32 %v3185_v39, %v1043_v12  ;;  %vm4099_vm3 = vmmov %vm4098_vm1  ;;  %vm4101_vm9 = vnez %v4100_v11  ;;  %1664 = vmatpush.msra.mxu3 %v1623_v20  ;;  %v4108_v33 = vld [vmem:[#allocation23_spill] sm:$0xff]  ;;  %v4110_v25 = vld [vmem:[#allocation22_spill] sm:$0xff] }
 0x125   :  { %1755 = vmatpush.msra.mxu0 %v1714_v28  ;;  %v4127_v11 = vld [vmem:[#allocation27_spill] sm:$0xff]  ;;  %v4131_v28 = vld [vmem:[#allocation4_spill] sm:$0xff] }
 0x126   :  { %v1063_v44 = vmax.f32 %v1055_v56, 0.0  ;;  %v814_v56 = vpop.f32.mrf.mxu2 }
 0x127   :  { %v915_v62 = vpop.f32.mrf.mxu3  ;;  %v3284_v53 = vld [vmem:[#allocation2 + $0x1c] sm:$0xff]  ;;  %v1033_v45 = vpop.f32.mrf.mxu0  ;;  %v824_v58 = vadd.f32 %v814_v56, %v701_v61  ;;  %v1433_v56 = vld [vmem:[#allocation2 + $0x8] sm:$0xff] }
 0x128   :  { %v3286_v27 = vld [vmem:[#allocation2 + $0x1b] sm:$0xff]  ;;  %1081 = vst.msk [vmem:[#allocation2 + $0x28] sm:$0xff] %vm4091_vm11, %v1063_v44  ;;  %v929_v1 = vadd.f32 %v915_v62, %v822_v52  ;;  %v1114_v38 = vsel %vm4093_vm4, %v3284_v53, 0.0  ;;  %vm4102_vm11 = vmmov %vm4098_vm1 }
 0x129   :  { %v3288_v32 = vld [vmem:[#allocation2 + $0x1d] sm:$0xff]  ;;  %v1096_v29 = vsel %vm4095_vm13, %v3286_v27, 0.0  ;;  %2074 = vmatmul.msk.f32.gmra.mxu1 %vm4098_vm1, %v1114_v38  ;;  %vm4103_vm4 = vmmov %vm4098_vm1 }
 0x12a   :  { %v1262_v31 = vsel %vm4097_vm8, %v3288_v32, 0.0  ;;  %v1345_v21 = vld [vmem:[#allocation2 + $0x1f] sm:$0xff]  ;;  %2082 = vmatmul.msk.f32.gmra.mxu2 %vm4099_vm3, %v1096_v29  ;;  %v1044_v13 = vadd.f32 %v1030_v35, %v929_v1  ;;  %vm4105_vm13 = vmmov %vm4098_vm1  ;;  %vm4107_vm8 = vcmp.ge.s32.totalorder %v4106_v5, 1  ;;  %vm4109_vm1 = vnez %v4108_v33  ;;  %v1806_v35 = vld [vmem:[%s3705_s3 + $0x88] sm:$0xff] }
 0x12b   :  { %v1353_v59 = vsel %vm4101_vm9, %v1345_v21, 0.0  ;;  %2090 = vmatmul.msk.f32.gmra.mxu3 %vm4102_vm11, %v1262_v31  ;;  %vm4111_vm3 = vnez %v4110_v25  ;;  %vm4112_vm9 = vmmov %vm4103_vm4  ;;  %1845 = vmatpush.msra.mxu1 %v1806_v35  ;;  %v4119_v38 = vld [vmem:[#allocation24_spill] sm:$0xff]  ;;  %v4121_v29 = vld [vmem:[#allocation30_spill] sm:$0xff] }
 0x12c   :  { %2098 = vmatmul.msk.f32.gmra.mxu0 %vm4103_vm4, %v1353_v59  ;;  %v1056_v6 = vadd.f32 %v3185_v39, %v1044_v13  ;;  %vm4113_vm11 = vmmov %vm4103_vm4  ;;  %vm4115_vm4 = vnez %v4114_v8  ;;  %v4123_v31 = vld [vmem:[#allocation29_spill] sm:$0xff]  ;;  %v1516_v35 = vld [vmem:[#allocation2 + $0x9] sm:$0xff] }
 0x12d   :  { %v4142_v33 = vld [vmem:[#allocation5_spill] sm:$0xff] }
 0x12e   :  { %v1064_v51 = vmax.f32 %v1056_v6, 0.0  ;;  %v4144_v25 = vld [vmem:[#allocation13_spill] sm:$0xff] }
 0x12f   :  { %v918_v37 = vpop.f32.mrf.mxu3  ;;  %v3321_v19 = vld [vmem:[#allocation2 + $0x24] sm:$0xff]  ;;  %v1036_v44 = vpop.f32.mrf.mxu0 }
 0x130   :  { %v3323_v4 = vld [vmem:[#allocation2 + $0x23] sm:$0xff]  ;;  %1082 = vst.msk [vmem:[#allocation2 + $0x30] sm:$0xff] %vm4105_vm13, %v1064_v51  ;;  %v930_v7 = vadd.f32 %v918_v37, %v823_v36  ;;  %v1115_v42 = vsel %vm4107_vm8, %v3321_v19, 0.0  ;;  %vm4116_vm13 = vmmov %vm4112_vm9  ;;  %v4138_v51 = vld [vmem:[#allocation7_spill] sm:$0xff] }
 0x131   :  { %v3325_v63 = vld [vmem:[#allocation2 + $0x25] sm:$0xff]  ;;  %v1097_v18 = vsel %vm4109_vm1, %v3323_v4, 0.0  ;;  %2075 = vmatmul.msk.f32.gmra.mxu1 %vm4112_vm9, %v1115_v42  ;;  %vm4117_vm8 = vmmov %vm4112_vm9  ;;  %vm4122_vm9 = vnez %v4121_v29  ;;  %v1434_v29 = vld [vmem:[#allocation2 + $0x10] sm:$0xff] }
 0x132   :  { %v1263_v57 = vsel %vm4111_vm3, %v3325_v63, 0.0  ;;  %v1346_v15 = vld [vmem:[#allocation2 + $0x27] sm:$0xff]  ;;  %2083 = vmatmul.msk.f32.gmra.mxu2 %vm4113_vm11, %v1097_v18  ;;  %v1045_v0 = vadd.f32 %v1033_v45, %v930_v7  ;;  %vm4118_vm1 = vmmov %vm4117_vm8  ;;  %vm4120_vm3 = vcmp.ge.s32.totalorder %v4119_v38, 1  ;;  %vm4124_vm11 = vnez %v4123_v31 }
 0x133   :  { %v1354_v12 = vsel %vm4115_vm4, %v1346_v15, 0.0  ;;  %2091 = vmatmul.msk.f32.gmra.mxu3 %vm4116_vm13, %v1263_v57  ;;  %vm4125_vm4 = vmmov %vm4118_vm1  ;;  %v4133_v45 = vld [vmem:[#allocation9_spill] sm:$0xff]  ;;  %v4146_v15 = vld [vmem:[#allocation28_spill] sm:$0xff] }
 0x134   :  { %2099 = vmatmul.msk.f32.gmra.mxu0 %vm4117_vm8, %v1354_v12  ;;  %v1057_v24 = vadd.f32 %v3185_v39, %v1045_v0  ;;  %vm4126_vm13 = vmmov %vm4118_vm1  ;;  %vm4128_vm8 = vnez %v4127_v11  ;;  %v4226_v11 = vld [vmem:[#allocation43_spill] sm:$0xff] }
 0x135   :  { %vm4141_vm10 = vmmov %vm4118_vm1 }
 0x136   :  { %v1065_v52 = vmax.f32 %v1057_v24, 0.0 }
 0x137   :  { %v921_v34 = vpop.f32.mrf.mxu3  ;;  %v3347_v54 = vld [vmem:[#allocation2 + $0x2c] sm:$0xff] }
 0x138   :  { %v3349_v48 = vld [vmem:[#allocation2 + $0x2b] sm:$0xff]  ;;  %1083 = vst.msk [vmem:[#allocation2 + $0x38] sm:$0xff] %vm4118_vm1, %v1065_v52  ;;  %v931_v1 = vadd.f32 %v921_v34, %v824_v58  ;;  %v1116_v9 = vsel %vm4120_vm3, %v3347_v54, 0.0  ;;  %vm4129_vm3 = vmmov %vm4118_vm1  ;;  %v1524_v58 = vsel %vm2241_vm0, %v1516_v35, 0.0 }
 0x139   :  { %v3351_v62 = vld [vmem:[#allocation2 + $0x2d] sm:$0xff]  ;;  %v1098_v47 = vsel %vm4122_vm9, %v3349_v48, 0.0  ;;  %2076 = vmatmul.msk.f32.gmra.mxu1 %vm4125_vm4, %v1116_v9  ;;  %vm4130_vm9 = vmmov %vm4118_vm1  ;;  %vm4134_vm4 = vnez %v4133_v45 }
 0x13a   :  { %v1264_v21 = vsel %vm4124_vm11, %v3351_v62, 0.0  ;;  %v1347_v60 = vld [vmem:[#allocation2 + $0x2f] sm:$0xff]  ;;  %2084 = vmatmul.msk.f32.gmra.mxu2 %vm4126_vm13, %v1098_v47  ;;  %v1046_v50 = vadd.f32 %v1036_v44, %v931_v1  ;;  %vm4132_vm11 = vcmp.ge.s32.totalorder %v4131_v28, 1  ;;  %vm4136_vm13 = vnez %v4135_v41  ;;  %v1805_v1 = vld [vmem:[%s3705_s3 + $0x80] sm:$0xff]  ;;  %vm4161_vm0 = vmmov %vm4118_vm1 }
 0x13b   :  { %v1355_v59 = vsel %vm4128_vm8, %v1347_v60, 0.0  ;;  %2092 = vmatmul.msk.f32.gmra.mxu3 %vm4118_vm1, %v1264_v21  ;;  %vm4137_vm8 = vmmov %vm4118_vm1  ;;  %v4155_v52 = vld [vmem:[#allocation31_spill] sm:$0xff]  ;;  %1846 = vmatpush.msra.mxu1 %v1805_v1  ;;  %v1518_v21 = vld [vmem:[#allocation2 + $0x19] sm:$0xff] }
 0x13c   :  { %2100 = vmatmul.msk.f32.gmra.mxu0 %vm4129_vm3, %v1355_v59  ;;  %v1058_v17 = vadd.f32 %v3185_v39, %v1046_v50  ;;  %vm4139_vm3 = vnez %v4138_v51  ;;  %v1517_v9 = vld [vmem:[#allocation2 + $0x11] sm:$0xff]  ;;  %v1526_v59 = vsel %vm2375_vm15, %v1518_v21, 0.0  ;;  %v4171_v50 = vld [vmem:[#allocation33_spill] sm:$0xff]  ;;  %vm4176_vm15 = vmmov %vm4161_vm0 }
 0x13d   :  { %v1525_v31 = vsel %vm2293_vm7, %v1517_v9, 0.0  ;;  %v1435_v60 = vld [vmem:[#allocation2 + $0x18] sm:$0xff]  ;;  %vm4169_vm7 = vmmov %vm4161_vm0  ;;  %v4178_v45 = vld [vmem:[#allocation34_spill] sm:$0xff] }
 0x13e   :  { %v1066_v13 = vmax.f32 %v1058_v17, 0.0  ;;  %v1436_v17 = vld [vmem:[#allocation2 + $0x20] sm:$0xff]  ;;  %v1438_v51 = vld [vmem:[#allocation2 + $0x30] sm:$0xff]  ;;  %v4217_v1 = vld [vmem:[#allocation40_spill] sm:$0xff] }
 0x13f   :  { %v3370_v23 = vld [vmem:[#allocation2 + $0x34] sm:$0xff] }
 0x140   :  { %v3372_v22 = vld [vmem:[#allocation2 + $0x33] sm:$0xff]  ;;  %1084 = vst.msk [vmem:[#allocation2 + $0x40] sm:$0xff] %vm4130_vm9, %v1066_v13  ;;  %v1117_v6 = vsel %vm4132_vm11, %v3370_v23, 0.0  ;;  %vm4140_vm9 = vmmov %vm4118_vm1  ;;  %vm4143_vm11 = vcmp.ge.s32.totalorder %v4142_v33, 1 }
 0x141   :  { %v3374_v20 = vld [vmem:[#allocation2 + $0x35] sm:$0xff]  ;;  %v1099_v36 = vsel %vm4134_vm4, %v3372_v22, 0.0  ;;  %2077 = vmatmul.msk.f32.gmra.mxu1 %vm4137_vm8, %v1117_v6  ;;  %vm4145_vm4 = vnez %v4144_v25  ;;  %vm4149_vm8 = vmmov %vm4118_vm1 }
 0x142   :  { %v1265_v39 = vsel %vm4136_vm13, %v3374_v20, 0.0  ;;  %v1348_v14 = vld [vmem:[#allocation2 + $0x37] sm:$0xff]  ;;  %2085 = vmatmul.msk.f32.gmra.mxu2 %vm4118_vm1, %v1099_v36  ;;  %vm4147_vm13 = vnez %v4146_v15  ;;  %v1437_v36 = vld [vmem:[#allocation2 + $0x28] sm:$0xff] }
 0x143   :  { %v1356_v26 = vsel %vm4139_vm3, %v1348_v14, 0.0  ;;  %2093 = vmatmul.msk.f32.gmra.mxu3 %vm4140_vm9, %v1265_v39  ;;  %vm4151_vm3 = vmmov %vm4118_vm1  ;;  %v4186_v14 = vld [vmem:[#allocation35_spill] sm:$0xff]  ;;  %v4193_v25 = vld [vmem:[#allocation36_spill] sm:$0xff] }
 0x144   :  { %2101 = vmatmul.msk.f32.gmra.mxu0 %vm4141_vm10, %v1356_v26  ;;  %vm4148_vm10 = vmmov %vm4118_vm1 }
 0x145   :  { %vm4153_vm9 = vmmov %vm4118_vm1 }
 0x147   :  { %v3392_v37 = vld [vmem:[#allocation2 + $0x3c] sm:$0xff] }
 0x148   :  { %v3394_v7 = vld [vmem:[#allocation2 + $0x3b] sm:$0xff]  ;;  %v1118_v18 = vsel %vm4143_vm11, %v3392_v37, 0.0  ;;  %vm4154_vm11 = vmmov %vm4118_vm1  ;;  %v1614_v61 = vld [vmem:[#allocation2 + $0x43] sm:$0xff] }
 0x149   :  { %v3396_v42 = vld [vmem:[#allocation2 + $0x3d] sm:$0xff]  ;;  %v1100_v57 = vsel %vm4145_vm4, %v3394_v7, 0.0  ;;  %2078 = vmatmul.msk.f32.gmra.mxu1 %vm4148_vm10, %v1118_v18  ;;  %vm4156_vm4 = vnez %v4155_v52  ;;  %vm4159_vm10 = vmmov %vm4118_vm1  ;;  %v4214_v52 = vld [vmem:[#allocation39_spill] sm:$0xff] }
 0x14a   :  { %v1266_v8 = vsel %vm4147_vm13, %v3396_v42, 0.0  ;;  %v1349_v12 = vld [vmem:[#allocation2 + $0x3f] sm:$0xff]  ;;  %2086 = vmatmul.msk.f32.gmra.mxu2 %vm4149_vm8, %v1100_v57  ;;  %v1615_v34 = vsel %vm4156_vm4, %v3221_v49, 0.0  ;;  %vm4158_vm13 = vmmov %vm4118_vm1 }
 0x14b   :  { %v1357_v0 = vsel %vm3997_vm14, %v1349_v12, 0.0  ;;  %2094 = vmatmul.msk.f32.gmra.mxu3 %vm4118_vm1, %v1266_v8  ;;  %vm4157_vm14 = vcmp.lt.s32.totalorder %v2239_v16, 3  ;;  %vm4162_vm8 = vmmov %vm4161_vm0  ;;  %v4163_v16 = vld [vmem:[#allocation32_spill] sm:$0xff]  ;;  %v4201_v12 = vld [vmem:[#allocation37_spill] sm:$0xff] }
 0x14c   :  { %2102 = vmatmul.msk.f32.gmra.mxu0 %vm4151_vm3, %v1357_v0  ;;  %v1706_v44 = vsel %vm4157_vm14, %v3219_v2, 0.0  ;;  %vm4164_vm1 = vnez %v4163_v16  ;;  %vm4165_vm3 = vcmp.lt.s32.totalorder %v2279_v30, 3  ;;  %vm4170_vm4 = vmmov %vm4161_vm0  ;;  %vm4172_vm14 = vnez %v4171_v50  ;;  %v1439_v57 = vld [vmem:[#allocation2 + $0x38] sm:$0xff]  ;;  %v1705_v0 = vld [vmem:[#allocation2 + $0x44] sm:$0xff] }
 0x14d   :  { %v1616_v2 = vsel %vm4164_vm1, %v3252_v10, 0.0  ;;  %v1707_v49 = vsel %vm4165_vm3, %v3250_v55, 0.0  ;;  %v1617_v10 = vsel %vm4172_vm14, %v3286_v27, 0.0  ;;  %v1519_v55 = vld [vmem:[#allocation2 + $0x21] sm:$0xff]  ;;  %vm4179_vm1 = vnez %v4178_v45 }
 0x14e   :  { %v1527_v6 = vsel %vm2454_vm12, %v1519_v55, 0.0  ;;  %v1618_v27 = vsel %vm4179_vm1, %v3323_v4, 0.0  ;;  %vm4180_vm3 = vcmp.lt.s32.totalorder %v4092_v3, 3  ;;  %vm4184_vm12 = vmmov %vm4161_vm0  ;;  %vm4188_vm14 = vcmp.lt.s32.totalorder %v4106_v5, 3  ;;  %v1440_v35 = vld [vmem:[#allocation2 + $0x40] sm:$0xff]  ;;  %v4223_v16 = vld [vmem:[#allocation42_spill] sm:$0xff] }
 0x14f   :  { %v1710_v3 = vsel %vm4188_vm14, %v3347_v54, 0.0  ;;  %vm4196_vm1 = vmmov %vm4161_vm0  ;;  %v1522_v54 = vld [vmem:[#allocation2 + $0x39] sm:$0xff] }
 0x150   :  { %v1530_v8 = vsel %vm3993_vm6, %v1522_v54, 0.0  ;;  %vm4208_vm14 = vmmov %vm4161_vm0  ;;  %v4229_v55 = vld [vmem:[#allocation44_spill] sm:$0xff] }
 0x151   :  { %2103 = vmatmul.msk.f32.vlgmr.msrb.gmra.mxu1 %vm4153_vm9, %v1433_v56  ;;  %vm4166_vm9 = vmmov %vm4161_vm0  ;;  %v4206_v56 = vld [vmem:[#allocation25_spill] sm:$0xff] }
 0x152   :  { %2111 = vmatmul.msk.f32.vlgmr.msrb.gmra.mxu2 %vm4154_vm11, %v1524_v58  ;;  %vm4167_vm11 = vmmov %vm4161_vm0  ;;  %vm4207_vm6 = vnez %v4206_v56 }
 0x153   :  { %2119 = vmatmul.msk.f32.vlgmr.msra.gmra.mxu3 %vm4158_vm13, %v1615_v34  ;;  %vm4173_vm13 = vcmp.lt.s32.totalorder %v2351_v46, 3  ;;  %v1709_v46 = vsel %vm4180_vm3, %v3321_v19, 0.0  ;;  %v1521_v19 = vld [vmem:[#allocation2 + $0x31] sm:$0xff]  ;;  %vm4197_vm3 = vmmov %vm4161_vm0 }
 0x154   :  { %2127 = vmatmul.msk.f32.vlgmr.msra.gmra.mxu0 %vm4159_vm10, %v1706_v44  ;;  %v1708_v30 = vsel %vm4173_vm13, %v3284_v53, 0.0  ;;  %vm4174_vm10 = vmmov %vm4161_vm0  ;;  %v1520_v53 = vld [vmem:[#allocation2 + $0x29] sm:$0xff]  ;;  %v1529_v18 = vsel %vm3984_vm5, %v1521_v19, 0.0 }
 0x155   :  { %v1528_v39 = vsel %vm3976_vm2, %v1520_v53, 0.0  ;;  %vm4189_vm13 = vmmov %vm4161_vm0  ;;  %v1796_v53 = vld [vmem:[#allocation2 + $0x45] sm:$0xff] }
 0x156   :  { %vm4192_vm2 = vmmov %vm4161_vm0 }
 0x157   :  { %vm4199_vm5 = vmmov %vm4161_vm0 }
 0x159   :  { %2104 = vmatmul.msk.f32.gmra.mxu1 %vm4161_vm0, %v1434_v29  ;;  %v4220_v29 = vld [vmem:[#allocation41_spill] sm:$0xff] }
 0x15a   :  { %2112 = vmatmul.msk.f32.gmra.mxu2 %vm4162_vm8, %v1525_v31  ;;  %vm4177_vm8 = vmmov %vm4161_vm0 }
 0x15b   :  { %2120 = vmatmul.msk.f32.gmra.mxu3 %vm4166_vm9, %v1616_v2  ;;  %vm4181_vm9 = vmmov %vm4161_vm0 }
 0x15c   :  { %2128 = vmatmul.msk.f32.gmra.mxu0 %vm4167_vm11, %v1707_v49  ;;  %vm4182_vm11 = vmmov %vm4161_vm0 }
 0x161   :  { %2105 = vmatmul.msk.f32.gmra.mxu1 %vm4169_vm7, %v1435_v60  ;;  %vm4185_vm7 = vmmov %vm4161_vm0 }
 0x162   :  { %2113 = vmatmul.msk.f32.gmra.mxu2 %vm4170_vm4, %v1526_v59  ;;  %vm4187_vm4 = vnez %v4186_v14 }
 0x163   :  { %2121 = vmatmul.msk.f32.gmra.mxu3 %vm4174_vm10, %v1617_v10  ;;  %v1619_v4 = vsel %vm4187_vm4, %v3349_v48, 0.0  ;;  %vm4190_vm10 = vmmov %vm4161_vm0 }
 0x164   :  { %2129 = vmatmul.msk.f32.gmra.mxu0 %vm4161_vm0, %v1708_v30  ;;  %vm4205_vm4 = vmmov %vm4161_vm0 }
 0x169   :  { %2106 = vmatmul.msk.f32.gmra.mxu1 %vm4176_vm15, %v1436_v17  ;;  %vm4194_vm15 = vnez %v4193_v25 }
 0x16a   :  { %2114 = vmatmul.msk.f32.gmra.mxu2 %vm4177_vm8, %v1527_v6  ;;  %v1620_v48 = vsel %vm4194_vm15, %v3372_v22, 0.0  ;;  %vm4195_vm8 = vcmp.lt.s32.totalorder %v4119_v38, 3  ;;  %vm4213_vm15 = vmmov %vm4161_vm0  ;;  %v4232_v6 = vld [vmem:[#allocation45_spill] sm:$0xff] }
 0x16b   :  { %2122 = vmatmul.msk.f32.gmra.mxu3 %vm4181_vm9, %v1618_v27  ;;  %v1711_v5 = vsel %vm4195_vm8, %v3370_v23, 0.0  ;;  %vm4200_vm9 = vmmov %vm4161_vm0  ;;  %v1523_v23 = vld [vmem:[#allocation2 + $0x41] sm:$0xff]  ;;  %vm4215_vm8 = vnez %v4214_v52 }
 0x16c   :  { %2130 = vmatmul.msk.f32.gmra.mxu0 %vm4182_vm11, %v1709_v46  ;;  %vm4202_vm11 = vnez %v4201_v12  ;;  %v1531_v24 = vsel %vm4207_vm6, %v1523_v23, 0.0  ;;  %v1797_v34 = vsel %vm4215_vm8, %v3223_v43, 0.0  ;;  %vm4228_vm6 = vmmov %vm4161_vm0 }
 0x16d   :  { %v1621_v22 = vsel %vm4202_vm11, %v3394_v7, 0.0  ;;  %v4210_v7 = vld [vmem:[#allocation38_spill] sm:$0xff]  ;;  %vm4222_vm11 = vmmov %vm4161_vm0 }
 0x171   :  { %2107 = vmatmul.msk.f32.gmra.mxu1 %vm4184_vm12, %v1437_v36  ;;  %vm4203_vm12 = vcmp.lt.s32.totalorder %v4131_v28, 3 }
 0x172   :  { %2115 = vmatmul.msk.f32.gmra.mxu2 %vm4185_vm7, %v1528_v39  ;;  %v1712_v38 = vsel %vm4203_vm12, %v3392_v37, 0.0  ;;  %vm4204_vm7 = vmmov %vm4161_vm0  ;;  %vm4224_vm12 = vnez %v4223_v16  ;;  %v4235_v39 = vld [vmem:[#allocation46_spill] sm:$0xff] }
 0x173   :  { %2123 = vmatmul.msk.f32.gmra.mxu3 %vm4189_vm13, %v1619_v4  ;;  %vm4209_vm13 = vmmov %vm4161_vm0  ;;  %v1800_v2 = vsel %vm4224_vm12, %v3325_v63, 0.0  ;;  %v1901_v63 = vld [vmem:[%s3707_s5 + $0x8] sm:$0xff] }
 0x174   :  { %2131 = vmatmul.msk.f32.gmra.mxu0 %vm4190_vm10, %v1710_v3  ;;  %vm4211_vm10 = vnez %v4210_v7  ;;  %1944 = vmatpush.msra.mxu2 %v1901_v63 }
 0x175   :  { %v1622_v58 = vsel %vm4211_vm10, %v1614_v61, 0.0  ;;  %vm4233_vm10 = vnez %v4232_v6 }
 0x176   :  { %v1803_v45 = vsel %vm4233_vm10, %v3396_v42, 0.0 }
 0x179   :  { %2108 = vmatmul.msk.f32.gmra.mxu1 %vm4192_vm2, %v1438_v51  ;;  %vm4212_vm2 = vcmp.lt.s32.totalorder %v4142_v33, 3 }
 0x17a   :  { %2116 = vmatmul.msk.f32.gmra.mxu2 %vm4161_vm0, %v1529_v18  ;;  %v1713_v28 = vsel %vm4212_vm2, %v1705_v0, 0.0  ;;  %vm4234_vm2 = vmmov %vm4161_vm0  ;;  %v1900_v18 = vld [vmem:[%s3707_s5] sm:$0xff] }
 0x17b   :  { %2124 = vmatmul.msk.f32.gmra.mxu3 %vm4196_vm1, %v1620_v48  ;;  %vm4216_vm1 = vmmov %vm4161_vm0  ;;  %1945 = vmatpush.msra.mxu2 %v1900_v18 }
 0x17c   :  { %2132 = vmatmul.msk.f32.gmra.mxu0 %vm4197_vm3, %v1711_v5  ;;  %vm4218_vm3 = vnez %v4217_v1  ;;  %vm4238_vm8 = vmmov %vm4216_vm1 }
 0x17d   :  { %v1798_v9 = vsel %vm4218_vm3, %v3254_v40, 0.0  ;;  %vm4239_vm3 = vmmov %vm4216_vm1 }
 0x17e   :  { %vm4243_vm12 = vmmov %vm4216_vm1 }
 0x17f   :  { %vm4249_vm10 = vmmov %vm4216_vm1 }
 0x181   :  { %2109 = vmatmul.msk.f32.gmra.mxu1 %vm4199_vm5, %v1439_v57  ;;  %vm4219_vm5 = vmmov %vm4161_vm0 }
 0x182   :  { %2117 = vmatmul.msk.f32.gmra.mxu2 %vm4200_vm9, %v1530_v8  ;;  %vm4221_vm9 = vnez %v4220_v29 }
 0x183   :  { %2125 = vmatmul.msk.f32.gmra.mxu3 %vm4204_vm7, %v1621_v22  ;;  %v1799_v47 = vsel %vm4221_vm9, %v3288_v32, 0.0  ;;  %vm4225_vm7 = vmmov %vm4161_vm0 }
 0x184   :  { %2133 = vmatmul.msk.f32.gmra.mxu0 %vm4205_vm4, %v1712_v38  ;;  %vm4227_vm4 = vnez %v4226_v11  ;;  %vm4241_vm9 = vmmov %vm4216_vm1 }
 0x185   :  { %v1801_v32 = vsel %vm4227_vm4, %v3351_v62, 0.0  ;;  %vm4245_vm4 = vmmov %vm4216_vm1 }
 0x189   :  { %2110 = vmatmul.msk.f32.gmra.mxu1 %vm4208_vm14, %v1440_v35  ;;  %vm4230_vm14 = vnez %v4229_v55 }
 0x18a   :  { %2118 = vmatmul.msk.f32.gmra.mxu2 %vm4209_vm13, %v1531_v24  ;;  %v1802_v17 = vsel %vm4230_vm14, %v3374_v20, 0.0  ;;  %vm4231_vm13 = vmmov %vm4161_vm0 }
 0x18b   :  { %2126 = vmatmul.msk.f32.gmra.mxu3 %vm4161_vm0, %v1622_v58  ;;  %vm4236_vm0 = vnez %v4235_v39  ;;  %vm4247_vm14 = vmmov %vm4216_vm1 }
 0x18c   :  { %2134 = vmatmul.msk.f32.gmra.mxu0 %vm4213_vm15, %v1713_v28  ;;  %v1804_v20 = vsel %vm4236_vm0, %v1796_v53, 0.0  ;;  %vm4237_vm15 = vmmov %vm4216_vm1 }
 0x18d   :  { %vm4251_vm0 = vmmov %vm4216_vm1 }
 0x18e   :  { %v3510_v37 = vpop.f32.mrf.mxu1 }
 0x191   :  { %2135 = vmatmul.msk.f32.vlgmr.msra.gmra.mxu1 %vm4216_vm1, %v1797_v34  ;;  %v1401_v49 = vpop.f32.mrf.mxu0 }
 0x195   :  { %v1227_v31 = vpop.f32.mrf.mxu2 }
 0x196   :  { %v3516_v44 = vpop.f32.mrf.mxu1  ;;  %v1310_v40 = vpop.f32.mrf.mxu3  ;;  %v1228_v35 = vadd.f32 %v1227_v31, %v3510_v37 }
 0x198   :  { %v1334_v24 = vadd.f32 %v1310_v40, %v1228_v35 }
 0x199   :  { %2136 = vmatmul.msk.f32.gmra.mxu1 %vm4219_vm5, %v1798_v9  ;;  %v1404_v10 = vpop.f32.mrf.mxu0  ;;  %vm4240_vm5 = vmmov %vm4216_vm1 }
 0x19a   :  { %v1425_v34 = vadd.f32 %v1401_v49, %v1334_v24 }
 0x19d   :  { %v1230_v21 = vpop.f32.mrf.mxu2 }
 0x19e   :  { %v3522_v33 = vpop.f32.mrf.mxu1  ;;  %v1313_v59 = vpop.f32.mrf.mxu3  ;;  %v1231_v52 = vadd.f32 %v1230_v21, %v3516_v44  ;;  %v3603_v44 = vld [vmem:[%s3706_s4] ss:$0 sm:$0xff] }
 0x1a0   :  { %v1335_v29 = vadd.f32 %v1313_v59, %v1231_v52 }
 0x1a1   :  { %2137 = vmatmul.msk.f32.gmra.mxu1 %vm4222_vm11, %v1799_v47  ;;  %v1407_v27 = vpop.f32.mrf.mxu0  ;;  %vm4242_vm11 = vmmov %vm4216_vm1 }
 0x1a2   :  { %v1426_v31 = vadd.f32 %v1404_v10, %v1335_v29 }
 0x1a5   :  { %v1233_v30 = vpop.f32.mrf.mxu2 }
 0x1a6   :  { %v3528_v43 = vpop.f32.mrf.mxu1  ;;  %v1316_v13 = vpop.f32.mrf.mxu3 }
 0x1a9   :  { %2138 = vmatmul.msk.f32.gmra.mxu1 %vm4225_vm7, %v1800_v2  ;;  %v3560_v14 = vpop.f32.mrf.mxu0  ;;  %vm4244_vm7 = vmmov %vm4216_vm1 }
 0x1ad   :  { %v1236_v46 = vpop.f32.mrf.mxu2 }
 0x1ae   :  { %v3534_v60 = vpop.f32.mrf.mxu1  ;;  %v1319_v41 = vpop.f32.mrf.mxu3  ;;  %v1237_v6 = vadd.f32 %v1236_v46, %v3528_v43 }
 0x1b1   :  { %2139 = vmatmul.msk.f32.gmra.mxu1 %vm4228_vm6, %v1801_v32  ;;  %v3566_v42 = vpop.f32.mrf.mxu0  ;;  %v1234_v32 = vadd.f32 %v1233_v30, %v3522_v33  ;;  %vm4246_vm6 = vmmov %vm4216_vm1 }
 0x1b3   :  { %v1336_v63 = vadd.f32 %v1316_v13, %v1234_v32 }
 0x1b5   :  { %v3562_v4 = vpop.f32.mrf.mxu2  ;;  %v1427_v53 = vadd.f32 %v1407_v27, %v1336_v63 }
 0x1b6   :  { %v3540_v50 = vpop.f32.mrf.mxu1  ;;  %v3564_v19 = vpop.f32.mrf.mxu3 }
 0x1b9   :  { %2140 = vmatmul.msk.f32.gmra.mxu1 %vm4231_vm13, %v1802_v17  ;;  %v3575_v5 = vpop.f32.mrf.mxu0  ;;  %vm4248_vm13 = vmmov %vm4216_vm1 }
 0x1bd   :  { %v3568_v51 = vpop.f32.mrf.mxu2 }
 0x1be   :  { %v3549_v62 = vpop.f32.mrf.mxu1  ;;  %v3573_v25 = vpop.f32.mrf.mxu3 }
 0x1c1   :  { %2141 = vmatmul.msk.f32.gmra.mxu1 %vm4234_vm2, %v1803_v45  ;;  %v3581_v8 = vpop.f32.mrf.mxu0  ;;  %vm4250_vm2 = vmmov %vm4216_vm1 }
 0x1c5   :  { %v3577_v54 = vpop.f32.mrf.mxu2 }
 0x1c6   :  { %v3555_v36 = vpop.f32.mrf.mxu1  ;;  %v3579_v57 = vpop.f32.mrf.mxu3 }
 0x1c9   :  { %2142 = vmatmul.msk.f32.gmra.mxu1 %vm4237_vm15, %v1804_v20  ;;  %v3589_v23 = vpop.f32.mrf.mxu0  ;;  %v1337_v20 = vadd.f32 %v1319_v41, %v1237_v6  ;;  %vm4252_vm15 = vmmov %vm4251_vm0 }
 0x1cb   :  { %v1428_v27 = vadd.f32 %v3560_v14, %v1337_v20 }
 0x1cd   :  { %v3583_v12 = vpop.f32.mrf.mxu2 }
 0x1ce   :  { %v1484_v3 = vpop.f32.mrf.mxu1  ;;  %v3587_v38 = vpop.f32.mrf.mxu3 }
 0x1cf   :  { %v1508_v1 = vadd.f32 %v1484_v3, %v1425_v34 }
 0x1d1   :  { %v1757_v7 = vpop.f32.mrf.mxu0 }
 0x1d5   :  { %v1575_v61 = vpop.f32.mrf.mxu2 }
 0x1d6   :  { %v1487_v26 = vpop.f32.mrf.mxu1  ;;  %v1666_v56 = vpop.f32.mrf.mxu3  ;;  %v1599_v47 = vadd.f32 %v1575_v61, %v1508_v1 }
 0x1d7   :  { %v1509_v40 = vadd.f32 %v1487_v26, %v1426_v31 }
 0x1d8   :  { %v1690_v37 = vadd.f32 %v1666_v56, %v1599_v47  ;;  %v1240_v56 = vadd.f32 %v3562_v4, %v3534_v60  ;;  %v1243_v60 = vadd.f32 %v3568_v51, %v3540_v50  ;;  %v1246_v50 = vadd.f32 %v3577_v54, %v3549_v62 }
 0x1d9   :  { %v1760_v2 = vpop.f32.mrf.mxu0  ;;  %v1249_v62 = vadd.f32 %v3583_v12, %v3555_v36 }
 0x1da   :  { %v1781_v17 = vadd.f32 %v1757_v7, %v1690_v37  ;;  %v1338_v41 = vadd.f32 %v3564_v19, %v1240_v56  ;;  %v1339_v19 = vadd.f32 %v3573_v25, %v1243_v60  ;;  %v1971_v60 = vld [vmem:[%s3703_s0 + $0x8] sm:$0xff] }
 0x1dc   :  { %v1429_v14 = vadd.f32 %v3566_v42, %v1338_v41  ;;  %v1430_v51 = vadd.f32 %v3575_v5, %v1339_v19  ;;  %v1973_v19 = vld [vmem:[%s3703_s0 + $0x18] sm:$0xff] }
 0x1dd   :  { %v1578_v58 = vpop.f32.mrf.mxu2 }
 0x1de   :  { %v1490_v48 = vpop.f32.mrf.mxu1  ;;  %v1669_v9 = vpop.f32.mrf.mxu3  ;;  %v1600_v55 = vadd.f32 %v1578_v58, %v1509_v40 }
 0x1df   :  { %v1510_v30 = vadd.f32 %v1490_v48, %v1427_v53 }
 0x1e0   :  { %v1691_v45 = vadd.f32 %v1669_v9, %v1600_v55 }
 0x1e1   :  { %v1763_v39 = vpop.f32.mrf.mxu0 }
 0x1e2   :  { %v1782_v26 = vadd.f32 %v1760_v2, %v1691_v45 }
 0x1e5   :  { %v1581_v11 = vpop.f32.mrf.mxu2 }
 0x1e6   :  { %v1493_v15 = vpop.f32.mrf.mxu1  ;;  %v1672_v49 = vpop.f32.mrf.mxu3  ;;  %v1601_v3 = vadd.f32 %v1581_v11, %v1510_v30 }
 0x1e7   :  { %v1511_v24 = vadd.f32 %v1493_v15, %v1428_v27 }
 0x1e8   :  { %v1692_v43 = vadd.f32 %v1672_v49, %v1601_v3  ;;  %v1340_v49 = vadd.f32 %v3579_v57, %v1246_v50  ;;  %v1341_v57 = vadd.f32 %v3587_v38, %v1249_v62 }
 0x1e9   :  { %v1766_v7 = vpop.f32.mrf.mxu0 }
 0x1ea   :  { %v1783_v34 = vadd.f32 %v1763_v39, %v1692_v43  ;;  %v1431_v54 = vadd.f32 %v3581_v8, %v1340_v49  ;;  %v1432_v36 = vadd.f32 %v3589_v23, %v1341_v57 }
 0x1ed   :  { %v1584_v10 = vpop.f32.mrf.mxu2 }
 0x1ee   :  { %v3585_v22 = vpop.f32.mrf.mxu1  ;;  %v1675_v35 = vpop.f32.mrf.mxu3  ;;  %v1602_v52 = vadd.f32 %v1584_v10, %v1511_v24 }
 0x1ef   :  { %v1512_v47 = vadd.f32 %v3585_v22, %v1429_v14 }
 0x1f0   :  { %v1693_v4 = vadd.f32 %v1675_v35, %v1602_v52 }
 0x1f1   :  { %v1769_v11 = vpop.f32.mrf.mxu0 }
 0x1f2   :  { %v1784_v37 = vadd.f32 %v1766_v7, %v1693_v4 }
 0x1f5   :  { %v1587_v58 = vpop.f32.mrf.mxu2 }
 0x1f6   :  { %v3591_v0 = vpop.f32.mrf.mxu1  ;;  %v1678_v15 = vpop.f32.mrf.mxu3  ;;  %v1603_v32 = vadd.f32 %v1587_v58, %v1512_v47 }
 0x1f7   :  { %v1513_v22 = vadd.f32 %v3591_v0, %v1430_v51 }
 0x1f8   :  { %v1694_v42 = vadd.f32 %v1678_v15, %v1603_v32 }
 0x1f9   :  { %v1772_v53 = vpop.f32.mrf.mxu0 }
 0x1fd   :  { %v1590_v31 = vpop.f32.mrf.mxu2 }
 0x1fe   :  { %v3594_v28 = vpop.f32.mrf.mxu1  ;;  %v1681_v25 = vpop.f32.mrf.mxu3 }
 0x201   :  { %v1775_v8 = vpop.f32.mrf.mxu0 }
 0x205   :  { %v1593_v39 = vpop.f32.mrf.mxu2 }
 0x206   :  { %v3597_v16 = vpop.f32.mrf.mxu1  ;;  %v1684_v20 = vpop.f32.mrf.mxu3 }
 0x207   :  { %v1515_v35 = vadd.f32 %v3597_v16, %v1432_v36 }
 0x209   :  { %v1778_v58 = vpop.f32.mrf.mxu0 }
 0x20e   :  { %v1848_v21 = vpop.f32.mrf.mxu1 }
 0x20f   :  { %v1872_v59 = vadd.f32 %v1848_v21, %v1781_v17  ;;  %v1604_v21 = vadd.f32 %v1590_v31, %v1513_v22  ;;  %v1974_v31 = vld [vmem:[%s3703_s0 + $0x20] sm:$0xff] }
 0x211   :  { %v1884_v33 = vadd.f32 %v3603_v44, %v1872_v59  ;;  %v1785_v59 = vadd.f32 %v1769_v11, %v1694_v42  ;;  %v1695_v5 = vadd.f32 %v1681_v25, %v1604_v21  ;;  %v1975_v42 = vld [vmem:[%s3703_s0 + $0x28] sm:$0xff] }
 0x213   :  { %v1892_v13 = vmax.f32 %v1884_v33, 0.0  ;;  %v1514_v33 = vadd.f32 %v3594_v28, %v1431_v54 }
 0x215   :  { %2143 = vmatmul.msk.f32.vlgmr.msra.gmra.mxu2 %vm4238_vm8, %v1892_v13  ;;  %v1605_v30 = vadd.f32 %v1593_v39, %v1514_v33  ;;  %v1786_v13 = vadd.f32 %v1772_v53, %v1695_v5  ;;  %v1978_v39 = vld [vmem:[%s3703_s0 + $0x40] sm:$0xff] }
 0x216   :  { %v1851_v18 = vpop.f32.mrf.mxu1 }
 0x217   :  { %v1873_v61 = vadd.f32 %v1851_v18, %v1782_v26  ;;  %v1696_v18 = vadd.f32 %v1684_v20, %v1605_v30 }
 0x219   :  { %v1885_v46 = vadd.f32 %v3603_v44, %v1873_v61  ;;  %v1596_v61 = vpop.f32.mrf.mxu2  ;;  %v1787_v38 = vadd.f32 %v1775_v8, %v1696_v18 }
 0x21a   :  { %v1606_v56 = vadd.f32 %v1596_v61, %v1515_v35 }
 0x21b   :  { %v1893_v48 = vmax.f32 %v1885_v46, 0.0  ;;  %v1687_v46 = vpop.f32.mrf.mxu3 }
 0x21c   :  { %v1697_v24 = vadd.f32 %v1687_v46, %v1606_v56 }
 0x21d   :  { %2144 = vmatmul.msk.f32.gmra.mxu2 %vm4216_vm1, %v1893_v48 }
 0x21e   :  { %v1854_v1 = vpop.f32.mrf.mxu1  ;;  %v1788_v23 = vadd.f32 %v1778_v58, %v1697_v24 }
 0x21f   :  { %v1874_v9 = vadd.f32 %v1854_v1, %v1783_v34  ;;  %v2160_v1 = vld [vmem:[%s3708_s6] ss:$0 sm:$0xff] }
 0x221   :  { %v1886_v29 = vadd.f32 %v3603_v44, %v1874_v9 }
 0x223   :  { %v1894_v2 = vmax.f32 %v1886_v29, 0.0  ;;  %v1972_v29 = vld [vmem:[%s3703_s0 + $0x10] sm:$0xff] }
 0x225   :  { %2145 = vmatmul.msk.f32.gmra.mxu2 %vm4239_vm3, %v1894_v2 }
 0x226   :  { %v1857_v40 = vpop.f32.mrf.mxu1 }
 0x227   :  { %v1875_v63 = vadd.f32 %v1857_v40, %v1784_v37 }
 0x229   :  { %v1887_v55 = vadd.f32 %v3603_v44, %v1875_v63 }
 0x22b   :  { %v1895_v17 = vmax.f32 %v1887_v55, 0.0 }
 0x22d   :  { %2146 = vmatmul.msk.f32.gmra.mxu2 %vm4240_vm5, %v1895_v17  ;;  %v1976_v17 = vld [vmem:[%s3703_s0 + $0x30] sm:$0xff] }
 0x22e   :  { %v1860_v6 = vpop.f32.mrf.mxu1 }
 0x22f   :  { %v1876_v45 = vadd.f32 %v1860_v6, %v1785_v59  ;;  %v1977_v59 = vld [vmem:[%s3703_s0 + $0x38] sm:$0xff] }
 0x231   :  { %v1888_v0 = vadd.f32 %v3603_v44, %v1876_v45 }
 0x233   :  { %v1896_v10 = vmax.f32 %v1888_v0, 0.0 }
 0x235   :  { %2147 = vmatmul.msk.f32.gmra.mxu2 %vm4241_vm9, %v1896_v10 }
 0x236   :  { %v1863_v3 = vpop.f32.mrf.mxu1 }
 0x237   :  { %v1877_v26 = vadd.f32 %v1863_v3, %v1786_v13 }
 0x239   :  { %v1889_v12 = vadd.f32 %v3603_v44, %v1877_v26 }
 0x23b   :  { %v1897_v28 = vmax.f32 %v1889_v12, 0.0 }
 0x23d   :  { %2148 = vmatmul.msk.f32.gmra.mxu2 %vm4242_vm11, %v1897_v28 }
 0x23e   :  { %v1866_v43 = vpop.f32.mrf.mxu1 }
 0x23f   :  { %v1878_v27 = vadd.f32 %v1866_v43, %v1787_v38 }
 0x241   :  { %v1890_v7 = vadd.f32 %v3603_v44, %v1878_v27 }
 0x243   :  { %v1898_v48 = vmax.f32 %v1890_v7, 0.0 }
 0x245   :  { %2149 = vmatmul.msk.f32.gmra.mxu2 %vm4243_vm12, %v1898_v48 }
 0x246   :  { %v1869_v41 = vpop.f32.mrf.mxu1 }
 0x247   :  { %v1879_v52 = vadd.f32 %v1869_v41, %v1788_v23 }
 0x249   :  { %v1891_v16 = vadd.f32 %v3603_v44, %v1879_v52 }
 0x24b   :  { %v1899_v34 = vmax.f32 %v1891_v16, 0.0 }
 0x24d   :  { %2150 = vmatmul.msk.f32.gmra.mxu2 %vm4244_vm7, %v1899_v34 }
 0x298   :  { %v1947_v9 = vpop.f32.mrf.mxu2 }
 0x299   :  { %v1948_v4 = vadd.f32 %v2160_v1, %v1947_v9 }
 0x29b   :  { %v1979_v14 = vadd.f32 %v1971_v60, %v1948_v4 }
 0x29d   :  { %1987 = vst.msk [vmem:[%s3709_s7] sm:$0xff] %vm4245_vm4, %v1979_v14 }
 0x2a0   :  { %v1950_v44 = vpop.f32.mrf.mxu2 }
 0x2a1   :  { %v1951_v15 = vadd.f32 %v2160_v1, %v1950_v44 }
 0x2a3   :  { %v1980_v47 = vadd.f32 %v1972_v29, %v1951_v15 }
 0x2a5   :  { %1988 = vst.msk [vmem:[%s3709_s7 + $0x8] sm:$0xff] %vm4246_vm6, %v1980_v47 }
 0x2a8   :  { %v1953_v2 = vpop.f32.mrf.mxu2 }
 0x2a9   :  { %v1954_v11 = vadd.f32 %v2160_v1, %v1953_v2 }
 0x2ab   :  { %v1981_v32 = vadd.f32 %v1973_v19, %v1954_v11 }
 0x2ad   :  { %1989 = vst.msk [vmem:[%s3709_s7 + $0x10] sm:$0xff] %vm4247_vm14, %v1981_v32 }
 0x2b0   :  { %v1956_v37 = vpop.f32.mrf.mxu2 }
 0x2b1   :  { %v1957_v40 = vadd.f32 %v2160_v1, %v1956_v37 }
 0x2b3   :  { %v1982_v63 = vadd.f32 %v1974_v31, %v1957_v40 }
 0x2b5   :  { %1990 = vst.msk [vmem:[%s3709_s7 + $0x18] sm:$0xff] %vm4248_vm13, %v1982_v63 }
 0x2b8   :  { %v1959_v50 = vpop.f32.mrf.mxu2 }
 0x2b9   :  { %v1960_v51 = vadd.f32 %v2160_v1, %v1959_v50 }
 0x2bb   :  { %v1983_v55 = vadd.f32 %v1975_v42, %v1960_v51 }
 0x2bd   :  { %1991 = vst.msk [vmem:[%s3709_s7 + $0x20] sm:$0xff] %vm4249_vm10, %v1983_v55 }
 0x2c0   :  { %v1962_v22 = vpop.f32.mrf.mxu2 }
 0x2c1   :  { %v1963_v25 = vadd.f32 %v2160_v1, %v1962_v22 }
 0x2c3   :  { %v1984_v49 = vadd.f32 %v1976_v17, %v1963_v25 }
 0x2c5   :  { %1992 = vst.msk [vmem:[%s3709_s7 + $0x28] sm:$0xff] %vm4250_vm2, %v1984_v49 }
 0x2c8   :  { %v1965_v21 = vpop.f32.mrf.mxu2 }
 0x2c9   :  { %v1966_v6 = vadd.f32 %v2160_v1, %v1965_v21 }
 0x2cb   :  { %v1985_v45 = vadd.f32 %v1977_v59, %v1966_v6 }
 0x2cd   :  { %1993 = vst.msk [vmem:[%s3709_s7 + $0x30] sm:$0xff] %vm4251_vm0, %v1985_v45 }
 0x2d0   :  { %v1968_v53 = vpop.f32.mrf.mxu2 }
 0x2d1   :  { %v1969_v62 = vadd.f32 %v2160_v1, %v1968_v53 }
 0x2d3   :  { %v1986_v5 = vadd.f32 %v1978_v39, %v1969_v62 }
 0x2d5   :  { %1994 = vst.msk [vmem:[%s3709_s7 + $0x38] sm:$0xff] %vm4252_vm15, %v1986_v5 }

// kernel: discrete_vae_forward.15
= control target key start
LH: loop header
LB: loop body
LE: loop exit
PB: predicated region body
PF: predicated region fallthrough
CT: control target
= control target key end

     0   :  { %vm49_vm0 = vcmask 261120   ;;  %vm75_vm1 = vcmask 130048   ;;  %s156_s1 = inlined_call_operand.vmem [shape: bf16[32,16], index: 1, kind: input, shape index: {}]   ;;  %s157_s2 = inlined_call_operand.vmem [shape: f32[1,16], index: 2, kind: input, shape index: {}]   ;;  %s158_s0 = inlined_call_operand.vmem [shape: bf16[32,32], index: 0, kind: input, shape index: {}]   ;;  %s159_s3 = inlined_call_operand.vmem [shape: f32[32,16], index: 3, kind: output, shape index: {}]  }
   0x1   :  { %v105_v0 = vld [vmem:[%s156_s1 + $0x8] sm:$0xff]  ;;  %v104_v1 = vld [vmem:[%s156_s1] sm:$0xff] }
   0x2   :  { %62 = vmatpush.bf16.msra.mxu0 %v105_v0  ;;  %106 = vmatpush.bf16.msra.mxu1 %v105_v0  ;;  %v102_v2 = vld [vmem:[%s158_s0] sm:$0xff]  ;;  %v103_v3 = vld [vmem:[%s158_s0 + $0x8] sm:$0xff] }
   0x3   :  { %v108_v4 = vld [vmem:[%s157_s2] ss:$0 sm:$0xff] }
   0x6   :  { %63 = vmatpush.bf16.msra.mxu0 %v104_v1  ;;  %107 = vmatpush.bf16.msra.mxu1 %v104_v1 }
   0x9   :  { %100 = vmatmul.msk.bf16.vlgmr.msra.gmra.mxu0 %vm49_vm0, %v102_v2  ;;  %101 = vmatmul.msk.bf16.vlgmr.msra.gmra.mxu1 %vm49_vm0, %v103_v3 }
  0x86   :  { %v65_v5 = vpop.f32.mrf.mxu0  ;;  %v70_v6 = vpop.f32.mrf.mxu1 }
  0x87   :  { %v66_v7 = vadd.f32 %v108_v4, %v65_v5  ;;  %v71_v8 = vadd.f32 %v108_v4, %v70_v6 }
  0x89   :  { %76 = vst.msk [vmem:[%s159_s3] sm:$0xff] %vm75_vm1, %v66_v7 }
  0x8a   :  { %78 = vst.msk [vmem:[%s159_s3 + $0x10] sm:$0xff] %vm75_vm1, %v71_v8 }
  0x8e   :  { %v67_v9 = vpop.f32.mrf.mxu0  ;;  %v72_v10 = vpop.f32.mrf.mxu1 }
  0x8f   :  { %v68_v11 = vadd.f32 %v108_v4, %v67_v9  ;;  %v73_v12 = vadd.f32 %v108_v4, %v72_v10 }
  0x91   :  { %77 = vst.msk [vmem:[%s159_s3 + $0x8] sm:$0xff] %vm75_vm1, %v68_v11 }
  0x92   :  { %79 = vst.msk [vmem:[%s159_s3 + $0x18] sm:$0xff] %vm75_vm1, %v73_v12 }

// kernel: discrete_vae_forward.16
= control target key start
LH: loop header
LB: loop body
LE: loop exit
PB: predicated region body
PF: predicated region fallthrough
CT: control target
= control target key end

     0   :  { %v26_v0 = vlaneseq  ;;  %vm2038_vm0 = vcmask 130048   ;;  %v2067_v33 = vmov 0  ;;  %v2069_v38 = vmov 0  ;;  %s2026_s1 = inlined_call_operand.vmem [shape: f32[144,16], index: 1, kind: input, shape index: {}]   ;;  %s2027_s0 = inlined_call_operand.vmem [shape: f32[48,16], index: 0, kind: input, shape index: {}]   ;;  %s2028_s2 = inlined_call_operand.vmem [shape: f32[1,16], index: 2, kind: input, shape index: {}]   ;;  %s2029_s3 = inlined_call_operand.vmem [shape: f32[144,16], index: 3, kind: input, shape index: {}]   ;;  %s2030_s4 = inlined_call_operand.vmem [shape: f32[1,16], index: 4, kind: input, shape index: {}]   ;;  %s2031_s6 = inlined_call_operand.vmem [shape: f32[1,16], index: 6, kind: input, shape index: {}]   ;;  %s2032_s5 = inlined_call_operand.vmem [shape: f32[16,16], index: 5, kind: input, shape index: {}]   ;;  %s2033_s7 = inlined_call_operand.vmem [shape: f32[32,16], index: 7, kind: output, shape index: {}]  }
   0x1   :  { %v90_v1 = vld [vmem:[%s2026_s1 + $0x18] sm:$0xff]  ;;  %v89_v2 = vld [vmem:[%s2026_s1 + $0x10] sm:$0xff]  ;;  %v199_v4 = vld [vmem:[%s2026_s1 + $0x28] sm:$0xff]  ;;  %v2075_v48 = vmov 0  ;;  %v2077_v50 = vmov 0  ;;  %v2079_v55 = vmov 0 }
   0x2   :  { %118 = vmatpush.msra.mxu0 %v90_v1  ;;  %1279 = vmatpush.msra.mxu3 %v90_v1  ;;  %v1336_v3 = vshrl.u32 %v26_v0, 7  ;;  %v262_v5 = vld [vmem:[%s2026_s1 + $0x38] sm:$0xff]  ;;  %v198_v6 = vld [vmem:[%s2026_s1 + $0x20] sm:$0xff]  ;;  %v72_v7 = vld [vmem:[%s2026_s1 + $0x8] sm:$0xff]  ;;  %v2081_v60 = vmov 0  ;;  %v2085_v63 = vmov 0 }
   0x3   :  { %1283 = vmatpush.msra.mxu2 %v199_v4  ;;  %v71_v11 = vld [vmem:[%s2026_s1] sm:$0xff]  ;;  %v261_v13 = vld [vmem:[%s2026_s1 + $0x30] sm:$0xff]  ;;  %1281 = vmatpush.msra.mxu1 %v72_v7  ;;  %v447_v31 = vld [vmem:[%s2026_s1 + $0x68] sm:$0xff] }
   0x4   :  { %119 = vmatpush.msra.mxu0 %v89_v2  ;;  %v31_v8 = vshra.s32 %v1336_v3, 2  ;;  %1280 = vmatpush.msra.mxu3 %v89_v2  ;;  %v28_v9 = vadd.s32 8, %v1336_v3  ;;  %v39_v10 = vand.u32 3, %v1336_v3  ;;  %v29_v12 = vadd.s32 16, %v1336_v3  ;;  %v73_v15 = vld [vmem:[%s2027_s0 + $0x4] sm:$0xff]  ;;  %v1380_v22 = vld [vmem:[%s2027_s0 + $0xc] sm:$0xff] }
   0x5   :  { %1284 = vmatpush.msra.mxu2 %v198_v6  ;;  %v1372_v20 = vadd.s32 24, %v1336_v3  ;;  %1282 = vmatpush.msra.mxu1 %v71_v11  ;;  %v1391_v26 = vld [vmem:[%s2027_s0 + $0xd] sm:$0xff]  ;;  %v510_v34 = vld [vmem:[%s2026_s1 + $0x78] sm:$0xff]  ;;  %v43_v37 = vld [vmem:[%s2027_s0 + $0x3] sm:$0xff]  ;;  %v2087_v3 = vmov 0 }
   0x6   :  { %289 = vmatpush.msrb.mxu3 %v262_v5  ;;  %v1360_v14 = vand.u32 3, %v31_v8  ;;  %v32_v16 = vshra.s32 %v28_v9, 2  ;;  %v40_v17 = vand.u32 3, %v28_v9  ;;  %159 = vmatpush.msrb.mxu0 %v72_v7  ;;  %vm1367_vm1 = vcmp.ge.s32.totalorder %v39_v10, 1  ;;  %v1412_v30 = vld [vmem:[%s2027_s0 + $0xb] sm:$0xff]  ;;  %v376_v35 = vld [vmem:[%s2026_s1 + $0x58] sm:$0xff] }
   0x7   :  { %v33_v19 = vshra.s32 %v29_v12, 2  ;;  %v41_v24 = vand.u32 3, %v29_v12  ;;  %474 = vmatpush.msrb.mxu2 %v447_v31  ;;  %v34_v40 = vshra.s32 %v1372_v20, 2  ;;  %v446_v41 = vld [vmem:[%s2026_s1 + $0x60] sm:$0xff]  ;;  %403 = vmatpush.msrb.mxu1 %v376_v35  ;;  %v375_v44 = vld [vmem:[%s2026_s1 + $0x50] sm:$0xff]  ;;  %v42_v52 = vand.u32 3, %v1372_v20 }
   0x8   :  { %290 = vmatpush.msrb.mxu3 %v261_v13  ;;  %vm2037_vm2 = vcmp.ge.s32.totalorder %v1360_v14, 1  ;;  %v1375_v21 = vand.u32 3, %v32_v16  ;;  %vm1382_vm3 = vcmp.lt.s32.totalorder %v40_v17, 3  ;;  %160 = vmatpush.msrb.mxu0 %v71_v11  ;;  %vm1393_vm4 = vcmp.ge.s32.totalorder %v40_v17, 1  ;;  %v1473_v45 = vld [vmem:[%s2027_s0 + $0x14] sm:$0xff]  ;;  %v313_v53 = vld [vmem:[%s2026_s1 + $0x48] sm:$0xff] }
   0x9   :  { %v85_v25 = vsel %vm2037_vm2, %v73_v15, 0.0  ;;  %v1397_v28 = vand.u32 3, %v33_v19  ;;  %vm1405_vm6 = vmand %vm2037_vm2, %vm1367_vm1  ;;  %vm1450_vm10 = vcmp.lt.s32.totalorder %v41_v24, 3  ;;  %vm1462_vm11 = vcmp.ge.s32.totalorder %v41_v24, 1  ;;  %v1480_v47 = vld [vmem:[%s2027_s0 + $0x15] sm:$0xff]  ;;  %475 = vmatpush.msrb.mxu2 %v446_v41  ;;  %404 = vmatpush.msrb.mxu1 %v375_v44  ;;  %v312_v57 = vld [vmem:[%s2026_s1 + $0x40] sm:$0xff] }
   0xa   :  { %1203 = vmatmul.msk.f32.vlgmr.msra.gmra.mxu0 %vm2038_vm0, %v85_v25  ;;  %vm2035_vm5 = vcmp.ge.s32.totalorder %v1375_v21, 1  ;;  %v67_v46 = vsel %vm1405_vm6, %v43_v37, 0.0  ;;  %v1493_v49 = vld [vmem:[%s2027_s0 + $0x13] sm:$0xff]  ;;  %v1503_v51 = vand.u32 3, %v34_v40  ;;  %vm1514_vm14 = vcmp.lt.s32.totalorder %v39_v10, 3  ;;  %v174_v59 = vld [vmem:[%s2027_s0 + $0x5] sm:$0xff] }
   0xb   :  { %v86_v32 = vsel %vm2035_vm5, %v1380_v22, 0.0  ;;  %vm1424_vm7 = vmand %vm2035_vm5, %vm1382_vm3  ;;  %226 = vmatpush.msra.mxu0 %v199_v4  ;;  %vm2034_vm9 = vcmp.ge.s32.totalorder %v1397_v28, 1  ;;  %v2080_v55 = vsel %vm1514_vm14, 4294967295, %v2079_v55  ;;  %v509_v62 = vld [vmem:[%s2026_s1 + $0x70] sm:$0xff]  ;;  %v1557_v0 = vld [vmem:[%s2027_s0 + $0x1c] sm:$0xff]  ;;  %v2095_v12 = vmov 0 }
   0xc   :  { %v2068_v33 = vsel %vm1424_vm7, 4294967295, %v2067_v33  ;;  %1204 = vmatmul.msk.f32.vlgmr.msra.gmra.mxu3 %vm2038_vm0, %v86_v32  ;;  %v195_v36 = vsel %vm1424_vm7, %v1391_v26, 0.0  ;;  %vm1445_vm8 = vmand %vm2035_vm5, %vm1393_vm4  ;;  %v87_v54 = vsel %vm2034_vm9, %v1473_v45, 0.0  ;;  %vm1541_vm5 = vcmp.lt.s32.totalorder %v42_v52, 3  ;;  %v1564_v2 = vld [vmem:[%s2027_s0 + $0x1d] sm:$0xff]  ;;  %v245_v11 = vld [vmem:[%s2027_s0 + $0x7] sm:$0xff] }
   0xd   :  { %v2070_v38 = vsel %vm1445_vm8, 4294967295, %v2069_v38  ;;  %1212 = vmatmul.msk.f32.vlgmr.msra.gmra.mxu2 %vm2038_vm0, %v195_v36  ;;  %v68_v42 = vsel %vm1445_vm8, %v1412_v30, 0.0  ;;  %227 = vmatpush.msra.mxu0 %v198_v6  ;;  %vm1486_vm12 = vmand %vm2034_vm9, %vm1450_vm10  ;;  %v46_v4 = vld [vmem:[%s2027_s0 + $0x1b] sm:$0xff]  ;;  %v577_v6 = vld [vmem:[%s2026_s1 + $0x88] sm:$0xff]  ;;  %vm2044_vm8 = vcmp.lt.s32.totalorder %v1360_v14, 3  ;;  %v257_v16 = vsel %vm1367_vm1, %v245_v11, 0.0 }
   0xe   :  { %1208 = vmatmul.msk.f32.vlgmr.msra.gmra.mxu1 %vm2038_vm0, %v68_v42  ;;  %537 = vmatpush.msra.mxu3 %v510_v34  ;;  %v2076_v48 = vsel %vm1486_vm12, 4294967295, %v2075_v48  ;;  %vm1499_vm13 = vmand %vm2034_vm9, %vm1462_vm11  ;;  %v196_v56 = vsel %vm1486_vm12, %v1480_v47, 0.0  ;;  %vm2043_vm9 = vcmp.ge.s32.totalorder %v1503_v51, 1  ;;  %vm1549_vm12 = vcmp.ge.s32.totalorder %v42_v52, 1  ;;  %v576_v10 = vld [vmem:[%s2026_s1 + $0x80] sm:$0xff]  ;;  %v1618_v13 = vld [vmem:[%s2027_s0 + $0x8] sm:$0xff] }
   0xf   :  { %v2078_v50 = vsel %vm1499_vm13, 4294967295, %v2077_v50  ;;  %v69_v58 = vsel %vm1499_vm13, %v1493_v49, 0.0  ;;  %vm1536_vm15 = vmand %vm2037_vm2, %vm1514_vm14  ;;  %v2086_v63 = vsel %vm1549_vm12, 4294967295, %v2085_v63  ;;  %v88_v7 = vsel %vm2043_vm9, %v1557_v0, 0.0  ;;  %v359_v15 = vld [vmem:[%s2027_s0 + $0x9] sm:$0xff]  ;;  %v247_v35 = vld [vmem:[%s2027_s0 + $0x17] sm:$0xff] }
  0x10   :  { %v2082_v60 = vsel %vm1536_vm15, 4294967295, %v2081_v60  ;;  %538 = vmatpush.msra.mxu3 %v509_v62  ;;  %v194_v1 = vsel %vm1536_vm15, %v174_v59, 0.0  ;;  %vm1570_vm2 = vmand %vm2043_vm9, %vm1541_vm5  ;;  %vm2091_vm13 = vcmask 130048   ;;  %v371_v19 = vsel %vm1514_vm14, %v359_v15, 0.0  ;;  %v246_v20 = vld [vmem:[%s2027_s0 + $0xf] sm:$0xff]  ;;  %v1682_v37 = vld [vmem:[%s2027_s0 + $0x18] sm:$0xff] }
  0x11   :  { %v2088_v3 = vsel %vm1570_vm2, 4294967295, %v2087_v3  ;;  %v197_v8 = vsel %vm1570_vm2, %v1564_v2, 0.0  ;;  %vm2092_vm7 = vmmov %vm2091_vm13  ;;  %v2100_v24 = vmov 0  ;;  %v1650_v25 = vld [vmem:[%s2027_s0 + $0x10] sm:$0xff]  ;;  %v258_v31 = vsel %vm1393_vm4, %v246_v20, 0.0  ;;  %2107 = vst [vmem:[#allocation3_spill] sm:$0xff] %v1682_v37 }
  0x12   :  { %1207 = vmatmul.msk.f32.vlgmr.msrb.gmra.mxu0 %vm2038_vm0, %v67_v46  ;;  %vm2093_vm15 = vmmov %vm2092_vm7  ;;  %v2105_v36 = vmov 0  ;;  %v361_v40 = vld [vmem:[%s2027_s0 + $0x19] sm:$0xff]  ;;  %v259_v41 = vsel %vm1462_vm11, %v247_v35, 0.0  ;;  %v2111_v52 = vmov 0  ;;  %v1082_v29 = vld [vmem:[%s2029_s3 + $0x88] sm:$0xff] }
  0x13   :  { %340 = vmatpush.msrb.mxu0 %v313_v53  ;;  %v373_v44 = vsel %vm1450_vm10, %v361_v40, 0.0  ;;  %v248_v46 = vld [vmem:[%s2027_s0 + $0x1f] sm:$0xff] }
  0x14   :  { %1205 = vmatmul.msk.f32.gmra.mxu3 %vm2038_vm0, %v87_v54  ;;  %v1716_v53 = vld [vmem:[%s2027_s0 + $0x20] sm:$0xff] }
  0x15   :  { %1213 = vmatmul.msk.f32.gmra.mxu2 %vm2038_vm0, %v196_v56  ;;  %341 = vmatpush.msrb.mxu0 %v312_v57  ;;  %2113 = vst [vmem:[#allocation4_spill] sm:$0xff] %v1716_v53  ;;  %v362_v54 = vld [vmem:[%s2027_s0 + $0x21] sm:$0xff]  ;;  %v260_v56 = vsel %vm1549_vm12, %v248_v46, 0.0  ;;  %v1289_v46 = vmov 0.0  }
  0x16   :  { %1209 = vmatmul.msk.f32.gmra.mxu1 %vm2038_vm0, %v69_v58  ;;  %vm1581_vm0 = vmand %vm2043_vm9, %vm1549_vm12  ;;  %vm2046_vm9 = vcmp.lt.s32.totalorder %v1375_v21, 3  ;;  %v374_v58 = vsel %vm1541_vm5, %v362_v54, 0.0  ;;  %v654_v54 = vld [vmem:[%s2029_s3 + $0x8] sm:$0xff] }
  0x17   :  { %v70_v9 = vsel %vm1581_vm0, %v46_v4, 0.0  ;;  %732 = vmatpush.msra.mxu2 %v654_v54  ;;  %v862_v54 = vld [vmem:[%s2029_s3 + $0x48] sm:$0xff] }
  0x1a   :  { %1211 = vmatmul.msk.f32.vlgmr.msra.gmra.mxu0 %vm2091_vm13, %v194_v1  ;;  %vm2094_vm13 = vmmov %vm2092_vm7 }
  0x1b   :  { %604 = vmatpush.msra.mxu0 %v577_v6  ;;  %v2130_v6 = vmov 0 }
  0x1c   :  { %1206 = vmatmul.msk.f32.gmra.mxu3 %vm2092_vm7, %v88_v7  ;;  %vm1611_vm7 = vmand %vm2044_vm8, %vm1367_vm1  ;;  %v559_v7 = vld [vmem:[%s2027_s0 + $0x25] sm:$0xff] }
  0x1d   :  { %1214 = vmatmul.msk.f32.gmra.mxu2 %vm2093_vm15, %v197_v8  ;;  %605 = vmatpush.msra.mxu0 %v576_v10  ;;  %v2096_v12 = vsel %vm1611_vm7, 4294967295, %v2095_v12  ;;  %v442_v17 = vsel %vm1611_vm7, %v1412_v30, 0.0  ;;  %vm2097_vm15 = vmmov %vm2094_vm13  ;;  %v360_v30 = vld [vmem:[%s2027_s0 + $0x11] sm:$0xff]  ;;  %v2135_v8 = vmov 0 }
  0x1e   :  { %1210 = vmatmul.msk.f32.gmra.mxu1 %vm2094_vm13, %v70_v9  ;;  %vm2098_vm8 = vmmov %vm2094_vm13  ;;  %v372_v34 = vsel %vm1382_vm3, %v360_v30, 0.0 }
  0x1f   :  { %vm2099_vm2 = vmmov %vm2098_vm8 }
  0x20   :  { %vm2104_vm7 = vmmov %vm2099_vm2 }
  0x22   :  { %1219 = vmatmul.msk.f32.vlgmr.msrb.gmra.mxu0 %vm2097_vm15, %v1618_v13  ;;  %vm1643_vm15 = vmand %vm2046_vm9, %vm1393_vm4 }
  0x23   :  { %v2101_v24 = vsel %vm1643_vm15, 4294967295, %v2100_v24  ;;  %v443_v32 = vsel %vm1643_vm15, %v1493_v49, 0.0  ;;  %vm2103_vm9 = vmmov %vm2099_vm2  ;;  %v425_v49 = vld [vmem:[%s2027_s0 + $0x23] sm:$0xff] }
  0x24   :  { %1215 = vmatmul.msk.f32.vlgmr.msrb.gmra.mxu3 %vm2094_vm13, %v257_v16  ;;  %vm2048_vm13 = vcmp.lt.s32.totalorder %v1397_v28, 3  ;;  %vm2110_vm15 = vmmov %vm2104_vm7 }
  0x25   :  { %1227 = vmatmul.msk.f32.vlgmr.msrb.gmra.mxu2 %vm2098_vm8, %v442_v17  ;;  %vm2102_vm8 = vmmov %vm2099_vm2 }
  0x26   :  { %1223 = vmatmul.msk.f32.vlgmr.msrb.gmra.mxu1 %vm2099_vm2, %v371_v19  ;;  %v664_v19 = vld [vmem:[%s2029_s3 + $0x18] sm:$0xff] }
  0x27   :  { %691 = vmatpush.msra.mxu1 %v664_v19 }
  0x2a   :  { %1220 = vmatmul.msk.f32.gmra.mxu0 %vm2099_vm2, %v1650_v25  ;;  %vm1675_vm2 = vmand %vm2048_vm13, %vm1462_vm11 }
  0x2b   :  { %v2106_v36 = vsel %vm1675_vm2, 4294967295, %v2105_v36  ;;  %v444_v42 = vsel %vm1675_vm2, %v46_v4, 0.0  ;;  %vm2109_vm13 = vmmov %vm2104_vm7  ;;  %v1141_v4 = vld [vmem:[%s2032_s5 + $0x8] sm:$0xff] }
  0x2c   :  { %1216 = vmatmul.msk.f32.gmra.mxu3 %vm2102_vm8, %v258_v31  ;;  %vm2050_vm8 = vcmp.lt.s32.totalorder %v1503_v51, 3 }
  0x2d   :  { %1228 = vmatmul.msk.f32.gmra.mxu2 %vm2103_vm9, %v443_v32  ;;  %vm2108_vm9 = vmmov %vm2104_vm7 }
  0x2e   :  { %1224 = vmatmul.msk.f32.gmra.mxu1 %vm2104_vm7, %v372_v34 }
  0x32   :  { %1221 = vmatmul.msk.f32.gmra.mxu0 %vm2108_vm9, %v1682_v37  ;;  %vm1709_vm9 = vmand %vm2050_vm8, %vm1549_vm12 }
  0x33   :  { %v2112_v52 = vsel %vm1709_vm9, 4294967295, %v2111_v52  ;;  %v445_v57 = vsel %vm1709_vm9, %v425_v49, 0.0  ;;  %v663_v49 = vld [vmem:[%s2029_s3 + $0x10] sm:$0xff] }
  0x34   :  { %1217 = vmatmul.msk.f32.gmra.mxu3 %vm2104_vm7, %v259_v41  ;;  %692 = vmatpush.msra.mxu1 %v663_v49 }
  0x35   :  { %1229 = vmatmul.msk.f32.gmra.mxu2 %vm2109_vm13, %v444_v42  ;;  %vm2115_vm13 = vmmov %vm2104_vm7 }
  0x36   :  { %1225 = vmatmul.msk.f32.gmra.mxu1 %vm2110_vm15, %v373_v44  ;;  %vm2114_vm15 = vmmov %vm2104_vm7  ;;  %vm2116_vm7 = vcmp.lt.s32.totalorder %v1360_v14, 3 }
  0x37   :  { %vm1734_vm8 = vmand %vm2116_vm7, %vm1514_vm14  ;;  %889 = vmatpush.msrb.mxu1 %v862_v54 }
  0x38   :  { %vm2119_vm2 = vmmov %vm2115_vm13  ;;  %v572_v62 = vsel %vm1734_vm8, %v1391_v26, 0.0 }
  0x39   :  { %vm2120_vm12 = vmmov %vm2119_vm2  ;;  %637 = vst.msk [vmem:[#allocation2 + $0x10] sm:$0xff] %vm2119_vm2, %v1289_v46 }
  0x3a   :  { %1222 = vmatmul.msk.f32.gmra.mxu0 %vm2114_vm15, %v1716_v53  ;;  %vm2121_vm15 = vmmov %vm2116_vm7  ;;  %vm2124_vm7 = vcmp.lt.s32.totalorder %v1375_v21, 3 }
  0x3b   :  { %v505_v1 = vsel %vm2121_vm15, %v1380_v22, 0.0  ;;  %vm2123_vm9 = vmmov %vm2119_vm2 }
  0x3c   :  { %1218 = vmatmul.msk.f32.gmra.mxu3 %vm2115_vm13, %v260_v56  ;;  %vm2122_vm13 = vmmov %vm2119_vm2  ;;  %v756_v56 = vld [vmem:[%s2029_s3 + $0x28] sm:$0xff] }
  0x3d   :  { %1230 = vmatmul.msk.f32.gmra.mxu2 %vm2119_vm2, %v445_v57  ;;  %vm1752_vm14 = vmand %vm2124_vm7, %vm1382_vm3  ;;  %783 = vmatpush.msrb.mxu3 %v756_v56 }
  0x3e   :  { %1226 = vmatmul.msk.f32.gmra.mxu1 %vm2120_vm12, %v374_v58  ;;  %v573_v26 = vsel %vm1752_vm14, %v1480_v47, 0.0  ;;  %vm2127_vm12 = vmmov %vm2124_vm7 }
  0x3f   :  { %v506_v22 = vsel %vm2127_vm12, %v1473_v45, 0.0  ;;  %vm2128_vm15 = vmmov %vm2119_vm2 }
  0x40   :  { %vm2133_vm12 = vmmov %vm2119_vm2 }
  0x42   :  { %1235 = vmatmul.msk.f32.vlgmr.msra.gmra.mxu0 %vm2122_vm13, %v572_v62  ;;  %v811_v62 = vld [vmem:[%s2029_s3 + $0x38] sm:$0xff] }
  0x43   :  { %838 = vmatpush.msrb.mxu0 %v811_v62 }
  0x44   :  { %1231 = vmatmul.msk.f32.vlgmr.msra.gmra.mxu3 %vm2123_vm9, %v505_v1  ;;  %vm2129_vm9 = vcmp.lt.s32.totalorder %v1397_v28, 3 }
  0x45   :  { %vm1768_vm13 = vmand %vm2129_vm9, %vm1450_vm10 }
  0x46   :  { %v2131_v6 = vsel %vm1768_vm13, 4294967295, %v2130_v6  ;;  %v574_v47 = vsel %vm1768_vm13, %v1564_v2, 0.0  ;;  %vm2132_vm7 = vmmov %vm2129_vm9 }
  0x47   :  { %v507_v45 = vsel %vm2132_vm7, %v1557_v0, 0.0  ;;  %v496_v0 = vld [vmem:[%s2027_s0 + $0x24] sm:$0xff]  ;;  %vm2149_vm13 = vmmov %vm2119_vm2 }
  0x4a   :  { %1236 = vmatmul.msk.f32.gmra.mxu0 %vm2119_vm2, %v573_v26 }
  0x4c   :  { %1232 = vmatmul.msk.f32.gmra.mxu3 %vm2128_vm15, %v506_v22  ;;  %vm2134_vm15 = vcmp.lt.s32.totalorder %v1503_v51, 3 }
  0x4d   :  { %vm1787_vm9 = vmand %vm2134_vm15, %vm1541_vm5 }
  0x4e   :  { %v2136_v8 = vsel %vm1787_vm9, 4294967295, %v2135_v8  ;;  %v575_v2 = vsel %vm1787_vm9, %v559_v7, 0.0  ;;  %vm2137_vm7 = vmmov %vm2134_vm15  ;;  %v810_v7 = vld [vmem:[%s2029_s3 + $0x30] sm:$0xff] }
  0x4f   :  { %v508_v9 = vsel %vm2137_vm7, %v496_v0, 0.0  ;;  %vm2139_vm15 = vmmov %vm2119_vm2  ;;  %839 = vmatpush.msrb.mxu0 %v810_v7 }
  0x50   :  { %635 = vst.msk [vmem:[#allocation2] sm:$0xff] %vm2139_vm15, %v1289_v46  ;;  %vm2140_vm7 = vmmov %vm2119_vm2 }
  0x51   :  { %636 = vst.msk [vmem:[#allocation2 + $0x8] sm:$0xff] %vm2140_vm7, %v1289_v46  ;;  %vm2142_vm15 = vmmov %vm2119_vm2 }
  0x52   :  { %1237 = vmatmul.msk.f32.gmra.mxu0 %vm2133_vm12, %v574_v47  ;;  %vm2138_vm12 = vmmov %vm2119_vm2  ;;  %638 = vst.msk [vmem:[#allocation2 + $0x18] sm:$0xff] %vm2142_vm15, %v1289_v46  ;;  %v653_v47 = vld [vmem:[%s2029_s3] sm:$0xff]  ;;  %vm2145_vm15 = vcmp.ge.s32.totalorder %v1360_v14, 1 }
  0x53   :  { %vm2143_vm7 = vmmov %vm2119_vm2  ;;  %733 = vmatpush.msra.mxu2 %v653_v47 }
  0x54   :  { %1233 = vmatmul.msk.f32.gmra.mxu3 %vm2119_vm2, %v507_v45  ;;  %639 = vst.msk [vmem:[#allocation2 + $0x20] sm:$0xff] %vm2143_vm7, %v1289_v46  ;;  %v755_v45 = vld [vmem:[%s2029_s3 + $0x20] sm:$0xff]  ;;  %vm2146_vm7 = vnez %v2082_v60  ;;  %vm2148_vm9 = vmmov %vm2119_vm2 }
  0x55   :  { %784 = vmatpush.msrb.mxu3 %v755_v45 }
  0x5a   :  { %1238 = vmatmul.msk.f32.gmra.mxu0 %vm2138_vm12, %v575_v2  ;;  %vm2141_vm12 = vmmov %vm2119_vm2 }
  0x5b   :  { %640 = vst.msk [vmem:[#allocation2 + $0x28] sm:$0xff] %vm2141_vm12, %v1289_v46  ;;  %vm2144_vm12 = vmmov %vm2119_vm2 }
  0x5c   :  { %1234 = vmatmul.msk.f32.gmra.mxu3 %vm2119_vm2, %v508_v9 }
  0x87   :  { %v121_v10 = vpop.f32.mrf.mxu0 }
  0x8b   :  { %v165_v20 = vpop.f32.mrf.mxu1 }
  0x8f   :  { %v124_v11 = vpop.f32.mrf.mxu3  ;;  %v162_v15 = vpop.f32.mrf.mxu0 }
  0x90   :  { %v232_v32 = vpop.f32.mrf.mxu2  ;;  %v163_v1 = vadd.f32 %v162_v15, %v121_v10  ;;  %v166_v10 = vadd.f32 %v165_v20, %v124_v11  ;;  %v1842_v20 = vld [vmem:[%s2028_s2] ss:$0 sm:$0xff] }
  0x92   :  { %v242_v49 = vadd.f32 %v232_v32, %v166_v10 }
  0x93   :  { %v168_v34 = vpop.f32.mrf.mxu1 }
  0x97   :  { %v127_v16 = vpop.f32.mrf.mxu3  ;;  %v229_v17 = vpop.f32.mrf.mxu0 }
  0x98   :  { %v235_v41 = vpop.f32.mrf.mxu2  ;;  %v241_v0 = vadd.f32 %v229_v17, %v163_v1  ;;  %v169_v17 = vadd.f32 %v168_v34, %v127_v16  ;;  %v972_v16 = vld [vmem:[%s2029_s3 + $0x68] sm:$0xff] }
  0x99   :  { %999 = vmatpush.msra.mxu3 %v972_v16 }
  0x9b   :  { %v171_v57 = vpop.f32.mrf.mxu1 }
  0x9f   :  { %v1803_v30 = vpop.f32.mrf.mxu3  ;;  %v343_v31 = vpop.f32.mrf.mxu0 }
  0xa0   :  { %v238_v58 = vpop.f32.mrf.mxu2 }
  0xa3   :  { %v406_v2 = vpop.f32.mrf.mxu1 }
  0xa7   :  { %v292_v35 = vpop.f32.mrf.mxu3  ;;  %v346_v40 = vpop.f32.mrf.mxu0 }
  0xa8   :  { %v304_v9 = vadd.f32 %v292_v35, %v241_v0  ;;  %v477_v15 = vpop.f32.mrf.mxu2  ;;  %v243_v35 = vadd.f32 %v235_v41, %v169_v17 }
  0xaa   :  { %v355_v19 = vadd.f32 %v343_v31, %v304_v9 }
  0xab   :  { %v409_v37 = vpop.f32.mrf.mxu1 }
  0xac   :  { %v418_v62 = vadd.f32 %v406_v2, %v355_v19 }
  0xae   :  { %v489_v1 = vadd.f32 %v477_v15, %v418_v62 }
  0xaf   :  { %v295_v42 = vpop.f32.mrf.mxu3  ;;  %v1805_v44 = vpop.f32.mrf.mxu0 }
  0xb0   :  { %v305_v53 = vadd.f32 %v295_v42, %v242_v49  ;;  %v480_v45 = vpop.f32.mrf.mxu2  ;;  %v861_v42 = vld [vmem:[%s2029_s3 + $0x40] sm:$0xff] }
  0xb1   :  { %890 = vmatpush.msrb.mxu1 %v861_v42 }
  0xb2   :  { %v356_v47 = vadd.f32 %v346_v40, %v305_v53  ;;  %v917_v53 = vld [vmem:[%s2029_s3 + $0x58] sm:$0xff]  ;;  %v172_v40 = vadd.f32 %v171_v57, %v1803_v30  ;;  %v916_v57 = vld [vmem:[%s2029_s3 + $0x50] sm:$0xff] }
  0xb3   :  { %944 = vmatpush.msrb.mxu2 %v917_v53  ;;  %v412_v41 = vpop.f32.mrf.mxu1  ;;  %v1027_v30 = vld [vmem:[%s2029_s3 + $0x78] sm:$0xff] }
  0xb4   :  { %v419_v31 = vadd.f32 %v409_v37, %v356_v47  ;;  %v244_v15 = vadd.f32 %v238_v58, %v172_v40  ;;  %1054 = vmatpush.msra.mxu0 %v1027_v30  ;;  %v1026_v58 = vld [vmem:[%s2029_s3 + $0x70] sm:$0xff] }
  0xb5   :  { %945 = vmatpush.msrb.mxu2 %v916_v57 }
  0xb6   :  { %1055 = vmatpush.msra.mxu0 %v1026_v58 }
  0xb7   :  { %v298_v26 = vpop.f32.mrf.mxu3  ;;  %v1825_v22 = vpop.f32.mrf.mxu0 }
  0xb8   :  { %v306_v32 = vadd.f32 %v298_v26, %v243_v35  ;;  %v490_v26 = vadd.f32 %v480_v45, %v419_v31  ;;  %v483_v49 = vpop.f32.mrf.mxu2 }
  0xba   :  { %v357_v2 = vadd.f32 %v1805_v44, %v306_v32  ;;  %v971_v44 = vld [vmem:[%s2029_s3 + $0x60] sm:$0xff] }
  0xbb   :  { %1000 = vmatpush.msra.mxu3 %v971_v44 }
  0xbc   :  { %v420_v54 = vadd.f32 %v412_v41, %v357_v2 }
  0xbf   :  { %v301_v46 = vpop.f32.mrf.mxu3  ;;  %v607_v56 = vpop.f32.mrf.mxu0 }
  0xc0   :  { %v486_v60 = vpop.f32.mrf.mxu2 }
  0xc7   :  { %v540_v7 = vpop.f32.mrf.mxu3  ;;  %v610_v34 = vpop.f32.mrf.mxu0 }
  0xc8   :  { %v552_v11 = vadd.f32 %v540_v7, %v489_v1  ;;  %v491_v1 = vadd.f32 %v483_v49, %v420_v54  ;;  %v415_v7 = vpop.f32.mrf.mxu1 }
  0xca   :  { %v619_v0 = vadd.f32 %v607_v56, %v552_v11  ;;  %v307_v56 = vadd.f32 %v301_v46, %v244_v15 }
  0xcc   :  { %v627_v37 = vadd.f32 %v1842_v20, %v619_v0  ;;  %v358_v47 = vadd.f32 %v1825_v22, %v307_v56 }
  0xce   :  { %v631_v9 = vmax.f32 %v627_v37, 0.0  ;;  %v421_v40 = vadd.f32 %v415_v7, %v358_v47 }
  0xcf   :  { %v543_v10 = vpop.f32.mrf.mxu3  ;;  %v613_v17 = vpop.f32.mrf.mxu0 }
  0xd0   :  { %641 = vst.msk [vmem:[#allocation2 + $0x8] sm:$0xff] %vm2144_vm12, %v631_v9  ;;  %v553_v19 = vadd.f32 %v543_v10, %v490_v26  ;;  %vm2147_vm12 = vmmov %vm2119_vm2  ;;  %v492_v26 = vadd.f32 %v486_v60, %v421_v40 }
  0xd2   :  { %v620_v62 = vadd.f32 %v610_v34, %v553_v19 }
  0xd4   :  { %v628_v46 = vadd.f32 %v1842_v20, %v620_v62 }
  0xd6   :  { %v632_v45 = vmax.f32 %v628_v46, 0.0 }
  0xd7   :  { %v546_v35 = vpop.f32.mrf.mxu3  ;;  %v655_v11 = vld [vmem:[#allocation2 + $0x4] sm:$0xff]  ;;  %v616_v10 = vpop.f32.mrf.mxu0 }
  0xd8   :  { %v645_v31 = vld [vmem:[#allocation2 + $0x3] sm:$0xff]  ;;  %642 = vst.msk [vmem:[#allocation2 + $0x10] sm:$0xff] %vm2119_vm2, %v632_v45  ;;  %v554_v0 = vadd.f32 %v546_v35, %v491_v1  ;;  %v659_v42 = vsel %vm2145_vm15, %v655_v11, 0.0 }
  0xd9   :  { %v747_v32 = vld [vmem:[#allocation2 + $0x5] sm:$0xff]  ;;  %v649_v53 = vsel %vm1405_vm6, %v645_v31, 0.0  ;;  %1239 = vmatmul.msk.f32.vlgmr.msra.gmra.mxu1 %vm2147_vm12, %v659_v42  ;;  %vm2151_vm6 = vcmp.ge.s32.totalorder %v1375_v21, 1 }
  0xda   :  { %v751_v16 = vsel %vm2146_vm7, %v747_v32, 0.0  ;;  %v802_v34 = vld [vmem:[#allocation2 + $0x7] sm:$0xff]  ;;  %1243 = vmatmul.msk.f32.vlgmr.msra.gmra.mxu2 %vm2148_vm9, %v649_v53  ;;  %v621_v37 = vadd.f32 %v613_v17, %v554_v0  ;;  %1109 = vmatpush.msra.mxu1 %v1082_v29  ;;  %vm2153_vm9 = vnez %v2068_v33 }
  0xdb   :  { %v806_v22 = vsel %vm1367_vm1, %v802_v34, 0.0  ;;  %1247 = vmatmul.msk.f32.vlgmr.msrb.gmra.mxu3 %vm2119_vm2, %v751_v16  ;;  %vm2150_vm1 = vmmov %vm2119_vm2  ;;  %v857_v53 = vld [vmem:[#allocation2 + $0x8] sm:$0xff]  ;;  %1172 = vmatpush.msra.mxu2 %v1141_v4 }
  0xdc   :  { %1251 = vmatmul.msk.f32.vlgmr.msrb.gmra.mxu0 %vm2149_vm13, %v806_v22  ;;  %v629_v41 = vadd.f32 %v1842_v20, %v621_v37  ;;  %vm2152_vm13 = vnez %v2070_v38  ;;  %vm2154_vm15 = vmmov %vm2150_vm1 }
  0xdd   :  { %vm2155_vm7 = vmmov %vm2150_vm1 }
  0xde   :  { %v633_v2 = vmax.f32 %v629_v41, 0.0  ;;  %vm2156_vm12 = vmmov %vm2150_vm1 }
  0xdf   :  { %v549_v9 = vpop.f32.mrf.mxu3  ;;  %v656_v18 = vld [vmem:[#allocation2 + $0xc] sm:$0xff]  ;;  %vm2157_vm2 = vmmov %vm2150_vm1 }
  0xe0   :  { %v646_v15 = vld [vmem:[#allocation2 + $0xb] sm:$0xff]  ;;  %643 = vst.msk [vmem:[#allocation2 + $0x18] sm:$0xff] %vm2150_vm1, %v633_v2  ;;  %v555_v49 = vadd.f32 %v549_v9, %v492_v26  ;;  %v660_v54 = vsel %vm2151_vm6, %v656_v18, 0.0  ;;  %vm2158_vm6 = vcmp.ge.s32.totalorder %v1397_v28, 1 }
  0xe1   :  { %v1888_v19 = vld [vmem:[#allocation2 + $0xd] sm:$0xff]  ;;  %v650_v56 = vsel %vm2152_vm13, %v646_v15, 0.0  ;;  %1240 = vmatmul.msk.f32.gmra.mxu1 %vm2154_vm15, %v660_v54  ;;  %vm2159_vm13 = vnez %v2078_v50  ;;  %vm2162_vm15 = vmmov %vm2150_vm1  ;;  %v1081_v50 = vld [vmem:[%s2029_s3 + $0x80] sm:$0xff] }
  0xe2   :  { %v752_v62 = vsel %vm2153_vm9, %v1888_v19, 0.0  ;;  %v803_v30 = vld [vmem:[#allocation2 + $0xf] sm:$0xff]  ;;  %1244 = vmatmul.msk.f32.gmra.mxu2 %vm2155_vm7, %v650_v56  ;;  %v622_v44 = vadd.f32 %v616_v10, %v555_v49  ;;  %vm2161_vm9 = vmmov %vm2150_vm1  ;;  %1110 = vmatpush.msra.mxu1 %v1081_v50  ;;  %v1077_v26 = vsel %vm1734_vm8, %v1888_v19, 0.0 }
  0xe3   :  { %v807_v57 = vsel %vm1393_vm4, %v803_v30, 0.0  ;;  %1248 = vmatmul.msk.f32.gmra.mxu3 %vm2156_vm12, %v752_v62  ;;  %vm2160_vm4 = vnez %v2076_v48  ;;  %vm2163_vm7 = vmmov %vm2150_vm1  ;;  %v908_v42 = vld [vmem:[#allocation2 + $0x9] sm:$0xff] }
  0xe4   :  { %1252 = vmatmul.msk.f32.gmra.mxu0 %vm2157_vm2, %v807_v57  ;;  %v630_v38 = vadd.f32 %v1842_v20, %v622_v44  ;;  %vm2164_vm12 = vmmov %vm2150_vm1  ;;  %vm2165_vm2 = vcmp.ge.s32.totalorder %v1503_v51, 1  ;;  %v858_v34 = vld [vmem:[#allocation2 + $0x10] sm:$0xff] }
  0xe6   :  { %v634_v58 = vmax.f32 %v630_v38, 0.0 }
  0xe7   :  { %v657_v46 = vld [vmem:[#allocation2 + $0x14] sm:$0xff] }
  0xe8   :  { %v647_v17 = vld [vmem:[#allocation2 + $0x13] sm:$0xff]  ;;  %644 = vst.msk [vmem:[#allocation2 + $0x20] sm:$0xff] %vm2150_vm1, %v634_v58  ;;  %v661_v1 = vsel %vm2158_vm6, %v657_v46, 0.0  ;;  %vm2167_vm6 = vmmov %vm2150_vm1 }
  0xe9   :  { %v1905_v33 = vld [vmem:[#allocation2 + $0x15] sm:$0xff]  ;;  %v651_v27 = vsel %vm2159_vm13, %v647_v17, 0.0  ;;  %1241 = vmatmul.msk.f32.gmra.mxu1 %vm2161_vm9, %v661_v1  ;;  %vm2168_vm13 = vnez %v2086_v63  ;;  %vm2170_vm9 = vmmov %vm2150_vm1 }
  0xea   :  { %v753_v47 = vsel %vm2160_vm4, %v1905_v33, 0.0  ;;  %v804_v45 = vld [vmem:[#allocation2 + $0x17] sm:$0xff]  ;;  %1245 = vmatmul.msk.f32.gmra.mxu2 %vm2162_vm15, %v651_v27  ;;  %vm2169_vm4 = vmmov %vm2150_vm1  ;;  %vm2171_vm15 = vnez %v2080_v55  ;;  %v1078_v61 = vsel %vm1752_vm14, %v1905_v33, 0.0 }
  0xeb   :  { %v808_v20 = vsel %vm1462_vm11, %v804_v45, 0.0  ;;  %1249 = vmatmul.msk.f32.gmra.mxu3 %vm2163_vm7, %v753_v47  ;;  %vm2166_vm11 = vnez %v2088_v3  ;;  %v912_v5 = vsel %vm2171_vm15, %v908_v42, 0.0  ;;  %v909_v16 = vld [vmem:[#allocation2 + $0x11] sm:$0xff] }
  0xec   :  { %1253 = vmatmul.msk.f32.gmra.mxu0 %vm2164_vm12, %v808_v20  ;;  %vm2174_vm12 = vnez %v2096_v12  ;;  %v913_v55 = vsel %vm1382_vm3, %v909_v16, 0.0  ;;  %v859_v40 = vld [vmem:[#allocation2 + $0x18] sm:$0xff] }
  0xed   :  { %v967_v3 = vsel %vm2174_vm12, %v646_v15, 0.0  ;;  %vm2185_vm12 = vnez %v2106_v36 }
  0xef   :  { %v658_v7 = vld [vmem:[#allocation2 + $0x1c] sm:$0xff]  ;;  %v1021_v60 = vld [vmem:[#allocation2 + $0x24] sm:$0xff] }
  0xf0   :  { %v648_v48 = vld [vmem:[#allocation2 + $0x1b] sm:$0xff]  ;;  %v662_v11 = vsel %vm2165_vm2, %v658_v7, 0.0  ;;  %vm2175_vm2 = vcmp.lt.s32.totalorder %v1360_v14, 3  ;;  %v966_v29 = vld [vmem:[#allocation2 + $0x23] sm:$0xff] }
  0xf1   :  { %v750_v35 = vld [vmem:[#allocation2 + $0x1d] sm:$0xff]  ;;  %v652_v31 = vsel %vm1581_vm0, %v648_v48, 0.0  ;;  %1242 = vmatmul.msk.f32.gmra.mxu1 %vm2150_vm1, %v662_v11  ;;  %vm2172_vm0 = vmmov %vm2150_vm1  ;;  %v1022_v63 = vsel %vm2175_vm2, %v656_v18, 0.0  ;;  %vm2186_vm2 = vcmp.lt.s32.totalorder %v1397_v28, 3 }
  0xf2   :  { %v754_v43 = vsel %vm2166_vm11, %v750_v35, 0.0  ;;  %v805_v32 = vld [vmem:[#allocation2 + $0x1f] sm:$0xff]  ;;  %1246 = vmatmul.msk.f32.gmra.mxu2 %vm2167_vm6, %v652_v31  ;;  %vm2173_vm7 = vmmov %vm2172_vm0 }
  0xf3   :  { %v809_v0 = vsel %vm2168_vm13, %v805_v32, 0.0  ;;  %1250 = vmatmul.msk.f32.gmra.mxu3 %vm2169_vm4, %v754_v43  ;;  %vm2176_vm11 = vmmov %vm2172_vm0  ;;  %vm2180_vm4 = vnez %v2101_v24  ;;  %v910_v22 = vld [vmem:[#allocation2 + $0x19] sm:$0xff]  ;;  %v969_v24 = vsel %vm2185_vm12, %v648_v48, 0.0  ;;  %v911_v37 = vld [vmem:[#allocation2 + $0x21] sm:$0xff]  ;;  %vm2198_vm12 = vnez %v2136_v8 }
  0xf4   :  { %1254 = vmatmul.msk.f32.gmra.mxu0 %vm2170_vm9, %v809_v0  ;;  %vm2177_vm1 = vmmov %vm2172_vm0  ;;  %v968_v12 = vsel %vm2180_vm4, %v647_v17, 0.0  ;;  %vm2181_vm9 = vcmp.lt.s32.totalorder %v1375_v21, 3  ;;  %v914_v23 = vsel %vm1450_vm10, %v910_v22, 0.0  ;;  %v1024_v21 = vsel %vm2186_vm2, %v658_v7, 0.0  ;;  %v860_v41 = vld [vmem:[#allocation2 + $0x20] sm:$0xff] }
  0xf5   :  { %vm2178_vm6 = vmmov %vm2172_vm0  ;;  %v1023_v14 = vsel %vm2181_vm9, %v657_v46, 0.0  ;;  %v915_v39 = vsel %vm1541_vm5, %v911_v37, 0.0  ;;  %vm2192_vm4 = vcmp.lt.s32.totalorder %v1503_v51, 3  ;;  %v1140_v8 = vld [vmem:[%s2032_s5] sm:$0xff] }
  0xf6   :  { %vm2179_vm13 = vmmov %vm2172_vm0  ;;  %v1025_v28 = vsel %vm2192_vm4, %v1021_v60, 0.0  ;;  %1173 = vmatpush.msra.mxu2 %v1140_v8 }
  0xf7   :  { %vm2182_vm15 = vmmov %vm2172_vm0 }
  0xf8   :  { %vm2183_vm3 = vmmov %vm2172_vm0 }
  0xf9   :  { %1255 = vmatmul.msk.f32.vlgmr.msrb.gmra.mxu1 %vm2172_vm0, %v857_v53  ;;  %vm2189_vm10 = vmmov %vm2172_vm0 }
  0xfa   :  { %1259 = vmatmul.msk.f32.vlgmr.msrb.gmra.mxu2 %vm2173_vm7, %v912_v5  ;;  %vm2184_vm7 = vmmov %vm2172_vm0 }
  0xfb   :  { %1263 = vmatmul.msk.f32.vlgmr.msra.gmra.mxu3 %vm2176_vm11, %v967_v3  ;;  %vm2187_vm11 = vmmov %vm2172_vm0 }
  0xfc   :  { %1267 = vmatmul.msk.f32.vlgmr.msra.gmra.mxu0 %vm2177_vm1, %v1022_v63  ;;  %vm2188_vm1 = vmmov %vm2172_vm0 }
  0xfd   :  { %vm2193_vm9 = vmmov %vm2172_vm0 }
  0xfe   :  { %vm2195_vm5 = vmmov %vm2172_vm0 }
  0xff   :  { %vm2199_vm2 = vmmov %vm2172_vm0 }
 0x100   :  { %vm2200_vm14 = vmmov %vm2172_vm0 }
 0x101   :  { %1256 = vmatmul.msk.f32.gmra.mxu1 %vm2178_vm6, %v858_v34  ;;  %vm2190_vm6 = vmmov %vm2172_vm0  ;;  %v1287_v34 = vld [vmem:[%s2030_s4] ss:$0 sm:$0xff] }
 0x102   :  { %1260 = vmatmul.msk.f32.gmra.mxu2 %vm2179_vm13, %v913_v55  ;;  %vm2191_vm13 = vnez %v2112_v52  ;;  %v1076_v52 = vld [vmem:[#allocation2 + $0x25] sm:$0xff]  ;;  %vm2201_vm8 = vmmov %vm2172_vm0 }
 0x103   :  { %1264 = vmatmul.msk.f32.gmra.mxu3 %vm2182_vm15, %v968_v12  ;;  %v970_v36 = vsel %vm2191_vm13, %v966_v29, 0.0  ;;  %vm2194_vm15 = vmmov %vm2172_vm0  ;;  %v1080_v2 = vsel %vm2198_vm12, %v1076_v52, 0.0 }
 0x104   :  { %1268 = vmatmul.msk.f32.gmra.mxu0 %vm2172_vm0, %v1023_v14  ;;  %vm2207_vm13 = vmmov %vm2172_vm0 }
 0x105   :  { %vm2209_vm4 = vmmov %vm2172_vm0 }
 0x109   :  { %1257 = vmatmul.msk.f32.gmra.mxu1 %vm2183_vm3, %v859_v40  ;;  %vm2196_vm3 = vnez %v2131_v6 }
 0x10a   :  { %1261 = vmatmul.msk.f32.gmra.mxu2 %vm2184_vm7, %v914_v23  ;;  %v1079_v51 = vsel %vm2196_vm3, %v750_v35, 0.0  ;;  %vm2197_vm7 = vmmov %vm2172_vm0 }
 0x10b   :  { %1265 = vmatmul.msk.f32.gmra.mxu3 %vm2187_vm11, %v969_v24  ;;  %vm2202_vm11 = vmmov %vm2172_vm0 }
 0x10c   :  { %1269 = vmatmul.msk.f32.gmra.mxu0 %vm2188_vm1, %v1024_v21  ;;  %vm2203_vm1 = vmmov %vm2172_vm0 }
 0x111   :  { %1258 = vmatmul.msk.f32.gmra.mxu1 %vm2189_vm10, %v860_v41  ;;  %vm2204_vm10 = vmmov %vm2172_vm0 }
 0x112   :  { %1262 = vmatmul.msk.f32.gmra.mxu2 %vm2190_vm6, %v915_v39  ;;  %vm2205_vm6 = vmmov %vm2172_vm0 }
 0x113   :  { %1266 = vmatmul.msk.f32.gmra.mxu3 %vm2193_vm9, %v970_v36 }
 0x114   :  { %1270 = vmatmul.msk.f32.gmra.mxu0 %vm2194_vm15, %v1025_v28 }
 0x119   :  { %1271 = vmatmul.msk.f32.vlgmr.msra.gmra.mxu1 %vm2172_vm0, %v1077_v26 }
 0x121   :  { %1272 = vmatmul.msk.f32.gmra.mxu1 %vm2195_vm5, %v1078_v61 }
 0x129   :  { %1273 = vmatmul.msk.f32.gmra.mxu1 %vm2197_vm7, %v1079_v51 }
 0x131   :  { %1274 = vmatmul.msk.f32.gmra.mxu1 %vm2199_vm2, %v1080_v2 }
 0x156   :  { %v694_v59 = vpop.f32.mrf.mxu1 }
 0x159   :  { %v841_v15 = vpop.f32.mrf.mxu0 }
 0x15d   :  { %v735_v9 = vpop.f32.mrf.mxu2 }
 0x15e   :  { %v697_v10 = vpop.f32.mrf.mxu1  ;;  %v786_v18 = vpop.f32.mrf.mxu3  ;;  %v736_v17 = vadd.f32 %v735_v9, %v694_v59 }
 0x160   :  { %v798_v27 = vadd.f32 %v786_v18, %v736_v17 }
 0x161   :  { %v844_v56 = vpop.f32.mrf.mxu0 }
 0x162   :  { %v853_v20 = vadd.f32 %v841_v15, %v798_v27 }
 0x165   :  { %v738_v6 = vpop.f32.mrf.mxu2 }
 0x166   :  { %v700_v19 = vpop.f32.mrf.mxu1  ;;  %v789_v49 = vpop.f32.mrf.mxu3  ;;  %v739_v45 = vadd.f32 %v738_v6, %v697_v10 }
 0x168   :  { %v799_v48 = vadd.f32 %v789_v49, %v739_v45 }
 0x169   :  { %v847_v44 = vpop.f32.mrf.mxu0 }
 0x16a   :  { %v854_v42 = vadd.f32 %v844_v56, %v799_v48 }
 0x16d   :  { %v741_v62 = vpop.f32.mrf.mxu2 }
 0x16e   :  { %v703_v54 = vpop.f32.mrf.mxu1  ;;  %v792_v30 = vpop.f32.mrf.mxu3  ;;  %v742_v32 = vadd.f32 %v741_v62, %v700_v19 }
 0x170   :  { %v800_v3 = vadd.f32 %v792_v30, %v742_v32 }
 0x171   :  { %v850_v33 = vpop.f32.mrf.mxu0 }
 0x172   :  { %v855_v24 = vadd.f32 %v847_v44, %v800_v3 }
 0x175   :  { %v744_v38 = vpop.f32.mrf.mxu2 }
 0x176   :  { %v892_v57 = vpop.f32.mrf.mxu1  ;;  %v795_v46 = vpop.f32.mrf.mxu3  ;;  %v745_v40 = vadd.f32 %v744_v38, %v703_v54 }
 0x177   :  { %v904_v7 = vadd.f32 %v892_v57, %v853_v20 }
 0x178   :  { %v801_v60 = vadd.f32 %v795_v46, %v745_v40 }
 0x179   :  { %v1057_v35 = vpop.f32.mrf.mxu0 }
 0x17a   :  { %v856_v51 = vadd.f32 %v850_v33, %v801_v60 }
 0x17d   :  { %v947_v1 = vpop.f32.mrf.mxu2 }
 0x17e   :  { %v895_v58 = vpop.f32.mrf.mxu1  ;;  %v1002_v50 = vpop.f32.mrf.mxu3  ;;  %v959_v11 = vadd.f32 %v947_v1, %v904_v7 }
 0x17f   :  { %v905_v53 = vadd.f32 %v895_v58, %v854_v42  ;;  %v1288_v58 = vld [vmem:[%s2031_s6] ss:$0 sm:$0xff] }
 0x180   :  { %v1014_v0 = vadd.f32 %v1002_v50, %v959_v11  ;;  %v2206_v50 = vld [vmem:[#allocation3_spill] sm:$0xff] }
 0x181   :  { %v1060_v14 = vpop.f32.mrf.mxu0 }
 0x182   :  { %v1069_v16 = vadd.f32 %v1057_v35, %v1014_v0  ;;  %v2208_v35 = vld [vmem:[#allocation4_spill] sm:$0xff] }
 0x185   :  { %v950_v31 = vpop.f32.mrf.mxu2 }
 0x186   :  { %v898_v47 = vpop.f32.mrf.mxu1  ;;  %v1005_v5 = vpop.f32.mrf.mxu3  ;;  %v960_v63 = vadd.f32 %v950_v31, %v905_v53 }
 0x187   :  { %v906_v37 = vadd.f32 %v898_v47, %v855_v24 }
 0x188   :  { %v1015_v23 = vadd.f32 %v1005_v5, %v960_v63 }
 0x189   :  { %v1063_v2 = vpop.f32.mrf.mxu0 }
 0x18a   :  { %v1070_v39 = vadd.f32 %v1060_v14, %v1015_v23 }
 0x18d   :  { %v953_v22 = vpop.f32.mrf.mxu2 }
 0x18e   :  { %v901_v43 = vpop.f32.mrf.mxu1  ;;  %v961_v41 = vadd.f32 %v953_v22, %v906_v37  ;;  %v1008_v36 = vpop.f32.mrf.mxu3 }
 0x18f   :  { %v907_v9 = vadd.f32 %v901_v43, %v856_v51 }
 0x190   :  { %v1016_v61 = vadd.f32 %v1008_v36, %v961_v41 }
 0x191   :  { %v1066_v8 = vpop.f32.mrf.mxu0 }
 0x192   :  { %v1071_v18 = vadd.f32 %v1063_v2, %v1016_v61 }
 0x195   :  { %v956_v59 = vpop.f32.mrf.mxu2 }
 0x196   :  { %v1112_v55 = vpop.f32.mrf.mxu1  ;;  %v962_v4 = vadd.f32 %v956_v59, %v907_v9  ;;  %v1011_v19 = vpop.f32.mrf.mxu3 }
 0x197   :  { %v1124_v12 = vadd.f32 %v1112_v55, %v1069_v16 }
 0x198   :  { %v1017_v49 = vadd.f32 %v1011_v19, %v962_v4 }
 0x199   :  { %v1132_v21 = vadd.f32 %v1287_v34, %v1124_v12 }
 0x19a   :  { %v1072_v62 = vadd.f32 %v1066_v8, %v1017_v49 }
 0x19b   :  { %v1136_v29 = vmax.f32 %v1132_v21, 0.0 }
 0x19d   :  { %1275 = vmatmul.msk.f32.vlgmr.msra.gmra.mxu2 %vm2200_vm14, %v1136_v29 }
 0x19e   :  { %v1115_v28 = vpop.f32.mrf.mxu1 }
 0x19f   :  { %v1125_v26 = vadd.f32 %v1115_v28, %v1070_v39 }
 0x1a1   :  { %v1133_v52 = vadd.f32 %v1287_v34, %v1125_v26 }
 0x1a3   :  { %v1137_v10 = vmax.f32 %v1133_v52, 0.0 }
 0x1a5   :  { %1276 = vmatmul.msk.f32.gmra.mxu2 %vm2201_vm8, %v1137_v10 }
 0x1a6   :  { %v1118_v15 = vpop.f32.mrf.mxu1 }
 0x1a7   :  { %v1126_v6 = vadd.f32 %v1118_v15, %v1071_v18 }
 0x1a9   :  { %v1134_v54 = vadd.f32 %v1287_v34, %v1126_v6 }
 0x1ab   :  { %v1138_v56 = vmax.f32 %v1134_v54, 0.0 }
 0x1ad   :  { %1277 = vmatmul.msk.f32.gmra.mxu2 %vm2202_vm11, %v1138_v56 }
 0x1ae   :  { %v1121_v30 = vpop.f32.mrf.mxu1 }
 0x1af   :  { %v1127_v57 = vadd.f32 %v1121_v30, %v1072_v62 }
 0x1b1   :  { %v1135_v44 = vadd.f32 %v1287_v34, %v1127_v57 }
 0x1b3   :  { %v1139_v38 = vmax.f32 %v1135_v44, 0.0 }
 0x1b5   :  { %1278 = vmatmul.msk.f32.gmra.mxu2 %vm2203_vm1, %v1139_v38 }
 0x220   :  { %v1175_v46 = vpop.f32.mrf.mxu2 }
 0x221   :  { %v1176_v17 = vadd.f32 %v1288_v58, %v1175_v46 }
 0x223   :  { %v1191_v33 = vadd.f32 %v1176_v17, %v1618_v13 }
 0x225   :  { %1195 = vst.msk [vmem:[%s2033_s7] sm:$0xff] %vm2204_vm10, %v1191_v33 }
 0x228   :  { %v1178_v1 = vpop.f32.mrf.mxu2 }
 0x229   :  { %v1179_v27 = vadd.f32 %v1288_v58, %v1178_v1 }
 0x22b   :  { %v1192_v47 = vadd.f32 %v1179_v27, %v1650_v25 }
 0x22d   :  { %1196 = vst.msk [vmem:[%s2033_s7 + $0x8] sm:$0xff] %vm2205_vm6, %v1192_v47 }
 0x230   :  { %v1181_v45 = vpop.f32.mrf.mxu2 }
 0x231   :  { %v1182_v20 = vadd.f32 %v1288_v58, %v1181_v45 }
 0x233   :  { %v1193_v7 = vadd.f32 %v1182_v20, %v2206_v50 }
 0x235   :  { %1197 = vst.msk [vmem:[%s2033_s7 + $0x10] sm:$0xff] %vm2207_vm13, %v1193_v7 }
 0x238   :  { %v1184_v13 = vpop.f32.mrf.mxu2 }
 0x239   :  { %v1185_v48 = vadd.f32 %v1288_v58, %v1184_v13 }
 0x23b   :  { %v1194_v11 = vadd.f32 %v1185_v48, %v2208_v35 }
 0x23d   :  { %1198 = vst.msk [vmem:[%s2033_s7 + $0x18] sm:$0xff] %vm2209_vm4, %v1194_v11 }

// kernel: tile.13
= control target key start
LH: loop header
LB: loop body
LE: loop exit
PB: predicated region body
PF: predicated region fallthrough
CT: control target
= control target key end

     0   :  { %s22_s0 = inlined_call_operand.vmem [shape: f32[16], index: 0, kind: input, shape index: {}]   ;;  %s23_s1 = inlined_call_operand.vmem [shape: f32[4,16], index: 1, kind: output, shape index: {}]  }
   0x1   :  { %v4_v0 = vld [vmem:[%s22_s0] ss:$0 sm:$0xff] }
   0x2   :  { %5 = vst [vmem:[%s23_s1] sm:$0xf] %v4_v0 }

// kernel: tile.14
= control target key start
LH: loop header
LB: loop body
LE: loop exit
PB: predicated region body
PF: predicated region fallthrough
CT: control target
= control target key end

     0   :  { %s37_s8 = smov 16   ;;  %s38_s9 = smov 32   ;;  %vm7_vm0 = vcmask 130048   ;;  %vm13_vm1 = vcmask 523648   ;;  %vm19_vm2 = vcmask 392448   ;;  %vm25_vm3 = vcmask 261248   ;;  %s55_s0 = inlined_call_operand.vmem [shape: f32[4,16], index: 0, kind: input, shape index: {}]   ;;  %s56_s1 = inlined_call_operand.vmem [shape: f32[1,64], index: 1, kind: output, shape index: {}]  }
   0x1   :  { %v4_v0 = vld [vmem:[%s55_s0] sm:$0xf]  ;;  %s36_s0 = smov 48  }
   0x2   :  { %5 = vst [vmem:[#allocation1] sm:$0xf] %v4_v0 }
   0x9   :  { %v10_v1 = vld [vmem:[#allocation1 + $0x3] sm:$0x1]   ;;  %v22_v2 = vld [vmem:[#allocation1 + $0x1] sm:$0x1]   ;;  %v16_v3 = vld [vmem:[#allocation1 + $0x2] sm:$0x1]  }
   0xa   :  { %11 = vrot.lane.b32.xlu0 %v10_v1, %s36_s0  ;;  %23 = vrot.lane.b32.xlu1 %v22_v2, %s37_s8  ;;  %v6_v4 = vld [vmem:[#allocation1] sm:$0x1]  }
   0xb   :  { %8 = vst.msk [vmem:[#allocation0] sm:$0x1] %vm7_vm0, %v6_v4  }
  0x12   :  { %17 = vrot.lane.b32.xlu0 %v16_v3, %s38_s9 }
  0x7c   :  { %v12_v5 = vpop.permute.xlu0 %11   ;;  %v24_v6 = vpop.permute.xlu1 %23  }
  0x7d   :  { %14 = vst.msk [vmem:[#allocation0] sm:$0x1] %vm13_vm1, %v12_v5  }
  0x84   :  { %v18_v7 = vpop.permute.xlu0 %17  }
  0x85   :  { %20 = vst.msk [vmem:[#allocation0] sm:$0x1] %vm19_vm2, %v18_v7  }
  0x86   :  { %26 = vst.msk [vmem:[#allocation0] sm:$0x1] %vm25_vm3, %v24_v6  }
  0x8d   :  { %v29_v8 = vld [vmem:[#allocation0] sm:$0x1] }
  0x8e   :  { %32 = vst [vmem:[%s56_s1] sm:$0x1] %v29_v8 }

// kernel: discrete_vae_forward.17
= control target key start
LH: loop header
LB: loop body
LE: loop exit
PB: predicated region body
PF: predicated region fallthrough
CT: control target
= control target key end

     0   :  { %v14_v0 = vlaneseq  ;;  %vm79_vm1 = vcmask 130048   ;;  %s1041_s1 = inlined_call_operand.vmem [shape: f32[144,64], index: 1, kind: input, shape index: {}]   ;;  %s1042_s0 = inlined_call_operand.vmem [shape: f32[48,16], index: 0, kind: input, shape index: {}]   ;;  %s1043_s2 = inlined_call_operand.vmem [shape: f32[1,64], index: 2, kind: input, shape index: {}]   ;;  %s1044_s3 = inlined_call_operand.vmem [shape: f32[32,64], index: 3, kind: output, shape index: {}]  }
   0x1   :  { %v78_v1 = vld [vmem:[%s1041_s1 + $0x18] sm:$0xff]  ;;  %v77_v2 = vld [vmem:[%s1041_s1 + $0x10] sm:$0xff]  ;;  %v187_v4 = vld [vmem:[%s1041_s1 + $0x28] sm:$0xff] }
   0x2   :  { %668 = vmatpush.msra.mxu1 %v78_v1  ;;  %669 = vmatpush.msra.mxu2 %v78_v1  ;;  %v15_v3 = vshrl.u32 %v14_v0, 7  ;;  %v250_v5 = vld [vmem:[%s1041_s1 + $0x38] sm:$0xff]  ;;  %v60_v6 = vld [vmem:[%s1041_s1 + $0x8] sm:$0xff]  ;;  %v186_v10 = vld [vmem:[%s1041_s1 + $0x20] sm:$0xff] }
   0x3   :  { %670 = vmatpush.msra.mxu3 %v78_v1  ;;  %106 = vmatpush.msra.mxu0 %v78_v1  ;;  %v249_v12 = vld [vmem:[%s1041_s1 + $0x30] sm:$0xff]  ;;  %v59_v13 = vld [vmem:[%s1041_s1] sm:$0xff]  ;;  %v301_v22 = vld [vmem:[%s1041_s1 + $0x48] sm:$0xff] }
   0x4   :  { %671 = vmatpush.msra.mxu1 %v77_v2  ;;  %672 = vmatpush.msra.mxu2 %v77_v2  ;;  %v710_v7 = vadd.s32 8, %v15_v3  ;;  %v712_v8 = vadd.s32 16, %v15_v3  ;;  %v714_v9 = vadd.s32 24, %v15_v3  ;;  %v19_v11 = vshra.s32 %v15_v3, 2  ;;  %v61_v19 = vld [vmem:[%s1042_s0 + $0x4] sm:$0xff]  ;;  %v736_v20 = vld [vmem:[%s1042_s0 + $0xc] sm:$0xff] }
   0x5   :  { %673 = vmatpush.msra.mxu3 %v77_v2  ;;  %v27_v14 = vand.u32 3, %v15_v3  ;;  %v741_v21 = vld [vmem:[%s1042_s0 + $0x14] sm:$0xff]  ;;  %107 = vmatpush.msra.mxu0 %v77_v2  ;;  %v755_v26 = vld [vmem:[%s1042_s0 + $0x1c] sm:$0xff]  ;;  %v435_v30 = vld [vmem:[%s1041_s1 + $0x68] sm:$0xff] }
   0x6   :  { %214 = vmatpush.msrb.mxu2 %v187_v4  ;;  %v20_v15 = vshra.s32 %v710_v7, 2  ;;  %v21_v16 = vshra.s32 %v712_v8, 2  ;;  %v22_v17 = vshra.s32 %v714_v9, 2  ;;  %147 = vmatpush.msrb.mxu1 %v60_v6  ;;  %v728_v18 = vand.u32 3, %v19_v11  ;;  %v300_v27 = vld [vmem:[%s1041_s1 + $0x40] sm:$0xff]  ;;  %v498_v35 = vld [vmem:[%s1041_s1 + $0x78] sm:$0xff] }
   0x7   :  { %277 = vmatpush.msrb.mxu3 %v250_v5  ;;  %328 = vmatpush.msrb.mxu0 %v301_v22  ;;  %vm766_vm5 = vcmp.ge.s32.totalorder %v27_v14, 1  ;;  %vm783_vm6 = vcmp.lt.s32.totalorder %v27_v14, 3  ;;  %v364_v36 = vld [vmem:[%s1041_s1 + $0x58] sm:$0xff]  ;;  %v565_v37 = vld [vmem:[%s1041_s1 + $0x88] sm:$0xff]  ;;  %v434_v38 = vld [vmem:[%s1041_s1 + $0x60] sm:$0xff]  ;;  %v28_v45 = vand.u32 3, %v710_v7 }
   0x8   :  { %215 = vmatpush.msrb.mxu2 %v186_v10  ;;  %v746_v23 = vand.u32 3, %v20_v15  ;;  %v748_v24 = vand.u32 3, %v21_v16  ;;  %v750_v25 = vand.u32 3, %v22_v17  ;;  %148 = vmatpush.msrb.mxu1 %v59_v13  ;;  %vm35_vm0 = vcmp.ge.s32.totalorder %v728_v18, 1  ;;  %v497_v40 = vld [vmem:[%s1041_s1 + $0x70] sm:$0xff]  ;;  %v31_v42 = vld [vmem:[%s1042_s0 + $0x3] sm:$0xff] }
   0x9   :  { %278 = vmatpush.msrb.mxu3 %v249_v12  ;;  %v73_v28 = vsel %vm35_vm0, %v61_v19, 0.0  ;;  %329 = vmatpush.msrb.mxu0 %v300_v27  ;;  %vm806_vm7 = vmand %vm35_vm0, %vm766_vm5  ;;  %v363_v41 = vld [vmem:[%s1041_s1 + $0x50] sm:$0xff]  ;;  %v162_v43 = vld [vmem:[%s1042_s0 + $0x5] sm:$0xff]  ;;  %vm846_vm9 = vcmp.ge.s32.totalorder %v28_v45, 1  ;;  %vm851_vm10 = vcmp.lt.s32.totalorder %v28_v45, 3  ;;  %v29_v56 = vand.u32 3, %v712_v8 }
   0xa   :  { %vm36_vm2 = vcmp.ge.s32.totalorder %v746_v23, 1  ;;  %vm37_vm3 = vcmp.ge.s32.totalorder %v748_v24, 1  ;;  %vm38_vm4 = vcmp.ge.s32.totalorder %v750_v25, 1  ;;  %632 = vmatmul.msk.f32.vlgmr.msra.gmra.mxu0 %vm79_vm1, %v73_v28  ;;  %vm826_vm8 = vmand %vm35_vm0, %vm783_vm6  ;;  %v233_v46 = vld [vmem:[%s1042_s0 + $0x7] sm:$0xff]  ;;  %v55_v49 = vsel %vm806_vm7, %v31_v42, 0.0  ;;  %v234_v57 = vld [vmem:[%s1042_s0 + $0xf] sm:$0xff] }
   0xb   :  { %v74_v31 = vsel %vm36_vm2, %v736_v20, 0.0  ;;  %v75_v32 = vsel %vm37_vm3, %v741_v21, 0.0  ;;  %v76_v33 = vsel %vm38_vm4, %v755_v26, 0.0  ;;  %v296_v47 = vld [vmem:[%s1042_s0 + $0x8] sm:$0xff]  ;;  %592 = vmatpush.msra.mxu0 %v565_v37  ;;  %v564_v48 = vld [vmem:[%s1041_s1 + $0x80] sm:$0xff]  ;;  %v182_v50 = vsel %vm826_vm8, %v162_v43, 0.0  ;;  %vm44_vm11 = vmand %vm36_vm2, %vm846_vm9 }
   0xc   :  { %633 = vmatmul.msk.f32.vlgmr.msra.gmra.mxu1 %vm79_vm1, %v74_v31  ;;  %634 = vmatmul.msk.f32.vlgmr.msra.gmra.mxu2 %vm79_vm1, %v75_v32  ;;  %v245_v51 = vsel %vm766_vm5, %v233_v46, 0.0  ;;  %v32_v54 = vld [vmem:[%s1042_s0 + $0xb] sm:$0xff]  ;;  %vm171_vm12 = vmand %vm36_vm2, %vm851_vm10  ;;  %v246_v61 = vsel %vm846_vm9, %v234_v57, 0.0  ;;  %vm881_vm13 = vcmp.ge.s32.totalorder %v29_v56, 1  ;;  %vm886_vm14 = vcmp.lt.s32.totalorder %v29_v56, 3  ;;  %v33_v0 = vld [vmem:[%s1042_s0 + $0x13] sm:$0xff] }
   0xd   :  { %635 = vmatmul.msk.f32.vlgmr.msra.gmra.mxu3 %vm79_vm1, %v76_v33  ;;  %462 = vmatpush.msra.mxu2 %v435_v30  ;;  %v163_v55 = vld [vmem:[%s1042_s0 + $0xd] sm:$0xff]  ;;  %v56_v59 = vsel %vm44_vm11, %v32_v54, 0.0  ;;  %vm45_vm15 = vmand %vm37_vm3, %vm881_vm13  ;;  %v164_v1 = vld [vmem:[%s1042_s0 + $0x15] sm:$0xff]  ;;  %v30_v2 = vand.u32 3, %v714_v9  ;;  %vm414_vm11 = vcmp.lt.s32.totalorder %v728_v18, 3 }
   0xe   :  { %525 = vmatpush.msra.mxu3 %v498_v35  ;;  %391 = vmatpush.msra.mxu1 %v364_v36  ;;  %v297_v58 = vld [vmem:[%s1042_s0 + $0x10] sm:$0xff]  ;;  %v183_v60 = vsel %vm171_vm12, %v163_v55, 0.0  ;;  %vm172_vm0 = vmand %vm37_vm3, %vm886_vm14  ;;  %v298_v4 = vld [vmem:[%s1042_s0 + $0x18] sm:$0xff]  ;;  %v57_v5 = vsel %vm45_vm15, %v33_v0, 0.0  ;;  %v493_v27 = vsel %vm414_vm11, %v736_v20, 0.0  ;;  %vm415_vm15 = vcmp.lt.s32.totalorder %v746_v23, 3 }
   0xf   :  { %463 = vmatpush.msra.mxu2 %v434_v38  ;;  %593 = vmatpush.msra.mxu0 %v564_v48  ;;  %v235_v3 = vld [vmem:[%s1042_s0 + $0x17] sm:$0xff]  ;;  %v184_v6 = vsel %vm172_vm0, %v164_v1, 0.0  ;;  %vm916_vm2 = vcmp.ge.s32.totalorder %v30_v2, 1  ;;  %vm921_vm3 = vcmp.lt.s32.totalorder %v30_v2, 3  ;;  %v236_v12 = vld [vmem:[%s1042_s0 + $0x1f] sm:$0xff]  ;;  %v347_v17 = vld [vmem:[%s1042_s0 + $0x9] sm:$0xff] }
  0x10   :  { %526 = vmatpush.msra.mxu3 %v497_v40  ;;  %392 = vmatpush.msra.mxu1 %v363_v41  ;;  %v247_v7 = vsel %vm881_vm13, %v235_v3, 0.0  ;;  %vm46_vm7 = vmand %vm38_vm4, %vm916_vm2  ;;  %v34_v10 = vld [vmem:[%s1042_s0 + $0x1b] sm:$0xff]  ;;  %v248_v16 = vsel %vm916_vm2, %v236_v12, 0.0  ;;  %v359_v18 = vsel %vm783_vm6, %v347_v17, 0.0  ;;  %v348_v28 = vld [vmem:[%s1042_s0 + $0x11] sm:$0xff]  ;;  %v494_v30 = vsel %vm415_vm15, %v741_v21, 0.0 }
  0x11   :  { %v165_v11 = vld [vmem:[%s1042_s0 + $0x1d] sm:$0xff]  ;;  %vm173_vm8 = vmand %vm38_vm4, %vm921_vm3  ;;  %v58_v14 = vsel %vm46_vm7, %v34_v10, 0.0  ;;  %v360_v23 = vsel %vm851_vm10, %v348_v28, 0.0  ;;  %v547_v34 = vld [vmem:[%s1042_s0 + $0x25] sm:$0xff] }
  0x12   :  { %648 = vmatmul.msk.f32.vlgmr.msrb.gmra.mxu0 %vm79_vm1, %v296_v47  ;;  %v299_v13 = vld [vmem:[%s1042_s0 + $0x20] sm:$0xff]  ;;  %v185_v15 = vsel %vm173_vm8, %v165_v11, 0.0  ;;  %vm548_vm4 = vmand %vm414_vm11, %vm783_vm6  ;;  %vm416_vm6 = vcmp.lt.s32.totalorder %v748_v24, 3 }
  0x13   :  { %vm418_vm12 = vmand %vm414_vm11, %vm766_vm5  ;;  %v560_v19 = vsel %vm548_vm4, %v163_v55, 0.0  ;;  %v349_v31 = vld [vmem:[%s1042_s0 + $0x19] sm:$0xff]  ;;  %v495_v33 = vsel %vm416_vm6, %v755_v26, 0.0  ;;  %v350_v26 = vld [vmem:[%s1042_s0 + $0x21] sm:$0xff] }
  0x14   :  { %636 = vmatmul.msk.f32.vlgmr.msrb.gmra.mxu1 %vm79_vm1, %v55_v49  ;;  %640 = vmatmul.msk.f32.vlgmr.msrb.gmra.mxu2 %vm79_vm1, %v182_v50  ;;  %v430_v22 = vsel %vm418_vm12, %v32_v54, 0.0  ;;  %vm549_vm0 = vmand %vm415_vm15, %vm851_vm10  ;;  %v361_v24 = vsel %vm886_vm14, %v349_v31, 0.0  ;;  %vm417_vm10 = vcmp.lt.s32.totalorder %v750_v25, 3  ;;  %v413_v25 = vld [vmem:[%s1042_s0 + $0x23] sm:$0xff]  ;;  %v362_v37 = vsel %vm921_vm3, %v350_v26, 0.0 }
  0x15   :  { %644 = vmatmul.msk.f32.vlgmr.msrb.gmra.mxu3 %vm79_vm1, %v245_v51  ;;  %vm419_vm5 = vmand %vm415_vm15, %vm846_vm9  ;;  %v561_v20 = vsel %vm549_vm0, %v164_v1, 0.0  ;;  %v484_v35 = vld [vmem:[%s1042_s0 + $0x24] sm:$0xff]  ;;  %v674_v12 = vld [vmem:[%s1043_s2] ss:$0 sm:$0xff] }
  0x16   :  { %v431_v29 = vsel %vm419_vm5, %v33_v0, 0.0  ;;  %vm550_vm7 = vmand %vm416_vm6, %vm886_vm14  ;;  %v496_v39 = vsel %vm417_vm10, %v484_v35, 0.0 }
  0x17   :  { %vm420_vm9 = vmand %vm416_vm6, %vm881_vm13  ;;  %v562_v21 = vsel %vm550_vm7, %v165_v11, 0.0 }
  0x18   :  { %v432_v32 = vsel %vm420_vm9, %v34_v10, 0.0  ;;  %vm551_vm13 = vmand %vm417_vm10, %vm921_vm3 }
  0x19   :  { %vm421_vm14 = vmand %vm417_vm10, %vm916_vm2  ;;  %v563_v36 = vsel %vm551_vm13, %v547_v34, 0.0 }
  0x1a   :  { %649 = vmatmul.msk.f32.gmra.mxu0 %vm79_vm1, %v297_v58  ;;  %v433_v38 = vsel %vm421_vm14, %v413_v25, 0.0 }
  0x1c   :  { %637 = vmatmul.msk.f32.gmra.mxu1 %vm79_vm1, %v56_v59  ;;  %641 = vmatmul.msk.f32.gmra.mxu2 %vm79_vm1, %v183_v60 }
  0x1d   :  { %645 = vmatmul.msk.f32.gmra.mxu3 %vm79_vm1, %v246_v61 }
  0x22   :  { %650 = vmatmul.msk.f32.gmra.mxu0 %vm79_vm1, %v298_v4 }
  0x24   :  { %638 = vmatmul.msk.f32.gmra.mxu1 %vm79_vm1, %v57_v5  ;;  %642 = vmatmul.msk.f32.gmra.mxu2 %vm79_vm1, %v184_v6 }
  0x25   :  { %646 = vmatmul.msk.f32.gmra.mxu3 %vm79_vm1, %v247_v7 }
  0x2a   :  { %651 = vmatmul.msk.f32.gmra.mxu0 %vm79_vm1, %v299_v13 }
  0x2c   :  { %639 = vmatmul.msk.f32.gmra.mxu1 %vm79_vm1, %v58_v14  ;;  %643 = vmatmul.msk.f32.gmra.mxu2 %vm79_vm1, %v185_v15 }
  0x2d   :  { %647 = vmatmul.msk.f32.gmra.mxu3 %vm79_vm1, %v248_v16 }
  0x32   :  { %664 = vmatmul.msk.f32.vlgmr.msra.gmra.mxu0 %vm79_vm1, %v560_v19 }
  0x34   :  { %652 = vmatmul.msk.f32.vlgmr.msra.gmra.mxu1 %vm79_vm1, %v359_v18  ;;  %656 = vmatmul.msk.f32.vlgmr.msra.gmra.mxu2 %vm79_vm1, %v430_v22 }
  0x35   :  { %660 = vmatmul.msk.f32.vlgmr.msra.gmra.mxu3 %vm79_vm1, %v493_v27 }
  0x3a   :  { %665 = vmatmul.msk.f32.gmra.mxu0 %vm79_vm1, %v561_v20 }
  0x3c   :  { %653 = vmatmul.msk.f32.gmra.mxu1 %vm79_vm1, %v360_v23  ;;  %657 = vmatmul.msk.f32.gmra.mxu2 %vm79_vm1, %v431_v29 }
  0x3d   :  { %661 = vmatmul.msk.f32.gmra.mxu3 %vm79_vm1, %v494_v30 }
  0x42   :  { %666 = vmatmul.msk.f32.gmra.mxu0 %vm79_vm1, %v562_v21 }
  0x44   :  { %654 = vmatmul.msk.f32.gmra.mxu1 %vm79_vm1, %v361_v24  ;;  %658 = vmatmul.msk.f32.gmra.mxu2 %vm79_vm1, %v432_v32 }
  0x45   :  { %662 = vmatmul.msk.f32.gmra.mxu3 %vm79_vm1, %v495_v33 }
  0x4a   :  { %667 = vmatmul.msk.f32.gmra.mxu0 %vm79_vm1, %v563_v36 }
  0x4c   :  { %655 = vmatmul.msk.f32.gmra.mxu1 %vm79_vm1, %v362_v37  ;;  %659 = vmatmul.msk.f32.gmra.mxu2 %vm79_vm1, %v433_v38 }
  0x4d   :  { %663 = vmatmul.msk.f32.gmra.mxu3 %vm79_vm1, %v496_v39  ;;  %vm623_vm1 = vcmask 523264  }
  0x87   :  { %v109_v40 = vpop.f32.mrf.mxu0 }
  0x89   :  { %v112_v41 = vpop.f32.mrf.mxu1 }
  0x8f   :  { %v115_v42 = vpop.f32.mrf.mxu2  ;;  %v331_v43 = vpop.f32.mrf.mxu0 }
  0x90   :  { %v118_v44 = vpop.f32.mrf.mxu3 }
  0x91   :  { %v150_v45 = vpop.f32.mrf.mxu1 }
  0x92   :  { %v151_v58 = vadd.f32 %v150_v45, %v109_v40 }
  0x97   :  { %v217_v46 = vpop.f32.mrf.mxu2  ;;  %v334_v47 = vpop.f32.mrf.mxu0 }
  0x98   :  { %v280_v48 = vpop.f32.mrf.mxu3  ;;  %v229_v59 = vadd.f32 %v217_v46, %v151_v58 }
  0x99   :  { %v153_v49 = vpop.f32.mrf.mxu1 }
  0x9a   :  { %v292_v61 = vadd.f32 %v280_v48, %v229_v59  ;;  %v154_v0 = vadd.f32 %v153_v49, %v112_v41 }
  0x9c   :  { %v343_v2 = vadd.f32 %v331_v43, %v292_v61 }
  0x9f   :  { %v220_v50 = vpop.f32.mrf.mxu2  ;;  %v337_v51 = vpop.f32.mrf.mxu0 }
  0xa0   :  { %v283_v52 = vpop.f32.mrf.mxu3  ;;  %v230_v3 = vadd.f32 %v220_v50, %v154_v0 }
  0xa1   :  { %v156_v53 = vpop.f32.mrf.mxu1 }
  0xa2   :  { %v293_v6 = vadd.f32 %v283_v52, %v230_v3  ;;  %v157_v10 = vadd.f32 %v156_v53, %v115_v42 }
  0xa4   :  { %v344_v13 = vadd.f32 %v334_v47, %v293_v6 }
  0xa7   :  { %v223_v54 = vpop.f32.mrf.mxu2  ;;  %v340_v57 = vpop.f32.mrf.mxu0 }
  0xa8   :  { %v286_v55 = vpop.f32.mrf.mxu3  ;;  %v231_v14 = vadd.f32 %v223_v54, %v157_v10 }
  0xa9   :  { %v159_v56 = vpop.f32.mrf.mxu1 }
  0xaa   :  { %v294_v22 = vadd.f32 %v286_v55, %v231_v14  ;;  %v160_v29 = vadd.f32 %v159_v56, %v118_v44 }
  0xac   :  { %v345_v31 = vadd.f32 %v337_v51, %v294_v22 }
  0xaf   :  { %v226_v60 = vpop.f32.mrf.mxu2  ;;  %v595_v1 = vpop.f32.mrf.mxu0 }
  0xb0   :  { %v289_v62 = vpop.f32.mrf.mxu3  ;;  %v232_v21 = vadd.f32 %v226_v60, %v160_v29 }
  0xb1   :  { %v394_v63 = vpop.f32.mrf.mxu1 }
  0xb2   :  { %v406_v4 = vadd.f32 %v394_v63, %v343_v2  ;;  %v295_v25 = vadd.f32 %v289_v62, %v232_v21 }
  0xb4   :  { %v346_v40 = vadd.f32 %v340_v57, %v295_v25 }
  0xb7   :  { %v465_v5 = vpop.f32.mrf.mxu2  ;;  %v598_v16 = vpop.f32.mrf.mxu0 }
  0xb8   :  { %v477_v7 = vadd.f32 %v465_v5, %v406_v4  ;;  %v528_v8 = vpop.f32.mrf.mxu3 }
  0xb9   :  { %v397_v9 = vpop.f32.mrf.mxu1 }
  0xba   :  { %v540_v11 = vadd.f32 %v528_v8, %v477_v7  ;;  %v407_v17 = vadd.f32 %v397_v9, %v344_v13 }
  0xbc   :  { %v607_v15 = vadd.f32 %v595_v1, %v540_v11 }
  0xbe   :  { %v615_v19 = vadd.f32 %v674_v12, %v607_v15 }
  0xbf   :  { %v468_v18 = vpop.f32.mrf.mxu2  ;;  %v601_v26 = vpop.f32.mrf.mxu0 }
  0xc0   :  { %v619_v27 = vmax.f32 %v615_v19, 0.0  ;;  %v478_v28 = vadd.f32 %v468_v18, %v407_v17  ;;  %v531_v20 = vpop.f32.mrf.mxu3 }
  0xc1   :  { %v400_v23 = vpop.f32.mrf.mxu1 }
  0xc2   :  { %624 = vst.msk [vmem:[%s1044_s3] sm:$0xff] %vm623_vm1, %v619_v27  ;;  %v541_v30 = vadd.f32 %v531_v20, %v478_v28  ;;  %v408_v32 = vadd.f32 %v400_v23, %v345_v31 }
  0xc4   :  { %v608_v24 = vadd.f32 %v598_v16, %v541_v30 }
  0xc6   :  { %v616_v33 = vadd.f32 %v674_v12, %v608_v24 }
  0xc7   :  { %v471_v34 = vpop.f32.mrf.mxu2  ;;  %v604_v48 = vpop.f32.mrf.mxu0 }
  0xc8   :  { %v620_v35 = vmax.f32 %v616_v33, 0.0  ;;  %v479_v36 = vadd.f32 %v471_v34, %v408_v32  ;;  %v534_v37 = vpop.f32.mrf.mxu3 }
  0xc9   :  { %v403_v39 = vpop.f32.mrf.mxu1 }
  0xca   :  { %625 = vst.msk [vmem:[%s1044_s3 + $0x8] sm:$0xff] %vm623_vm1, %v620_v35  ;;  %v542_v38 = vadd.f32 %v534_v37, %v479_v36  ;;  %v409_v42 = vadd.f32 %v403_v39, %v346_v40 }
  0xcc   :  { %v609_v41 = vadd.f32 %v601_v26, %v542_v38 }
  0xce   :  { %v617_v43 = vadd.f32 %v674_v12, %v609_v41 }
  0xcf   :  { %v474_v44 = vpop.f32.mrf.mxu2 }
  0xd0   :  { %v621_v45 = vmax.f32 %v617_v43, 0.0  ;;  %v480_v46 = vadd.f32 %v474_v44, %v409_v42  ;;  %v537_v47 = vpop.f32.mrf.mxu3 }
  0xd2   :  { %626 = vst.msk [vmem:[%s1044_s3 + $0x10] sm:$0xff] %vm623_vm1, %v621_v45  ;;  %v543_v49 = vadd.f32 %v537_v47, %v480_v46 }
  0xd4   :  { %v610_v50 = vadd.f32 %v604_v48, %v543_v49 }
  0xd6   :  { %v618_v51 = vadd.f32 %v674_v12, %v610_v50 }
  0xd8   :  { %v622_v52 = vmax.f32 %v618_v51, 0.0 }
  0xda   :  { %627 = vst.msk [vmem:[%s1044_s3 + $0x18] sm:$0xff] %vm623_vm1, %v622_v52 }

// kernel: discrete_vae_forward.18
= control target key start
LH: loop header
LB: loop body
LE: loop exit
PB: predicated region body
PF: predicated region fallthrough
CT: control target
= control target key end

     0   :  { %v14_v0 = vlaneseq  ;;  %vm3753_vm0 = vcmask 130048   ;;  %s3729_s1 = inlined_call_operand.vmem [shape: f32[144,64], index: 1, kind: input, shape index: {}]   ;;  %s3730_s0 = inlined_call_operand.vmem [shape: f32[160,16], index: 0, kind: input, shape index: {}]   ;;  %s3731_s2 = inlined_call_operand.vmem [shape: f32[1,64], index: 2, kind: input, shape index: {}]   ;;  %s3732_s3 = inlined_call_operand.vmem [shape: f32[128,64], index: 3, kind: output, shape index: {}]  }
   0x1   :  { %v258_v1 = vld [vmem:[%s3729_s1 + $0x18] sm:$0xff]  ;;  %v257_v2 = vld [vmem:[%s3729_s1 + $0x10] sm:$0xff]  ;;  %v583_v4 = vld [vmem:[%s3729_s1 + $0x28] sm:$0xff] }
   0x2   :  { %2084 = vmatpush.msra.mxu1 %v258_v1  ;;  %2085 = vmatpush.msra.mxu2 %v258_v1  ;;  %v2117_v3 = vshrl.u32 %v14_v0, 7  ;;  %v778_v5 = vld [vmem:[%s3729_s1 + $0x38] sm:$0xff]  ;;  %v192_v6 = vld [vmem:[%s3729_s1 + $0x8] sm:$0xff]  ;;  %v582_v23 = vld [vmem:[%s3729_s1 + $0x20] sm:$0xff] }
   0x3   :  { %2086 = vmatpush.msra.mxu3 %v258_v1  ;;  %322 = vmatpush.msra.mxu0 %v258_v1  ;;  %v925_v14 = vld [vmem:[%s3729_s1 + $0x48] sm:$0xff]  ;;  %v777_v29 = vld [vmem:[%s3729_s1 + $0x30] sm:$0xff]  ;;  %v191_v33 = vld [vmem:[%s3729_s1] sm:$0xff] }
   0x4   :  { %2087 = vmatpush.msra.mxu1 %v257_v2  ;;  %2088 = vmatpush.msra.mxu2 %v257_v2  ;;  %v2129_v7 = vadd.s32 32, %v2117_v3  ;;  %v2132_v8 = vadd.s32 64, %v2117_v3  ;;  %v2135_v9 = vadd.s32 96, %v2117_v3  ;;  %v2138_v10 = vadd.s32 40, %v2117_v3  ;;  %v2157_v19 = vld [vmem:[%s3730_s0 + $0x28] sm:$0xff]  ;;  %v924_v39 = vld [vmem:[%s3729_s1 + $0x40] sm:$0xff] }
   0x5   :  { %2089 = vmatpush.msra.mxu3 %v257_v2  ;;  %v2141_v11 = vadd.s32 72, %v2117_v3  ;;  %v31_v12 = vshra.s32 %v2117_v3, 3  ;;  %v2145_v13 = vadd.s32 104, %v2117_v3  ;;  %323 = vmatpush.msra.mxu0 %v257_v2  ;;  %v2173_v26 = vld [vmem:[%s3730_s0 + $0x48] sm:$0xff]  ;;  %v2192_v32 = vadd.s32 48, %v2117_v3  ;;  %v2225_v41 = vld [vmem:[%s3730_s0 + $0x30] sm:$0xff] }
   0x6   :  { %646 = vmatpush.msrb.mxu2 %v583_v4  ;;  %v35_v15 = vshra.s32 %v2129_v7, 3  ;;  %v39_v16 = vshra.s32 %v2132_v8, 3  ;;  %v43_v17 = vshra.s32 %v2135_v9, 3  ;;  %435 = vmatpush.msrb.mxu1 %v192_v6  ;;  %v36_v18 = vshra.s32 %v2138_v10, 3  ;;  %v2180_v28 = vld [vmem:[%s3730_s0 + $0x68] sm:$0xff]  ;;  %3848 = vst [vmem:[#allocation7_spill] sm:$0xff] %v2225_v41 }
   0x7   :  { %841 = vmatpush.msrb.mxu3 %v778_v5  ;;  %v40_v20 = vshra.s32 %v2141_v11, 3  ;;  %v2160_v21 = vand.u32 7, %v31_v12  ;;  %v44_v22 = vshra.s32 %v2145_v13, 3  ;;  %988 = vmatpush.msrb.mxu0 %v925_v14  ;;  %v193_v31 = vld [vmem:[%s3730_s0 + $0x8] sm:$0xff]  ;;  %v37_v42 = vshra.s32 %v2192_v32, 3  ;;  %v2242_v46 = vld [vmem:[%s3730_s0 + $0x50] sm:$0xff] }
   0x8   :  { %v2166_v24 = vand.u32 7, %v35_v15  ;;  %v2168_v25 = vand.u32 7, %v39_v16  ;;  %v2175_v27 = vand.u32 7, %v43_v17  ;;  %647 = vmatpush.msrb.mxu2 %v582_v23  ;;  %v2185_v30 = vand.u32 7, %v36_v18  ;;  %436 = vmatpush.msrb.mxu1 %v191_v33  ;;  %v1347_v45 = vld [vmem:[%s3729_s1 + $0x68] sm:$0xff]  ;;  %v1542_v48 = vld [vmem:[%s3729_s1 + $0x78] sm:$0xff] }
   0x9   :  { %vm95_vm1 = vcmp.ge.s32.totalorder %v2160_v21, 1  ;;  %842 = vmatpush.msrb.mxu3 %v777_v29  ;;  %v2200_v34 = vand.u32 7, %v40_v20  ;;  %v2211_v38 = vand.u32 7, %v44_v22  ;;  %v2230_v43 = vadd.s32 80, %v2117_v3  ;;  %989 = vmatpush.msrb.mxu0 %v924_v39  ;;  %v2254_v49 = vld [vmem:[%s3730_s0 + $0x70] sm:$0xff]  ;;  %v1120_v53 = vld [vmem:[%s3729_s1 + $0x58] sm:$0xff] }
   0xa   :  { %3843 = vst [vmem:[#allocation2_spill] sm:$0xff] %v2166_v24  ;;  %vm99_vm2 = vcmp.ge.s32.totalorder %v2166_v24, 1  ;;  %vm3740_vm3 = vcmp.ge.s32.totalorder %v2168_v25, 1  ;;  %vm3735_vm4 = vcmp.ge.s32.totalorder %v2175_v27, 1  ;;  %v241_v40 = vsel %vm95_vm1, %v193_v31, 0.0  ;;  %v2278_v59 = vld [vmem:[%s3730_s0 + $0x10] sm:$0xff] }
   0xb   :  { %3844 = vst [vmem:[#allocation3_spill] sm:$0xff] %v2168_v25  ;;  %v245_v35 = vsel %vm99_vm2, %v2157_v19, 0.0  ;;  %v249_v36 = vsel %vm3740_vm3, %v2173_v26, 0.0  ;;  %v253_v37 = vsel %vm3735_vm4, %v2180_v28, 0.0  ;;  %vm100_vm5 = vcmp.ge.s32.totalorder %v2185_v30, 1  ;;  %1940 = vmatmul.msk.f32.vlgmr.msra.gmra.mxu0 %vm3753_vm0, %v241_v40  ;;  %v1753_v6 = vld [vmem:[%s3729_s1 + $0x88] sm:$0xff] }
   0xc   :  { %3845 = vst [vmem:[#allocation4_spill] sm:$0xff] %v2175_v27  ;;  %1944 = vmatmul.msk.f32.vlgmr.msra.gmra.mxu1 %vm3753_vm0, %v245_v35  ;;  %1948 = vmatmul.msk.f32.vlgmr.msra.gmra.mxu2 %vm3753_vm0, %v249_v36  ;;  %v2233_v44 = vadd.s32 8, %v2117_v3  ;;  %vm3739_vm6 = vcmp.ge.s32.totalorder %v2200_v34, 1  ;;  %v2245_v47 = vadd.s32 112, %v2117_v3  ;;  %vm3734_vm7 = vcmp.ge.s32.totalorder %v2211_v38, 1  ;;  %v2314_v12 = vld [vmem:[%s3730_s0 + $0x38] sm:$0xff] }
   0xd   :  { %3846 = vst [vmem:[#allocation5_spill] sm:$0xff] %v2200_v34  ;;  %1952 = vmatmul.msk.f32.vlgmr.msra.gmra.mxu3 %vm3753_vm0, %v253_v37  ;;  %1410 = vmatpush.msra.mxu2 %v1347_v45  ;;  %v41_v50 = vshra.s32 %v2230_v43, 3  ;;  %v2259_v52 = vadd.s32 16, %v2117_v3  ;;  %v246_v54 = vsel %vm100_vm5, %v2225_v41, 0.0  ;;  %v250_v56 = vsel %vm3739_vm6, %v2242_v46, 0.0  ;;  %v2320_v14 = vld [vmem:[%s3730_s0 + $0x58] sm:$0xff] }
   0xe   :  { %3847 = vst [vmem:[#allocation6_spill] sm:$0xff] %v2211_v38  ;;  %v32_v51 = vshra.s32 %v2233_v44, 3  ;;  %1605 = vmatpush.msra.mxu3 %v1542_v48  ;;  %v45_v55 = vshra.s32 %v2245_v47, 3  ;;  %1183 = vmatpush.msra.mxu1 %v1120_v53  ;;  %v2271_v57 = vand.u32 7, %v37_v42  ;;  %v254_v61 = vsel %vm3734_vm7, %v2254_v49, 0.0  ;;  %v2328_v17 = vld [vmem:[%s3730_s0 + $0x78] sm:$0xff] }
   0xf   :  { %v33_v60 = vshra.s32 %v2259_v52, 3  ;;  %v2284_v62 = vand.u32 7, %v41_v50  ;;  %v2287_v63 = vadd.s32 56, %v2117_v3  ;;  %v2290_v0 = vadd.s32 88, %v2117_v3  ;;  %1816 = vmatpush.msra.mxu0 %v1753_v6  ;;  %v2334_v18 = vld [vmem:[%s3730_s0 + $0x18] sm:$0xff]  ;;  %v2369_v42 = vld [vmem:[%s3730_s0 + $0x40] sm:$0xff] }
  0x10   :  { %v2273_v58 = vand.u32 7, %v32_v51  ;;  %v2293_v1 = vand.u32 7, %v45_v55  ;;  %v2298_v4 = vadd.s32 120, %v2117_v3  ;;  %vm3742_vm9 = vcmp.ge.s32.totalorder %v2271_v57, 1  ;;  %v2375_v45 = vld [vmem:[%s3730_s0 + $0x60] sm:$0xff]  ;;  %v2624_v24 = vld [vmem:[%s3730_s0 + $0x37] sm:$0xff] }
  0x11   :  { %3849 = vst [vmem:[#allocation8_spill] sm:$0xff] %v2284_v62  ;;  %v2295_v2 = vand.u32 7, %v33_v60  ;;  %vm3738_vm10 = vcmp.ge.s32.totalorder %v2284_v62, 1  ;;  %v38_v15 = vshra.s32 %v2287_v63, 3  ;;  %v42_v16 = vshra.s32 %v2290_v0, 3  ;;  %v2382_v50 = vld [vmem:[%s3730_s0 + $0x80] sm:$0xff] }
  0x12   :  { %vm96_vm8 = vcmp.ge.s32.totalorder %v2273_v58, 1  ;;  %3850 = vst [vmem:[#allocation9_spill] sm:$0xff] %v2293_v1  ;;  %vm3733_vm11 = vcmp.ge.s32.totalorder %v2293_v1, 1  ;;  %v46_v20 = vshra.s32 %v2298_v4, 3  ;;  %v2338_v22 = vadd.s32 24, %v2117_v3  ;;  %v2388_v51 = vld [vmem:[%s3730_s0 + $0x20] sm:$0xff] }
  0x13   :  { %v242_v5 = vsel %vm96_vm8, %v2278_v59, 0.0  ;;  %vm97_vm12 = vcmp.ge.s32.totalorder %v2295_v2, 1  ;;  %v247_v23 = vsel %vm3742_vm9, %v2314_v12, 0.0  ;;  %v251_v29 = vsel %vm3738_vm10, %v2320_v14, 0.0 }
  0x14   :  { %1945 = vmatmul.msk.f32.gmra.mxu1 %vm3753_vm0, %v246_v54  ;;  %1949 = vmatmul.msk.f32.gmra.mxu2 %vm3753_vm0, %v250_v56  ;;  %v34_v31 = vshra.s32 %v2338_v22, 3  ;;  %v255_v33 = vsel %vm3733_vm11, %v2328_v17, 0.0  ;;  %v2350_v35 = vand.u32 7, %v38_v15  ;;  %v2352_v36 = vand.u32 7, %v42_v16  ;;  %v713_v15 = vld [vmem:[%s3730_s0 + $0xf] sm:$0xff] }
  0x15   :  { %1953 = vmatmul.msk.f32.gmra.mxu3 %vm3753_vm0, %v254_v61  ;;  %1941 = vmatmul.msk.f32.gmra.mxu0 %vm3753_vm0, %v242_v5  ;;  %v243_v37 = vsel %vm97_vm12, %v2334_v18, 0.0  ;;  %v2357_v39 = vand.u32 7, %v46_v20  ;;  %v63_v48 = vand.u32 7, %v2117_v3  ;;  %v79_v61 = vld [vmem:[%s3730_s0 + $0x7] sm:$0xff]  ;;  %v64_v6 = vand.u32 7, %v2233_v44  ;;  %v2454_v44 = vld [vmem:[%s3730_s0 + $0x11] sm:$0xff] }
  0x16   :  { %3851 = vst [vmem:[#allocation10_spill] sm:$0xff] %v2350_v35  ;;  %v2359_v40 = vand.u32 7, %v34_v31  ;;  %vm3741_vm13 = vcmp.ge.s32.totalorder %v2350_v35, 1  ;;  %vm3737_vm14 = vcmp.ge.s32.totalorder %v2352_v36, 1  ;;  %v486_v5 = vld [vmem:[%s3730_s0 + $0x9] sm:$0xff] }
  0x17   :  { %3852 = vst [vmem:[#allocation11_spill] sm:$0xff] %v2352_v36  ;;  %vm3736_vm15 = vcmp.ge.s32.totalorder %v2357_v39, 1  ;;  %v248_v53 = vsel %vm3741_vm13, %v2369_v42, 0.0  ;;  %v252_v3 = vsel %vm3737_vm14, %v2375_v45, 0.0  ;;  %vm2399_vm7 = vcmp.ge.s32.totalorder %v63_v48, 1 }
  0x18   :  { %3853 = vst [vmem:[#allocation12_spill] sm:$0xff] %v2357_v39  ;;  %vm98_vm11 = vcmp.ge.s32.totalorder %v2359_v40, 1  ;;  %v256_v54 = vsel %vm3736_vm15, %v2382_v50, 0.0  ;;  %vm2406_vm4 = vcmp.lt.s32.totalorder %v63_v48, 7  ;;  %vm127_vm15 = vmand %vm95_vm1, %vm2399_vm7  ;;  %vm2434_vm10 = vcmp.ge.s32.totalorder %v64_v6, 1 }
  0x19   :  { %v244_v56 = vsel %vm98_vm11, %v2388_v51, 0.0  ;;  %vm518_vm14 = vmand %vm95_vm1, %vm2406_vm4  ;;  %v175_v16 = vsel %vm127_vm15, %v79_v61, 0.0  ;;  %vm2438_vm6 = vcmp.lt.s32.totalorder %v64_v6, 7  ;;  %v2500_v61 = vld [vmem:[%s3730_s0 + $0x1f] sm:$0xff] }
  0x1a   :  { %v566_v20 = vsel %vm518_vm14, %v486_v5, 0.0  ;;  %vm128_vm1 = vmand %vm96_vm8, %vm2434_vm10 }
  0x1b   :  { %vm519_vm14 = vmand %vm96_vm8, %vm2438_vm6  ;;  %v176_v48 = vsel %vm128_vm1, %v713_v15, 0.0 }
  0x1c   :  { %1946 = vmatmul.msk.f32.gmra.mxu1 %vm3753_vm0, %v247_v23  ;;  %1950 = vmatmul.msk.f32.gmra.mxu2 %vm3753_vm0, %v251_v29  ;;  %v761_v23 = vsel %vm2399_vm7, %v713_v15, 0.0 }
  0x1d   :  { %1954 = vmatmul.msk.f32.gmra.mxu3 %vm3753_vm0, %v255_v33  ;;  %1942 = vmatmul.msk.f32.gmra.mxu0 %vm3753_vm0, %v243_v37  ;;  %v65_v33 = vand.u32 7, %v2259_v52  ;;  %v2464_v37 = vld [vmem:[%s3730_s0 + $0x17] sm:$0xff] }
  0x1e   :  { %v2490_v52 = vld [vmem:[%s3730_s0 + $0x19] sm:$0xff] }
  0x1f   :  { %vm2470_vm15 = vcmp.ge.s32.totalorder %v65_v33, 1  ;;  %vm2474_vm3 = vcmp.lt.s32.totalorder %v65_v33, 7  ;;  %v2537_v33 = vld [vmem:[%s3730_s0 + $0x27] sm:$0xff] }
  0x20   :  { %vm129_vm8 = vmand %vm97_vm12, %vm2470_vm15  ;;  %v763_v15 = vsel %vm2470_vm15, %v2500_v61, 0.0 }
  0x21   :  { %vm520_vm1 = vmand %vm97_vm12, %vm2474_vm3  ;;  %v177_v5 = vsel %vm129_vm8, %v2464_v37, 0.0 }
  0x22   :  { %v568_v6 = vsel %vm520_vm1, %v2490_v52, 0.0 }
  0x24   :  { %1947 = vmatmul.msk.f32.gmra.mxu1 %vm3753_vm0, %v248_v53  ;;  %1951 = vmatmul.msk.f32.gmra.mxu2 %vm3753_vm0, %v252_v3  ;;  %v762_v53 = vsel %vm2434_vm10, %v2464_v37, 0.0 }
  0x25   :  { %1955 = vmatmul.msk.f32.gmra.mxu3 %vm3753_vm0, %v256_v54  ;;  %1943 = vmatmul.msk.f32.gmra.mxu0 %vm3753_vm0, %v244_v56  ;;  %v66_v56 = vand.u32 7, %v2338_v22  ;;  %v2527_v22 = vld [vmem:[%s3730_s0 + $0x21] sm:$0xff] }
  0x26   :  { %v1105_v3 = vsel %vm2474_vm3, %v2527_v22, 0.0 }
  0x27   :  { %vm2511_vm12 = vcmp.lt.s32.totalorder %v66_v56, 7 }
  0x28   :  { %vm521_vm1 = vmand %vm98_vm11, %vm2511_vm12 }
  0x2c   :  { %1956 = vmatmul.msk.f32.vlgmr.msrb.gmra.mxu1 %vm3753_vm0, %v175_v16  ;;  %1972 = vmatmul.msk.f32.vlgmr.msrb.gmra.mxu2 %vm3753_vm0, %v566_v20  ;;  %v3868_v20 = vmov 0 }
  0x2d   :  { %1988 = vmatmul.msk.f32.vlgmr.msrb.gmra.mxu3 %vm3753_vm0, %v761_v23  ;;  %2004 = vmatmul.msk.f32.vlgmr.msrb.gmra.mxu0 %vm3753_vm0, %v2278_v59  ;;  %v567_v59 = vsel %vm519_vm14, %v2454_v44, 0.0  ;;  %vm2507_vm14 = vcmp.ge.s32.totalorder %v66_v56, 1  ;;  %v3869_v20 = vsel %vm2511_vm12, 4294967295, %v3868_v20  ;;  %v67_v23 = vand.u32 7, %v2129_v7  ;;  %v2564_v7 = vld [vmem:[%s3730_s0 + $0x29] sm:$0xff] }
  0x2e   :  { %3870 = vst [vmem:[#allocation13_spill] sm:$0xff] %v3869_v20  ;;  %vm130_vm8 = vmand %vm98_vm11, %vm2507_vm14  ;;  %v3871_v56 = vmov 0  ;;  %v1106_v16 = vsel %vm2511_vm12, %v2564_v7, 0.0 }
  0x2f   :  { %vm2544_vm13 = vcmp.ge.s32.totalorder %v67_v23, 1  ;;  %vm2548_vm11 = vcmp.lt.s32.totalorder %v67_v23, 7 }
  0x30   :  { %v3872_v56 = vsel %vm2544_vm13, 4294967295, %v3871_v56 }
  0x31   :  { %3873 = vst [vmem:[#allocation14_spill] sm:$0xff] %v3872_v56  ;;  %v1752_v56 = vld [vmem:[%s3729_s1 + $0x80] sm:$0xff] }
  0x32   :  { %1817 = vmatpush.msra.mxu0 %v1752_v56  ;;  %v2693_v56 = vld [vmem:[%s3730_s0 + $0x41] sm:$0xff] }
  0x34   :  { %1957 = vmatmul.msk.f32.gmra.mxu1 %vm3753_vm0, %v176_v48  ;;  %1973 = vmatmul.msk.f32.gmra.mxu2 %vm3753_vm0, %v567_v59  ;;  %v178_v48 = vsel %vm130_vm8, %v2500_v61, 0.0  ;;  %v569_v59 = vsel %vm521_vm1, %v2527_v22, 0.0  ;;  %vm131_vm8 = vmand %vm99_vm2, %vm2544_vm13 }
  0x35   :  { %1989 = vmatmul.msk.f32.gmra.mxu3 %vm3753_vm0, %v762_v53  ;;  %2005 = vmatmul.msk.f32.gmra.mxu0 %vm3753_vm0, %v2334_v18  ;;  %v764_v53 = vsel %vm2507_vm14, %v2537_v33, 0.0  ;;  %vm522_vm1 = vmand %vm99_vm2, %vm2548_vm11  ;;  %v179_v23 = vsel %vm131_vm8, %v2537_v33, 0.0 }
  0x3c   :  { %1958 = vmatmul.msk.f32.gmra.mxu1 %vm3753_vm0, %v177_v5  ;;  %1974 = vmatmul.msk.f32.gmra.mxu2 %vm3753_vm0, %v568_v6  ;;  %v3874_v5 = vmov 0  ;;  %v68_v6 = vand.u32 7, %v2138_v10  ;;  %v1346_v10 = vld [vmem:[%s3729_s1 + $0x60] sm:$0xff] }
  0x3d   :  { %1990 = vmatmul.msk.f32.gmra.mxu3 %vm3753_vm0, %v763_v15  ;;  %2006 = vmatmul.msk.f32.gmra.mxu0 %vm3753_vm0, %v2388_v51  ;;  %v3875_v5 = vsel %vm2548_vm11, 4294967295, %v3874_v5  ;;  %v2574_v15 = vld [vmem:[%s3730_s0 + $0x2f] sm:$0xff] }
  0x3e   :  { %3876 = vst [vmem:[#allocation15_spill] sm:$0xff] %v3875_v5  ;;  %vm2581_vm9 = vcmp.ge.s32.totalorder %v68_v6, 1  ;;  %vm2585_vm2 = vcmp.lt.s32.totalorder %v68_v6, 7  ;;  %v3879_v5 = vmov 0  ;;  %v1541_v6 = vld [vmem:[%s3729_s1 + $0x70] sm:$0xff]  ;;  %1411 = vmatpush.msra.mxu2 %v1346_v10  ;;  %v3887_v10 = vmov 0 }
  0x3f   :  { %v3880_v5 = vsel %vm2585_vm2, 4294967295, %v3879_v5  ;;  %vm2599_vm8 = vmand %vm100_vm5, %vm2581_vm9  ;;  %1606 = vmatpush.msra.mxu3 %v1541_v6 }
  0x40   :  { %3881 = vst [vmem:[#allocation16_spill] sm:$0xff] %v3880_v5  ;;  %v766_v5 = vsel %vm2581_vm9, %v2624_v24, 0.0 }
  0x44   :  { %1959 = vmatmul.msk.f32.gmra.mxu1 %vm3753_vm0, %v178_v48  ;;  %1975 = vmatmul.msk.f32.gmra.mxu2 %vm3753_vm0, %v569_v59  ;;  %v570_v48 = vsel %vm522_vm1, %v2564_v7, 0.0  ;;  %v765_v59 = vsel %vm2544_vm13, %v2574_v15, 0.0  ;;  %vm523_vm1 = vmand %vm100_vm5, %vm2585_vm2  ;;  %vm3890_vm2 = vcmask 130048  }
  0x45   :  { %1991 = vmatmul.msk.f32.gmra.mxu3 %vm3753_vm0, %v764_v53  ;;  %2007 = vmatmul.msk.f32.gmra.mxu0 %vm3753_vm0, %v2157_v19  ;;  %v3877_v53 = vmov 0  ;;  %vm3891_vm11 = vmmov %vm3890_vm2 }
  0x46   :  { %v3878_v53 = vsel %vm2581_vm9, 4294967295, %v3877_v53  ;;  %vm3892_vm13 = vmmov %vm3890_vm2 }
  0x47   :  { %vm3894_vm9 = vmmov %vm3890_vm2 }
  0x4c   :  { %1960 = vmatmul.msk.f32.gmra.mxu1 %vm3753_vm0, %v179_v23  ;;  %1976 = vmatmul.msk.f32.gmra.mxu2 %vm3753_vm0, %v570_v48  ;;  %v1119_v23 = vld [vmem:[%s3729_s1 + $0x50] sm:$0xff] }
  0x4d   :  { %1992 = vmatmul.msk.f32.gmra.mxu3 %vm3753_vm0, %v765_v59  ;;  %2008 = vmatmul.msk.f32.gmra.mxu0 %vm3753_vm0, %v2225_v41  ;;  %v2614_v48 = vld [vmem:[%s3730_s0 + $0x31] sm:$0xff]  ;;  %v69_v59 = vand.u32 7, %v2192_v32  ;;  %v180_v41 = vsel %vm2599_vm8, %v2574_v15, 0.0  ;;  %v3884_v32 = vmov 0  ;;  %vm3893_vm8 = vcmp.ge.s32.totalorder %v2271_v57, 1 }
  0x4e   :  { %1184 = vmatpush.msra.mxu1 %v1119_v23  ;;  %v571_v20 = vsel %vm523_vm1, %v2614_v48, 0.0 }
  0x4f   :  { %vm2633_vm5 = vcmp.ge.s32.totalorder %v69_v59, 1  ;;  %vm2637_vm0 = vcmp.lt.s32.totalorder %v69_v59, 7 }
  0x50   :  { %v3885_v32 = vsel %vm2633_vm5, 4294967295, %v3884_v32  ;;  %v3888_v10 = vsel %vm2637_vm0, 4294967295, %v3887_v10  ;;  %vm133_vm1 = vmand %vm3893_vm8, %vm2633_vm5 }
  0x51   :  { %3886 = vst [vmem:[#allocation17_spill] sm:$0xff] %v3885_v32  ;;  %v181_v6 = vsel %vm133_vm1, %v2624_v24, 0.0  ;;  %vm3904_vm1 = vcmp.ge.s32.totalorder %v2350_v35, 1  ;;  %v3909_v35 = vmov 0 }
  0x52   :  { %3889 = vst [vmem:[#allocation18_spill] sm:$0xff] %v3888_v10  ;;  %v3896_v10 = vmov 0 }
  0x54   :  { %1961 = vmatmul.msk.f32.gmra.mxu1 %vm3890_vm2, %v180_v41  ;;  %1977 = vmatmul.msk.f32.gmra.mxu2 %vm3891_vm11, %v571_v20  ;;  %v2656_v41 = vld [vmem:[%s3730_s0 + $0x39] sm:$0xff]  ;;  %v70_v20 = vand.u32 7, %v2287_v63  ;;  %v3898_v63 = vmov 0 }
  0x55   :  { %1993 = vmatmul.msk.f32.gmra.mxu3 %vm3892_vm13, %v766_v5  ;;  %2009 = vmatmul.msk.f32.gmra.mxu0 %vm3894_vm9, %v2314_v12  ;;  %vm3895_vm13 = vmmov %vm3893_vm8  ;;  %v2666_v5 = vld [vmem:[%s3730_s0 + $0x3f] sm:$0xff]  ;;  %vm3901_vm8 = vcmask 130048  }
  0x56   :  { %vm524_vm11 = vmand %vm3895_vm13, %vm2637_vm0  ;;  %v767_v59 = vsel %vm2633_vm5, %v2666_v5, 0.0  ;;  %vm2673_vm9 = vcmp.ge.s32.totalorder %v70_v20, 1  ;;  %vm2677_vm2 = vcmp.lt.s32.totalorder %v70_v20, 7  ;;  %v71_v20 = vand.u32 7, %v2132_v8  ;;  %v2730_v8 = vld [vmem:[%s3730_s0 + $0x49] sm:$0xff] }
  0x57   :  { %v572_v23 = vsel %vm524_vm11, %v2656_v41, 0.0  ;;  %v3897_v10 = vsel %vm2673_vm9, 4294967295, %v3896_v10  ;;  %v3899_v63 = vsel %vm2677_vm2, 4294967295, %v3898_v63  ;;  %vm3902_vm13 = vmmov %vm3901_vm8 }
  0x58   :  { %3900 = vst [vmem:[#allocation19_spill] sm:$0xff] %v3899_v63  ;;  %vm3903_vm0 = vmmov %vm3901_vm8  ;;  %v3907_v63 = vmov 0 }
  0x59   :  { %vm134_vm11 = vmand %vm3904_vm1, %vm2673_vm9 }
  0x5a   :  { %vm3905_vm5 = vmmov %vm3903_vm0 }
  0x5c   :  { %1962 = vmatmul.msk.f32.gmra.mxu1 %vm3901_vm8, %v181_v6  ;;  %1978 = vmatmul.msk.f32.gmra.mxu2 %vm3902_vm13, %v572_v23  ;;  %vm3906_vm8 = vmmov %vm3904_vm1  ;;  %v2703_v6 = vld [vmem:[%s3730_s0 + $0x47] sm:$0xff]  ;;  %v182_v23 = vsel %vm134_vm11, %v2666_v5, 0.0  ;;  %vm3912_vm1 = vcmask 130048   ;;  %vm3915_vm11 = vcmp.ge.s32.totalorder %v2168_v25, 1  ;;  %v3920_v25 = vmov 0 }
  0x5d   :  { %1994 = vmatmul.msk.f32.gmra.mxu3 %vm3903_vm0, %v767_v59  ;;  %2010 = vmatmul.msk.f32.gmra.mxu0 %vm3905_vm5, %v2369_v42  ;;  %vm525_vm13 = vmand %vm3906_vm8, %vm2677_vm2  ;;  %v768_v32 = vsel %vm2673_vm9, %v2703_v6, 0.0  ;;  %vm2710_vm0 = vcmp.ge.s32.totalorder %v71_v20, 1  ;;  %vm2714_vm5 = vcmp.lt.s32.totalorder %v71_v20, 7  ;;  %v2740_v20 = vld [vmem:[%s3730_s0 + $0x4f] sm:$0xff] }
  0x5e   :  { %v573_v59 = vsel %vm525_vm13, %v2693_v56, 0.0  ;;  %v3908_v63 = vsel %vm2710_vm0, 4294967295, %v3907_v63  ;;  %v3910_v35 = vsel %vm2714_vm5, 4294967295, %v3909_v35  ;;  %vm3913_vm8 = vmmov %vm3912_vm1 }
  0x5f   :  { %3911 = vst [vmem:[#allocation20_spill] sm:$0xff] %v3910_v35  ;;  %vm3914_vm2 = vmmov %vm3912_vm1  ;;  %v3918_v35 = vmov 0 }
  0x60   :  { %vm135_vm13 = vmand %vm3915_vm11, %vm2710_vm0 }
  0x61   :  { %vm3916_vm9 = vmmov %vm3912_vm1 }
  0x64   :  { %1963 = vmatmul.msk.f32.gmra.mxu1 %vm3912_vm1, %v182_v23  ;;  %1979 = vmatmul.msk.f32.gmra.mxu2 %vm3913_vm8, %v573_v59  ;;  %vm3917_vm1 = vmmov %vm3915_vm11  ;;  %v183_v23 = vsel %vm135_vm13, %v2703_v6, 0.0  ;;  %v769_v59 = vsel %vm2710_vm0, %v2740_v20, 0.0  ;;  %vm3923_vm11 = vcmask 130048   ;;  %vm3926_vm13 = vcmp.ge.s32.totalorder %v2200_v34, 1 }
  0x65   :  { %1995 = vmatmul.msk.f32.gmra.mxu3 %vm3914_vm2, %v768_v32  ;;  %2011 = vmatmul.msk.f32.gmra.mxu0 %vm3916_vm9, %v2173_v26  ;;  %vm526_vm8 = vmand %vm3917_vm1, %vm2714_vm5  ;;  %v72_v32 = vand.u32 7, %v2141_v11  ;;  %v2767_v11 = vld [vmem:[%s3730_s0 + $0x51] sm:$0xff]  ;;  %v3932_v34 = vmov 0 }
  0x66   :  { %v574_v26 = vsel %vm526_vm8, %v2730_v8, 0.0  ;;  %vm3924_vm1 = vmmov %vm3923_vm11 }
  0x67   :  { %vm2747_vm9 = vcmp.ge.s32.totalorder %v72_v32, 1  ;;  %vm2751_vm2 = vcmp.lt.s32.totalorder %v72_v32, 7  ;;  %vm3925_vm5 = vmmov %vm3924_vm1  ;;  %v73_v32 = vand.u32 7, %v2230_v43  ;;  %v2804_v43 = vld [vmem:[%s3730_s0 + $0x59] sm:$0xff] }
  0x68   :  { %v3919_v35 = vsel %vm2747_vm9, 4294967295, %v3918_v35  ;;  %v3921_v25 = vsel %vm2751_vm2, 4294967295, %v3920_v25  ;;  %vm136_vm8 = vmand %vm3926_vm13, %vm2747_vm9 }
  0x69   :  { %3922 = vst [vmem:[#allocation21_spill] sm:$0xff] %v3921_v25  ;;  %vm3927_vm0 = vmmov %vm3924_vm1  ;;  %v3929_v25 = vmov 0 }
  0x6c   :  { %1964 = vmatmul.msk.f32.gmra.mxu1 %vm3923_vm11, %v183_v23  ;;  %1980 = vmatmul.msk.f32.gmra.mxu2 %vm3924_vm1, %v574_v26  ;;  %vm3928_vm11 = vmmov %vm3926_vm13  ;;  %v2777_v23 = vld [vmem:[%s3730_s0 + $0x57] sm:$0xff]  ;;  %v184_v26 = vsel %vm136_vm8, %v2740_v20, 0.0  ;;  %vm3935_vm13 = vcmask 130048   ;;  %vm3938_vm8 = vcmp.ge.s32.totalorder %v2284_v62, 1  ;;  %v3944_v62 = vmov 0 }
  0x6d   :  { %1996 = vmatmul.msk.f32.gmra.mxu3 %vm3925_vm5, %v769_v59  ;;  %2012 = vmatmul.msk.f32.gmra.mxu0 %vm3927_vm0, %v2242_v46  ;;  %vm527_vm1 = vmand %vm3928_vm11, %vm2751_vm2  ;;  %v770_v59 = vsel %vm2747_vm9, %v2777_v23, 0.0  ;;  %vm2784_vm0 = vcmp.ge.s32.totalorder %v73_v32, 1  ;;  %vm2788_vm5 = vcmp.lt.s32.totalorder %v73_v32, 7  ;;  %v74_v32 = vand.u32 7, %v2290_v0  ;;  %v2841_v0 = vld [vmem:[%s3730_s0 + $0x61] sm:$0xff] }
  0x6e   :  { %v575_v46 = vsel %vm527_vm1, %v2767_v11, 0.0  ;;  %v3930_v25 = vsel %vm2784_vm0, 4294967295, %v3929_v25  ;;  %v3933_v34 = vsel %vm2788_vm5, 4294967295, %v3932_v34  ;;  %vm3936_vm11 = vmmov %vm3935_vm13 }
  0x6f   :  { %3931 = vst [vmem:[#allocation22_spill] sm:$0xff] %v3930_v25  ;;  %vm3937_vm2 = vmmov %vm3936_vm11  ;;  %v3984_v25 = vmov 0 }
  0x70   :  { %3934 = vst [vmem:[#allocation23_spill] sm:$0xff] %v3933_v34  ;;  %vm137_vm1 = vmand %vm3938_vm8, %vm2784_vm0  ;;  %v3941_v34 = vmov 0 }
  0x71   :  { %vm3939_vm9 = vmmov %vm3937_vm2 }
  0x74   :  { %1965 = vmatmul.msk.f32.gmra.mxu1 %vm3935_vm13, %v184_v26  ;;  %1981 = vmatmul.msk.f32.gmra.mxu2 %vm3936_vm11, %v575_v46  ;;  %vm3940_vm13 = vmmov %vm3938_vm8  ;;  %v2814_v26 = vld [vmem:[%s3730_s0 + $0x5f] sm:$0xff]  ;;  %v185_v46 = vsel %vm137_vm1, %v2777_v23, 0.0  ;;  %vm3947_vm8 = vcmask 130048   ;;  %vm3950_vm1 = vcmp.ge.s32.totalorder %v2352_v36, 1  ;;  %v3957_v36 = vmov 0 }
  0x75   :  { %1997 = vmatmul.msk.f32.gmra.mxu3 %vm3937_vm2, %v770_v59  ;;  %2013 = vmatmul.msk.f32.gmra.mxu0 %vm3939_vm9, %v2320_v14  ;;  %vm528_vm11 = vmand %vm3940_vm13, %vm2788_vm5  ;;  %v771_v59 = vsel %vm2784_vm0, %v2814_v26, 0.0  ;;  %vm2821_vm9 = vcmp.ge.s32.totalorder %v74_v32, 1  ;;  %vm2825_vm2 = vcmp.lt.s32.totalorder %v74_v32, 7  ;;  %v75_v32 = vand.u32 7, %v2135_v9  ;;  %v2878_v9 = vld [vmem:[%s3730_s0 + $0x69] sm:$0xff] }
  0x76   :  { %v576_v14 = vsel %vm528_vm11, %v2804_v43, 0.0  ;;  %v3942_v34 = vsel %vm2821_vm9, 4294967295, %v3941_v34  ;;  %v3945_v62 = vsel %vm2825_vm2, 4294967295, %v3944_v62  ;;  %vm3948_vm13 = vmmov %vm3947_vm8  ;;  %3965 = vst [vmem:[#allocation29_spill] sm:$0xff] %v2878_v9 }
  0x77   :  { %3943 = vst [vmem:[#allocation24_spill] sm:$0xff] %v3942_v34  ;;  %vm3949_vm5 = vmmov %vm3947_vm8 }
  0x78   :  { %3946 = vst [vmem:[#allocation25_spill] sm:$0xff] %v3945_v62  ;;  %vm138_vm11 = vmand %vm3950_vm1, %vm2821_vm9  ;;  %v3954_v62 = vmov 0 }
  0x79   :  { %vm3951_vm0 = vmmov %vm3949_vm5 }
  0x7c   :  { %1966 = vmatmul.msk.f32.gmra.mxu1 %vm3947_vm8, %v185_v46  ;;  %1982 = vmatmul.msk.f32.gmra.mxu2 %vm3948_vm13, %v576_v14  ;;  %vm3952_vm8 = vmmov %vm3950_vm1  ;;  %v2851_v46 = vld [vmem:[%s3730_s0 + $0x67] sm:$0xff]  ;;  %v186_v14 = vsel %vm138_vm11, %v2814_v26, 0.0  ;;  %vm3960_vm1 = vcmask 130048   ;;  %vm3963_vm11 = vcmp.ge.s32.totalorder %v2175_v27, 1  ;;  %v3968_v27 = vmov 0 }
  0x7d   :  { %1998 = vmatmul.msk.f32.gmra.mxu3 %vm3949_vm5, %v771_v59  ;;  %2014 = vmatmul.msk.f32.gmra.mxu0 %vm3951_vm0, %v2375_v45  ;;  %vm529_vm13 = vmand %vm3952_vm8, %vm2825_vm2  ;;  %3953 = vst [vmem:[#allocation26_spill] sm:$0xff] %v2851_v46  ;;  %v772_v59 = vsel %vm2821_vm9, %v2851_v46, 0.0  ;;  %vm2858_vm0 = vcmp.ge.s32.totalorder %v75_v32, 1  ;;  %vm2862_vm5 = vcmp.lt.s32.totalorder %v75_v32, 7  ;;  %v76_v32 = vand.u32 7, %v2145_v13 }
  0x7e   :  { %v577_v45 = vsel %vm529_vm13, %v2841_v0, 0.0  ;;  %v3955_v62 = vsel %vm2858_vm0, 4294967295, %v3954_v62  ;;  %v3958_v36 = vsel %vm2862_vm5, 4294967295, %v3957_v36  ;;  %vm3961_vm8 = vmmov %vm3960_vm1  ;;  %v3971_v13 = vmov 0 }
  0x7f   :  { %3956 = vst [vmem:[#allocation27_spill] sm:$0xff] %v3955_v62  ;;  %vm3962_vm2 = vmmov %vm3960_vm1  ;;  %v3021_v62 = vld [vmem:[%s3730_s0 + $0x81] sm:$0xff] }
  0x80   :  { %3959 = vst [vmem:[#allocation28_spill] sm:$0xff] %v3958_v36  ;;  %vm139_vm13 = vmand %vm3963_vm11, %vm2858_vm0 }
  0x81   :  { %vm3964_vm9 = vmmov %vm3960_vm1 }
  0x84   :  { %1967 = vmatmul.msk.f32.gmra.mxu1 %vm3960_vm1, %v186_v14  ;;  %1983 = vmatmul.msk.f32.gmra.mxu2 %vm3961_vm8, %v577_v45  ;;  %vm3966_vm1 = vmmov %vm3963_vm11  ;;  %v2888_v14 = vld [vmem:[%s3730_s0 + $0x6f] sm:$0xff]  ;;  %vm3974_vm11 = vcmask 130048  }
  0x85   :  { %1999 = vmatmul.msk.f32.gmra.mxu3 %vm3962_vm2, %v772_v59  ;;  %2015 = vmatmul.msk.f32.gmra.mxu0 %vm3964_vm9, %v2180_v28  ;;  %vm530_vm8 = vmand %vm3966_vm1, %vm2862_vm5  ;;  %3967 = vst [vmem:[#allocation30_spill] sm:$0xff] %v2888_v14  ;;  %v187_v28 = vsel %vm139_vm13, %v2851_v46, 0.0  ;;  %v773_v36 = vsel %vm2858_vm0, %v2888_v14, 0.0  ;;  %vm2899_vm9 = vcmp.ge.s32.totalorder %v76_v32, 1  ;;  %vm2903_vm2 = vcmp.lt.s32.totalorder %v76_v32, 7  ;;  %v2923_v32 = vld [vmem:[%s3730_s0 + $0x71] sm:$0xff] }
  0x86   :  { %v578_v59 = vsel %vm530_vm8, %v2878_v9, 0.0  ;;  %v3969_v27 = vsel %vm2899_vm9, 4294967295, %v3968_v27  ;;  %v3972_v13 = vsel %vm2903_vm2, 4294967295, %v3971_v13  ;;  %vm3975_vm1 = vmmov %vm3974_vm11  ;;  %vm3977_vm8 = vcmp.ge.s32.totalorder %v2211_v38, 1  ;;  %3981 = vst [vmem:[#allocation33_spill] sm:$0xff] %v2923_v32 }
  0x87   :  { %3970 = vst [vmem:[#allocation31_spill] sm:$0xff] %v3969_v27  ;;  %vm3976_vm13 = vmmov %vm3975_vm1 }
  0x88   :  { %v2897_v34 = vpop.f32.mrf.mxu0  ;;  %3973 = vst [vmem:[#allocation32_spill] sm:$0xff] %v3972_v13  ;;  %vm2914_vm5 = vmand %vm3977_vm8, %vm2899_vm9 }
  0x89   :  { %v2890_v45 = vpop.f32.mrf.mxu1  ;;  %vm3980_vm0 = vmmov %vm3975_vm1  ;;  %v188_v13 = vsel %vm2914_vm5, %v2888_v14, 0.0  ;;  %v4000_v14 = vmov 0 }
  0x8c   :  { %1968 = vmatmul.msk.f32.gmra.mxu1 %vm3974_vm11, %v187_v28  ;;  %1984 = vmatmul.msk.f32.gmra.mxu2 %vm3975_vm1, %v578_v59  ;;  %vm3982_vm11 = vmmov %vm3977_vm8  ;;  %v2935_v59 = vld [vmem:[%s3730_s0 + $0x77] sm:$0xff]  ;;  %vm3990_vm8 = vcmask 130048  }
  0x8d   :  { %2000 = vmatmul.msk.f32.gmra.mxu3 %vm3976_vm13, %v773_v36  ;;  %2016 = vmatmul.msk.f32.gmra.mxu0 %vm3980_vm0, %v2254_v49  ;;  %vm531_vm1 = vmand %vm3982_vm11, %vm2903_vm2  ;;  %v77_v36 = vand.u32 7, %v2245_v47  ;;  %v774_v47 = vsel %vm2899_vm9, %v2935_v59, 0.0 }
  0x8e   :  { %v579_v38 = vsel %vm531_vm1, %v2923_v32, 0.0  ;;  %vm3991_vm11 = vmmov %vm3990_vm8  ;;  %vm3993_vm1 = vcmp.ge.s32.totalorder %v2293_v1, 1 }
  0x8f   :  { %v2930_v28 = vpop.f32.mrf.mxu2  ;;  %vm2950_vm0 = vcmp.ge.s32.totalorder %v77_v36, 1  ;;  %vm2954_vm13 = vcmp.lt.s32.totalorder %v77_v36, 7  ;;  %vm3992_vm5 = vmmov %vm3990_vm8  ;;  %v2974_v36 = vld [vmem:[%s3730_s0 + $0x79] sm:$0xff] }
  0x90   :  { %v2937_v49 = vpop.f32.mrf.mxu3  ;;  %v3985_v25 = vsel %vm2950_vm0, 4294967295, %v3984_v25  ;;  %vm2965_vm2 = vmand %vm3993_vm1, %vm2950_vm0  ;;  %3997 = vst [vmem:[#allocation37_spill] sm:$0xff] %v2974_v36 }
  0x91   :  { %3983 = vst [vmem:[#allocation34_spill] sm:$0xff] %v2937_v49  ;;  %v2939_v9 = vpop.f32.mrf.mxu1  ;;  %v3987_v49 = vmov 0  ;;  %vm3996_vm9 = vmmov %vm3992_vm5 }
  0x92   :  { %v2948_v46 = vpop.f32.mrf.mxu0  ;;  %3986 = vst [vmem:[#allocation35_spill] sm:$0xff] %v3985_v25  ;;  %v3988_v49 = vsel %vm2954_vm13, 4294967295, %v3987_v49 }
  0x93   :  { %3989 = vst [vmem:[#allocation36_spill] sm:$0xff] %v3988_v49  ;;  %v189_v49 = vsel %vm2965_vm2, %v2935_v59, 0.0 }
  0x94   :  { %1969 = vmatmul.msk.f32.gmra.mxu1 %vm3990_vm8, %v188_v13  ;;  %1985 = vmatmul.msk.f32.gmra.mxu2 %vm3991_vm11, %v579_v38  ;;  %vm3998_vm8 = vmmov %vm3993_vm1  ;;  %v78_v38 = vand.u32 7, %v2298_v4  ;;  %vm4006_vm1 = vcmask 130048  }
  0x95   :  { %2001 = vmatmul.msk.f32.gmra.mxu3 %vm3992_vm5, %v774_v47  ;;  %2017 = vmatmul.msk.f32.gmra.mxu0 %vm3996_vm9, %v2328_v17  ;;  %vm532_vm11 = vmand %vm3998_vm8, %vm2954_vm13  ;;  %v2986_v47 = vld [vmem:[%s3730_s0 + $0x7f] sm:$0xff] }
  0x96   :  { %v580_v1 = vsel %vm532_vm11, %v2974_v36, 0.0  ;;  %v775_v4 = vsel %vm2950_vm0, %v2986_v47, 0.0  ;;  %vm3001_vm9 = vcmp.ge.s32.totalorder %v78_v38, 1  ;;  %vm3005_vm5 = vcmp.lt.s32.totalorder %v78_v38, 7  ;;  %vm4007_vm8 = vmmov %vm4006_vm1  ;;  %v3048_v36 = vld [vmem:[%s3730_s0 + $0x88] sm:$0xff] }
  0x97   :  { %v2981_v13 = vpop.f32.mrf.mxu2  ;;  %v4001_v14 = vsel %vm3001_vm9, 4294967295, %v4000_v14  ;;  %vm4008_vm2 = vmmov %vm4006_vm1  ;;  %vm4009_vm11 = vcmp.ge.s32.totalorder %v2357_v39, 1  ;;  %4013 = vst [vmem:[#allocation42_spill] sm:$0xff] %v3048_v36 }
  0x98   :  { %v2988_v17 = vpop.f32.mrf.mxu3  ;;  %4002 = vst [vmem:[#allocation39_spill] sm:$0xff] %v4001_v14  ;;  %vm142_vm13 = vmand %vm4009_vm11, %vm3001_vm9 }
  0x99   :  { %3999 = vst [vmem:[#allocation38_spill] sm:$0xff] %v2988_v17  ;;  %v2990_v27 = vpop.f32.mrf.mxu1  ;;  %v4003_v17 = vmov 0  ;;  %vm4010_vm0 = vmmov %vm4006_vm1 }
  0x9a   :  { %v2999_v32 = vpop.f32.mrf.mxu0  ;;  %v4004_v17 = vsel %vm3005_vm5, 4294967295, %v4003_v17 }
  0x9b   :  { %4005 = vst [vmem:[#allocation40_spill] sm:$0xff] %v4004_v17 }
  0x9c   :  { %1970 = vmatmul.msk.f32.gmra.mxu1 %vm4006_vm1, %v189_v49  ;;  %1986 = vmatmul.msk.f32.gmra.mxu2 %vm4007_vm8, %v580_v1  ;;  %vm4011_vm1 = vmmov %vm4009_vm11  ;;  %v3032_v49 = vld [vmem:[%s3730_s0 + $0x87] sm:$0xff] }
  0x9d   :  { %2002 = vmatmul.msk.f32.gmra.mxu3 %vm4008_vm2, %v775_v4  ;;  %2018 = vmatmul.msk.f32.gmra.mxu0 %vm4010_vm0, %v2382_v50  ;;  %vm533_vm8 = vmand %vm4011_vm1, %vm3005_vm5  ;;  %v190_v4 = vsel %vm142_vm13, %v2986_v47, 0.0  ;;  %v776_v17 = vsel %vm3001_vm9, %v3032_v49, 0.0  ;;  %vm1266_vm0 = vcmp.lt.s32.totalorder %v2160_v21, 7 }
  0x9e   :  { %v581_v25 = vsel %vm533_vm8, %v3021_v62, 0.0  ;;  %vm4014_vm11 = vmmov %vm4008_vm2 }
  0x9f   :  { %v3027_v1 = vpop.f32.mrf.mxu2  ;;  %vm4015_vm13 = vmmov %vm4008_vm2 }
  0xa0   :  { %v3034_v38 = vpop.f32.mrf.mxu3  ;;  %vm4016_vm1 = vmmov %vm4008_vm2 }
  0xa1   :  { %4012 = vst [vmem:[#allocation41_spill] sm:$0xff] %v3034_v38  ;;  %v3036_v50 = vpop.f32.mrf.mxu1  ;;  %vm1282_vm8 = vmand %vm1266_vm0, %vm2399_vm7  ;;  %vm1267_vm7 = vcmp.lt.s32.totalorder %v2273_v58, 7 }
  0xa2   :  { %v3043_v39 = vpop.f32.mrf.mxu0  ;;  %vm1688_vm5 = vmand %vm1266_vm0, %vm2406_vm4 }
  0xa3   :  { %v1736_v55 = vsel %vm1688_vm5, %v2490_v52, 0.0  ;;  %vm3084_vm5 = vmand %vm1267_vm7, %vm2438_vm6 }
  0xa4   :  { %1971 = vmatmul.msk.f32.gmra.mxu1 %vm4008_vm2, %v190_v4  ;;  %1987 = vmatmul.msk.f32.gmra.mxu2 %vm4014_vm11, %v581_v25  ;;  %v1103_v25 = vsel %vm2406_vm4, %v2454_v44, 0.0  ;;  %v1525_v4 = vsel %vm1266_vm0, %v2334_v18, 0.0  ;;  %vm4018_vm2 = vmmov %vm4016_vm1 }
  0xa5   :  { %2003 = vmatmul.msk.f32.gmra.mxu3 %vm4015_vm13, %v776_v17  ;;  %2019 = vmatmul.msk.f32.gmra.mxu0 %vm4016_vm1, %v3048_v36  ;;  %v1330_v17 = vsel %vm1282_vm8, %v2464_v37, 0.0  ;;  %vm4019_vm11 = vmmov %vm4016_vm1 }
  0xa6   :  { %vm4020_vm13 = vmmov %vm4016_vm1 }
  0xa7   :  { %v3058_v14 = vpop.f32.mrf.mxu2  ;;  %vm3078_vm4 = vmand %vm1267_vm7, %vm2434_vm10  ;;  %vm1268_vm10 = vcmp.lt.s32.totalorder %v2295_v2, 7 }
  0xa8   :  { %v3062_v38 = vpop.f32.mrf.mxu3  ;;  %v1331_v29 = vsel %vm3078_vm4, %v2500_v61, 0.0  ;;  %vm4025_vm0 = vmmov %vm4016_vm1  ;;  %v1527_v58 = vsel %vm1268_vm10, %v2157_v19, 0.0  ;;  %v4043_v61 = vld [vmem:[#allocation2_spill] sm:$0xff] }
  0xa9   :  { %4017 = vst [vmem:[#allocation43_spill] sm:$0xff] %v3062_v38  ;;  %v438_v21 = vpop.f32.mrf.mxu1  ;;  %v1737_v38 = vsel %vm3084_vm5, %v2527_v22, 0.0  ;;  %vm4026_vm8 = vmmov %vm4025_vm0 }
  0xaa   :  { %v991_v36 = vpop.f32.mrf.mxu0  ;;  %v439_v60 = vadd.f32 %v438_v21, %v2897_v34  ;;  %v1104_v34 = vsel %vm2438_vm6, %v2490_v52, 0.0  ;;  %vm4027_vm6 = vmmov %vm4025_vm0 }
  0xab   :  { %vm4036_vm4 = vmmov %vm4025_vm0 }
  0xac   :  { %2020 = vmatmul.msk.f32.vlgmr.msra.gmra.mxu1 %vm4018_vm2, %v1103_v25  ;;  %2036 = vmatmul.msk.f32.vlgmr.msra.gmra.mxu2 %vm4019_vm11, %v1330_v17  ;;  %vm4028_vm2 = vmmov %vm4025_vm0 }
  0xad   :  { %2052 = vmatmul.msk.f32.vlgmr.msra.gmra.mxu3 %vm4020_vm13, %v1525_v4  ;;  %2068 = vmatmul.msk.f32.vlgmr.msra.gmra.mxu0 %vm4016_vm1, %v1736_v55  ;;  %v1526_v4 = vsel %vm1267_vm7, %v2388_v51, 0.0  ;;  %vm3110_vm7 = vmand %vm1268_vm10, %vm2470_vm15  ;;  %vm1269_vm15 = vcmp.lt.s32.totalorder %v2359_v40, 7 }
  0xae   :  { %vm3118_vm11 = vmand %vm1268_vm10, %vm2474_vm3  ;;  %v1332_v44 = vsel %vm3110_vm7, %v2537_v33, 0.0  ;;  %v4062_v33 = vld [vmem:[#allocation16_spill] sm:$0xff] }
  0xaf   :  { %v649_v18 = vpop.f32.mrf.mxu2  ;;  %vm4033_vm13 = vmmov %vm4025_vm0 }
  0xb0   :  { %v697_v37 = vadd.f32 %v649_v18, %v439_v60  ;;  %v844_v25 = vpop.f32.mrf.mxu3  ;;  %vm4034_vm3 = vmmov %vm4025_vm0 }
  0xb1   :  { %v441_v17 = vpop.f32.mrf.mxu1  ;;  %vm4035_vm1 = vmmov %vm4025_vm0 }
  0xb2   :  { %v892_v21 = vadd.f32 %v844_v25, %v697_v37  ;;  %v994_v55 = vpop.f32.mrf.mxu0  ;;  %v442_v31 = vadd.f32 %v441_v17, %v2948_v46  ;;  %v1738_v25 = vsel %vm3118_vm11, %v2564_v7, 0.0  ;;  %vm3146_vm5 = vmand %vm1269_vm15, %vm2507_vm14  ;;  %vm1270_vm14 = vcmp.lt.s32.totalorder %v4043_v61, 7  ;;  %v4047_v7 = vld [vmem:[#allocation14_spill] sm:$0xff] }
  0xb3   :  { %vm3154_vm10 = vmand %vm1269_vm15, %vm2511_vm12  ;;  %v4074_v61 = vld [vmem:[#allocation18_spill] sm:$0xff] }
  0xb4   :  { %v3099_v60 = vadd.f32 %v991_v36, %v892_v21  ;;  %2021 = vmatmul.msk.f32.gmra.mxu1 %vm4025_vm0, %v1104_v34  ;;  %2037 = vmatmul.msk.f32.gmra.mxu2 %vm4026_vm8, %v1331_v29  ;;  %v1333_v21 = vsel %vm3146_vm5, %v2574_v15, 0.0  ;;  %vm4044_vm12 = vmmov %vm4025_vm0 }
  0xb5   :  { %2053 = vmatmul.msk.f32.gmra.mxu3 %vm4027_vm6, %v1526_v4  ;;  %2069 = vmatmul.msk.f32.gmra.mxu0 %vm4028_vm2, %v1737_v38  ;;  %vm4045_vm8 = vmmov %vm4025_vm0  ;;  %vm4048_vm2 = vnez %v4047_v7 }
  0xb6   :  { %vm4046_vm6 = vmmov %vm4025_vm0 }
  0xb7   :  { %v652_v52 = vpop.f32.mrf.mxu2  ;;  %vm3182_vm7 = vmand %vm1270_vm14, %vm4048_vm2 }
  0xb8   :  { %v698_v36 = vadd.f32 %v652_v52, %v442_v31  ;;  %v847_v38 = vpop.f32.mrf.mxu3  ;;  %v1739_v52 = vsel %vm3154_vm10, %v2614_v48, 0.0  ;;  %vm4058_vm5 = vmmov %vm4025_vm0  ;;  %vm4059_vm10 = vnez %v3878_v53 }
  0xb9   :  { %v444_v46 = vpop.f32.mrf.mxu1 }
  0xba   :  { %v893_v18 = vadd.f32 %v847_v38, %v698_v36  ;;  %v997_v37 = vpop.f32.mrf.mxu0  ;;  %v445_v2 = vadd.f32 %v444_v46, %v2999_v32  ;;  %v4051_v46 = vld [vmem:[#allocation15_spill] sm:$0xff] }
  0xbb   :  { %vm4052_vm11 = vnez %v4051_v46 }
  0xbc   :  { %v3135_v17 = vadd.f32 %v994_v55, %v893_v18  ;;  %2022 = vmatmul.msk.f32.gmra.mxu1 %vm4033_vm13, %v1105_v3  ;;  %2038 = vmatmul.msk.f32.gmra.mxu2 %vm4034_vm3, %v1332_v44  ;;  %v4042_v55 = vld [vmem:[#allocation7_spill] sm:$0xff]  ;;  %vm1271_vm13 = vcmp.lt.s32.totalorder %v2185_v30, 7  ;;  %vm4055_vm3 = vmmov %vm4025_vm0 }
  0xbd   :  { %2054 = vmatmul.msk.f32.gmra.mxu3 %vm4035_vm1, %v1527_v58  ;;  %2070 = vmatmul.msk.f32.gmra.mxu0 %vm4036_vm4, %v1738_v25  ;;  %v1528_v31 = vsel %vm1269_vm15, %v4042_v55, 0.0  ;;  %vm3190_vm15 = vmand %vm1270_vm14, %vm4052_vm11  ;;  %v1107_v58 = vsel %vm4052_vm11, %v2614_v48, 0.0 }
  0xbe   :  { %vm4056_vm1 = vmmov %vm4025_vm0 }
  0xbf   :  { %v655_v54 = vpop.f32.mrf.mxu2  ;;  %vm4057_vm4 = vmmov %vm4025_vm0 }
  0xc0   :  { %v699_v34 = vadd.f32 %v655_v54, %v445_v2  ;;  %v850_v29 = vpop.f32.mrf.mxu3  ;;  %v1529_v2 = vsel %vm1270_vm14, %v2314_v12, 0.0  ;;  %v1740_v54 = vsel %vm3190_vm15, %v2656_v41, 0.0  ;;  %vm3218_vm14 = vmand %vm1271_vm13, %vm4059_vm10 }
  0xc1   :  { %v447_v32 = vpop.f32.mrf.mxu1  ;;  %vm4067_vm2 = vmmov %vm4056_vm1 }
  0xc2   :  { %v894_v4 = vadd.f32 %v850_v29, %v699_v34  ;;  %v1000_v51 = vpop.f32.mrf.mxu0  ;;  %v448_v40 = vadd.f32 %v447_v32, %v3043_v39  ;;  %vm4069_vm11 = vmmov %vm4056_vm1 }
  0xc3   :  { %vm4080_vm10 = vmmov %vm4067_vm2 }
  0xc4   :  { %v3171_v36 = vadd.f32 %v997_v37, %v894_v4  ;;  %2023 = vmatmul.msk.f32.gmra.mxu1 %vm4025_vm0, %v1106_v16  ;;  %2039 = vmatmul.msk.f32.gmra.mxu2 %vm4044_vm12, %v1333_v21  ;;  %v1334_v37 = vsel %vm3182_vm7, %v2624_v24, 0.0  ;;  %vm4063_vm0 = vnez %v4062_v33  ;;  %v1335_v16 = vsel %vm3218_vm14, %v2666_v5, 0.0  ;;  %vm4068_vm7 = vmmov %vm4056_vm1 }
  0xc5   :  { %2055 = vmatmul.msk.f32.gmra.mxu3 %vm4045_vm8, %v1528_v31  ;;  %2071 = vmatmul.msk.f32.gmra.mxu0 %vm4046_vm6, %v1739_v52  ;;  %vm3226_vm12 = vmand %vm1271_vm13, %vm4063_vm0  ;;  %v1108_v53 = vsel %vm4063_vm0, %v2656_v41, 0.0  ;;  %v1530_v4 = vsel %vm1271_vm13, %v2369_v42, 0.0  ;;  %vm1272_vm8 = vcmp.lt.s32.totalorder %v2271_v57, 7  ;;  %v4070_v42 = vld [vmem:[#allocation17_spill] sm:$0xff]  ;;  %v1483_v52 = vld [vmem:[%s3730_s0 + $0x48] sm:$0xff] }
  0xc6   :  { %v1741_v31 = vsel %vm3226_vm12, %v2693_v56, 0.0  ;;  %vm4066_vm6 = vmmov %vm4056_vm1  ;;  %vm4071_vm15 = vnez %v4070_v42  ;;  %vm4083_vm12 = vnez %v3897_v10 }
  0xc7   :  { %v658_v38 = vpop.f32.mrf.mxu2  ;;  %vm3254_vm13 = vmand %vm1272_vm8, %vm4071_vm15 }
  0xc8   :  { %v700_v44 = vadd.f32 %v658_v38, %v448_v40  ;;  %v853_v18 = vpop.f32.mrf.mxu3  ;;  %v1336_v46 = vsel %vm3254_vm13, %v2703_v6, 0.0  ;;  %vm4081_vm14 = vmmov %vm4067_vm2 }
  0xc9   :  { %v450_v39 = vpop.f32.mrf.mxu1  ;;  %vm4082_vm0 = vmmov %vm4067_vm2 }
  0xca   :  { %v895_v25 = vadd.f32 %v853_v18, %v700_v44  ;;  %v1003_v19 = vpop.f32.mrf.mxu0  ;;  %v451_v24 = vadd.f32 %v450_v39, %v2890_v45  ;;  %v1531_v44 = vsel %vm1272_vm8, %v1483_v52, 0.0  ;;  %vm4092_vm15 = vmmov %vm4082_vm0 }
  0xcb   :  { %vm4093_vm13 = vmmov %vm4082_vm0 }
  0xcc   :  { %v3207_v22 = vadd.f32 %v1000_v51, %v895_v25  ;;  %2024 = vmatmul.msk.f32.gmra.mxu1 %vm4055_vm3, %v1107_v58  ;;  %2040 = vmatmul.msk.f32.gmra.mxu2 %vm4056_vm1, %v1334_v37  ;;  %vm4075_vm3 = vnez %v4074_v61  ;;  %v4078_v58 = vld [vmem:[#allocation10_spill] sm:$0xff]  ;;  %v1484_v25 = vld [vmem:[%s3730_s0 + $0x50] sm:$0xff]  ;;  %v4102_v61 = vld [vmem:[#allocation5_spill] sm:$0xff] }
  0xcd   :  { %2056 = vmatmul.msk.f32.gmra.mxu3 %vm4057_vm4, %v1529_v2  ;;  %2072 = vmatmul.msk.f32.gmra.mxu0 %vm4058_vm5, %v1740_v54  ;;  %vm3265_vm1 = vmand %vm1272_vm8, %vm4075_vm3  ;;  %v1109_v38 = vsel %vm4075_vm3, %v2693_v56, 0.0  ;;  %vm1273_vm4 = vcmp.lt.s32.totalorder %v4078_v58, 7  ;;  %v4086_v2 = vld [vmem:[#allocation19_spill] sm:$0xff]  ;;  %v4113_v56 = vld [vmem:[#allocation8_spill] sm:$0xff] }
  0xce   :  { %v1742_v39 = vsel %vm3265_vm1, %v2730_v8, 0.0  ;;  %vm4079_vm5 = vmmov %vm4067_vm2  ;;  %v1532_v33 = vsel %vm1273_vm4, %v1484_v25, 0.0  ;;  %vm4095_vm1 = vnez %v3908_v63 }
  0xcf   :  { %v661_v48 = vpop.f32.mrf.mxu2  ;;  %vm3292_vm8 = vmand %vm1273_vm4, %vm4083_vm12 }
  0xd0   :  { %v701_v29 = vadd.f32 %v661_v48, %v451_v24  ;;  %v856_v32 = vpop.f32.mrf.mxu3  ;;  %v1337_v12 = vsel %vm3292_vm8, %v2740_v20, 0.0  ;;  %vm4094_vm3 = vmmov %vm4082_vm0 }
  0xd1   :  { %v453_v45 = vpop.f32.mrf.mxu1  ;;  %vm4103_vm12 = vmmov %vm4082_vm0 }
  0xd2   :  { %v896_v21 = vadd.f32 %v856_v32, %v701_v29  ;;  %v1006_v55 = vpop.f32.mrf.mxu0  ;;  %v454_v30 = vadd.f32 %v453_v45, %v2939_v9  ;;  %v4090_v32 = vld [vmem:[#allocation3_spill] sm:$0xff]  ;;  %vm4104_vm8 = vmmov %vm4082_vm0 }
  0xd4   :  { %v3243_v51 = vadd.f32 %v1003_v19, %v896_v21  ;;  %2025 = vmatmul.msk.f32.gmra.mxu1 %vm4066_vm6, %v1108_v53  ;;  %2041 = vmatmul.msk.f32.gmra.mxu2 %vm4067_vm2, %v1335_v16  ;;  %vm4087_vm6 = vnez %v4086_v2  ;;  %v1485_v16 = vld [vmem:[%s3730_s0 + $0x58] sm:$0xff]  ;;  %v4098_v21 = vld [vmem:[#allocation20_spill] sm:$0xff]  ;;  %v1487_v19 = vld [vmem:[%s3730_s0 + $0x68] sm:$0xff] }
  0xd5   :  { %2057 = vmatmul.msk.f32.gmra.mxu3 %vm4068_vm7, %v1530_v4  ;;  %2073 = vmatmul.msk.f32.gmra.mxu0 %vm4069_vm11, %v1741_v31  ;;  %vm3303_vm2 = vmand %vm1273_vm4, %vm4087_vm6  ;;  %v1110_v24 = vsel %vm4087_vm6, %v2730_v8, 0.0  ;;  %vm1274_vm7 = vcmp.lt.s32.totalorder %v4090_v32, 7 }
  0xd6   :  { %v1743_v29 = vsel %vm3303_vm2, %v2767_v11, 0.0  ;;  %vm4091_vm11 = vmmov %vm4082_vm0  ;;  %v1533_v41 = vsel %vm1274_vm7, %v1485_v16, 0.0  ;;  %vm4106_vm2 = vnez %v3919_v35 }
  0xd7   :  { %v664_v5 = vpop.f32.mrf.mxu2  ;;  %vm3330_vm4 = vmand %vm1274_vm7, %vm4095_vm1 }
  0xd8   :  { %v702_v9 = vadd.f32 %v664_v5, %v454_v30  ;;  %v859_v7 = vpop.f32.mrf.mxu3  ;;  %v1338_v30 = vsel %vm3330_vm4, %v2777_v23, 0.0  ;;  %vm4105_vm6 = vmmov %vm4082_vm0 }
  0xd9   :  { %v456_v15 = vpop.f32.mrf.mxu1  ;;  %vm4115_vm1 = vmmov %vm4082_vm0 }
  0xda   :  { %v897_v3 = vadd.f32 %v859_v7, %v702_v9  ;;  %v1009_v18 = vpop.f32.mrf.mxu0  ;;  %v457_v57 = vadd.f32 %v456_v15, %v2990_v27  ;;  %v1486_v7 = vld [vmem:[%s3730_s0 + $0x60] sm:$0xff]  ;;  %v4109_v15 = vld [vmem:[#allocation21_spill] sm:$0xff]  ;;  %vm4116_vm4 = vmmov %vm4082_vm0 }
  0xdc   :  { %v3281_v37 = vadd.f32 %v1006_v55, %v897_v3  ;;  %2026 = vmatmul.msk.f32.gmra.mxu1 %vm4079_vm5, %v1109_v38  ;;  %2042 = vmatmul.msk.f32.gmra.mxu2 %vm4080_vm10, %v1336_v46  ;;  %vm4099_vm5 = vnez %v4098_v21  ;;  %v4133_v21 = vld [vmem:[#allocation24_spill] sm:$0xff] }
  0xdd   :  { %2058 = vmatmul.msk.f32.gmra.mxu3 %vm4081_vm14, %v1531_v44  ;;  %2074 = vmatmul.msk.f32.gmra.mxu0 %vm4082_vm0, %v1742_v39  ;;  %vm3341_vm10 = vmand %vm1274_vm7, %vm4099_vm5  ;;  %v1111_v31 = vsel %vm4099_vm5, %v2767_v11, 0.0  ;;  %vm1275_vm14 = vcmp.lt.s32.totalorder %v4102_v61, 7 }
  0xde   :  { %v1744_v52 = vsel %vm3341_vm10, %v2804_v43, 0.0  ;;  %vm3368_vm7 = vmand %vm1275_vm14, %vm4106_vm2  ;;  %v1534_v39 = vsel %vm1275_vm14, %v1486_v7, 0.0 }
  0xdf   :  { %v667_v6 = vpop.f32.mrf.mxu2  ;;  %v1339_v44 = vsel %vm3368_vm7, %v2814_v26, 0.0  ;;  %vm4117_vm5 = vmmov %vm4082_vm0  ;;  %v4118_v26 = vld [vmem:[#allocation22_spill] sm:$0xff] }
  0xe0   :  { %v703_v27 = vadd.f32 %v667_v6, %v457_v57  ;;  %v862_v10 = vpop.f32.mrf.mxu3  ;;  %vm4119_vm10 = vnez %v4118_v26  ;;  %vm4130_vm2 = vmmov %vm4115_vm1 }
  0xe1   :  { %v459_v54 = vpop.f32.mrf.mxu1  ;;  %vm4131_vm7 = vmmov %vm4115_vm1 }
  0xe2   :  { %v898_v48 = vadd.f32 %v862_v10, %v703_v27  ;;  %v1012_v34 = vpop.f32.mrf.mxu0  ;;  %v460_v8 = vadd.f32 %v459_v54, %v3036_v50  ;;  %v4122_v27 = vld [vmem:[#allocation23_spill] sm:$0xff]  ;;  %v4157_v10 = vld [vmem:[#allocation6_spill] sm:$0xff] }
  0xe4   :  { %v3319_v45 = vadd.f32 %v1009_v18, %v898_v48  ;;  %2027 = vmatmul.msk.f32.gmra.mxu1 %vm4091_vm11, %v1110_v24  ;;  %2043 = vmatmul.msk.f32.gmra.mxu2 %vm4092_vm15, %v1337_v12  ;;  %vm4110_vm11 = vnez %v4109_v15  ;;  %v4126_v48 = vld [vmem:[#allocation26_spill] sm:$0xff]  ;;  %v4143_v15 = vld [vmem:[#allocation4_spill] sm:$0xff] }
  0xe5   :  { %2059 = vmatmul.msk.f32.gmra.mxu3 %vm4093_vm13, %v1532_v33  ;;  %2075 = vmatmul.msk.f32.gmra.mxu0 %vm4094_vm3, %v1743_v29  ;;  %vm3379_vm15 = vmand %vm1275_vm14, %vm4110_vm11  ;;  %v1112_v3 = vsel %vm4110_vm11, %v2804_v43, 0.0  ;;  %vm1276_vm13 = vcmp.lt.s32.totalorder %v4113_v56, 7 }
  0xe6   :  { %v1745_v57 = vsel %vm3379_vm15, %v2841_v0, 0.0  ;;  %vm4114_vm3 = vmmov %vm4082_vm0  ;;  %v1535_v29 = vsel %vm1276_vm13, %v1487_v19, 0.0  ;;  %vm4134_vm15 = vnez %v4133_v21  ;;  %v4156_v19 = vld [vmem:[#allocation37_spill] sm:$0xff] }
  0xe7   :  { %v670_v53 = vpop.f32.mrf.mxu2  ;;  %vm3406_vm14 = vmand %vm1276_vm13, %vm4119_vm10 }
  0xe8   :  { %v704_v63 = vadd.f32 %v670_v53, %v460_v8  ;;  %v865_v50 = vpop.f32.mrf.mxu3  ;;  %v1340_v33 = vsel %vm3406_vm14, %v4126_v48, 0.0  ;;  %v4127_v8 = vld [vmem:[#allocation29_spill] sm:$0xff]  ;;  %v4128_v53 = vld [vmem:[#allocation11_spill] sm:$0xff]  ;;  %vm4132_vm11 = vmmov %vm4115_vm1 }
  0xe9   :  { %v462_v55 = vpop.f32.mrf.mxu1  ;;  %vm4145_vm10 = vmmov %vm4130_vm2 }
  0xea   :  { %v899_v42 = vadd.f32 %v865_v50, %v704_v63  ;;  %v1015_v5 = vpop.f32.mrf.mxu0  ;;  %v463_v11 = vadd.f32 %v462_v55, %v2930_v28  ;;  %v1488_v50 = vld [vmem:[%s3730_s0 + $0x70] sm:$0xff]  ;;  %v4137_v55 = vld [vmem:[#allocation25_spill] sm:$0xff]  ;;  %vm4146_vm14 = vmmov %vm4130_vm2 }
  0xec   :  { %v3357_v40 = vadd.f32 %v1012_v34, %v899_v42  ;;  %2028 = vmatmul.msk.f32.gmra.mxu1 %vm4082_vm0, %v1111_v31  ;;  %2044 = vmatmul.msk.f32.gmra.mxu2 %vm4103_vm12, %v1338_v30  ;;  %vm4123_vm0 = vnez %v4122_v27 }
  0xed   :  { %2060 = vmatmul.msk.f32.gmra.mxu3 %vm4104_vm8, %v1533_v41  ;;  %2076 = vmatmul.msk.f32.gmra.mxu0 %vm4105_vm6, %v1744_v52  ;;  %vm3417_vm12 = vmand %vm1276_vm13, %vm4123_vm0  ;;  %v1113_v12 = vsel %vm4123_vm0, %v2841_v0, 0.0  ;;  %vm1277_vm8 = vcmp.lt.s32.totalorder %v4128_v53, 7 }
  0xee   :  { %v1746_v20 = vsel %vm3417_vm12, %v4127_v8, 0.0  ;;  %vm4129_vm6 = vmmov %vm4115_vm1 }
  0xef   :  { %v673_v9 = vpop.f32.mrf.mxu2  ;;  %vm3444_vm13 = vmand %vm1277_vm8, %vm4134_vm15 }
  0xf0   :  { %v705_v35 = vadd.f32 %v673_v9, %v463_v11  ;;  %v868_v28 = vpop.f32.mrf.mxu3  ;;  %v1536_v11 = vsel %vm1277_vm8, %v1488_v50, 0.0  ;;  %v4142_v9 = vld [vmem:[#allocation33_spill] sm:$0xff]  ;;  %vm4147_vm0 = vmmov %vm4130_vm2 }
  0xf1   :  { %v465_v46 = vpop.f32.mrf.mxu1  ;;  %vm4159_vm15 = vmmov %vm4147_vm0 }
  0xf2   :  { %v900_v18 = vadd.f32 %v868_v28, %v705_v35  ;;  %v1018_v58 = vpop.f32.mrf.mxu0  ;;  %v466_v43 = vadd.f32 %v465_v46, %v2981_v13  ;;  %v4148_v28 = vld [vmem:[#allocation27_spill] sm:$0xff] }
  0xf3   :  { %vm4149_vm12 = vnez %v4148_v28  ;;  %v4184_v28 = vld [vmem:[#allocation42_spill] sm:$0xff] }
  0xf4   :  { %v3395_v6 = vadd.f32 %v1015_v5, %v900_v18  ;;  %2029 = vmatmul.msk.f32.gmra.mxu1 %vm4114_vm3, %v1112_v3  ;;  %2045 = vmatmul.msk.f32.gmra.mxu2 %vm4115_vm1, %v1339_v44  ;;  %vm4138_vm3 = vnez %v4137_v55  ;;  %v4141_v5 = vld [vmem:[#allocation30_spill] sm:$0xff]  ;;  %v1489_v44 = vld [vmem:[%s3730_s0 + $0x78] sm:$0xff]  ;;  %v4152_v18 = vld [vmem:[#allocation28_spill] sm:$0xff] }
  0xf5   :  { %2061 = vmatmul.msk.f32.gmra.mxu3 %vm4116_vm4, %v1534_v39  ;;  %2077 = vmatmul.msk.f32.gmra.mxu0 %vm4117_vm5, %v1745_v57  ;;  %vm3455_vm1 = vmand %vm1277_vm8, %vm4138_vm3  ;;  %v1114_v41 = vsel %vm4138_vm3, %v4127_v8, 0.0  ;;  %v1341_v52 = vsel %vm3444_vm13, %v4141_v5, 0.0  ;;  %vm1278_vm4 = vcmp.lt.s32.totalorder %v4143_v15, 7  ;;  %v4171_v55 = vld [vmem:[#allocation9_spill] sm:$0xff]  ;;  %v4180_v5 = vld [vmem:[#allocation36_spill] sm:$0xff] }
  0xf6   :  { %v1747_v7 = vsel %vm3455_vm1, %v4142_v9, 0.0  ;;  %vm4144_vm5 = vmmov %vm4130_vm2  ;;  %v1537_v25 = vsel %vm1278_vm4, %v1489_v44, 0.0  ;;  %v1070_v15 = vld [vmem:[%s3730_s0 + $0x89] sm:$0xff] }
  0xf7   :  { %v676_v2 = vpop.f32.mrf.mxu2  ;;  %vm3482_vm8 = vmand %vm1278_vm4, %vm4149_vm12 }
  0xf8   :  { %v706_v13 = vadd.f32 %v676_v2, %v466_v43  ;;  %v871_v54 = vpop.f32.mrf.mxu3  ;;  %v1342_v43 = vsel %vm3482_vm8, %v2935_v59, 0.0  ;;  %vm4160_vm13 = vmmov %vm4147_vm0  ;;  %v4162_v59 = vld [vmem:[#allocation34_spill] sm:$0xff] }
  0xf9   :  { %v468_v24 = vpop.f32.mrf.mxu1  ;;  %vm4161_vm3 = vmmov %vm4147_vm0 }
  0xfa   :  { %v901_v34 = vadd.f32 %v871_v54, %v706_v13  ;;  %v1021_v32 = vpop.f32.mrf.mxu0  ;;  %v469_v0 = vadd.f32 %v468_v24, %v3027_v1  ;;  %v4163_v24 = vld [vmem:[#allocation31_spill] sm:$0xff]  ;;  %vm4172_vm12 = vmmov %vm4147_vm0 }
  0xfb   :  { %vm4164_vm1 = vnez %v4163_v24  ;;  %vm4173_vm8 = vmmov %vm4147_vm0 }
  0xfc   :  { %v3433_v16 = vadd.f32 %v1018_v58, %v901_v34  ;;  %2030 = vmatmul.msk.f32.gmra.mxu1 %vm4129_vm6, %v1113_v12  ;;  %2046 = vmatmul.msk.f32.gmra.mxu2 %vm4130_vm2, %v1340_v33  ;;  %vm4153_vm6 = vnez %v4152_v18  ;;  %v1490_v33 = vld [vmem:[%s3730_s0 + $0x80] sm:$0xff]  ;;  %v4167_v34 = vld [vmem:[#allocation32_spill] sm:$0xff] }
  0xfd   :  { %2062 = vmatmul.msk.f32.gmra.mxu3 %vm4131_vm7, %v1535_v29  ;;  %2078 = vmatmul.msk.f32.gmra.mxu0 %vm4132_vm11, %v1746_v20  ;;  %vm3493_vm2 = vmand %vm1278_vm4, %vm4153_vm6  ;;  %v1115_v56 = vsel %vm4153_vm6, %v4142_v9, 0.0  ;;  %vm1279_vm7 = vcmp.lt.s32.totalorder %v4157_v10, 7  ;;  %v4185_v18 = vld [vmem:[#allocation12_spill] sm:$0xff] }
  0xfe   :  { %v1748_v27 = vsel %vm3493_vm2, %v4156_v19, 0.0  ;;  %vm4158_vm11 = vmmov %vm4147_vm0  ;;  %v1538_v4 = vsel %vm1279_vm7, %v1490_v33, 0.0 }
  0xff   :  { %v679_v63 = vpop.f32.mrf.mxu2  ;;  %vm3520_vm4 = vmand %vm1279_vm7, %vm4164_vm1 }
 0x100   :  { %v707_v1 = vadd.f32 %v679_v63, %v469_v0  ;;  %v874_v30 = vpop.f32.mrf.mxu3  ;;  %v1343_v0 = vsel %vm3520_vm4, %v2986_v47, 0.0  ;;  %vm4174_vm6 = vmmov %vm4147_vm0  ;;  %v4175_v47 = vld [vmem:[#allocation38_spill] sm:$0xff] }
 0x101   :  { %v471_v42 = vpop.f32.mrf.mxu1  ;;  %vm4187_vm1 = vmmov %vm4147_vm0 }
 0x102   :  { %v902_v61 = vadd.f32 %v874_v30, %v707_v1  ;;  %v1024_v23 = vpop.f32.mrf.mxu0  ;;  %v472_v35 = vadd.f32 %v471_v42, %v3058_v14  ;;  %v4176_v30 = vld [vmem:[#allocation35_spill] sm:$0xff]  ;;  %vm4188_vm4 = vmmov %vm4147_vm0  ;;  %v3632_v42 = vld [vmem:[%s3731_s2] ss:$0 sm:$0xff] }
 0x103   :  { %vm4177_vm2 = vnez %v4176_v30 }
 0x104   :  { %v3471_v38 = vadd.f32 %v1021_v32, %v902_v61  ;;  %2031 = vmatmul.msk.f32.gmra.mxu1 %vm4144_vm5, %v1114_v41  ;;  %2047 = vmatmul.msk.f32.gmra.mxu2 %vm4145_vm10, %v1341_v52  ;;  %vm4168_vm5 = vnez %v4167_v34  ;;  %v4200_v34 = vld [vmem:[#allocation43_spill] sm:$0xff] }
 0x105   :  { %2063 = vmatmul.msk.f32.gmra.mxu3 %vm4146_vm14, %v1536_v11  ;;  %2079 = vmatmul.msk.f32.gmra.mxu0 %vm4147_vm0, %v1747_v7  ;;  %vm3531_vm10 = vmand %vm1279_vm7, %vm4168_vm5  ;;  %v1116_v53 = vsel %vm4168_vm5, %v4156_v19, 0.0  ;;  %vm1280_vm14 = vcmp.lt.s32.totalorder %v4171_v55, 7 }
 0x106   :  { %v1749_v50 = vsel %vm3531_vm10, %v3021_v62, 0.0  ;;  %vm3558_vm7 = vmand %vm1280_vm14, %vm4177_vm2  ;;  %v1539_v46 = vsel %vm1280_vm14, %v4184_v28, 0.0  ;;  %vm1919_vm2 = vcmask 523264  }
 0x107   :  { %v682_v3 = vpop.f32.mrf.mxu2  ;;  %v1344_v7 = vsel %vm3558_vm7, %v3032_v49, 0.0  ;;  %vm4189_vm5 = vmmov %vm4147_vm0  ;;  %v4190_v49 = vld [vmem:[#allocation41_spill] sm:$0xff] }
 0x108   :  { %v708_v14 = vadd.f32 %v682_v3, %v472_v35  ;;  %v877_v58 = vpop.f32.mrf.mxu3 }
 0x109   :  { %v474_v57 = vpop.f32.mrf.mxu1 }
 0x10a   :  { %v903_v26 = vadd.f32 %v877_v58, %v708_v14  ;;  %v1027_v2 = vpop.f32.mrf.mxu0  ;;  %v475_v54 = vadd.f32 %v474_v57, %v4162_v59  ;;  %v1265_v14 = vld [vmem:[%s3730_s0 + $0x8f] sm:$0xff] }
 0x10c   :  { %v3509_v13 = vadd.f32 %v1024_v23, %v903_v26  ;;  %2032 = vmatmul.msk.f32.gmra.mxu1 %vm4158_vm11, %v1115_v56  ;;  %2048 = vmatmul.msk.f32.gmra.mxu2 %vm4159_vm15, %v1342_v43  ;;  %vm4181_vm11 = vnez %v4180_v5  ;;  %v1492_v43 = vld [vmem:[%s3730_s0 + $0x90] sm:$0xff] }
 0x10d   :  { %2064 = vmatmul.msk.f32.gmra.mxu3 %vm4160_vm13, %v1537_v25  ;;  %2080 = vmatmul.msk.f32.gmra.mxu0 %vm4161_vm3, %v1748_v27  ;;  %vm3566_vm15 = vmand %vm1280_vm14, %vm4181_vm11  ;;  %v1117_v9 = vsel %vm4181_vm11, %v3021_v62, 0.0  ;;  %vm1281_vm13 = vcmp.lt.s32.totalorder %v4185_v18, 7  ;;  %v1687_v26 = vld [vmem:[%s3730_s0 + $0x91] sm:$0xff] }
 0x10e   :  { %v1750_v44 = vsel %vm3566_vm15, %v1070_v15, 0.0  ;;  %vm4186_vm3 = vmmov %vm4147_vm0  ;;  %v4194_v25 = vld [vmem:[#allocation40_spill] sm:$0xff]  ;;  %v1540_v24 = vsel %vm1281_vm13, %v1492_v43, 0.0 }
 0x10f   :  { %v685_v48 = vpop.f32.mrf.mxu2  ;;  %vm3599_vm10 = vmand %vm1281_vm13, %vm3001_vm9  ;;  %vm4195_vm14 = vnez %v4194_v25 }
 0x110   :  { %v709_v32 = vadd.f32 %v685_v48, %v475_v54  ;;  %v880_v8 = vpop.f32.mrf.mxu3  ;;  %v1118_v10 = vsel %vm4195_vm14, %v1070_v15, 0.0  ;;  %v1345_v59 = vsel %vm3599_vm10, %v1265_v14, 0.0  ;;  %vm4196_vm9 = vmmov %vm4187_vm1 }
 0x111   :  { %v477_v20 = vpop.f32.mrf.mxu1 }
 0x112   :  { %v904_v21 = vadd.f32 %v880_v8, %v709_v32  ;;  %v1030_v63 = vpop.f32.mrf.mxu0  ;;  %v478_v1 = vadd.f32 %v477_v20, %v4175_v47 }
 0x114   :  { %v3547_v31 = vadd.f32 %v1027_v2, %v904_v21  ;;  %2033 = vmatmul.msk.f32.gmra.mxu1 %vm4147_vm0, %v1116_v53  ;;  %2049 = vmatmul.msk.f32.gmra.mxu2 %vm4172_vm12, %v1343_v0  ;;  %vm1703_vm0 = vmand %vm1281_vm13, %vm4195_vm14 }
 0x115   :  { %2065 = vmatmul.msk.f32.gmra.mxu3 %vm4173_vm8, %v1538_v4  ;;  %2081 = vmatmul.msk.f32.gmra.mxu0 %vm4174_vm6, %v1749_v50  ;;  %v1751_v48 = vsel %vm1703_vm0, %v1687_v26, 0.0  ;;  %vm4197_vm12 = vmmov %vm4187_vm1 }
 0x116   :  { %vm4198_vm8 = vmmov %vm4187_vm1 }
 0x117   :  { %v688_v41 = vpop.f32.mrf.mxu2  ;;  %vm4199_vm6 = vmmov %vm4187_vm1 }
 0x118   :  { %v710_v61 = vadd.f32 %v688_v41, %v478_v1  ;;  %v883_v11 = vpop.f32.mrf.mxu3 }
 0x119   :  { %v480_v23 = vpop.f32.mrf.mxu1 }
 0x11a   :  { %v905_v35 = vadd.f32 %v883_v11, %v710_v61  ;;  %v1033_v3 = vpop.f32.mrf.mxu0  ;;  %v481_v39 = vadd.f32 %v480_v23, %v4190_v49 }
 0x11c   :  { %v3585_v62 = vadd.f32 %v1030_v63, %v905_v35  ;;  %2034 = vmatmul.msk.f32.gmra.mxu1 %vm4186_vm3, %v1117_v9  ;;  %2050 = vmatmul.msk.f32.gmra.mxu2 %vm4187_vm1, %v1344_v7 }
 0x11d   :  { %2066 = vmatmul.msk.f32.gmra.mxu3 %vm4188_vm4, %v1539_v46  ;;  %2082 = vmatmul.msk.f32.gmra.mxu0 %vm4189_vm5, %v1750_v44 }
 0x11f   :  { %v691_v56 = vpop.f32.mrf.mxu2 }
 0x120   :  { %v711_v2 = vadd.f32 %v691_v56, %v481_v39  ;;  %v886_v19 = vpop.f32.mrf.mxu3 }
 0x121   :  { %v483_v27 = vpop.f32.mrf.mxu1 }
 0x122   :  { %v906_v54 = vadd.f32 %v886_v19, %v711_v2  ;;  %v1036_v12 = vpop.f32.mrf.mxu0  ;;  %v484_v29 = vadd.f32 %v483_v27, %v4200_v34 }
 0x124   :  { %v3619_v33 = vadd.f32 %v1033_v3, %v906_v54  ;;  %2035 = vmatmul.msk.f32.gmra.mxu1 %vm4196_vm9, %v1118_v10  ;;  %2051 = vmatmul.msk.f32.gmra.mxu2 %vm4197_vm12, %v1345_v59 }
 0x125   :  { %2067 = vmatmul.msk.f32.gmra.mxu3 %vm4198_vm8, %v1540_v24  ;;  %2083 = vmatmul.msk.f32.gmra.mxu0 %vm4199_vm6, %v1751_v48 }
 0x127   :  { %v694_v32 = vpop.f32.mrf.mxu2 }
 0x128   :  { %v712_v8 = vadd.f32 %v694_v32, %v484_v29  ;;  %v889_v20 = vpop.f32.mrf.mxu3 }
 0x129   :  { %v1186_v53 = vpop.f32.mrf.mxu1 }
 0x12a   :  { %v907_v0 = vadd.f32 %v889_v20, %v712_v8  ;;  %v1819_v21 = vpop.f32.mrf.mxu0  ;;  %v1234_v63 = vadd.f32 %v1186_v53, %v3099_v60 }
 0x12c   :  { %v3626_v4 = vadd.f32 %v1036_v12, %v907_v0 }
 0x12f   :  { %v1413_v50 = vpop.f32.mrf.mxu2 }
 0x130   :  { %v1461_v55 = vadd.f32 %v1413_v50, %v1234_v63  ;;  %v1608_v47 = vpop.f32.mrf.mxu3 }
 0x131   :  { %v1189_v1 = vpop.f32.mrf.mxu1 }
 0x132   :  { %v1656_v30 = vadd.f32 %v1608_v47, %v1461_v55  ;;  %v1822_v41 = vpop.f32.mrf.mxu0  ;;  %v1235_v52 = vadd.f32 %v1189_v1, %v3135_v17 }
 0x134   :  { %v1867_v5 = vadd.f32 %v1819_v21, %v1656_v30 }
 0x136   :  { %v1887_v61 = vadd.f32 %v3632_v42, %v1867_v5 }
 0x137   :  { %v1416_v11 = vpop.f32.mrf.mxu2 }
 0x138   :  { %v1903_v23 = vmax.f32 %v1887_v61, 0.0  ;;  %v1462_v60 = vadd.f32 %v1416_v11, %v1235_v52  ;;  %v1611_v9 = vpop.f32.mrf.mxu3 }
 0x139   :  { %v1192_v7 = vpop.f32.mrf.mxu1 }
 0x13a   :  { %1920 = vst.msk [vmem:[%s3732_s3] sm:$0xff] %vm1919_vm2, %v1903_v23  ;;  %v1657_v15 = vadd.f32 %v1611_v9, %v1462_v60  ;;  %v1825_v35 = vpop.f32.mrf.mxu0  ;;  %v1236_v46 = vadd.f32 %v1192_v7, %v3171_v36 }
 0x13c   :  { %v1868_v28 = vadd.f32 %v1822_v41, %v1657_v15 }
 0x13e   :  { %v1888_v17 = vadd.f32 %v3632_v42, %v1868_v28 }
 0x13f   :  { %v1419_v3 = vpop.f32.mrf.mxu2 }
 0x140   :  { %v1904_v44 = vmax.f32 %v1888_v17, 0.0  ;;  %v1463_v18 = vadd.f32 %v1419_v3, %v1236_v46  ;;  %v1614_v49 = vpop.f32.mrf.mxu3 }
 0x141   :  { %v1195_v39 = vpop.f32.mrf.mxu1 }
 0x142   :  { %1921 = vst.msk [vmem:[%s3732_s3 + $0x8] sm:$0xff] %vm1919_vm2, %v1904_v44  ;;  %v1658_v14 = vadd.f32 %v1614_v49, %v1463_v18  ;;  %v1828_v58 = vpop.f32.mrf.mxu0  ;;  %v1237_v56 = vadd.f32 %v1195_v39, %v3207_v22 }
 0x144   :  { %v1869_v57 = vadd.f32 %v1825_v35, %v1658_v14 }
 0x146   :  { %v1889_v43 = vadd.f32 %v3632_v42, %v1869_v57 }
 0x147   :  { %v1422_v36 = vpop.f32.mrf.mxu2 }
 0x148   :  { %v1905_v26 = vmax.f32 %v1889_v43, 0.0  ;;  %v1464_v25 = vadd.f32 %v1422_v36, %v1237_v56  ;;  %v1617_v2 = vpop.f32.mrf.mxu3 }
 0x149   :  { %v1198_v19 = vpop.f32.mrf.mxu1 }
 0x14a   :  { %1922 = vst.msk [vmem:[%s3732_s3 + $0x10] sm:$0xff] %vm1919_vm2, %v1905_v26  ;;  %v1659_v27 = vadd.f32 %v1617_v2, %v1464_v25  ;;  %v1831_v10 = vpop.f32.mrf.mxu0  ;;  %v1238_v54 = vadd.f32 %v1198_v19, %v3243_v51 }
 0x14c   :  { %v1870_v59 = vadd.f32 %v1828_v58, %v1659_v27 }
 0x14e   :  { %v1890_v24 = vadd.f32 %v3632_v42, %v1870_v59 }
 0x14f   :  { %v1425_v22 = vpop.f32.mrf.mxu2 }
 0x150   :  { %v1906_v12 = vmax.f32 %v1890_v24, 0.0  ;;  %v1465_v48 = vadd.f32 %v1425_v22, %v1238_v54  ;;  %v1620_v34 = vpop.f32.mrf.mxu3 }
 0x151   :  { %v1201_v29 = vpop.f32.mrf.mxu1 }
 0x152   :  { %1923 = vst.msk [vmem:[%s3732_s3 + $0x18] sm:$0xff] %vm1919_vm2, %v1906_v12  ;;  %v1660_v32 = vadd.f32 %v1620_v34, %v1465_v48  ;;  %v1834_v8 = vpop.f32.mrf.mxu0  ;;  %v1239_v53 = vadd.f32 %v1201_v29, %v3281_v37 }
 0x154   :  { %v1871_v20 = vadd.f32 %v1831_v10, %v1660_v32 }
 0x156   :  { %v1891_v0 = vadd.f32 %v3632_v42, %v1871_v20 }
 0x157   :  { %v1428_v51 = vpop.f32.mrf.mxu2 }
 0x158   :  { %v1907_v21 = vmax.f32 %v1891_v0, 0.0  ;;  %v1466_v63 = vadd.f32 %v1428_v51, %v1239_v53  ;;  %v1623_v50 = vpop.f32.mrf.mxu3 }
 0x159   :  { %v1204_v55 = vpop.f32.mrf.mxu1 }
 0x15a   :  { %1924 = vst.msk [vmem:[%s3732_s3 + $0x20] sm:$0xff] %vm1919_vm2, %v1907_v21  ;;  %v1661_v47 = vadd.f32 %v1623_v50, %v1466_v63  ;;  %v1837_v1 = vpop.f32.mrf.mxu0  ;;  %v1240_v41 = vadd.f32 %v1204_v55, %v3319_v45 }
 0x15c   :  { %v1872_v30 = vadd.f32 %v1834_v8, %v1661_v47 }
 0x15e   :  { %v1892_v5 = vadd.f32 %v3632_v42, %v1872_v30 }
 0x15f   :  { %v1431_v37 = vpop.f32.mrf.mxu2 }
 0x160   :  { %v1908_v52 = vmax.f32 %v1892_v5, 0.0  ;;  %v1467_v61 = vadd.f32 %v1431_v37, %v1240_v41  ;;  %v1626_v11 = vpop.f32.mrf.mxu3 }
 0x161   :  { %v1207_v23 = vpop.f32.mrf.mxu1 }
 0x162   :  { %1925 = vst.msk [vmem:[%s3732_s3 + $0x28] sm:$0xff] %vm1919_vm2, %v1908_v52  ;;  %v1662_v60 = vadd.f32 %v1626_v11, %v1467_v61  ;;  %v1840_v9 = vpop.f32.mrf.mxu0  ;;  %v1241_v15 = vadd.f32 %v1207_v23, %v3357_v40 }
 0x164   :  { %v1873_v7 = vadd.f32 %v1837_v1, %v1662_v60 }
 0x166   :  { %v1893_v35 = vadd.f32 %v3632_v42, %v1873_v7 }
 0x167   :  { %v1434_v45 = vpop.f32.mrf.mxu2 }
 0x168   :  { %v1909_v28 = vmax.f32 %v1893_v35, 0.0  ;;  %v1468_v46 = vadd.f32 %v1434_v45, %v1241_v15  ;;  %v1629_v17 = vpop.f32.mrf.mxu3 }
 0x169   :  { %v1210_v3 = vpop.f32.mrf.mxu1 }
 0x16a   :  { %1926 = vst.msk [vmem:[%s3732_s3 + $0x30] sm:$0xff] %vm1919_vm2, %v1909_v28  ;;  %v1663_v44 = vadd.f32 %v1629_v17, %v1468_v46  ;;  %v1843_v18 = vpop.f32.mrf.mxu0  ;;  %v1242_v39 = vadd.f32 %v1210_v3, %v3395_v6 }
 0x16c   :  { %v1874_v49 = vadd.f32 %v1840_v9, %v1663_v44 }
 0x16e   :  { %v1894_v14 = vadd.f32 %v3632_v42, %v1874_v49 }
 0x16f   :  { %v1437_v40 = vpop.f32.mrf.mxu2 }
 0x170   :  { %v1910_v58 = vmax.f32 %v1894_v14, 0.0  ;;  %v1469_v57 = vadd.f32 %v1437_v40, %v1242_v39  ;;  %v1632_v56 = vpop.f32.mrf.mxu3 }
 0x171   :  { %v1213_v43 = vpop.f32.mrf.mxu1 }
 0x172   :  { %1927 = vst.msk [vmem:[%s3732_s3 + $0x38] sm:$0xff] %vm1919_vm2, %v1910_v58  ;;  %v1664_v36 = vadd.f32 %v1632_v56, %v1469_v57  ;;  %v1846_v26 = vpop.f32.mrf.mxu0  ;;  %v1243_v2 = vadd.f32 %v1213_v43, %v3433_v16 }
 0x174   :  { %v1875_v25 = vadd.f32 %v1843_v18, %v1664_v36 }
 0x176   :  { %v1895_v19 = vadd.f32 %v3632_v42, %v1875_v25 }
 0x177   :  { %v1440_v6 = vpop.f32.mrf.mxu2 }
 0x178   :  { %v1911_v27 = vmax.f32 %v1895_v19, 0.0  ;;  %v1470_v10 = vadd.f32 %v1440_v6, %v1243_v2  ;;  %v1635_v59 = vpop.f32.mrf.mxu3 }
 0x179   :  { %v1216_v54 = vpop.f32.mrf.mxu1 }
 0x17a   :  { %1928 = vst.msk [vmem:[%s3732_s3 + $0x40] sm:$0xff] %vm1919_vm2, %v1911_v27  ;;  %v1665_v24 = vadd.f32 %v1635_v59, %v1470_v10  ;;  %v1849_v22 = vpop.f32.mrf.mxu0  ;;  %v1244_v48 = vadd.f32 %v1216_v54, %v3471_v38 }
 0x17c   :  { %v1876_v12 = vadd.f32 %v1846_v26, %v1665_v24 }
 0x17e   :  { %v1896_v34 = vadd.f32 %v3632_v42, %v1876_v12 }
 0x17f   :  { %v1443_v16 = vpop.f32.mrf.mxu2 }
 0x180   :  { %v1912_v29 = vmax.f32 %v1896_v34, 0.0  ;;  %v1471_v32 = vadd.f32 %v1443_v16, %v1244_v48  ;;  %v1638_v8 = vpop.f32.mrf.mxu3 }
 0x181   :  { %v1219_v20 = vpop.f32.mrf.mxu1 }
 0x182   :  { %1929 = vst.msk [vmem:[%s3732_s3 + $0x48] sm:$0xff] %vm1919_vm2, %v1912_v29  ;;  %v1666_v53 = vadd.f32 %v1638_v8, %v1471_v32  ;;  %v1852_v0 = vpop.f32.mrf.mxu0  ;;  %v1245_v21 = vadd.f32 %v1219_v20, %v3509_v13 }
 0x184   :  { %v1877_v51 = vadd.f32 %v1849_v22, %v1666_v53 }
 0x186   :  { %v1897_v63 = vadd.f32 %v3632_v42, %v1877_v51 }
 0x187   :  { %v1446_v38 = vpop.f32.mrf.mxu2 }
 0x188   :  { %v1913_v50 = vmax.f32 %v1897_v63, 0.0  ;;  %v1472_v55 = vadd.f32 %v1446_v38, %v1245_v21  ;;  %v1641_v47 = vpop.f32.mrf.mxu3 }
 0x189   :  { %v1222_v1 = vpop.f32.mrf.mxu1 }
 0x18a   :  { %1930 = vst.msk [vmem:[%s3732_s3 + $0x50] sm:$0xff] %vm1919_vm2, %v1913_v50  ;;  %v1667_v30 = vadd.f32 %v1641_v47, %v1472_v55  ;;  %v1855_v41 = vpop.f32.mrf.mxu0  ;;  %v1246_v37 = vadd.f32 %v1222_v1, %v3547_v31 }
 0x18c   :  { %v1878_v5 = vadd.f32 %v1852_v0, %v1667_v30 }
 0x18e   :  { %v1898_v52 = vadd.f32 %v3632_v42, %v1878_v5 }
 0x18f   :  { %v1449_v13 = vpop.f32.mrf.mxu2 }
 0x190   :  { %v1914_v61 = vmax.f32 %v1898_v52, 0.0  ;;  %v1473_v11 = vadd.f32 %v1449_v13, %v1246_v37  ;;  %v1644_v23 = vpop.f32.mrf.mxu3 }
 0x191   :  { %v1225_v60 = vpop.f32.mrf.mxu1 }
 0x192   :  { %1931 = vst.msk [vmem:[%s3732_s3 + $0x58] sm:$0xff] %vm1919_vm2, %v1914_v61  ;;  %v1668_v9 = vadd.f32 %v1644_v23, %v1473_v11  ;;  %v1858_v15 = vpop.f32.mrf.mxu0  ;;  %v1247_v35 = vadd.f32 %v1225_v60, %v3585_v62 }
 0x194   :  { %v1879_v7 = vadd.f32 %v1855_v41, %v1668_v9 }
 0x196   :  { %v1899_v45 = vadd.f32 %v3632_v42, %v1879_v7 }
 0x197   :  { %v1452_v31 = vpop.f32.mrf.mxu2 }
 0x198   :  { %v1915_v28 = vmax.f32 %v1899_v45, 0.0  ;;  %v1474_v46 = vadd.f32 %v1452_v31, %v1247_v35  ;;  %v1647_v17 = vpop.f32.mrf.mxu3 }
 0x199   :  { %v1228_v3 = vpop.f32.mrf.mxu1 }
 0x19a   :  { %1932 = vst.msk [vmem:[%s3732_s3 + $0x60] sm:$0xff] %vm1919_vm2, %v1915_v28  ;;  %v1669_v44 = vadd.f32 %v1647_v17, %v1474_v46  ;;  %v1248_v49 = vadd.f32 %v1228_v3, %v3619_v33  ;;  %v1861_v62 = vpop.f32.mrf.mxu0 }
 0x19c   :  { %v1880_v18 = vadd.f32 %v1858_v15, %v1669_v44 }
 0x19e   :  { %v1900_v39 = vadd.f32 %v3632_v42, %v1880_v18 }
 0x19f   :  { %v1455_v14 = vpop.f32.mrf.mxu2 }
 0x1a0   :  { %v1916_v40 = vmax.f32 %v1900_v39, 0.0  ;;  %v1475_v58 = vadd.f32 %v1455_v14, %v1248_v49  ;;  %v1650_v57 = vpop.f32.mrf.mxu3 }
 0x1a1   :  { %v1231_v43 = vpop.f32.mrf.mxu1 }
 0x1a2   :  { %1933 = vst.msk [vmem:[%s3732_s3 + $0x68] sm:$0xff] %vm1919_vm2, %v1916_v40  ;;  %v1670_v56 = vadd.f32 %v1650_v57, %v1475_v58  ;;  %v1249_v26 = vadd.f32 %v1231_v43, %v3626_v4  ;;  %v1864_v27 = vpop.f32.mrf.mxu0 }
 0x1a4   :  { %v1881_v36 = vadd.f32 %v1861_v62, %v1670_v56 }
 0x1a6   :  { %v1901_v25 = vadd.f32 %v3632_v42, %v1881_v36 }
 0x1a7   :  { %v1458_v33 = vpop.f32.mrf.mxu2 }
 0x1a8   :  { %v1917_v2 = vmax.f32 %v1901_v25, 0.0  ;;  %v1476_v19 = vadd.f32 %v1458_v33, %v1249_v26  ;;  %v1653_v6 = vpop.f32.mrf.mxu3 }
 0x1aa   :  { %1934 = vst.msk [vmem:[%s3732_s3 + $0x70] sm:$0xff] %vm1919_vm2, %v1917_v2  ;;  %v1671_v10 = vadd.f32 %v1653_v6, %v1476_v19 }
 0x1ac   :  { %v1882_v59 = vadd.f32 %v1864_v27, %v1671_v10 }
 0x1ae   :  { %v1902_v54 = vadd.f32 %v3632_v42, %v1882_v59 }
 0x1b0   :  { %v1918_v24 = vmax.f32 %v1902_v54, 0.0 }
 0x1b2   :  { %1935 = vst.msk [vmem:[%s3732_s3 + $0x78] sm:$0xff] %vm1919_vm2, %v1918_v24 }

// kernel: discrete_vae_forward.19
= control target key start
LH: loop header
LB: loop body
LE: loop exit
PB: predicated region body
PF: predicated region fallthrough
CT: control target
= control target key end

     0   :  { %vm251_vm0 = vcmask 130048   ;;  %vm517_vm1 = vcmask 23552   ;;  %s1263_s1 = inlined_call_operand.vmem [shape: bf16[16,3], index: 1, kind: input, shape index: {}]   ;;  %s1264_s0 = inlined_call_operand.vmem [shape: bf16[512,16], index: 0, kind: input, shape index: {}]   ;;  %s1265_s2 = inlined_call_operand.vmem [shape: f32[1,3], index: 2, kind: input, shape index: {}]   ;;  %s1266_s3 = inlined_call_operand.vmem [shape: f32[512,3], index: 3, kind: output, shape index: {}]  }
   0x1   :  { %v782_v0 = vld [vmem:[%s1263_s1] sm:$0xff]  ;;  %v751_v5 = vld [vmem:[%s1264_s0 + $0x8] sm:$0xff]  ;;  %v752_v9 = vld [vmem:[%s1264_s0 + $0x10] sm:$0xff] }
   0x2   :  { %v750_v1 = vld [vmem:[%s1264_s0] sm:$0xff]  ;;  %355 = vmatpush.bf16.msra.mxu0 %v782_v0  ;;  %783 = vmatpush.bf16.msra.mxu1 %v782_v0  ;;  %v759_v6 = vld [vmem:[%s1264_s0 + $0x48] sm:$0xff]  ;;  %v760_v10 = vld [vmem:[%s1264_s0 + $0x50] sm:$0xff] }
   0x3   :  { %v758_v2 = vld [vmem:[%s1264_s0 + $0x40] sm:$0xff]  ;;  %784 = vmatpush.bf16.msra.mxu2 %v782_v0  ;;  %785 = vmatpush.bf16.msra.mxu3 %v782_v0  ;;  %v767_v7 = vld [vmem:[%s1264_s0 + $0x88] sm:$0xff]  ;;  %v768_v11 = vld [vmem:[%s1264_s0 + $0x90] sm:$0xff] }
   0x4   :  { %v766_v3 = vld [vmem:[%s1264_s0 + $0x80] sm:$0xff]  ;;  %v775_v8 = vld [vmem:[%s1264_s0 + $0xc8] sm:$0xff]  ;;  %v776_v12 = vld [vmem:[%s1264_s0 + $0xd0] sm:$0xff] }
   0x5   :  { %v774_v4 = vld [vmem:[%s1264_s0 + $0xc0] sm:$0xff]  ;;  %718 = vmatmul.msk.bf16.vlgmr.msra.gmra.mxu0 %vm251_vm0, %v750_v1  ;;  %726 = vmatmul.msk.bf16.vlgmr.msra.gmra.mxu1 %vm251_vm0, %v758_v2  ;;  %v753_v13 = vld [vmem:[%s1264_s0 + $0x18] sm:$0xff]  ;;  %v755_v21 = vld [vmem:[%s1264_s0 + $0x28] sm:$0xff] }
   0x6   :  { %734 = vmatmul.msk.bf16.vlgmr.msra.gmra.mxu2 %vm251_vm0, %v766_v3  ;;  %742 = vmatmul.msk.bf16.vlgmr.msra.gmra.mxu3 %vm251_vm0, %v774_v4  ;;  %v761_v14 = vld [vmem:[%s1264_s0 + $0x58] sm:$0xff]  ;;  %v754_v17 = vld [vmem:[%s1264_s0 + $0x20] sm:$0xff]  ;;  %v763_v22 = vld [vmem:[%s1264_s0 + $0x68] sm:$0xff] }
   0x7   :  { %v769_v15 = vld [vmem:[%s1264_s0 + $0x98] sm:$0xff]  ;;  %v762_v18 = vld [vmem:[%s1264_s0 + $0x60] sm:$0xff]  ;;  %v771_v23 = vld [vmem:[%s1264_s0 + $0xa8] sm:$0xff] }
   0x8   :  { %v777_v16 = vld [vmem:[%s1264_s0 + $0xd8] sm:$0xff]  ;;  %v770_v19 = vld [vmem:[%s1264_s0 + $0xa0] sm:$0xff]  ;;  %v779_v24 = vld [vmem:[%s1264_s0 + $0xe8] sm:$0xff] }
   0x9   :  { %v778_v20 = vld [vmem:[%s1264_s0 + $0xe0] sm:$0xff]  ;;  %v756_v25 = vld [vmem:[%s1264_s0 + $0x30] sm:$0xff]  ;;  %v757_v29 = vld [vmem:[%s1264_s0 + $0x38] sm:$0xff] }
   0xa   :  { %v764_v26 = vld [vmem:[%s1264_s0 + $0x70] sm:$0xff]  ;;  %v765_v30 = vld [vmem:[%s1264_s0 + $0x78] sm:$0xff]  ;;  %v941_v33 = vld [vmem:[%s1265_s2] ss:$0 sm:$0xff] }
   0xb   :  { %v772_v27 = vld [vmem:[%s1264_s0 + $0xb0] sm:$0xff]  ;;  %v773_v31 = vld [vmem:[%s1264_s0 + $0xb8] sm:$0xff] }
   0xc   :  { %v780_v28 = vld [vmem:[%s1264_s0 + $0xf0] sm:$0xff]  ;;  %v781_v32 = vld [vmem:[%s1264_s0 + $0xf8] sm:$0xff] }
  0x15   :  { %719 = vmatmul.msk.bf16.gmra.mxu0 %vm251_vm0, %v751_v5  ;;  %727 = vmatmul.msk.bf16.gmra.mxu1 %vm251_vm0, %v759_v6 }
  0x16   :  { %735 = vmatmul.msk.bf16.gmra.mxu2 %vm251_vm0, %v767_v7  ;;  %743 = vmatmul.msk.bf16.gmra.mxu3 %vm251_vm0, %v775_v8 }
  0x25   :  { %720 = vmatmul.msk.bf16.gmra.mxu0 %vm251_vm0, %v752_v9  ;;  %728 = vmatmul.msk.bf16.gmra.mxu1 %vm251_vm0, %v760_v10 }
  0x26   :  { %736 = vmatmul.msk.bf16.gmra.mxu2 %vm251_vm0, %v768_v11  ;;  %744 = vmatmul.msk.bf16.gmra.mxu3 %vm251_vm0, %v776_v12 }
  0x35   :  { %721 = vmatmul.msk.bf16.gmra.mxu0 %vm251_vm0, %v753_v13  ;;  %729 = vmatmul.msk.bf16.gmra.mxu1 %vm251_vm0, %v761_v14 }
  0x36   :  { %737 = vmatmul.msk.bf16.gmra.mxu2 %vm251_vm0, %v769_v15  ;;  %745 = vmatmul.msk.bf16.gmra.mxu3 %vm251_vm0, %v777_v16 }
  0x45   :  { %722 = vmatmul.msk.bf16.gmra.mxu0 %vm251_vm0, %v754_v17  ;;  %730 = vmatmul.msk.bf16.gmra.mxu1 %vm251_vm0, %v762_v18 }
  0x46   :  { %738 = vmatmul.msk.bf16.gmra.mxu2 %vm251_vm0, %v770_v19  ;;  %746 = vmatmul.msk.bf16.gmra.mxu3 %vm251_vm0, %v778_v20 }
  0x55   :  { %723 = vmatmul.msk.bf16.gmra.mxu0 %vm251_vm0, %v755_v21  ;;  %731 = vmatmul.msk.bf16.gmra.mxu1 %vm251_vm0, %v763_v22 }
  0x56   :  { %739 = vmatmul.msk.bf16.gmra.mxu2 %vm251_vm0, %v771_v23  ;;  %747 = vmatmul.msk.bf16.gmra.mxu3 %vm251_vm0, %v779_v24 }
  0x65   :  { %724 = vmatmul.msk.bf16.gmra.mxu0 %vm251_vm0, %v756_v25  ;;  %732 = vmatmul.msk.bf16.gmra.mxu1 %vm251_vm0, %v764_v26 }
  0x66   :  { %740 = vmatmul.msk.bf16.gmra.mxu2 %vm251_vm0, %v772_v27  ;;  %748 = vmatmul.msk.bf16.gmra.mxu3 %vm251_vm0, %v780_v28 }
  0x75   :  { %725 = vmatmul.msk.bf16.gmra.mxu0 %vm251_vm0, %v757_v29  ;;  %733 = vmatmul.msk.bf16.gmra.mxu1 %vm251_vm0, %v765_v30 }
  0x76   :  { %741 = vmatmul.msk.bf16.gmra.mxu2 %vm251_vm0, %v773_v31  ;;  %749 = vmatmul.msk.bf16.gmra.mxu3 %vm251_vm0, %v781_v32 }
  0x82   :  { %v357_v34 = vpop.f32.mrf.mxu0  ;;  %v397_v35 = vpop.f32.mrf.mxu1 }
  0x83   :  { %v358_v36 = vadd.f32 %v941_v33, %v357_v34  ;;  %v398_v37 = vadd.f32 %v941_v33, %v397_v35 }
  0x85   :  { %518 = vst.msk [vmem:[%s1266_s3] sm:$0xff] %vm517_vm1, %v358_v36 }
  0x86   :  { %534 = vst.msk [vmem:[%s1266_s3 + $0x80] sm:$0xff] %vm517_vm1, %v398_v37 }
  0x89   :  { %v437_v38 = vpop.f32.mrf.mxu2  ;;  %v477_v39 = vpop.f32.mrf.mxu3 }
  0x8a   :  { %v438_v40 = vadd.f32 %v941_v33, %v437_v38  ;;  %v478_v41 = vadd.f32 %v941_v33, %v477_v39  ;;  %v359_v42 = vpop.f32.mrf.mxu0  ;;  %v399_v43 = vpop.f32.mrf.mxu1 }
  0x8b   :  { %v360_v44 = vadd.f32 %v941_v33, %v359_v42  ;;  %v400_v45 = vadd.f32 %v941_v33, %v399_v43 }
  0x8c   :  { %550 = vst.msk [vmem:[%s1266_s3 + $0x100] sm:$0xff] %vm517_vm1, %v438_v40 }
  0x8d   :  { %566 = vst.msk [vmem:[%s1266_s3 + $0x180] sm:$0xff] %vm517_vm1, %v478_v41 }
  0x8e   :  { %519 = vst.msk [vmem:[%s1266_s3 + $0x8] sm:$0xff] %vm517_vm1, %v360_v44 }
  0x8f   :  { %535 = vst.msk [vmem:[%s1266_s3 + $0x88] sm:$0xff] %vm517_vm1, %v400_v45 }
  0x91   :  { %v439_v46 = vpop.f32.mrf.mxu2  ;;  %v479_v47 = vpop.f32.mrf.mxu3 }
  0x92   :  { %v440_v48 = vadd.f32 %v941_v33, %v439_v46  ;;  %v480_v49 = vadd.f32 %v941_v33, %v479_v47  ;;  %v362_v50 = vpop.f32.mrf.mxu0  ;;  %v402_v51 = vpop.f32.mrf.mxu1 }
  0x93   :  { %v363_v52 = vadd.f32 %v941_v33, %v362_v50  ;;  %v403_v53 = vadd.f32 %v941_v33, %v402_v51 }
  0x94   :  { %551 = vst.msk [vmem:[%s1266_s3 + $0x108] sm:$0xff] %vm517_vm1, %v440_v48 }
  0x95   :  { %567 = vst.msk [vmem:[%s1266_s3 + $0x188] sm:$0xff] %vm517_vm1, %v480_v49 }
  0x96   :  { %520 = vst.msk [vmem:[%s1266_s3 + $0x10] sm:$0xff] %vm517_vm1, %v363_v52 }
  0x97   :  { %536 = vst.msk [vmem:[%s1266_s3 + $0x90] sm:$0xff] %vm517_vm1, %v403_v53 }
  0x99   :  { %v442_v54 = vpop.f32.mrf.mxu2  ;;  %v482_v55 = vpop.f32.mrf.mxu3 }
  0x9a   :  { %v443_v56 = vadd.f32 %v941_v33, %v442_v54  ;;  %v483_v57 = vadd.f32 %v941_v33, %v482_v55  ;;  %v364_v58 = vpop.f32.mrf.mxu0  ;;  %v404_v59 = vpop.f32.mrf.mxu1 }
  0x9b   :  { %v365_v60 = vadd.f32 %v941_v33, %v364_v58  ;;  %v405_v61 = vadd.f32 %v941_v33, %v404_v59 }
  0x9c   :  { %552 = vst.msk [vmem:[%s1266_s3 + $0x110] sm:$0xff] %vm517_vm1, %v443_v56 }
  0x9d   :  { %568 = vst.msk [vmem:[%s1266_s3 + $0x190] sm:$0xff] %vm517_vm1, %v483_v57 }
  0x9e   :  { %521 = vst.msk [vmem:[%s1266_s3 + $0x18] sm:$0xff] %vm517_vm1, %v365_v60 }
  0x9f   :  { %537 = vst.msk [vmem:[%s1266_s3 + $0x98] sm:$0xff] %vm517_vm1, %v405_v61 }
  0xa1   :  { %v444_v62 = vpop.f32.mrf.mxu2  ;;  %v484_v63 = vpop.f32.mrf.mxu3 }
  0xa2   :  { %v445_v0 = vadd.f32 %v941_v33, %v444_v62  ;;  %v485_v1 = vadd.f32 %v941_v33, %v484_v63  ;;  %v367_v2 = vpop.f32.mrf.mxu0  ;;  %v407_v3 = vpop.f32.mrf.mxu1 }
  0xa3   :  { %v368_v4 = vadd.f32 %v941_v33, %v367_v2  ;;  %v408_v5 = vadd.f32 %v941_v33, %v407_v3 }
  0xa4   :  { %553 = vst.msk [vmem:[%s1266_s3 + $0x118] sm:$0xff] %vm517_vm1, %v445_v0 }
  0xa5   :  { %569 = vst.msk [vmem:[%s1266_s3 + $0x198] sm:$0xff] %vm517_vm1, %v485_v1 }
  0xa6   :  { %522 = vst.msk [vmem:[%s1266_s3 + $0x20] sm:$0xff] %vm517_vm1, %v368_v4 }
  0xa7   :  { %538 = vst.msk [vmem:[%s1266_s3 + $0xa0] sm:$0xff] %vm517_vm1, %v408_v5 }
  0xa9   :  { %v447_v6 = vpop.f32.mrf.mxu2  ;;  %v487_v7 = vpop.f32.mrf.mxu3 }
  0xaa   :  { %v448_v8 = vadd.f32 %v941_v33, %v447_v6  ;;  %v488_v9 = vadd.f32 %v941_v33, %v487_v7  ;;  %v369_v10 = vpop.f32.mrf.mxu0  ;;  %v409_v11 = vpop.f32.mrf.mxu1 }
  0xab   :  { %v370_v12 = vadd.f32 %v941_v33, %v369_v10  ;;  %v410_v13 = vadd.f32 %v941_v33, %v409_v11 }
  0xac   :  { %554 = vst.msk [vmem:[%s1266_s3 + $0x120] sm:$0xff] %vm517_vm1, %v448_v8 }
  0xad   :  { %570 = vst.msk [vmem:[%s1266_s3 + $0x1a0] sm:$0xff] %vm517_vm1, %v488_v9 }
  0xae   :  { %523 = vst.msk [vmem:[%s1266_s3 + $0x28] sm:$0xff] %vm517_vm1, %v370_v12 }
  0xaf   :  { %539 = vst.msk [vmem:[%s1266_s3 + $0xa8] sm:$0xff] %vm517_vm1, %v410_v13 }
  0xb1   :  { %v449_v14 = vpop.f32.mrf.mxu2  ;;  %v489_v15 = vpop.f32.mrf.mxu3 }
  0xb2   :  { %v450_v16 = vadd.f32 %v941_v33, %v449_v14  ;;  %v490_v17 = vadd.f32 %v941_v33, %v489_v15  ;;  %v372_v18 = vpop.f32.mrf.mxu0  ;;  %v412_v19 = vpop.f32.mrf.mxu1 }
  0xb3   :  { %v373_v20 = vadd.f32 %v941_v33, %v372_v18  ;;  %v413_v21 = vadd.f32 %v941_v33, %v412_v19 }
  0xb4   :  { %555 = vst.msk [vmem:[%s1266_s3 + $0x128] sm:$0xff] %vm517_vm1, %v450_v16 }
  0xb5   :  { %571 = vst.msk [vmem:[%s1266_s3 + $0x1a8] sm:$0xff] %vm517_vm1, %v490_v17 }
  0xb6   :  { %524 = vst.msk [vmem:[%s1266_s3 + $0x30] sm:$0xff] %vm517_vm1, %v373_v20 }
  0xb7   :  { %540 = vst.msk [vmem:[%s1266_s3 + $0xb0] sm:$0xff] %vm517_vm1, %v413_v21 }
  0xb9   :  { %v452_v22 = vpop.f32.mrf.mxu2  ;;  %v492_v23 = vpop.f32.mrf.mxu3 }
  0xba   :  { %v453_v24 = vadd.f32 %v941_v33, %v452_v22  ;;  %v493_v25 = vadd.f32 %v941_v33, %v492_v23  ;;  %v374_v26 = vpop.f32.mrf.mxu0  ;;  %v414_v27 = vpop.f32.mrf.mxu1 }
  0xbb   :  { %v375_v28 = vadd.f32 %v941_v33, %v374_v26  ;;  %v415_v29 = vadd.f32 %v941_v33, %v414_v27 }
  0xbc   :  { %556 = vst.msk [vmem:[%s1266_s3 + $0x130] sm:$0xff] %vm517_vm1, %v453_v24 }
  0xbd   :  { %572 = vst.msk [vmem:[%s1266_s3 + $0x1b0] sm:$0xff] %vm517_vm1, %v493_v25 }
  0xbe   :  { %525 = vst.msk [vmem:[%s1266_s3 + $0x38] sm:$0xff] %vm517_vm1, %v375_v28 }
  0xbf   :  { %541 = vst.msk [vmem:[%s1266_s3 + $0xb8] sm:$0xff] %vm517_vm1, %v415_v29 }
  0xc1   :  { %v454_v30 = vpop.f32.mrf.mxu2  ;;  %v494_v31 = vpop.f32.mrf.mxu3 }
  0xc2   :  { %v455_v32 = vadd.f32 %v941_v33, %v454_v30  ;;  %v495_v34 = vadd.f32 %v941_v33, %v494_v31  ;;  %v377_v35 = vpop.f32.mrf.mxu0  ;;  %v417_v36 = vpop.f32.mrf.mxu1 }
  0xc3   :  { %v378_v37 = vadd.f32 %v941_v33, %v377_v35  ;;  %v418_v38 = vadd.f32 %v941_v33, %v417_v36 }
  0xc4   :  { %557 = vst.msk [vmem:[%s1266_s3 + $0x138] sm:$0xff] %vm517_vm1, %v455_v32 }
  0xc5   :  { %573 = vst.msk [vmem:[%s1266_s3 + $0x1b8] sm:$0xff] %vm517_vm1, %v495_v34 }
  0xc6   :  { %526 = vst.msk [vmem:[%s1266_s3 + $0x40] sm:$0xff] %vm517_vm1, %v378_v37 }
  0xc7   :  { %542 = vst.msk [vmem:[%s1266_s3 + $0xc0] sm:$0xff] %vm517_vm1, %v418_v38 }
  0xc9   :  { %v457_v39 = vpop.f32.mrf.mxu2  ;;  %v497_v40 = vpop.f32.mrf.mxu3 }
  0xca   :  { %v458_v41 = vadd.f32 %v941_v33, %v457_v39  ;;  %v498_v42 = vadd.f32 %v941_v33, %v497_v40  ;;  %v379_v43 = vpop.f32.mrf.mxu0  ;;  %v419_v44 = vpop.f32.mrf.mxu1 }
  0xcb   :  { %v380_v45 = vadd.f32 %v941_v33, %v379_v43  ;;  %v420_v46 = vadd.f32 %v941_v33, %v419_v44 }
  0xcc   :  { %558 = vst.msk [vmem:[%s1266_s3 + $0x140] sm:$0xff] %vm517_vm1, %v458_v41 }
  0xcd   :  { %574 = vst.msk [vmem:[%s1266_s3 + $0x1c0] sm:$0xff] %vm517_vm1, %v498_v42 }
  0xce   :  { %527 = vst.msk [vmem:[%s1266_s3 + $0x48] sm:$0xff] %vm517_vm1, %v380_v45 }
  0xcf   :  { %543 = vst.msk [vmem:[%s1266_s3 + $0xc8] sm:$0xff] %vm517_vm1, %v420_v46 }
  0xd1   :  { %v459_v47 = vpop.f32.mrf.mxu2  ;;  %v499_v48 = vpop.f32.mrf.mxu3 }
  0xd2   :  { %v460_v49 = vadd.f32 %v941_v33, %v459_v47  ;;  %v500_v50 = vadd.f32 %v941_v33, %v499_v48  ;;  %v382_v51 = vpop.f32.mrf.mxu0  ;;  %v422_v52 = vpop.f32.mrf.mxu1 }
  0xd3   :  { %v383_v53 = vadd.f32 %v941_v33, %v382_v51  ;;  %v423_v54 = vadd.f32 %v941_v33, %v422_v52 }
  0xd4   :  { %559 = vst.msk [vmem:[%s1266_s3 + $0x148] sm:$0xff] %vm517_vm1, %v460_v49 }
  0xd5   :  { %575 = vst.msk [vmem:[%s1266_s3 + $0x1c8] sm:$0xff] %vm517_vm1, %v500_v50 }
  0xd6   :  { %528 = vst.msk [vmem:[%s1266_s3 + $0x50] sm:$0xff] %vm517_vm1, %v383_v53 }
  0xd7   :  { %544 = vst.msk [vmem:[%s1266_s3 + $0xd0] sm:$0xff] %vm517_vm1, %v423_v54 }
  0xd9   :  { %v462_v55 = vpop.f32.mrf.mxu2  ;;  %v502_v56 = vpop.f32.mrf.mxu3 }
  0xda   :  { %v463_v57 = vadd.f32 %v941_v33, %v462_v55  ;;  %v503_v58 = vadd.f32 %v941_v33, %v502_v56  ;;  %v384_v59 = vpop.f32.mrf.mxu0  ;;  %v424_v60 = vpop.f32.mrf.mxu1 }
  0xdb   :  { %v385_v61 = vadd.f32 %v941_v33, %v384_v59  ;;  %v425_v62 = vadd.f32 %v941_v33, %v424_v60 }
  0xdc   :  { %560 = vst.msk [vmem:[%s1266_s3 + $0x150] sm:$0xff] %vm517_vm1, %v463_v57 }
  0xdd   :  { %576 = vst.msk [vmem:[%s1266_s3 + $0x1d0] sm:$0xff] %vm517_vm1, %v503_v58 }
  0xde   :  { %529 = vst.msk [vmem:[%s1266_s3 + $0x58] sm:$0xff] %vm517_vm1, %v385_v61 }
  0xdf   :  { %545 = vst.msk [vmem:[%s1266_s3 + $0xd8] sm:$0xff] %vm517_vm1, %v425_v62 }
  0xe1   :  { %v464_v63 = vpop.f32.mrf.mxu2  ;;  %v504_v0 = vpop.f32.mrf.mxu3 }
  0xe2   :  { %v465_v1 = vadd.f32 %v941_v33, %v464_v63  ;;  %v505_v2 = vadd.f32 %v941_v33, %v504_v0  ;;  %v387_v3 = vpop.f32.mrf.mxu0  ;;  %v427_v4 = vpop.f32.mrf.mxu1 }
  0xe3   :  { %v388_v5 = vadd.f32 %v941_v33, %v387_v3  ;;  %v428_v6 = vadd.f32 %v941_v33, %v427_v4 }
  0xe4   :  { %561 = vst.msk [vmem:[%s1266_s3 + $0x158] sm:$0xff] %vm517_vm1, %v465_v1 }
  0xe5   :  { %577 = vst.msk [vmem:[%s1266_s3 + $0x1d8] sm:$0xff] %vm517_vm1, %v505_v2 }
  0xe6   :  { %530 = vst.msk [vmem:[%s1266_s3 + $0x60] sm:$0xff] %vm517_vm1, %v388_v5 }
  0xe7   :  { %546 = vst.msk [vmem:[%s1266_s3 + $0xe0] sm:$0xff] %vm517_vm1, %v428_v6 }
  0xe9   :  { %v467_v7 = vpop.f32.mrf.mxu2  ;;  %v507_v8 = vpop.f32.mrf.mxu3 }
  0xea   :  { %v468_v9 = vadd.f32 %v941_v33, %v467_v7  ;;  %v508_v10 = vadd.f32 %v941_v33, %v507_v8  ;;  %v389_v11 = vpop.f32.mrf.mxu0  ;;  %v429_v12 = vpop.f32.mrf.mxu1 }
  0xeb   :  { %v390_v13 = vadd.f32 %v941_v33, %v389_v11  ;;  %v430_v14 = vadd.f32 %v941_v33, %v429_v12 }
  0xec   :  { %562 = vst.msk [vmem:[%s1266_s3 + $0x160] sm:$0xff] %vm517_vm1, %v468_v9 }
  0xed   :  { %578 = vst.msk [vmem:[%s1266_s3 + $0x1e0] sm:$0xff] %vm517_vm1, %v508_v10 }
  0xee   :  { %531 = vst.msk [vmem:[%s1266_s3 + $0x68] sm:$0xff] %vm517_vm1, %v390_v13 }
  0xef   :  { %547 = vst.msk [vmem:[%s1266_s3 + $0xe8] sm:$0xff] %vm517_vm1, %v430_v14 }
  0xf1   :  { %v469_v15 = vpop.f32.mrf.mxu2  ;;  %v509_v16 = vpop.f32.mrf.mxu3 }
  0xf2   :  { %v470_v17 = vadd.f32 %v941_v33, %v469_v15  ;;  %v510_v18 = vadd.f32 %v941_v33, %v509_v16  ;;  %v392_v19 = vpop.f32.mrf.mxu0  ;;  %v432_v20 = vpop.f32.mrf.mxu1 }
  0xf3   :  { %v393_v21 = vadd.f32 %v941_v33, %v392_v19  ;;  %v433_v22 = vadd.f32 %v941_v33, %v432_v20 }
  0xf4   :  { %563 = vst.msk [vmem:[%s1266_s3 + $0x168] sm:$0xff] %vm517_vm1, %v470_v17 }
  0xf5   :  { %579 = vst.msk [vmem:[%s1266_s3 + $0x1e8] sm:$0xff] %vm517_vm1, %v510_v18 }
  0xf6   :  { %532 = vst.msk [vmem:[%s1266_s3 + $0x70] sm:$0xff] %vm517_vm1, %v393_v21 }
  0xf7   :  { %548 = vst.msk [vmem:[%s1266_s3 + $0xf0] sm:$0xff] %vm517_vm1, %v433_v22 }
  0xf9   :  { %v472_v23 = vpop.f32.mrf.mxu2  ;;  %v512_v24 = vpop.f32.mrf.mxu3 }
  0xfa   :  { %v473_v25 = vadd.f32 %v941_v33, %v472_v23  ;;  %v513_v26 = vadd.f32 %v941_v33, %v512_v24  ;;  %v394_v27 = vpop.f32.mrf.mxu0  ;;  %v434_v28 = vpop.f32.mrf.mxu1 }
  0xfb   :  { %v395_v29 = vadd.f32 %v941_v33, %v394_v27  ;;  %v435_v30 = vadd.f32 %v941_v33, %v434_v28 }
  0xfc   :  { %564 = vst.msk [vmem:[%s1266_s3 + $0x170] sm:$0xff] %vm517_vm1, %v473_v25 }
  0xfd   :  { %580 = vst.msk [vmem:[%s1266_s3 + $0x1f0] sm:$0xff] %vm517_vm1, %v513_v26 }
  0xfe   :  { %533 = vst.msk [vmem:[%s1266_s3 + $0x78] sm:$0xff] %vm517_vm1, %v395_v29 }
  0xff   :  { %549 = vst.msk [vmem:[%s1266_s3 + $0xf8] sm:$0xff] %vm517_vm1, %v435_v30 }
 0x101   :  { %v474_v31 = vpop.f32.mrf.mxu2  ;;  %v514_v32 = vpop.f32.mrf.mxu3 }
 0x102   :  { %v475_v34 = vadd.f32 %v941_v33, %v474_v31  ;;  %v515_v35 = vadd.f32 %v941_v33, %v514_v32 }
 0x104   :  { %565 = vst.msk [vmem:[%s1266_s3 + $0x178] sm:$0xff] %vm517_vm1, %v475_v34 }
 0x105   :  { %581 = vst.msk [vmem:[%s1266_s3 + $0x1f8] sm:$0xff] %vm517_vm1, %v515_v35 }

</bundles_post_ra>
